<compile_context>
chip_gen: v7x
topology: tpu7x:2x2x1
jax: 0.10.0
libtpu: 0.0.40
codegen_flags: <defaults>
</compile_context>

<pallas_src>
import functools

import jax
import jax.numpy as jnp
from jax import lax
from jax.experimental import pallas as pl
from jax.experimental.pallas import tpu as pltpu

DIM = 2
HID = 512


def escape_mlp_kernel(xt_ref, w1_ref, aux_ref, w2_ref, w3_ref, b4_ref, o_ref,
                      *, chunk):
    # xt_ref : (DIM, TM)  f32   input tile, batch along lanes (lane-dense)
    # w1_ref : (HID, DIM) f32   layer-1 weight, PyTorch [out, in] layout
    # aux_ref: (HID, 4)   f32   columns = [b1, b2, b3, w4^T]
    # w2_ref : (HID, HID) bf16  layer-2 weight, [out, in]
    # w3_ref : (HID, HID) bf16  layer-3 weight, [out, in]
    # b4_ref : (1, 1)     f32
    # o_ref  : (1, TM)    f32   lane-dense output tile
    tile_m = o_ref.shape[-1]
    num_chunks = tile_m // chunk

    # Hoisted once per kernel invocation: JAX does not CSE these slices /
    # broadcasts across the unrolled chunk loop.
    w1 = w1_ref[...]
    aux = aux_ref[...]
    w1a = w1[:, 0:1]
    w1b = w1[:, 1:2]
    b1 = aux[:, 0:1]
    b2 = aux[:, 1:2]
    b3 = aux[:, 2:3]
    w4 = aux[:, 3:4]
    w2 = w2_ref[...]
    w3 = w3_ref[...]
    b4 = b4_ref[...]

    def body(j, carry):
        start = pl.multiple_of(j * chunk, chunk)
        xt = xt_ref[:, pl.ds(start, chunk)]

        # Layer 1 (K=2): VPU outer product (skip a degenerate MXU matmul).
        # Leaky-ReLU = maximum(x, 0.01x) fused with the bf16 cast; Dropout is
        # identity in eval mode.
        h = w1a * xt[0:1, :] + w1b * xt[1:2, :] + b1
        h = jnp.maximum(h, 0.01 * h).astype(jnp.bfloat16)

        # Layer 2: (HID,HID) @ (HID,chunk) on the MXU; f32 accumulation.
        h = jnp.dot(w2, h, preferred_element_type=jnp.float32) + b2
        h = jnp.maximum(h, 0.01 * h).astype(jnp.bfloat16)

        # Layer 3.
        h = jnp.dot(w3, h, preferred_element_type=jnp.float32) + b3
        h = jnp.maximum(h, 0.01 * h)

        # Layer 4 (single output unit): VPU multiply + sublane reduce -> lane-
        # dense (1, chunk) slab, stored unmasked.
        y = jnp.sum(w4 * h, axis=0, keepdims=True) + b4
        o_ref[:, pl.ds(start, chunk)] = jax.nn.sigmoid(y)
        return carry

    # Statically unrolled so the LLO scheduler can fill the MXU slot of one
    # chunk with the VPU work of its neighbors.
    lax.fori_loop(0, num_chunks, body, 0, unroll=True)
    # NOTE: resident weight BlockSpecs could use pipeline_mode=pl.Buffered(1)
    # to drop their second buffer (~1-1.5 MiB saving on v7x); left at the
    # default double-buffering for maximum lowering compatibility.


def _default_tile_m(n):
    # Keep >= 2 grid steps when possible (shards across v7x's 2 TensorCores)
    # while amortizing the ~0.35us per-step overhead for large batches.
    # Always a multiple of 256 (MXU width on v6e/v7x, 2x width on v5e).
    if n <= 1024:
        return 512
    half = -(-n // 2)                    # ceil(n / 2)
    tm = -(-half // 256) * 256           # round up to a multiple of 256
    return max(512, min(2048, tm))


def prepare_params(params):
    """One-time conversion of PyTorch-layout params to kernel-ready form.

    Keeps the per-call forward free of weight casts / concatenations.
    """
    aux = jnp.stack(
        [params["b1"].reshape(HID),
         params["b2"].reshape(HID),
         params["b3"].reshape(HID),
         params["w4"].reshape(HID)],
        axis=1).astype(jnp.float32)                       # (HID, 4)
    return dict(
        w1=params["w1"].astype(jnp.float32),              # (HID, DIM)
        w2=params["w2"].astype(jnp.bfloat16),             # (HID, HID)
        w3=params["w3"].astype(jnp.bfloat16),             # (HID, HID)
        aux=aux,
        b4=params["b4"].reshape(1, 1).astype(jnp.float32),
    )


@functools.partial(jax.jit, static_argnames=("tile_m", "chunk"))
def escape_model_2d(x, kparams, tile_m=None, chunk=256):
    """x: [N, 2] float32. kparams: output of prepare_params(). Returns [N, 1]."""
    n = x.shape[0]
    if tile_m is None:
        tile_m = _default_tile_m(n)
    assert tile_m % 128 == 0 and chunk % 128 == 0 and tile_m % chunk == 0

    num_tiles = (n + tile_m - 1) // tile_m
    n_pad = num_tiles * tile_m

    w1 = kparams["w1"]
    w2 = kparams["w2"]
    w3 = kparams["w3"]
    aux = kparams["aux"]
    b4 = kparams["b4"]

    # Pad the batch to a tile multiple and go feature-major (batch on lanes).
    x_pad = jnp.pad(x.astype(jnp.float32), ((0, n_pad - n), (0, 0)))
    xt = x_pad.T                                          # (DIM, n_pad)

    def resident(shape):
        # Whole-array block, same block index every grid step (kept resident).
        return pl.BlockSpec(shape, lambda i: (0,) * len(shape))

    flops = 2 * n_pad * (DIM * HID + 2 * HID * HID + HID)
    bytes_accessed = (
        n_pad * DIM * 4 + n_pad * 4                       # input + output
        + int(w1.size) * 4 + int(aux.size) * 4 + 4
        + int(w2.size) * 2 + int(w3.size) * 2)            # bf16 weights

    cp_kwargs = dict(dimension_semantics=("parallel",))
    if tile_m > 512:
        # Intermediates are per-chunk, but many unrolled chunks can be live at
        # once for overlap; raise v5e's 16 MiB scoped default (32 MiB also
        # fits inside v7x's 64 MiB physical VMEM).
        cp_kwargs["vmem_limit_bytes"] = 32 * 1024 * 1024

    out = pl.pallas_call(
        functools.partial(escape_mlp_kernel, chunk=chunk),
        out_shape=jax.ShapeDtypeStruct((1, n_pad), jnp.float32),
        grid_spec=pltpu.PrefetchScalarGridSpec(
            num_scalar_prefetch=0,
            grid=(num_tiles,),
            in_specs=[
                pl.BlockSpec((DIM, tile_m), lambda i: (0, i)),   # x^T tile
                resident(w1.shape),
                resident(aux.shape),
                resident(w2.shape),
                resident(w3.shape),
                resident(b4.shape),
            ],
            out_specs=pl.BlockSpec((1, tile_m), lambda i: (0, i)),
        ),
        compiler_params=pltpu.CompilerParams(**cp_kwargs),
        cost_estimate=pl.CostEstimate(
            flops=flops,
            transcendentals=n_pad,
            bytes_accessed=bytes_accessed,
        ),
    )(xt, w1, aux, w2, w3, b4)

    return out[0, :n].reshape(n, 1)


def init_params(key):
    """PyTorch Linear default init, U(-1/sqrt(fan_in), 1/sqrt(fan_in)), [out, in]."""
    keys = jax.random.split(key, 8)

    def linear(kw, kb, fan_in, fan_out):
        bound = 1.0 / jnp.sqrt(jnp.float32(fan_in))
        w = jax.random.uniform(kw, (fan_out, fan_in), jnp.float32, -bound, bound)
        b = jax.random.uniform(kb, (fan_out,), jnp.float32, -bound, bound)
        return w, b

    w1, b1 = linear(keys[0], keys[1], DIM, HID)
    w2, b2 = linear(keys[2], keys[3], HID, HID)
    w3, b3 = linear(keys[4], keys[5], HID, HID)
    w4, b4 = linear(keys[6], keys[7], HID, 1)
    return dict(w1=w1, b1=b1, w2=w2, b2=b2, w3=w3, b3=b3, w4=w4, b4=b4)


def _leaky_relu(x, slope=0.01):
    return jnp.where(x >= 0, x, slope * x)


def reference_forward_f32(x, p):
    """Pure f32 reference (PyTorch semantics, eval-mode dropout)."""
    h = _leaky_relu(x @ p["w1"].T + p["b1"])
    h = _leaky_relu(h @ p["w2"].T + p["b2"])
    h = _leaky_relu(h @ p["w3"].T + p["b3"])
    return jax.nn.sigmoid(h @ p["w4"].T + p["b4"])


def reference_forward_mixed(x, p):
    """Reference mirroring the kernel's bf16-at-MXU / f32-accumulate math."""
    bf16, f32 = jnp.bfloat16, jnp.float32
    h = _leaky_relu(x @ p["w1"].T + p["b1"])
    h = _leaky_relu(jnp.dot(h.astype(bf16), p["w2"].T.astype(bf16),
                            preferred_element_type=f32) + p["b2"])
    h = _leaky_relu(jnp.dot(h.astype(bf16), p["w3"].T.astype(bf16),
                            preferred_element_type=f32) + p["b3"])
    return jax.nn.sigmoid(h @ p["w4"].T + p["b4"])


if __name__ == "__main__":
    key = jax.random.PRNGKey(0)
    k_params, k_x = jax.random.split(key)
    params = init_params(k_params)
    kparams = prepare_params(params)       # one-time, outside the jitted path

    # Small batch, NOT a multiple of tile_m -> exercises the padded tail and
    # a 2-step grid (both v7x TensorCores get work).
    N = 600
    x = jax.random.normal(k_x, (N, DIM), jnp.float32)

    out = escape_model_2d(x, kparams)       # default tile_m=512, chunk=256
    out = jax.block_until_ready(out)
    assert out.shape == (N, 1)

    ref_mixed = reference_forward_mixed(x, params)
    ref_f32 = reference_forward_f32(x, params)
    assert jnp.allclose(out, ref_mixed, atol=2e-3, rtol=2e-3), (
        "mismatch vs bf16-matmul reference: max |diff| = "
        f"{jnp.max(jnp.abs(out - ref_mixed))}")
    assert jnp.allclose(out, ref_f32, atol=5e-2, rtol=5e-2), (
        "mismatch vs f32 reference: max |diff| = "
        f"{jnp.max(jnp.abs(out - ref_f32))}")

    print("KERNEL_OK")
</pallas_src>

<mosaic_0001>
module attributes {stable_mosaic.version = 11 : i64} {
  func.func @escape_mlp_kernel(%arg0: i32, %arg1: memref<2x512xf32, #tpu.memory_space<vmem>>, %arg2: memref<512x2xf32, #tpu.memory_space<vmem>>, %arg3: memref<512x4xf32, #tpu.memory_space<vmem>>, %arg4: memref<512x512xbf16, #tpu.memory_space<vmem>>, %arg5: memref<512x512xbf16, #tpu.memory_space<vmem>>, %arg6: memref<1x1xf32, #tpu.memory_space<vmem>>, %arg7: memref<1x512xf32, #tpu.memory_space<vmem>>) attributes {dimension_semantics = [#tpu.dimension_semantics<parallel>], iteration_bounds = array<i64: 2>, scalar_prefetch = 0 : i64, scratch_operands = 0 : i64, tpu.core_type = #tpu.core_type<tc>, window_params = [{transform_indices = @transform_0, window_bounds = array<i64: 2, 512>}, {pipeline_mode = #tpu.pipeline_mode<synchronous>, transform_indices = @transform_1, window_bounds = array<i64: 512, 2>}, {pipeline_mode = #tpu.pipeline_mode<synchronous>, transform_indices = @transform_2, window_bounds = array<i64: 512, 4>}, {pipeline_mode = #tpu.pipeline_mode<synchronous>, transform_indices = @transform_3, window_bounds = array<i64: 512, 512>}, {pipeline_mode = #tpu.pipeline_mode<synchronous>, transform_indices = @transform_4, window_bounds = array<i64: 512, 512>}, {pipeline_mode = #tpu.pipeline_mode<synchronous>, transform_indices = @transform_5, window_bounds = array<i64: 1, 1>}, {transform_indices = @transform_6, window_bounds = array<i64: 1, 512>}]} {
    %c0 = arith.constant 0 : index
    %c0_0 = arith.constant 0 : index
    %0 = vector.load %arg2[%c0, %c0_0] : memref<512x2xf32, #tpu.memory_space<vmem>>, vector<512x2xf32>
    %c0_1 = arith.constant 0 : index
    %c0_2 = arith.constant 0 : index
    %1 = vector.load %arg3[%c0_1, %c0_2] : memref<512x4xf32, #tpu.memory_space<vmem>>, vector<512x4xf32>
    %2 = vector.extract_strided_slice %0 {offsets = [0, 0], sizes = [512, 1], strides = [1, 1]} : vector<512x2xf32> to vector<512x1xf32>
    %3 = vector.extract_strided_slice %0 {offsets = [0, 1], sizes = [512, 1], strides = [1, 1]} : vector<512x2xf32> to vector<512x1xf32>
    %4 = vector.extract_strided_slice %1 {offsets = [0, 0], sizes = [512, 1], strides = [1, 1]} : vector<512x4xf32> to vector<512x1xf32>
    %5 = vector.extract_strided_slice %1 {offsets = [0, 1], sizes = [512, 1], strides = [1, 1]} : vector<512x4xf32> to vector<512x1xf32>
    %6 = vector.extract_strided_slice %1 {offsets = [0, 2], sizes = [512, 1], strides = [1, 1]} : vector<512x4xf32> to vector<512x1xf32>
    %7 = vector.extract_strided_slice %1 {offsets = [0, 3], sizes = [512, 1], strides = [1, 1]} : vector<512x4xf32> to vector<512x1xf32>
    %c0_3 = arith.constant 0 : index
    %c0_4 = arith.constant 0 : index
    %8 = vector.load %arg4[%c0_3, %c0_4] : memref<512x512xbf16, #tpu.memory_space<vmem>>, vector<512x512xbf16>
    %c0_5 = arith.constant 0 : index
    %c0_6 = arith.constant 0 : index
    %9 = vector.load %arg5[%c0_5, %c0_6] : memref<512x512xbf16, #tpu.memory_space<vmem>>, vector<512x512xbf16>
    %c0_7 = arith.constant 0 : index
    %c0_8 = arith.constant 0 : index
    %10 = vector.load %arg6[%c0_7, %c0_8] : memref<1x1xf32, #tpu.memory_space<vmem>>, vector<1x1xf32>
    %c0_i32 = arith.constant 0 : i32
    %c256_i32 = arith.constant 256 : i32
    %11 = arith.muli %c0_i32, %c256_i32 : i32
    %12 = tpu.assume_multiple %11, 256 : i32
    %c0_9 = arith.constant 0 : index
    %13 = arith.index_cast %12 : i32 to index
    %14 = vector.load %arg1[%c0_9, %13] : memref<2x512xf32, #tpu.memory_space<vmem>>, vector<2x256xf32>
    %15 = vector.extract_strided_slice %14 {offsets = [0, 0], sizes = [1, 256], strides = [1, 1]} : vector<2x256xf32> to vector<1x256xf32>
    %16 = vector.broadcast %2 : vector<512x1xf32> to vector<512x256xf32>
    %17 = vector.broadcast %15 : vector<1x256xf32> to vector<512x256xf32>
    %18 = arith.mulf %16, %17 : vector<512x256xf32>
    %19 = vector.extract_strided_slice %14 {offsets = [1, 0], sizes = [1, 256], strides = [1, 1]} : vector<2x256xf32> to vector<1x256xf32>
    %20 = vector.broadcast %3 : vector<512x1xf32> to vector<512x256xf32>
    %21 = vector.broadcast %19 : vector<1x256xf32> to vector<512x256xf32>
    %22 = arith.mulf %20, %21 : vector<512x256xf32>
    %23 = arith.addf %18, %22 : vector<512x256xf32>
    %24 = vector.broadcast %4 : vector<512x1xf32> to vector<512x256xf32>
    %25 = arith.addf %23, %24 : vector<512x256xf32>
    %cst = arith.constant 0.00999999977 : f32
    %26 = vector.broadcast %cst : f32 to vector<512x256xf32>
    %27 = arith.mulf %26, %25 : vector<512x256xf32>
    %28 = arith.maximumf %25, %27 : vector<512x256xf32>
    %29 = arith.truncf %28 : vector<512x256xf32> to vector<512x256xbf16>
    %cst_10 = arith.constant dense<0.000000e+00> : vector<512x256xf32>
    %30 = tpu.matmul %8, %29, %cst_10 {dimension_numbers = #tpu.dot_dimension_numbers<[1], [0], [0], [1], [0, 0, 1, 1], [], []>} : vector<512x512xbf16>, vector<512x256xbf16>, vector<512x256xf32> -> vector<512x256xf32>
    %31 = vector.broadcast %5 : vector<512x1xf32> to vector<512x256xf32>
    %32 = arith.addf %30, %31 : vector<512x256xf32>
    %cst_11 = arith.constant 0.00999999977 : f32
    %33 = vector.broadcast %cst_11 : f32 to vector<512x256xf32>
    %34 = arith.mulf %33, %32 : vector<512x256xf32>
    %35 = arith.maximumf %32, %34 : vector<512x256xf32>
    %36 = arith.truncf %35 : vector<512x256xf32> to vector<512x256xbf16>
    %cst_12 = arith.constant dense<0.000000e+00> : vector<512x256xf32>
    %37 = tpu.matmul %9, %36, %cst_12 {dimension_numbers = #tpu.dot_dimension_numbers<[1], [0], [0], [1], [0, 0, 1, 1], [], []>} : vector<512x512xbf16>, vector<512x256xbf16>, vector<512x256xf32> -> vector<512x256xf32>
    %38 = vector.broadcast %6 : vector<512x1xf32> to vector<512x256xf32>
    %39 = arith.addf %37, %38 : vector<512x256xf32>
    %cst_13 = arith.constant 0.00999999977 : f32
    %40 = vector.broadcast %cst_13 : f32 to vector<512x256xf32>
    %41 = arith.mulf %40, %39 : vector<512x256xf32>
    %42 = arith.maximumf %39, %41 : vector<512x256xf32>
    %43 = vector.broadcast %7 : vector<512x1xf32> to vector<512x256xf32>
    %44 = arith.mulf %43, %42 : vector<512x256xf32>
    %cst_14 = arith.constant dense<0.000000e+00> : vector<256xf32>
    %45 = vector.multi_reduction <add>, %44, %cst_14 [0] : vector<512x256xf32> to vector<256xf32>
    %46 = vector.shape_cast %45 : vector<256xf32> to vector<1x256xf32>
    %47 = vector.broadcast %10 : vector<1x1xf32> to vector<1x256xf32>
    %48 = arith.addf %46, %47 : vector<1x256xf32>
    %49 = arith.negf %48 : vector<1x256xf32>
    %50 = math.exp %49 : vector<1x256xf32>
    %cst_15 = arith.constant 1.000000e+00 : f32
    %51 = vector.broadcast %cst_15 : f32 to vector<1x256xf32>
    %52 = arith.addf %51, %50 : vector<1x256xf32>
    %53 = arith.divf %51, %52 : vector<1x256xf32>
    %c0_16 = arith.constant 0 : index
    %54 = arith.index_cast %12 : i32 to index
    %55 = vector.load %arg7[%c0_16, %54] : memref<1x512xf32, #tpu.memory_space<vmem>>, vector<1x256xf32>
    tpu.vector_store %arg7[%c0_16, %54], %53 {strides = array<i32>} : memref<1x512xf32, #tpu.memory_space<vmem>>, vector<1x256xf32>,
    %c1_i32 = arith.constant 1 : i32
    %c256_i32_17 = arith.constant 256 : i32
    %56 = arith.muli %c1_i32, %c256_i32_17 : i32
    %57 = tpu.assume_multiple %56, 256 : i32
    %c0_18 = arith.constant 0 : index
    %58 = arith.index_cast %57 : i32 to index
    %59 = vector.load %arg1[%c0_18, %58] : memref<2x512xf32, #tpu.memory_space<vmem>>, vector<2x256xf32>
    %60 = vector.extract_strided_slice %59 {offsets = [0, 0], sizes = [1, 256], strides = [1, 1]} : vector<2x256xf32> to vector<1x256xf32>
    %61 = vector.broadcast %2 : vector<512x1xf32> to vector<512x256xf32>
    %62 = vector.broadcast %60 : vector<1x256xf32> to vector<512x256xf32>
    %63 = arith.mulf %61, %62 : vector<512x256xf32>
    %64 = vector.extract_strided_slice %59 {offsets = [1, 0], sizes = [1, 256], strides = [1, 1]} : vector<2x256xf32> to vector<1x256xf32>
    %65 = vector.broadcast %3 : vector<512x1xf32> to vector<512x256xf32>
    %66 = vector.broadcast %64 : vector<1x256xf32> to vector<512x256xf32>
    %67 = arith.mulf %65, %66 : vector<512x256xf32>
    %68 = arith.addf %63, %67 : vector<512x256xf32>
    %69 = vector.broadcast %4 : vector<512x1xf32> to vector<512x256xf32>
    %70 = arith.addf %68, %69 : vector<512x256xf32>
    %cst_19 = arith.constant 0.00999999977 : f32
    %71 = vector.broadcast %cst_19 : f32 to vector<512x256xf32>
    %72 = arith.mulf %71, %70 : vector<512x256xf32>
    %73 = arith.maximumf %70, %72 : vector<512x256xf32>
    %74 = arith.truncf %73 : vector<512x256xf32> to vector<512x256xbf16>
    %cst_20 = arith.constant dense<0.000000e+00> : vector<512x256xf32>
    %75 = tpu.matmul %8, %74, %cst_20 {dimension_numbers = #tpu.dot_dimension_numbers<[1], [0], [0], [1], [0, 0, 1, 1], [], []>} : vector<512x512xbf16>, vector<512x256xbf16>, vector<512x256xf32> -> vector<512x256xf32>
    %76 = vector.broadcast %5 : vector<512x1xf32> to vector<512x256xf32>
    %77 = arith.addf %75, %76 : vector<512x256xf32>
    %cst_21 = arith.constant 0.00999999977 : f32
    %78 = vector.broadcast %cst_21 : f32 to vector<512x256xf32>
    %79 = arith.mulf %78, %77 : vector<512x256xf32>
    %80 = arith.maximumf %77, %79 : vector<512x256xf32>
    %81 = arith.truncf %80 : vector<512x256xf32> to vector<512x256xbf16>
    %cst_22 = arith.constant dense<0.000000e+00> : vector<512x256xf32>
    %82 = tpu.matmul %9, %81, %cst_22 {dimension_numbers = #tpu.dot_dimension_numbers<[1], [0], [0], [1], [0, 0, 1, 1], [], []>} : vector<512x512xbf16>, vector<512x256xbf16>, vector<512x256xf32> -> vector<512x256xf32>
    %83 = vector.broadcast %6 : vector<512x1xf32> to vector<512x256xf32>
    %84 = arith.addf %82, %83 : vector<512x256xf32>
    %cst_23 = arith.constant 0.00999999977 : f32
    %85 = vector.broadcast %cst_23 : f32 to vector<512x256xf32>
    %86 = arith.mulf %85, %84 : vector<512x256xf32>
    %87 = arith.maximumf %84, %86 : vector<512x256xf32>
    %88 = vector.broadcast %7 : vector<512x1xf32> to vector<512x256xf32>
    %89 = arith.mulf %88, %87 : vector<512x256xf32>
    %cst_24 = arith.constant dense<0.000000e+00> : vector<256xf32>
    %90 = vector.multi_reduction <add>, %89, %cst_24 [0] : vector<512x256xf32> to vector<256xf32>
    %91 = vector.shape_cast %90 : vector<256xf32> to vector<1x256xf32>
    %92 = vector.broadcast %10 : vector<1x1xf32> to vector<1x256xf32>
    %93 = arith.addf %91, %92 : vector<1x256xf32>
    %94 = arith.negf %93 : vector<1x256xf32>
    %95 = math.exp %94 : vector<1x256xf32>
    %cst_25 = arith.constant 1.000000e+00 : f32
    %96 = vector.broadcast %cst_25 : f32 to vector<1x256xf32>
    %97 = arith.addf %96, %95 : vector<1x256xf32>
    %98 = arith.divf %96, %97 : vector<1x256xf32>
    %c0_26 = arith.constant 0 : index
    %99 = arith.index_cast %57 : i32 to index
    %100 = vector.load %arg7[%c0_26, %99] : memref<1x512xf32, #tpu.memory_space<vmem>>, vector<1x256xf32>
    tpu.vector_store %arg7[%c0_26, %99], %98 {strides = array<i32>} : memref<1x512xf32, #tpu.memory_space<vmem>>, vector<1x256xf32>,
    %c2_i32 = arith.constant 2 : i32
    return
  }
  func.func @transform_0(%arg0: i32) -> (i32, i32) {
    %c0_i32 = arith.constant 0 : i32
    %c0_i32_0 = arith.constant 0 : i32
    return %c0_i32, %arg0 : i32, i32
  }
  func.func @transform_1(%arg0: i32) -> (i32, i32) {
    %c0_i32 = arith.constant 0 : i32
    %c0_i32_0 = arith.constant 0 : i32
    %c0_i32_1 = arith.constant 0 : i32
    return %c0_i32, %c0_i32_0 : i32, i32
  }
  func.func @transform_2(%arg0: i32) -> (i32, i32) {
    %c0_i32 = arith.constant 0 : i32
    %c0_i32_0 = arith.constant 0 : i32
    %c0_i32_1 = arith.constant 0 : i32
    return %c0_i32, %c0_i32_0 : i32, i32
  }
  func.func @transform_3(%arg0: i32) -> (i32, i32) {
    %c0_i32 = arith.constant 0 : i32
    %c0_i32_0 = arith.constant 0 : i32
    %c0_i32_1 = arith.constant 0 : i32
    return %c0_i32, %c0_i32_0 : i32, i32
  }
  func.func @transform_4(%arg0: i32) -> (i32, i32) {
    %c0_i32 = arith.constant 0 : i32
    %c0_i32_0 = arith.constant 0 : i32
    %c0_i32_1 = arith.constant 0 : i32
    return %c0_i32, %c0_i32_0 : i32, i32
  }
  func.func @transform_5(%arg0: i32) -> (i32, i32) {
    %c0_i32 = arith.constant 0 : i32
    %c0_i32_0 = arith.constant 0 : i32
    %c0_i32_1 = arith.constant 0 : i32
    return %c0_i32, %c0_i32_0 : i32, i32
  }
  func.func @transform_6(%arg0: i32) -> (i32, i32) {
    %c0_i32 = arith.constant 0 : i32
    %c0_i32_0 = arith.constant 0 : i32
    return %c0_i32, %arg0 : i32, i32
  }
}

</mosaic_0001>

<bundles_post_ra>
// kernel: escape_model_2d.1
= control target key start
LH: loop header
LB: loop body
LE: loop exit
PB: predicated region body
PF: predicated region fallthrough
CT: control target
= control target key end

     0   :  { %s18353_s0 = inlined_call_operand.vmem [shape: f32[2,1024], index: 0, kind: input, shape index: {}]   ;;  %s18354_s1 = inlined_call_operand.vmem [shape: f32[512,2], index: 1, kind: input, shape index: {}]   ;;  %s18355_s2 = inlined_call_operand.vmem [shape: f32[512,4], index: 2, kind: input, shape index: {}]   ;;  %s18356_s3 = inlined_call_operand.vmem [shape: bf16[512,512], index: 3, kind: input, shape index: {}]   ;;  %s18357_s4 = inlined_call_operand.hbm [shape: bf16[512,512], index: 4, kind: input, shape index: {}]   ;;  %s18358_s5 = inlined_call_operand.<no memory space> [shape: f32[1,1], index: 5, kind: input, shape index: {}]   ;;  %s18359_s6 = inlined_call_operand.vmem [shape: f32[1,1024], index: 6, kind: output, shape index: {}]  }
   0x1   :  { %v11_v0 = vstv %s18358_s5 }
   0x2   :  { %12 = vst [vmem:[#allocation2] sm:$0x1] %v11_v0 }
   0x3   :  { %13 = vsyncpa [#allocation4], 0  ;;  %s12260_s23 = smov 0  }
   0x4 LB: > { %s9990_s24 = sadd.s32 4294967295, %s12212_s23   ;;  %p9992_p0 = scmp.ge.s32.totalorder %s12212_s23, 1  ;;  %s12212_s23 = sphi %s12260_s23, %s19_s23  }
   0x5   : > { %p181_p1 = scmp.lt.s32.totalorder %s12212_s23, 3  ;;  %s12214_s25 = smov [#allocation3]  }
   0x6   : > { %s202_s26 = sshll.u32 %s12214_s25, 4  ;;  %p12274_p3 = scmp.eq.s32.totalorder %s9990_s24, 0  ;;  %s203_s26 = int_to_ptr.vmem [resolvable:$true] %s202_s26 }
   0x7   : > { %p12268_p2 = pnand %p9992_p0, %p181_p1  ;;  %s12174_s7 = scalar_lea.hbm %s18357_s4, 16384 }
   0x8   : > { %s19075_s27 = scalar_select %p12274_p3, 1, 0 }
   0x9   : > { %s19074_s5 = scalar_select %p12268_p2, 1, 0 }
   0xa   : > { %p11292_p4 = pneg %p12268_p2  ;;  %p12175_p6 = scmp.ne.s32.totalorder %s18357_s4, %s12174_s7 }
   0xb   : > { %p12181_p10 = scmp.lt.u32.totalorder %s12174_s7, %s18357_s4 }
   0xc   : > { %p12282_p5 = pnand %p12274_p3, %p11292_p4 }
   0xe   : > { %p12176_p7 = pneg %p12282_p5 }
  0x10   : > { %p12177_p8 = pnand %p12176_p7, %p12175_p6 }
  0x12   : > { %p12178_p9 = pneg %p12177_p8 }
  0x14   : > { %p12183_p11 = pnand %p12181_p10, %p12178_p9 }
  0x16   : > { %12186 = shalt.err (!%p12183_p11)
}
  0x17   : > { %s12187_s12 = scalar_lea.vmem %s203_s26, 16384  ;;  %p12195_p1 = scmp.lt.s32.totalorder %s203_s26, %s203_s26 }
  0x18   : > { %p12188_p12 = scmp.ne.s32.totalorder %s203_s26, %s12187_s12  ;;  %p12196_p4 = scmp.lt.s32.totalorder %s12187_s12, %s12187_s12 }
  0x1a   : > { %p12190_p13 = pnand %p12188_p12, %p12176_p7  ;;  %p12197_p3 = por %p12196_p4, %p12195_p1 }
  0x1c   : > { %p12191_p0 = pneg %p12190_p13 }
  0x1e   : > { %p12198_p2 = pnand %p12197_p3, %p12191_p0 }
  0x20   : > { %12201 = shalt.err (!%p12198_p2)
}
  0x21   : > { %s12215_s13 = smov 256   ;;  %s12216_s14 = smov 16  }
  0x22   : > { %11295 = dma.hbm_to_vmem [thread:$0]  (!%p12282_p5), %s18357_s4, 16384, %s203_s26, [#allocation4], %s12215_s13, %s12215_s13, %s12216_s14  }
  0x23   : > { %p19077_p6 = scmp.ne.s32.totalorder %s19074_s5, 0 }
  0x25   : > { %230 = sbr.rel (%p19077_p6) target bundleno = 2401 (0x961), region = 44 }
  0x2c   : > { %p19078_p8 = scmp.ne.s32.totalorder %s19075_s27, 0 }
  0x2e   : > { %12207 = dma.done.wait (%p19078_p8), [#allocation4], 16384  }
  0x2f   : > { %12209 = vsyncadd (%p19078_p8), [#allocation4], 4294950912  ;;  %v18375_v1 = vmov 1   ;;  %s9997_s17 = sshll.u32 %s9990_s24, 2  ;;  %v12315_v2 = vld [vmem:[%s18354_s1 + $0x10] sm:$0xff]  ;;  %v12320_v3 = vld [vmem:[%s18354_s1] sm:$0xff]  ;;  %v18363_v6 = vlaneseq }
  0x30   : > { %11316 = vset.pattern.permute.xlu0 %v18375_v1  ;;  %11314 = vset.pattern.permute.xlu1 %v18375_v1  ;;  %p260_p2 = scmp.lt.s32.totalorder %s9997_s17, 7  ;;  %v274_v4 = vld [vmem:[%s18354_s1 + $0x20] sm:$0xff]  ;;  %v12330_v5 = vld [vmem:[%s18354_s1 + $0x8] sm:$0xff]  ;;  %v276_v7 = vld [vmem:[%s18354_s1 + $0x30] sm:$0xff]  ;;  %v18364_v10 = vmov 0  }
  0x31   : > { %1132 = vperm.xlu0 %11316, %v12315_v2   ;;  %1124 = vperm.xlu1 %11314, %v12320_v3   ;;  %v12339_v8 = vshrl.u32 %v18363_v6, 7  ;;  %v273_v9 = vld [vmem:[%s18354_s1 + $0x18] sm:$0xff]  ;;  %v278_v11 = vld [vmem:[%s18354_s1 + $0x40] sm:$0xff]  ;;  %v12362_v15 = vld [vmem:[%s18354_s1 + $0x50] sm:$0xff] }
  0x32   : > { %s19937_s17 = smov (!%p260_p2, %s9997_s17), 7  ;;  %v334_v20 = vld [vmem:[%s18355_s2] sm:$0xff]  ;;  %v12392_v24 = vld [vmem:[%s18354_s1 + $0x70] sm:$0xff]  ;;  %v275_v25 = vld [vmem:[%s18354_s1 + $0x28] sm:$0xff] }
  0x33   : > { %19079 = vst [vmem:[#allocation6_spill] sm:$0xff] %v12339_v8  ;;  %s9998_s30 = sshll.u32 %s19937_s17, 1  ;;  %v12355_v12 = vsub.s32 1, %v12339_v8  ;;  %v1385_v13 = vsub.s32 3, %v12339_v8  ;;  %v983_v14 = vsub.s32 2, %v12339_v8  ;;  %v12386_v23 = vld [vmem:[%s18354_s1 + $0x60] sm:$0xff]  ;;  %s18076_s29 = scalar_lea.vmem %s18359_s6, %s19937_s17 }
  0x34   : > { %s12352_s11 = scalar_lea.vmem %s18353_s0, %s9998_s30  ;;  %v12402_v26 = vld [vmem:[%s18354_s1 + $0x80] sm:$0xff]  ;;  %v12407_v27 = vld [vmem:[%s18354_s1 + $0x90] sm:$0xff]  ;;  %v277_v32 = vld [vmem:[%s18354_s1 + $0x38] sm:$0xff] }
  0x35   : > { %1140 = vperm.xlu0 %11316, %v274_v4   ;;  %1128 = vperm.xlu1 %11314, %v12330_v5   ;;  %v10258_v16 = vld [vmem:[%s12352_s11 + $0x4] sm:$0xf]  ;;  %v336_v29 = vld [vmem:[%s18355_s2 + $0x10] sm:$0xff]  ;;  %v279_v37 = vld [vmem:[%s18354_s1 + $0x48] sm:$0xff] }
  0x36   : > { %v6921_v17 = vrot.slane %v10258_v16, %v12355_v12  ;;  %v6925_v18 = vrot.slane %v10258_v16, %v1385_v13  ;;  %v12371_v19 = vrot.slane %v10258_v16, %v983_v14  ;;  %v12415_v28 = vld [vmem:[%s18354_s1 + $0xa0] sm:$0xff]  ;;  %v12423_v30 = vld [vmem:[%s18354_s1 + $0xb0] sm:$0xff]  ;;  %v335_v38 = vld [vmem:[%s18355_s2 + $0x8] sm:$0xff] }
  0x37   : > { %v12430_v31 = vld [vmem:[%s18354_s1 + $0xc0] sm:$0xff]  ;;  %v296_v33 = vld [vmem:[%s18354_s1 + $0xd0] sm:$0xff]  ;;  %v337_v40 = vld [vmem:[%s18355_s2 + $0x18] sm:$0xff] }
  0x38   : > { %19080 = vst [vmem:[#allocation7_spill] sm:$0xff] %v12371_v19  ;;  %v12377_v21 = vrot.slane %v6921_v17, %v12355_v12  ;;  %v12380_v22 = vrot.slane %v6925_v18, %v12355_v12  ;;  %v298_v34 = vld [vmem:[%s18354_s1 + $0xe0] sm:$0xff]  ;;  %v300_v36 = vld [vmem:[%s18354_s1 + $0xf0] sm:$0xff]  ;;  %v339_v41 = vld [vmem:[%s18355_s2 + $0x28] sm:$0xff] }
  0x39   : > { %1148 = vperm.xlu0 %11316, %v276_v7   ;;  %11315 = vset.pattern.permute.xlu1 %v18364_v10  ;;  %v338_v35 = vld [vmem:[%s18355_s2 + $0x20] sm:$0xff]  ;;  %v340_v39 = vld [vmem:[%s18355_s2 + $0x30] sm:$0xff]  ;;  %v281_v42 = vld [vmem:[%s18354_s1 + $0x58] sm:$0xff] }
  0x3a   : > { %673 = vperm.xlu1 %11315, %v273_v9   ;;  %19081 = vst [vmem:[#allocation8_spill] sm:$0xff] %v12377_v21  ;;  %19082 = vst [vmem:[#allocation9_spill] sm:$0xff] %v12380_v22  ;;  %v341_v43 = vld [vmem:[%s18355_s2 + $0x38] sm:$0xff]  ;;  %v343_v44 = vld [vmem:[%s18355_s2 + $0x48] sm:$0xff] }
  0x3b   : > { %v342_v45 = vld [vmem:[%s18355_s2 + $0x40] sm:$0xff]  ;;  %v345_v46 = vld [vmem:[%s18355_s2 + $0x58] sm:$0xff]  ;;  %v347_v47 = vld [vmem:[%s18355_s2 + $0x68] sm:$0xff] }
  0x3c   : > { %v283_v48 = vld [vmem:[%s18354_s1 + $0x68] sm:$0xff]  ;;  %v349_v49 = vld [vmem:[%s18355_s2 + $0x78] sm:$0xff]  ;;  %v344_v51 = vld [vmem:[%s18355_s2 + $0x50] sm:$0xff] }
  0x3d   : > { %1156 = vperm.xlu0 %11316, %v278_v11   ;;  %v351_v50 = vld [vmem:[%s18355_s2 + $0x88] sm:$0xff]  ;;  %v353_v52 = vld [vmem:[%s18355_s2 + $0x98] sm:$0xff]  ;;  %v346_v58 = vld [vmem:[%s18355_s2 + $0x60] sm:$0xff] }
  0x3e   : > { %11317 = vset.pattern.permute.xlu1 %v18375_v1  ;;  %v355_v53 = vld [vmem:[%s18355_s2 + $0xa8] sm:$0xff]  ;;  %v285_v54 = vld [vmem:[%s18354_s1 + $0x78] sm:$0xff]  ;;  %v12547_v0 = vld [vmem:[%s18354_s1 + $0x100] sm:$0xff] }
  0x3f   : > { %1136 = vperm.xlu1 %11317, %v273_v9   ;;  %v357_v55 = vld [vmem:[%s18355_s2 + $0xb8] sm:$0xff]  ;;  %v359_v56 = vld [vmem:[%s18355_s2 + $0xc8] sm:$0xff]  ;;  %v308_v9 = vld [vmem:[%s18354_s1 + $0x130] sm:$0xff] }
  0x40   : > { %v361_v57 = vld [vmem:[%s18355_s2 + $0xd8] sm:$0xff]  ;;  %v363_v59 = vld [vmem:[%s18355_s2 + $0xe8] sm:$0xff]  ;;  %v310_v17 = vld [vmem:[%s18354_s1 + $0x140] sm:$0xff] }
  0x41   : > { %1164 = vperm.xlu0 %11316, %v12362_v15  }
  0x43   : > { %11318 = vset.pattern.permute.xlu1 %v18364_v10 }
  0x44   : > { %1655 = vperm.xlu1 %11318, %v334_v20  }
  0x45   : > { %1172 = vperm.xlu0 %11316, %v12386_v23  }
  0x48   : > { %678 = vperm.xlu1 %11318, %v274_v4   ;;  %v12559_v4 = vld [vmem:[%s18354_s1 + $0x120] sm:$0xff] }
  0x49   : > { %1180 = vperm.xlu0 %11316, %v12392_v24  }
  0x4c   : > { %683 = vperm.xlu1 %11318, %v275_v25  }
  0x4d   : > { %1188 = vperm.xlu0 %11316, %v12402_v26  }
  0x50   : > { %11319 = vset.pattern.permute.xlu1 %v18375_v1 }
  0x51   : > { %1196 = vperm.xlu0 %11316, %v12407_v27   ;;  %1144 = vperm.xlu1 %11319, %v275_v25   ;;  %v289_v25 = vld [vmem:[%s18354_s1 + $0x98] sm:$0xff] }
  0x55   : > { %1204 = vperm.xlu0 %11316, %v12415_v28   ;;  %11320 = vset.pattern.permute.xlu1 %v18364_v10 }
  0x56   : > { %1665 = vperm.xlu1 %11320, %v336_v29   ;;  %v314_v29 = vld [vmem:[%s18354_s1 + $0x160] sm:$0xff] }
  0x59   : > { %1212 = vperm.xlu0 %11316, %v12423_v30  }
  0x5a   : > { %688 = vperm.xlu1 %11320, %v276_v7  }
  0x5d   : > { %1220 = vperm.xlu0 %11316, %v12430_v31  }
  0x5e   : > { %693 = vperm.xlu1 %11320, %v277_v32  }
  0x61   : > { %1228 = vperm.xlu0 %11316, %v296_v33  }
  0x62   : > { %11321 = vset.pattern.permute.xlu1 %v18375_v1 }
  0x63   : > { %1152 = vperm.xlu1 %11321, %v277_v32  }
  0x65   : > { %1236 = vperm.xlu0 %11316, %v298_v34  }
  0x67   : > { %11322 = vset.pattern.permute.xlu1 %v18364_v10 }
  0x68   : > { %1675 = vperm.xlu1 %11322, %v338_v35  }
  0x69   : > { %1244 = vperm.xlu0 %11316, %v300_v36   ;;  %v318_v36 = vld [vmem:[%s18354_s1 + $0x180] sm:$0xff] }
  0x6c   : > { %698 = vperm.xlu1 %11322, %v278_v11  }
  0x6d   : > { %11345 = vset.pattern.permute.xlu0 %v18364_v10 }
  0x6e   : > { %658 = vperm.xlu0 %11345, %v12320_v3  }
  0x70   : > { %703 = vperm.xlu1 %11322, %v279_v37  }
  0x72   : > { %663 = vperm.xlu0 %11345, %v12330_v5  }
  0x74   : > { %11323 = vset.pattern.permute.xlu1 %v18375_v1 }
  0x75   : > { %1160 = vperm.xlu1 %11323, %v279_v37   ;;  %v350_v37 = vld [vmem:[%s18355_s2 + $0x80] sm:$0xff] }
  0x76   : > { %668 = vperm.xlu0 %11345, %v12315_v2   ;;  %v287_v2 = vld [vmem:[%s18354_s1 + $0x88] sm:$0xff] }
  0x79   : > { %11324 = vset.pattern.permute.xlu1 %v18364_v10 }
  0x7a   : > { %1660 = vperm.xlu0 %11345, %v335_v38   ;;  %1685 = vperm.xlu1 %11324, %v340_v39   ;;  %v320_v39 = vld [vmem:[%s18354_s1 + $0x190] sm:$0xff] }
  0x7e   : > { %1670 = vperm.xlu0 %11345, %v337_v40   ;;  %708 = vperm.xlu1 %11324, %v12362_v15   ;;  %v348_v15 = vld [vmem:[%s18355_s2 + $0x70] sm:$0xff] }
  0x82   : > { %1680 = vperm.xlu0 %11345, %v339_v41   ;;  %713 = vperm.xlu1 %11324, %v281_v42  }
  0x86   : > { %1690 = vperm.xlu0 %11345, %v341_v43   ;;  %11325 = vset.pattern.permute.xlu1 %v18375_v1 }
  0x87   : > { %1168 = vperm.xlu1 %11325, %v281_v42   ;;  %v322_v42 = vld [vmem:[%s18354_s1 + $0x1a0] sm:$0xff] }
  0x8a   : > { %1700 = vperm.xlu0 %11345, %v343_v44   ;;  %v291_v44 = vld [vmem:[%s18354_s1 + $0xa8] sm:$0xff] }
  0x8b   : > { %11326 = vset.pattern.permute.xlu1 %v18364_v10 }
  0x8c   : > { %1695 = vperm.xlu1 %11326, %v342_v45  }
  0x8e   : > { %1710 = vperm.xlu0 %11345, %v345_v46  }
  0x90   : > { %718 = vperm.xlu1 %11326, %v12386_v23   ;;  %v312_v23 = vld [vmem:[%s18354_s1 + $0x150] sm:$0xff] }
  0x92   : > { %1720 = vperm.xlu0 %11345, %v347_v47  }
  0x94   : > { %723 = vperm.xlu1 %11326, %v283_v48  }
  0x96   : > { %1730 = vperm.xlu0 %11345, %v349_v49  }
  0x98   : > { %11327 = vset.pattern.permute.xlu1 %v18375_v1 }
  0x99   : > { %1176 = vperm.xlu1 %11327, %v283_v48   ;;  %v326_v48 = vld [vmem:[%s18354_s1 + $0x1c0] sm:$0xff] }
  0x9a   : > { %1740 = vperm.xlu0 %11345, %v351_v50   ;;  %v352_v50 = vld [vmem:[%s18355_s2 + $0x90] sm:$0xff] }
  0x9d   : > { %11328 = vset.pattern.permute.xlu1 %v18364_v10 }
  0x9e   : > { %1705 = vperm.xlu1 %11328, %v344_v51   ;;  %1750 = vperm.xlu0 %11345, %v353_v52   ;;  %v655_v51 = vld [vmem:[%s12352_s11] sm:$0xf]  ;;  %v12656_v52 = vsub.s32 0, %v12339_v8 }
  0xa0   : > { %19103 = vst [vmem:[#allocation30_spill] sm:$0xff] %v12656_v52 }
  0xa2   : > { %728 = vperm.xlu1 %11328, %v12392_v24   ;;  %1760 = vperm.xlu0 %11345, %v355_v53  }
  0xa6   : > { %733 = vperm.xlu1 %11328, %v285_v54   ;;  %1770 = vperm.xlu0 %11345, %v357_v55   ;;  %v1382_v55 = vrot.slane %v655_v51, %v12355_v12 }
  0xaa   : > { %11329 = vset.pattern.permute.xlu1 %v18375_v1  ;;  %1780 = vperm.xlu0 %11345, %v359_v56   ;;  %v1386_v56 = vrot.slane %v655_v51, %v1385_v13 }
  0xab   : > { %1184 = vperm.xlu1 %11329, %v285_v54   ;;  %v328_v54 = vld [vmem:[%s18354_s1 + $0x1d0] sm:$0xff] }
  0xac   : > { %v12682_v13 = vrot.slane %v1386_v56, %v12355_v12 }
  0xae   : > { %1790 = vperm.xlu0 %11345, %v361_v57  }
  0xaf   : > { %11330 = vset.pattern.permute.xlu1 %v18364_v10 }
  0xb0   : > { %1715 = vperm.xlu1 %11330, %v346_v58   ;;  %v12535_v60 = vpop.permute.xlu1 %1124  ;;  %v12537_v61 = vpop.permute.xlu0 %1132  ;;  %v980_v58 = vrot.slane %v655_v51, %v12656_v52 }
  0xb1   : > { %19083 = vst [vmem:[#allocation10_spill] sm:$0xff] %v12537_v61 }
  0xb2   : > { %1800 = vperm.xlu0 %11345, %v363_v59   ;;  %v984_v59 = vrot.slane %v655_v51, %v983_v14  ;;  %v293_v14 = vld [vmem:[%s18354_s1 + $0xb8] sm:$0xff] }
  0xb4   : > { %738 = vperm.xlu1 %11330, %v12402_v26   ;;  %v12540_v62 = vpop.permute.xlu1 %1128  ;;  %v12542_v63 = vpop.permute.xlu0 %1140 }
  0xb5   : > { %19084 = vst [vmem:[#allocation11_spill] sm:$0xff] %v12540_v62  ;;  %19085 = vst [vmem:[#allocation12_spill] sm:$0xff] %v12542_v63 }
  0xb6   : > { %11348 = vset.pattern.permute.xlu0 %v18375_v1 }
  0xb7   : > { %1252 = vperm.xlu0 %11348, %v12547_v0  }
  0xb8   : > { %743 = vperm.xlu1 %11330, %v287_v2   ;;  %v12554_v3 = vpop.permute.xlu0 %1148 }
  0xb9   : > { %19086 = vst [vmem:[#allocation13_spill] sm:$0xff] %v12554_v3  ;;  %v12561_v5 = vpop.permute.xlu1 %673  ;;  %v1410_v8 = vmul.f32 %v12682_v13, %v12554_v3 }
  0xba   : > { %19087 = vst [vmem:[#allocation14_spill] sm:$0xff] %v12561_v5 }
  0xbb   : > { %1268 = vperm.xlu0 %11348, %v12559_v4  }
  0xbc   : > { %11331 = vset.pattern.permute.xlu1 %v18375_v1  ;;  %v12565_v7 = vpop.permute.xlu0 %1156 }
  0xbd   : > { %19088 = vst [vmem:[#allocation15_spill] sm:$0xff] %v12565_v7  ;;  %1192 = vperm.xlu1 %11331, %v287_v2  }
  0xbe   : > { %v12570_v11 = vpop.permute.xlu1 %1136 }
  0xbf   : > { %19089 = vst [vmem:[#allocation16_spill] sm:$0xff] %v12570_v11  ;;  %1276 = vperm.xlu0 %11348, %v308_v9   ;;  %v330_v9 = vld [vmem:[%s18354_s1 + $0x1e0] sm:$0xff]  ;;  %v1404_v51 = vmul.f32 %v12682_v13, %v12570_v11 }
  0xc0   : > { %v12575_v16 = vpop.permute.xlu0 %1164 }
  0xc1   : > { %11332 = vset.pattern.permute.xlu1 %v18364_v10 }
  0xc2   : > { %1725 = vperm.xlu1 %11332, %v348_v15   ;;  %v12679_v15 = vrot.slane %v1382_v55, %v12355_v12 }
  0xc3   : > { %v12581_v18 = vpop.permute.xlu1 %1655  ;;  %1284 = vperm.xlu0 %11348, %v310_v17  }
  0xc4   : > { %19090 = vst [vmem:[#allocation17_spill] sm:$0xff] %v12581_v18  ;;  %v12583_v20 = vpop.permute.xlu0 %1172 }
  0xc6   : > { %748 = vperm.xlu1 %11332, %v12407_v27   ;;  %v316_v27 = vld [vmem:[%s18354_s1 + $0x170] sm:$0xff] }
  0xc7   : > { %v12589_v24 = vpop.permute.xlu1 %678  ;;  %1292 = vperm.xlu0 %11348, %v312_v23   ;;  %v12690_v23 = vrot.slane %v980_v58, %v12656_v52 }
  0xc8   : > { %19091 = vst [vmem:[#allocation18_spill] sm:$0xff] %v12589_v24  ;;  %v12594_v26 = vpop.permute.xlu0 %1180 }
  0xc9   : > { %v1003_v55 = vmul.f32 %v12690_v23, %v12589_v24 }
  0xca   : > { %753 = vperm.xlu1 %11332, %v289_v25  }
  0xcb   : > { %v12599_v32 = vpop.permute.xlu1 %683  ;;  %1300 = vperm.xlu0 %11348, %v314_v29  }
  0xcc   : > { %19092 = vst [vmem:[#allocation19_spill] sm:$0xff] %v12599_v32  ;;  %v12601_v33 = vpop.permute.xlu0 %1188 }
  0xce   : > { %11333 = vset.pattern.permute.xlu1 %v18375_v1 }
  0xcf   : > { %1200 = vperm.xlu1 %11333, %v289_v25   ;;  %1308 = vperm.xlu0 %11348, %v316_v27   ;;  %v12693_v25 = vrot.slane %v984_v59, %v12656_v52  ;;  %v1400_v59 = vmul.f32 %v12682_v13, %v12540_v62 }
  0xd0   : > { %v12607_v34 = vpop.permute.xlu1 %1144  ;;  %v12609_v35 = vpop.permute.xlu0 %1196 }
  0xd1   : > { %19093 = vst [vmem:[#allocation20_spill] sm:$0xff] %v12607_v34  ;;  %19094 = vst [vmem:[#allocation21_spill] sm:$0xff] %v12609_v35  ;;  %v1004_v56 = vmul.f32 %v12693_v25, %v12589_v24  ;;  %v12743_v24 = vmul.f32 %v12679_v15, %v12565_v7 }
  0xd3   : > { %11334 = vset.pattern.permute.xlu1 %v18364_v10  ;;  %1316 = vperm.xlu0 %11348, %v318_v36   ;;  %v1397_v36 = vmul.f32 %v12679_v15, %v12535_v60 }
  0xd4   : > { %1735 = vperm.xlu1 %11334, %v350_v37   ;;  %v12618_v38 = vpop.permute.xlu0 %1204  ;;  %v1401_v37 = vmul.f32 %v12679_v15, %v12537_v61 }
  0xd5   : > { %19095 = vst [vmem:[#allocation22_spill] sm:$0xff] %v12618_v38  ;;  %v12623_v40 = vpop.permute.xlu1 %1665 }
  0xd6   : > { %19096 = vst [vmem:[#allocation23_spill] sm:$0xff] %v12623_v40 }
  0xd7   : > { %1324 = vperm.xlu0 %11348, %v320_v39   ;;  %v1402_v39 = vmul.f32 %v12682_v13, %v12537_v61 }
  0xd8   : > { %758 = vperm.xlu1 %11334, %v12415_v28   ;;  %v12626_v41 = vpop.permute.xlu0 %1212  ;;  %v324_v28 = vld [vmem:[%s18354_s1 + $0x1b0] sm:$0xff] }
  0xd9   : > { %19097 = vst [vmem:[#allocation24_spill] sm:$0xff] %v12626_v41  ;;  %v12631_v43 = vpop.permute.xlu1 %688 }
  0xda   : > { %19098 = vst [vmem:[#allocation25_spill] sm:$0xff] %v12631_v43 }
  0xdb   : > { %1332 = vperm.xlu0 %11348, %v322_v42  }
  0xdc   : > { %763 = vperm.xlu1 %11334, %v291_v44   ;;  %v12636_v45 = vpop.permute.xlu0 %1220 }
  0xdd   : > { %19099 = vst [vmem:[#allocation26_spill] sm:$0xff] %v12636_v45  ;;  %v12641_v46 = vpop.permute.xlu1 %693 }
  0xde   : > { %19100 = vst [vmem:[#allocation27_spill] sm:$0xff] %v12641_v46 }
  0xdf   : > { %1340 = vperm.xlu0 %11348, %v324_v28   ;;  %v1399_v28 = vmul.f32 %v12679_v15, %v12540_v62 }
  0xe0   : > { %11335 = vset.pattern.permute.xlu1 %v18375_v1  ;;  %v12644_v47 = vpop.permute.xlu0 %1228 }
  0xe1   : > { %19101 = vst [vmem:[#allocation28_spill] sm:$0xff] %v12644_v47  ;;  %1208 = vperm.xlu1 %11335, %v291_v44   ;;  %v1398_v44 = vmul.f32 %v12682_v13, %v12535_v60 }
  0xe2   : > { %v12649_v49 = vpop.permute.xlu1 %1152 }
  0xe3   : > { %19102 = vst [vmem:[#allocation29_spill] sm:$0xff] %v12649_v49  ;;  %1348 = vperm.xlu0 %11348, %v326_v48   ;;  %v1405_v48 = vmul.f32 %v12679_v15, %v12542_v63 }
  0xe4   : > { %v12658_v53 = vpop.permute.xlu0 %1236 }
  0xe5   : > { %19104 = vst [vmem:[#allocation31_spill] sm:$0xff] %v12658_v53  ;;  %11336 = vset.pattern.permute.xlu1 %v18364_v10  ;;  %v1533_v62 = vadd.f32 %v1405_v48, %v1003_v55  ;;  %v1407_v48 = vmul.f32 %v12679_v15, %v12607_v34 }
  0xe6   : > { %1745 = vperm.xlu1 %11336, %v352_v50   ;;  %v1406_v50 = vmul.f32 %v12682_v13, %v12542_v63  ;;  %v12748_v63 = vmul.f32 %v12682_v13, %v12565_v7  ;;  %v354_v7 = vld [vmem:[%s18355_s2 + $0xa0] sm:$0xff] }
  0xe7   : > { %v12667_v57 = vpop.permute.xlu1 %1675  ;;  %1356 = vperm.xlu0 %11348, %v328_v54   ;;  %v1403_v54 = vmul.f32 %v12679_v15, %v12570_v11  ;;  %v19111_v11 = vmov 0  }
  0xe8   : > { %19105 = vst [vmem:[#allocation32_spill] sm:$0xff] %v12667_v57  ;;  %v12672_v2 = vpop.permute.xlu0 %1244  ;;  %v12796_v22 = vadd.f32 %v12667_v57, %v1533_v62 }
  0xe9   : > { %19106 = vst [vmem:[#allocation33_spill] sm:$0xff] %v12672_v2 }
  0xea   : > { %768 = vperm.xlu1 %11336, %v12423_v30   ;;  %v332_v30 = vld [vmem:[%s18354_s1 + $0x1f0] sm:$0xff] }
  0xeb   : > { %v12684_v17 = vpop.permute.xlu1 %698  ;;  %1364 = vperm.xlu0 %11348, %v330_v9   ;;  %v1409_v9 = vmul.f32 %v12679_v15, %v12554_v3  ;;  %v1534_v3 = vadd.f32 %v1406_v50, %v1004_v56  ;;  %v1408_v50 = vmul.f32 %v12682_v13, %v12607_v34 }
  0xec   : > { %19107 = vst [vmem:[#allocation34_spill] sm:$0xff] %v12684_v17  ;;  %v1011_v21 = vmul.f32 %v12690_v23, %v12684_v17 }
  0xed   : > { %v12698_v29 = vpop.permute.xlu0 %658  ;;  %v12793_v19 = vadd.f32 %v12667_v57, %v1534_v3 }
  0xee   : > { %19108 = vst [vmem:[#allocation35_spill] sm:$0xff] %v12698_v29  ;;  %v995_v12 = vmul.f32 %v12690_v23, %v12698_v29  ;;  %773 = vperm.xlu1 %11336, %v293_v14   ;;  %v996_v27 = vmul.f32 %v12693_v25, %v12698_v29  ;;  %v1001_v29 = vmul.f32 %v12690_v23, %v12561_v5 }
  0xef   : > { %v12710_v42 = vpop.permute.xlu1 %703  ;;  %1372 = vperm.xlu0 %11348, %v332_v30   ;;  %v1002_v30 = vmul.f32 %v12693_v25, %v12561_v5 }
  0xf0   : > { %19109 = vst [vmem:[#allocation36_spill] sm:$0xff] %v12710_v42  ;;  %v1526_v6 = vadd.f32 %v1398_v44, %v996_v27  ;;  %v1525_v10 = vadd.f32 %v1397_v36, %v995_v12  ;;  %v1531_v5 = vadd.f32 %v1403_v54, %v1001_v29  ;;  %v1006_v29 = vmul.f32 %v12693_v25, %v12599_v32 }
  0xf1   : > { %v12728_v58 = vpop.permute.xlu0 %663  ;;  %v1532_v44 = vadd.f32 %v1404_v51, %v1002_v30  ;;  %v1007_v54 = vmul.f32 %v12690_v23, %v12631_v43 }
  0xf2   : > { %19110 = vst [vmem:[#allocation37_spill] sm:$0xff] %v12728_v58  ;;  %11337 = vset.pattern.permute.xlu1 %v18375_v1  ;;  %v997_v12 = vmul.f32 %v12690_v23, %v12728_v58  ;;  %v998_v36 = vmul.f32 %v12693_v25, %v12728_v58  ;;  %v1973_v30 = vadd.f32 %v12581_v18, %v1525_v10  ;;  %v12773_v58 = vld [vmem:[%s18354_s1 + $0x118] sm:$0xff] }
  0xf3   : > { %1216 = vperm.xlu1 %11337, %v293_v14   ;;  %11379 = vset.pattern.permute.xlu0 %v19111_v11  ;;  %v1005_v14 = vmul.f32 %v12690_v23, %v12599_v32 }
  0xf4   : > { %v12752_v27 = vpop.permute.xlu1 %1160  ;;  %818 = vperm.xlu0 %11379, %v12547_v0   ;;  %v1974_v0 = vadd.f32 %v12581_v18, %v1526_v6  ;;  %v1008_v6 = vmul.f32 %v12693_v25, %v12631_v43  ;;  %v1528_v10 = vadd.f32 %v1400_v59, %v998_v36  ;;  %v1527_v55 = vadd.f32 %v1399_v28, %v997_v12  ;;  %v366_v12 = vld [vmem:[%s18355_s2 + $0x100] sm:$0xff] }
  0xf5   : > { %19112 = vst [vmem:[#allocation38_spill] sm:$0xff] %v12752_v27  ;;  %v12759_v1 = vpop.permute.xlu0 %668  ;;  %v2101_v59 = vmul.f32 0.01, %v1973_v30  ;;  %v1535_v62 = vadd.f32 %v1407_v48, %v1005_v14  ;;  %v1411_v36 = vmul.f32 %v12679_v15, %v12649_v49 }
  0xf6   : > { %19113 = vst [vmem:[#allocation39_spill] sm:$0xff] %v12759_v1  ;;  %v999_v61 = vmul.f32 %v12690_v23, %v12759_v1  ;;  %v1000_v51 = vmul.f32 %v12693_v25, %v12759_v1  ;;  %v1412_v1 = vmul.f32 %v12682_v13, %v12649_v49  ;;  %v2102_v28 = vmul.f32 0.01, %v1974_v0 }
  0xf7   : > { %11338 = vset.pattern.permute.xlu1 %v19111_v11 }
  0xf8   : > { %1755 = vperm.xlu1 %11338, %v354_v7   ;;  %v1530_v56 = vadd.f32 %v1402_v39, %v1000_v51  ;;  %v1529_v34 = vadd.f32 %v1401_v37, %v999_v61  ;;  %833 = vperm.xlu0 %11379, %v12773_v58   ;;  %v1010_v61 = vmul.f32 %v12693_v25, %v12641_v46 }
  0xf9   : > { %v12788_v18 = vpop.permute.xlu0 %1660  ;;  %v12790_v32 = vpop.permute.xlu1 %1685  ;;  %v1536_v37 = vadd.f32 %v1408_v50, %v1006_v29  ;;  %v295_v29 = vld [vmem:[%s18354_s1 + $0xc8] sm:$0xff] }
  0xfa   : > { %19114 = vst [vmem:[#allocation40_spill] sm:$0xff] %v12788_v18  ;;  %19115 = vst [vmem:[#allocation41_spill] sm:$0xff] %v12790_v32  ;;  %v1976_v7 = vadd.f32 %v12788_v18, %v1528_v10  ;;  %v1975_v39 = vadd.f32 %v12788_v18, %v1527_v55  ;;  %v1978_v3 = vadd.f32 %v12623_v40, %v1530_v56 }
  0xfb   : > { %v1538_v10 = vadd.f32 %v1410_v8, %v1008_v6  ;;  %v1537_v55 = vadd.f32 %v1409_v9, %v1007_v54  ;;  %v1009_v18 = vmul.f32 %v12690_v23, %v12641_v46  ;;  %v1977_v48 = vadd.f32 %v12623_v40, %v1529_v34 }
  0xfc   : > { %778 = vperm.xlu1 %11338, %v12430_v31   ;;  %v2104_v51 = vmul.f32 0.01, %v1976_v7  ;;  %v2103_v14 = vmul.f32 0.01, %v1975_v39  ;;  %v1540_v50 = vadd.f32 %v1412_v1, %v1010_v61  ;;  %1815 = vperm.xlu0 %11379, %v366_v12   ;;  %v2230_v31 = vmax.f32 %v1974_v0, %v2102_v28 }
  0xfd   : > { %v12812_v57 = vpop.permute.xlu0 %1670  ;;  %v12814_v43 = vpop.permute.xlu1 %708  ;;  %v2229_v56 = vmax.f32 %v1973_v30, %v2101_v59  ;;  %v12821_v8 = vmul.f32 0.01, %v12793_v19  ;;  %v12824_v9 = vmul.f32 0.01, %v12796_v22  ;;  %v2106_v46 = vmul.f32 0.01, %v1978_v3 }
  0xfe   : > { %19116 = vst [vmem:[#allocation42_spill] sm:$0xff] %v12812_v57  ;;  %19117 = vst [vmem:[#allocation43_spill] sm:$0xff] %v12814_v43  ;;  %v2232_v54 = vmax.f32 %v1976_v7, %v2104_v51  ;;  %v2231_v6 = vmax.f32 %v1975_v39, %v2103_v14  ;;  %v1980_v49 = vadd.f32 %v12812_v57, %v1532_v44  ;;  %v2105_v12 = vmul.f32 0.01, %v1977_v48 }
  0xff   : > { %v1012_v1 = vmul.f32 %v12693_v25, %v12684_v17  ;;  %v1979_v34 = vadd.f32 %v12812_v57, %v1531_v5  ;;  %v1539_v0 = vadd.f32 %v1411_v36, %v1009_v18  ;;  %v1415_v44 = vmul.f32 %v12679_v15, %v12752_v27  ;;  %v12847_v36 = vld [vmem:[%s18355_s2 + $0x118] sm:$0xff] }
 0x100   : > { %783 = vperm.xlu1 %11338, %v295_v29   ;;  %v2358_v59 = vpack.c.bf16 %v2232_v54, %v2230_v31  ;;  %v2357_v7 = vpack.c.bf16 %v2231_v6, %v2229_v56  ;;  %v2108_v39 = vmul.f32 0.01, %v1980_v49  ;;  %838 = vperm.xlu0 %11379, %v12559_v4   ;;  %v2238_v61 = vmax.f32 %v12793_v19, %v12821_v8 }
 0x101   : > { %v12832_v30 = vpop.permute.xlu0 %1680  ;;  %v12834_v28 = vpop.permute.xlu1 %713  ;;  %v2237_v5 = vmax.f32 %v12796_v22, %v12824_v9  ;;  %v1986_v18 = vadd.f32 %v12790_v32, %v1538_v10  ;;  %v2234_v51 = vmax.f32 %v1978_v3, %v2106_v46  ;;  %v2107_v4 = vmul.f32 0.01, %v1979_v34 }
 0x102   : > { %19118 = vst [vmem:[#allocation44_spill] sm:$0xff] %v12832_v30  ;;  %19119 = vst [vmem:[#allocation45_spill] sm:$0xff] %v12834_v28  ;;  %3317 = vmatprep.subr.bf16.mxu0 %v2358_v59  ;;  %v2236_v14 = vmax.f32 %v1980_v49, %v2108_v39  ;;  %v1984_v31 = vadd.f32 %v12832_v30, %v1536_v37  ;;  %v1416_v56 = vmul.f32 %v12682_v13, %v12752_v27  ;;  %v19120_v19 = vmov 1  }
 0x103   : > { %3318 = vmatpush1.bf16.msra.mxu0 %v2357_v7  ;;  %v1983_v22 = vadd.f32 %v12832_v30, %v1535_v62  ;;  %v1985_v10 = vadd.f32 %v12790_v32, %v1537_v55  ;;  %v2233_v54 = vmax.f32 %v1977_v48, %v2105_v12  ;;  %v2235_v46 = vmax.f32 %v1979_v34, %v2107_v4  ;;  %v12865_v62 = vld [vmem:[%s18355_s2 + $0x128] sm:$0xff]  ;;  %v356_v48 = vld [vmem:[%s18355_s2 + $0xb0] sm:$0xff] }
 0x104   : > { %11339 = vset.pattern.permute.xlu1 %v19120_v19  ;;  %v2360_v9 = vpack.c.bf16 %v2236_v14, %v2234_v51  ;;  %v2112_v49 = vmul.f32 0.01, %v1984_v31  ;;  %1830 = vperm.xlu0 %11379, %v12847_v36   ;;  %v2114_v59 = vmul.f32 0.01, %v1986_v18  ;;  %v1013_v55 = vmul.f32 %v12690_v23, %v12710_v42 }
 0x105   : > { %v12855_v8 = vpop.permute.xlu0 %1690  ;;  %1224 = vperm.xlu1 %11339, %v295_v29   ;;  %v2111_v37 = vmul.f32 0.01, %v1983_v22  ;;  %v1014_v29 = vmul.f32 %v12693_v25, %v12710_v42  ;;  %v1541_v34 = vadd.f32 %v12743_v24, %v1011_v21  ;;  %v2113_v51 = vmul.f32 0.01, %v1985_v10  ;;  %v12883_v21 = vld [vmem:[%s18355_s2 + $0x138] sm:$0xff] }
 0x106   : > { %19121 = vst [vmem:[#allocation46_spill] sm:$0xff] %v12855_v8  ;;  %v12858_v3 = vpop.permute.xlu1 %1168  ;;  %v1988_v6 = vadd.f32 %v12855_v8, %v1540_v50  ;;  %v1987_v7 = vadd.f32 %v12855_v8, %v1539_v0  ;;  %3319 = vmatprep.subr.bf16.mxu0 %v2360_v9  ;;  %v1542_v50 = vadd.f32 %v12748_v63, %v1012_v1 }
 0x107   : > { %19122 = vst [vmem:[#allocation47_spill] sm:$0xff] %v12858_v3  ;;  %v2359_v0 = vpack.c.bf16 %v2235_v46, %v2233_v54  ;;  %v2240_v39 = vmax.f32 %v1984_v31, %v2112_v49  ;;  %v2239_v12 = vmax.f32 %v1983_v22, %v2111_v37  ;;  %v1544_v8 = vadd.f32 %v1416_v56, %v1014_v29 }
 0x108   : > { %v2116_v4 = vmul.f32 0.01, %v1988_v6  ;;  %v2115_v40 = vmul.f32 0.01, %v1987_v7  ;;  %v1543_v9 = vadd.f32 %v1415_v44, %v1013_v55  ;;  %1840 = vperm.xlu0 %11379, %v12865_v62   ;;  %v2242_v1 = vmax.f32 %v1986_v18, %v2114_v59 }
 0x109   : > { %v12876_v14 = vpop.permute.xlu0 %1700  ;;  %11340 = vset.pattern.permute.xlu1 %v19111_v11  ;;  %3320 = vmatpush1.bf16.msra.mxu0 %v2359_v0  ;;  %v2362_v30 = vpack.c.bf16 %v2240_v39, %v2238_v61  ;;  %v2361_v63 = vpack.c.bf16 %v2239_v12, %v2237_v5  ;;  %v2241_v56 = vmax.f32 %v1985_v10, %v2113_v51  ;;  %v297_v10 = vld [vmem:[%s18354_s1 + $0xd8] sm:$0xff]  ;;  %v12905_v0 = vld [vmem:[%s18355_s2 + $0x148] sm:$0xff] }
 0x10a   : > { %19123 = vst [vmem:[#allocation48_spill] sm:$0xff] %v12876_v14  ;;  %1765 = vperm.xlu1 %11340, %v356_v48   ;;  %v2244_v31 = vmax.f32 %v1988_v6, %v2116_v4  ;;  %v2243_v22 = vmax.f32 %v1987_v7, %v2115_v40  ;;  %v1992_v54 = vadd.f32 %v12876_v14, %v1544_v8  ;;  %v11790_v40 = vld [vmem:[%s18354_s1 + $0xd0] sm:$0xff] }
 0x10b   : > { %v12885_v24 = vpop.permute.xlu1 %1695  ;;  %v1991_v44 = vadd.f32 %v12876_v14, %v1543_v9  ;;  %3321 = vmatprep.subr.bf16.mxu0 %v2362_v30  ;;  %v1419_v39 = vmul.f32 %v12679_v15, %v12858_v3  ;;  %v1420_v12 = vmul.f32 %v12682_v13, %v12858_v3  ;;  %v1017_v51 = vmul.f32 %v12690_v23, %v12834_v28 }
 0x10c   : > { %19124 = vst [vmem:[#allocation49_spill] sm:$0xff] %v12885_v24  ;;  %v1990_v46 = vadd.f32 %v12885_v24, %v1542_v50  ;;  %v1989_v61 = vadd.f32 %v12885_v24, %v1541_v34  ;;  %v2364_v5 = vpack.c.bf16 %v2244_v31, %v2242_v1  ;;  %v2120_v18 = vmul.f32 0.01, %v1992_v54  ;;  %1850 = vperm.xlu0 %11379, %v12883_v21  }
 0x10d   : > { %v2119_v49 = vmul.f32 0.01, %v1991_v44  ;;  %3322 = vmatpush1.bf16.msra.mxu0 %v2361_v63  ;;  %v2363_v8 = vpack.c.bf16 %v2243_v22, %v2241_v56  ;;  %v1018_v4 = vmul.f32 %v12693_v25, %v12834_v28  ;;  %v1417_v9 = vmul.f32 %v12679_v15, %v12575_v16  ;;  %v12925_v22 = vpop.permute.xlu0 %1710 }
 0x10e   : > { %788 = vperm.xlu1 %11340, %v11790_v40   ;;  %v2118_v37 = vmul.f32 0.01, %v1990_v46  ;;  %v2117_v6 = vmul.f32 0.01, %v1989_v61  ;;  %3323 = vmatprep.subr.bf16.mxu0 %v2364_v5  ;;  %v2248_v7 = vmax.f32 %v1992_v54, %v2120_v18  ;;  %v1418_v63 = vmul.f32 %v12682_v13, %v12575_v16  ;;  %19127 = vst [vmem:[#allocation52_spill] sm:$0xff] %v12925_v22 }
 0x10f   : > { %v12895_v30 = vpop.permute.xlu1 %718  ;;  %v2247_v29 = vmax.f32 %v1991_v44, %v2119_v49  ;;  %v1015_v1 = vmul.f32 %v12690_v23, %v12814_v43  ;;  %v1016_v31 = vmul.f32 %v12693_v25, %v12814_v43  ;;  %v358_v44 = vld [vmem:[%s18355_s2 + $0xc0] sm:$0xff]  ;;  %v1548_v56 = vadd.f32 %v1420_v12, %v1018_v4 }
 0x110   : > { %19125 = vst [vmem:[#allocation50_spill] sm:$0xff] %v12895_v30  ;;  %v2246_v59 = vmax.f32 %v1990_v46, %v2118_v37  ;;  %v2245_v55 = vmax.f32 %v1989_v61, %v2117_v6  ;;  %1860 = vperm.xlu0 %11379, %v12905_v0   ;;  %v1547_v46 = vadd.f32 %v1419_v39, %v1017_v51 }
 0x111   : > { %3324 = vmatpush1.bf16.msra.mxu0 %v2363_v8  ;;  %v1996_v61 = vadd.f32 %v12925_v22, %v1548_v56  ;;  %v1546_v18 = vadd.f32 %v1418_v63, %v1016_v31  ;;  %v1545_v49 = vadd.f32 %v1417_v9, %v1015_v1 }
 0x112   : > { %793 = vperm.xlu1 %11340, %v297_v10   ;;  %v2366_v50 = vpack.c.bf16 %v2248_v7, %v2246_v59  ;;  %v2365_v34 = vpack.c.bf16 %v2247_v29, %v2245_v55  ;;  %v1995_v5 = vadd.f32 %v12925_v22, %v1547_v46  ;;  %v11791_v59 = vld [vmem:[%s18354_s1 + $0xe0] sm:$0xff] }
 0x113   : > { %v12900_v48 = vpop.permute.xlu1 %723  ;;  %v2124_v6 = vmul.f32 0.01, %v1996_v61 }
 0x114   : > { %19126 = vst [vmem:[#allocation51_spill] sm:$0xff] %v12900_v48  ;;  %3325 = vmatprep.subr.bf16.mxu0 %v2366_v50  ;;  %v299_v50 = vld [vmem:[%s18354_s1 + $0xe8] sm:$0xff]  ;;  %v1021_v56 = vmul.f32 %v12690_v23, %v12900_v48  ;;  %v1022_v46 = vmul.f32 %v12693_v25, %v12900_v48 }
 0x115   : > { %3326 = vmatpush1.bf16.msra.mxu0 %v2365_v34  ;;  %v2252_v39 = vmax.f32 %v1996_v61, %v2124_v6  ;;  %v12972_v6 = vpop.permute.xlu0 %1720 }
 0x116   : > { %11341 = vset.pattern.permute.xlu1 %v19120_v19  ;;  %19132 = vst [vmem:[#allocation57_spill] sm:$0xff] %v12972_v6 }
 0x117   : > { %1232 = vperm.xlu1 %11341, %v297_v10   ;;  %v2123_v10 = vmul.f32 0.01, %v1995_v5 }
 0x118   : > { %v12927_v54 = vpop.permute.xlu1 %1176 }
 0x119   : > { %19128 = vst [vmem:[#allocation53_spill] sm:$0xff] %v12927_v54  ;;  %v2251_v51 = vmax.f32 %v1995_v5, %v2123_v10  ;;  %v1423_v4 = vmul.f32 %v12679_v15, %v12927_v54  ;;  %v1424_v9 = vmul.f32 %v12682_v13, %v12927_v54  ;;  %v307_v54 = vld [vmem:[%s18354_s1 + $0x128] sm:$0xff] }
 0x11b   : > { %11342 = vset.pattern.permute.xlu1 %v19111_v11  ;;  %v1552_v61 = vadd.f32 %v1424_v9, %v1022_v46  ;;  %v1551_v5 = vadd.f32 %v1423_v4, %v1021_v56 }
 0x11c   : > { %1775 = vperm.xlu1 %11342, %v358_v44   ;;  %v12956_v44 = vld [vmem:[%s18355_s2 + $0x158] sm:$0xff] }
 0x11d   : > { %v12935_v40 = vpop.permute.xlu1 %1705  ;;  %1870 = vperm.xlu0 %11379, %v12956_v44  }
 0x11e   : > { %19129 = vst [vmem:[#allocation54_spill] sm:$0xff] %v12935_v40  ;;  %v1994_v8 = vadd.f32 %v12935_v40, %v1546_v18  ;;  %v1993_v37 = vadd.f32 %v12935_v40, %v1545_v49  ;;  %v1421_v18 = vmul.f32 %v12679_v15, %v12583_v20  ;;  %v1422_v49 = vmul.f32 %v12682_v13, %v12583_v20 }
 0x120   : > { %798 = vperm.xlu1 %11342, %v11791_v59   ;;  %v2122_v7 = vmul.f32 0.01, %v1994_v8  ;;  %v2121_v55 = vmul.f32 0.01, %v1993_v37  ;;  %v360_v59 = vld [vmem:[%s18355_s2 + $0xd0] sm:$0xff] }
 0x121   : > { %v12942_v29 = vpop.permute.xlu1 %728 }
 0x122   : > { %19130 = vst [vmem:[#allocation55_spill] sm:$0xff] %v12942_v29  ;;  %v2250_v34 = vmax.f32 %v1994_v8, %v2122_v7  ;;  %v2249_v12 = vmax.f32 %v1993_v37, %v2121_v55  ;;  %v1019_v8 = vmul.f32 %v12690_v23, %v12895_v30  ;;  %v1020_v37 = vmul.f32 %v12693_v25, %v12895_v30 }
 0x123   : > { %v2000_v7 = vadd.f32 %v12972_v6, %v1552_v61  ;;  %v1999_v55 = vadd.f32 %v12972_v6, %v1551_v5  ;;  %v301_v61 = vld [vmem:[%s18354_s1 + $0xf8] sm:$0xff] }
 0x124   : > { %803 = vperm.xlu1 %11342, %v299_v50   ;;  %v2368_v1 = vpack.c.bf16 %v2252_v39, %v2250_v34  ;;  %v2367_v31 = vpack.c.bf16 %v2251_v51, %v2249_v12  ;;  %v1549_v34 = vadd.f32 %v1421_v18, %v1019_v8 }
 0x125   : > { %v12951_v63 = vpop.permute.xlu1 %733  ;;  %v2128_v4 = vmul.f32 0.01, %v2000_v7  ;;  %v2127_v9 = vmul.f32 0.01, %v1999_v55 }
 0x126   : > { %19131 = vst [vmem:[#allocation56_spill] sm:$0xff] %v12951_v63  ;;  %3327 = vmatprep.subr.bf16.mxu0 %v2368_v1  ;;  %v11792_v1 = vld [vmem:[%s18354_s1 + $0xf0] sm:$0xff] }
 0x127   : > { %3328 = vmatpush1.bf16.msra.mxu0 %v2367_v31  ;;  %v2256_v18 = vmax.f32 %v2000_v7, %v2128_v4  ;;  %v2255_v8 = vmax.f32 %v1999_v55, %v2127_v9  ;;  %v1025_v7 = vmul.f32 %v12690_v23, %v12951_v63  ;;  %v1026_v55 = vmul.f32 %v12693_v25, %v12951_v63 }
 0x128   : > { %11343 = vset.pattern.permute.xlu1 %v19120_v19  ;;  %v1425_v4 = vmul.f32 %v12679_v15, %v12594_v26  ;;  %v1426_v9 = vmul.f32 %v12682_v13, %v12594_v26 }
 0x129   : > { %1240 = vperm.xlu1 %11343, %v299_v50   ;;  %v1550_v50 = vadd.f32 %v1422_v49, %v1020_v37 }
 0x12a   : > { %v12974_v10 = vpop.permute.xlu1 %1184 }
 0x12b   : > { %19133 = vst [vmem:[#allocation58_spill] sm:$0xff] %v12974_v10  ;;  %v1427_v37 = vmul.f32 %v12679_v15, %v12974_v10 }
 0x12d   : > { %11344 = vset.pattern.permute.xlu1 %v19111_v11 }
 0x12e   : > { %1785 = vperm.xlu1 %11344, %v360_v59   ;;  %v1428_v59 = vmul.f32 %v12682_v13, %v12974_v10 }
 0x12f   : > { %v12982_v39 = vpop.permute.xlu1 %1715 }
 0x130   : > { %19134 = vst [vmem:[#allocation59_spill] sm:$0xff] %v12982_v39  ;;  %v1998_v12 = vadd.f32 %v12982_v39, %v1550_v50  ;;  %v1997_v51 = vadd.f32 %v12982_v39, %v1549_v34  ;;  %v13003_v39 = vld [vmem:[%s18355_s2 + $0x168] sm:$0xff] }
 0x131   : > { %1880 = vperm.xlu0 %11379, %v13003_v39  }
 0x132   : > { %808 = vperm.xlu1 %11344, %v11792_v1   ;;  %v2126_v31 = vmul.f32 0.01, %v1998_v12  ;;  %v2125_v56 = vmul.f32 0.01, %v1997_v51 }
 0x133   : > { %v12989_v46 = vpop.permute.xlu1 %738 }
 0x134   : > { %19135 = vst [vmem:[#allocation60_spill] sm:$0xff] %v12989_v46  ;;  %v2254_v5 = vmax.f32 %v1998_v12, %v2126_v31  ;;  %v2253_v49 = vmax.f32 %v1997_v51, %v2125_v56  ;;  %v1556_v12 = vadd.f32 %v1428_v59, %v1026_v55  ;;  %v1555_v51 = vadd.f32 %v1427_v37, %v1025_v7 }
 0x135   : > { %v1023_v31 = vmul.f32 %v12690_v23, %v12942_v29  ;;  %v1024_v56 = vmul.f32 %v12693_v25, %v12942_v29 }
 0x136   : > { %813 = vperm.xlu1 %11344, %v301_v61   ;;  %v2370_v34 = vpack.c.bf16 %v2256_v18, %v2254_v5  ;;  %v2369_v1 = vpack.c.bf16 %v2255_v8, %v2253_v49  ;;  %v13019_v5 = vpop.permute.xlu0 %1730 }
 0x137   : > { %v12998_v50 = vpop.permute.xlu1 %743  ;;  %19137 = vst [vmem:[#allocation62_spill] sm:$0xff] %v13019_v5  ;;  %v2004_v49 = vadd.f32 %v13019_v5, %v1556_v12  ;;  %v2003_v8 = vadd.f32 %v13019_v5, %v1555_v51  ;;  %v1554_v37 = vadd.f32 %v1426_v9, %v1024_v56  ;;  %v1553_v59 = vadd.f32 %v1425_v4, %v1023_v31  ;;  %v13041_v51 = vld [vmem:[%s18355_s2 + $0xf8] sm:$0xff]  ;;  %v303_v5 = vld [vmem:[%s18354_s1 + $0x108] sm:$0xff] }
 0x138   : > { %19136 = vst [vmem:[#allocation61_spill] sm:$0xff] %v12998_v50  ;;  %3329 = vmatprep.subr.bf16.mxu0 %v2370_v34 }
 0x139   : > { %3330 = vmatpush1.bf16.msra.mxu0 %v2369_v1  ;;  %v364_v1 = vld [vmem:[%s18355_s2 + $0xf0] sm:$0xff]  ;;  %v2132_v10 = vmul.f32 0.01, %v2004_v49  ;;  %v2131_v63 = vmul.f32 0.01, %v2003_v8 }
 0x13a   : > { %11346 = vset.pattern.permute.xlu1 %v19120_v19 }
 0x13b   : > { %1248 = vperm.xlu1 %11346, %v301_v61   ;;  %v362_v61 = vld [vmem:[%s18355_s2 + $0xe0] sm:$0xff]  ;;  %v2260_v9 = vmax.f32 %v2004_v49, %v2132_v10  ;;  %v2259_v56 = vmax.f32 %v2003_v8, %v2131_v63  ;;  %v1029_v63 = vmul.f32 %v12690_v23, %v12998_v50  ;;  %v1030_v10 = vmul.f32 %v12693_v25, %v12998_v50 }
 0x13c   : > { %v13021_v18 = vpop.permute.xlu1 %1192 }
 0x13d   : > { %19138 = vst [vmem:[#allocation63_spill] sm:$0xff] %v13021_v18 }
 0x13f   : > { %11347 = vset.pattern.permute.xlu1 %v19111_v11 }
 0x140   : > { %1795 = vperm.xlu1 %11347, %v362_v61   ;;  %v1431_v61 = vmul.f32 %v12679_v15, %v13021_v18 }
 0x141   : > { %v13029_v34 = vpop.permute.xlu1 %1725 }
 0x142   : > { %19139 = vst [vmem:[#allocation64_spill] sm:$0xff] %v13029_v34  ;;  %v2002_v7 = vadd.f32 %v13029_v34, %v1554_v37  ;;  %v2001_v55 = vadd.f32 %v13029_v34, %v1553_v59  ;;  %v1432_v37 = vmul.f32 %v12682_v13, %v13021_v18  ;;  %v1559_v8 = vadd.f32 %v1431_v61, %v1029_v63  ;;  %v13087_v63 = vld [vmem:[%s18355_s2 + $0x198] sm:$0xff] }
 0x144   : > { %1805 = vperm.xlu1 %11347, %v364_v1   ;;  %v2130_v29 = vmul.f32 0.01, %v2002_v7  ;;  %v2129_v12 = vmul.f32 0.01, %v2001_v55  ;;  %v1560_v49 = vadd.f32 %v1432_v37, %v1030_v10 }
 0x145   : > { %v13036_v40 = vpop.permute.xlu1 %748 }
 0x146   : > { %19140 = vst [vmem:[#allocation65_spill] sm:$0xff] %v13036_v40  ;;  %v2258_v4 = vmax.f32 %v2002_v7, %v2130_v29  ;;  %v2257_v31 = vmax.f32 %v2001_v55, %v2129_v12  ;;  %v13056_v29 = vld [vmem:[%s18355_s2 + $0x178] sm:$0xff]  ;;  %v1429_v7 = vmul.f32 %v12679_v15, %v12601_v33  ;;  %v1430_v55 = vmul.f32 %v12682_v13, %v12601_v33 }
 0x147   : > { %1890 = vperm.xlu0 %11379, %v13056_v29   ;;  %v1027_v12 = vmul.f32 %v12690_v23, %v12989_v46 }
 0x148   : > { %1810 = vperm.xlu1 %11347, %v13041_v51   ;;  %v2372_v1 = vpack.c.bf16 %v2260_v9, %v2258_v4  ;;  %v2371_v34 = vpack.c.bf16 %v2259_v56, %v2257_v31  ;;  %v1028_v4 = vmul.f32 %v12693_v25, %v12989_v46  ;;  %v13071_v9 = vpop.permute.xlu0 %1740  ;;  %v13078_v31 = vld [vmem:[%s18355_s2 + $0x188] sm:$0xff]  ;;  %v304_v46 = vld [vmem:[%s18354_s1 + $0x110] sm:$0xff] }
 0x149   : > { %v13048_v59 = vpop.permute.xlu1 %753  ;;  %19142 = vst [vmem:[#allocation67_spill] sm:$0xff] %v13071_v9  ;;  %v2008_v56 = vadd.f32 %v13071_v9, %v1560_v49  ;;  %v2007_v61 = vadd.f32 %v13071_v9, %v1559_v8 }
 0x14a   : > { %19141 = vst [vmem:[#allocation66_spill] sm:$0xff] %v13048_v59  ;;  %3331 = vmatprep.subr.bf16.mxu0 %v2372_v1  ;;  %v1558_v37 = vadd.f32 %v1430_v55, %v1028_v4  ;;  %v1557_v1 = vadd.f32 %v1429_v7, %v1027_v12  ;;  %v13101_v4 = vld [vmem:[%s18355_s2 + $0x1a8] sm:$0xff] }
 0x14b   : > { %3332 = vmatpush1.bf16.msra.mxu0 %v2371_v34  ;;  %1900 = vperm.xlu0 %11379, %v13078_v31   ;;  %v2136_v8 = vmul.f32 0.01, %v2008_v56  ;;  %v2135_v55 = vmul.f32 0.01, %v2007_v61 }
 0x14c   : > { %823 = vperm.xlu1 %11347, %v303_v5  }
 0x14e   : > { %v13073_v34 = vpop.permute.xlu1 %1200 }
 0x14f   : > { %19143 = vst [vmem:[#allocation68_spill] sm:$0xff] %v13073_v34  ;;  %1910 = vperm.xlu0 %11379, %v13087_v63   ;;  %v1435_v6 = vmul.f32 %v12679_v15, %v13073_v34  ;;  %v1436_v48 = vmul.f32 %v12682_v13, %v13073_v34 }
 0x150   : > { %11349 = vset.pattern.permute.xlu1 %v19120_v19 }
 0x151   : > { %1256 = vperm.xlu1 %11349, %v303_v5  }
 0x153   : > { %v13089_v10 = vpop.permute.xlu1 %1735  ;;  %1920 = vperm.xlu0 %11379, %v13101_v4  }
 0x154   : > { %19144 = vst [vmem:[#allocation69_spill] sm:$0xff] %v13089_v10  ;;  %v2006_v5 = vadd.f32 %v13089_v10, %v1558_v37  ;;  %v2005_v49 = vadd.f32 %v13089_v10, %v1557_v1  ;;  %v2264_v37 = vmax.f32 %v2008_v56, %v2136_v8  ;;  %v2263_v1 = vmax.f32 %v2007_v61, %v2135_v55  ;;  %v13110_v10 = vld [vmem:[%s18355_s2 + $0x1b8] sm:$0xff] }
 0x155   : > { %11350 = vset.pattern.permute.xlu1 %v19111_v11  ;;  %v1033_v8 = vmul.f32 %v12690_v23, %v13048_v59  ;;  %v1034_v55 = vmul.f32 %v12693_v25, %v13048_v59 }
 0x156   : > { %828 = vperm.xlu1 %11350, %v304_v46   ;;  %v2134_v7 = vmul.f32 0.01, %v2006_v5  ;;  %v2133_v12 = vmul.f32 0.01, %v2005_v49 }
 0x157   : > { %v13103_v9 = vpop.permute.xlu1 %758  ;;  %1930 = vperm.xlu0 %11379, %v13110_v10  }
 0x158   : > { %19145 = vst [vmem:[#allocation70_spill] sm:$0xff] %v13103_v9  ;;  %v2262_v50 = vmax.f32 %v2006_v5, %v2134_v7  ;;  %v2261_v18 = vmax.f32 %v2005_v49, %v2133_v12  ;;  %v13118_v49 = vpop.permute.xlu0 %1750  ;;  %v1433_v7 = vmul.f32 %v12679_v15, %v12609_v35  ;;  %v1434_v12 = vmul.f32 %v12682_v13, %v12609_v35 }
 0x159   : > { %19147 = vst [vmem:[#allocation72_spill] sm:$0xff] %v13118_v49 }
 0x15a   : > { %11351 = vset.pattern.permute.xlu1 %v19120_v19  ;;  %v2374_v56 = vpack.c.bf16 %v2264_v37, %v2262_v50  ;;  %v2373_v61 = vpack.c.bf16 %v2263_v1, %v2261_v18  ;;  %v1564_v50 = vadd.f32 %v1436_v48, %v1034_v55  ;;  %v1563_v18 = vadd.f32 %v1435_v6, %v1033_v8  ;;  %v13152_v48 = vld [vmem:[%s18355_s2 + $0x1d8] sm:$0xff] }
 0x15b   : > { %1260 = vperm.xlu1 %11351, %v304_v46   ;;  %v13116_v5 = vpop.permute.xlu1 %763  ;;  %v13128_v46 = vld [vmem:[%s18355_s2 + $0x1c8] sm:$0xff]  ;;  %v1031_v37 = vmul.f32 %v12690_v23, %v13036_v40  ;;  %v1032_v1 = vmul.f32 %v12693_v25, %v13036_v40 }
 0x15c   : > { %19146 = vst [vmem:[#allocation71_spill] sm:$0xff] %v13116_v5  ;;  %3333 = vmatprep.subr.bf16.mxu0 %v2374_v56  ;;  %1940 = vperm.xlu0 %11379, %v13128_v46   ;;  %v2012_v6 = vadd.f32 %v13118_v49, %v1564_v50  ;;  %v2011_v8 = vadd.f32 %v13118_v49, %v1563_v18  ;;  %v13171_v18 = vld [vmem:[%s18355_s2 + $0x1e8] sm:$0xff] }
 0x15d   : > { %3334 = vmatpush1.bf16.msra.mxu0 %v2373_v61  ;;  %v13141_v61 = vpop.permute.xlu0 %1760  ;;  %v1562_v55 = vadd.f32 %v1434_v12, %v1032_v1  ;;  %v1561_v40 = vadd.f32 %v1433_v7, %v1031_v37 }
 0x15e   : > { %19149 = vst [vmem:[#allocation74_spill] sm:$0xff] %v13141_v61  ;;  %v2140_v7 = vmul.f32 0.01, %v2012_v6  ;;  %v2139_v12 = vmul.f32 0.01, %v2011_v8 }
 0x15f   : > { %1264 = vperm.xlu1 %11351, %v12773_v58   ;;  %v13146_v58 = vld [vmem:[%s18355_s2 + $0x108] sm:$0xff] }
 0x160   : > { %v13139_v56 = vpop.permute.xlu1 %1208  ;;  %1950 = vperm.xlu0 %11379, %v13152_v48  }
 0x161   : > { %19148 = vst [vmem:[#allocation73_spill] sm:$0xff] %v13139_v56  ;;  %v13158_v59 = vpop.permute.xlu0 %1770  ;;  %v1439_v14 = vmul.f32 %v12679_v15, %v13139_v56  ;;  %v1440_v43 = vmul.f32 %v12682_v13, %v13139_v56 }
 0x162   : > { %19150 = vst [vmem:[#allocation75_spill] sm:$0xff] %v13158_v59 }
 0x163   : > { %11352 = vset.pattern.permute.xlu1 %v19111_v11 }
 0x164   : > { %1820 = vperm.xlu1 %11352, %v13146_v58   ;;  %1960 = vperm.xlu0 %11379, %v13171_v18  }
 0x165   : > { %v13160_v34 = vpop.permute.xlu1 %1745  ;;  %v13173_v49 = vpop.permute.xlu0 %1780 }
 0x166   : > { %19151 = vst [vmem:[#allocation76_spill] sm:$0xff] %v13160_v34  ;;  %v2010_v30 = vadd.f32 %v13160_v34, %v1562_v55  ;;  %v2009_v50 = vadd.f32 %v13160_v34, %v1561_v40  ;;  %19152 = vst [vmem:[#allocation77_spill] sm:$0xff] %v13173_v49  ;;  %v2268_v55 = vmax.f32 %v2012_v6, %v2140_v7  ;;  %v11392_v34 = vld [vmem:[%s18356_s3 + $0x4] ss:$16 sps:$4 sm:$0xff]  }
 0x167   : > { %v2267_v40 = vmax.f32 %v2011_v8, %v2139_v12  ;;  %3349 = vmatprep.mubr.bf16.mxu0 %v11392_v34  ;;  %v1037_v8 = vmul.f32 %v12690_v23, %v13116_v5  ;;  %v368_v7 = vld [vmem:[%s18355_s2 + $0x110] sm:$0xff]  ;;  %v1437_v34 = vmul.f32 %v12679_v15, %v12618_v38  ;;  %v1438_v12 = vmul.f32 %v12682_v13, %v12618_v38 }
 0x168   : > { %843 = vperm.xlu1 %11352, %v307_v54   ;;  %v2138_v37 = vmul.f32 0.01, %v2010_v30  ;;  %v2137_v1 = vmul.f32 0.01, %v2009_v50  ;;  %11382 = vset.pattern.permute.xlu0 %v19120_v19 }
 0x169   : > { %v13175_v22 = vpop.permute.xlu1 %768  ;;  %v13184_v3 = vpop.permute.xlu0 %1790 }
 0x16a   : > { %19153 = vst [vmem:[#allocation78_spill] sm:$0xff] %v13175_v22  ;;  %v2266_v24 = vmax.f32 %v2010_v30, %v2138_v37  ;;  %v2265_v28 = vmax.f32 %v2009_v50, %v2137_v1  ;;  %19154 = vst [vmem:[#allocation79_spill] sm:$0xff] %v13184_v3  ;;  %v1038_v50 = vmul.f32 %v12693_v25, %v13116_v5 }
 0x16b   : > { %v1035_v37 = vmul.f32 %v12690_v23, %v13103_v9  ;;  %v1036_v1 = vmul.f32 %v12693_v25, %v13103_v9 }
 0x16c   : > { %11353 = vset.pattern.permute.xlu1 %v19120_v19  ;;  %v2376_v30 = vpack.c.bf16 %v2268_v55, %v2266_v24  ;;  %v2375_v6 = vpack.c.bf16 %v2267_v40, %v2265_v28  ;;  %v1567_v24 = vadd.f32 %v1439_v14, %v1037_v8  ;;  %v11793_v28 = vld [vmem:[%s18355_s2] sm:$0xff] }
 0x16d   : > { %1272 = vperm.xlu1 %11353, %v307_v54   ;;  %v13188_v57 = vpop.permute.xlu1 %773  ;;  %v1568_v54 = vadd.f32 %v1440_v43, %v1038_v50  ;;  %2422 = vperm.xlu0 %11382, %v11793_v28   ;;  %v13212_v14 = vpop.permute.xlu0 %1800  ;;  %v1566_v8 = vadd.f32 %v1438_v12, %v1036_v1  ;;  %v1565_v50 = vadd.f32 %v1437_v34, %v1035_v37 }
 0x16e   : > { %19155 = vst [vmem:[#allocation80_spill] sm:$0xff] %v13188_v57  ;;  %3335 = vmatprep.subr.bf16.mxu0 %v2376_v30  ;;  %19157 = vst [vmem:[#allocation82_spill] sm:$0xff] %v13212_v14  ;;  %v2015_v40 = vadd.f32 %v13141_v61, %v1567_v24  ;;  %v11794_v30 = vld [vmem:[%s18355_s2 + $0x18] sm:$0xff] }
 0x16f   : > { %3336 = vmatpush1.bf16.msra.mxu0 %v2375_v6  ;;  %v2016_v55 = vadd.f32 %v13141_v61, %v1568_v54  ;;  %v11795_v6 = vld [vmem:[%s18354_s1 + $0x130] sm:$0xff]  ;;  %v309_v54 = vld [vmem:[%s18354_s1 + $0x138] sm:$0xff] }
 0x170   : > { %v2143_v9 = vmul.f32 0.01, %v2015_v40 }
 0x171   : > { %11354 = vset.pattern.permute.xlu1 %v19111_v11  ;;  %2434 = vperm.xlu0 %11382, %v11794_v30   ;;  %v13229_v61 = vpop.permute.xlu0 %1252  ;;  %v2144_v30 = vmul.f32 0.01, %v2016_v55 }
 0x172   : > { %1825 = vperm.xlu1 %11354, %v368_v7   ;;  %v13210_v43 = vpop.permute.xlu1 %1216  ;;  %19159 = vst [vmem:[#allocation84_spill] sm:$0xff] %v13229_v61 }
 0x173   : > { %19156 = vst [vmem:[#allocation81_spill] sm:$0xff] %v13210_v43  ;;  %v2272_v5 = vmax.f32 %v2016_v55, %v2144_v30  ;;  %v1444_v32 = vmul.f32 %v12682_v13, %v13210_v43  ;;  %v370_v30 = vld [vmem:[%s18355_s2 + $0x120] sm:$0xff] }
 0x176   : > { %848 = vperm.xlu1 %11354, %v11795_v6   ;;  %v11796_v6 = vld [vmem:[%s18355_s2 + $0x28] sm:$0xff] }
 0x177   : > { %v13222_v7 = vpop.permute.xlu1 %1755  ;;  %2442 = vperm.xlu0 %11382, %v11796_v6   ;;  %v1443_v6 = vmul.f32 %v12679_v15, %v13210_v43 }
 0x178   : > { %19158 = vst [vmem:[#allocation83_spill] sm:$0xff] %v13222_v7  ;;  %v2014_v24 = vadd.f32 %v13222_v7, %v1566_v8  ;;  %v2013_v28 = vadd.f32 %v13222_v7, %v1565_v50  ;;  %v2271_v8 = vmax.f32 %v2015_v40, %v2143_v9  ;;  %v11797_v50 = vld [vmem:[%s18355_s2 + $0x38] sm:$0xff]  ;;  %v13240_v7 = vpop.permute.xlu0 %1268  ;;  %v1041_v40 = vmul.f32 %v12690_v23, %v13188_v57 }
 0x179   : > { %19161 = vst [vmem:[#allocation86_spill] sm:$0xff] %v13240_v7 }
 0x17a   : > { %853 = vperm.xlu1 %11354, %v309_v54   ;;  %v2142_v34 = vmul.f32 0.01, %v2014_v24  ;;  %v2141_v12 = vmul.f32 0.01, %v2013_v28 }
 0x17b   : > { %v13234_v37 = vpop.permute.xlu1 %778  ;;  %2450 = vperm.xlu0 %11382, %v11797_v50   ;;  %v1441_v50 = vmul.f32 %v12679_v15, %v12626_v41 }
 0x17c   : > { %19160 = vst [vmem:[#allocation85_spill] sm:$0xff] %v13234_v37  ;;  %v2270_v1 = vmax.f32 %v2014_v24, %v2142_v34  ;;  %v2269_v56 = vmax.f32 %v2013_v28, %v2141_v12  ;;  %v1042_v28 = vmul.f32 %v12693_v25, %v13188_v57  ;;  %v1039_v34 = vmul.f32 %v12690_v23, %v13175_v22 }
 0x17d   : > { %v1040_v12 = vmul.f32 %v12693_v25, %v13175_v22  ;;  %v311_v22 = vld [vmem:[%s18354_s1 + $0x148] sm:$0xff] }
 0x17e   : > { %11355 = vset.pattern.permute.xlu1 %v19120_v19  ;;  %v2378_v55 = vpack.c.bf16 %v2272_v5, %v2270_v1  ;;  %v2377_v9 = vpack.c.bf16 %v2271_v8, %v2269_v56  ;;  %v1572_v5 = vadd.f32 %v1444_v32, %v1042_v28  ;;  %v1571_v56 = vadd.f32 %v1443_v6, %v1041_v40  ;;  %v13265_v8 = vpop.permute.xlu0 %1276  ;;  %v11799_v32 = vld [vmem:[%s18355_s2 + $0x58] sm:$0xff]  ;;  %v11800_v40 = vld [vmem:[%s18354_s1 + $0x140] sm:$0xff] }
 0x17f   : > { %1280 = vperm.xlu1 %11355, %v309_v54   ;;  %v13246_v24 = vpop.permute.xlu1 %783  ;;  %v11798_v54 = vld [vmem:[%s18355_s2 + $0x48] sm:$0xff]  ;;  %19164 = vst [vmem:[#allocation89_spill] sm:$0xff] %v13265_v8 }
 0x180   : > { %19162 = vst [vmem:[#allocation87_spill] sm:$0xff] %v13246_v24  ;;  %3337 = vmatprep.subr.bf16.mxu0 %v2378_v55  ;;  %2458 = vperm.xlu0 %11382, %v11798_v54   ;;  %v1442_v55 = vmul.f32 %v12682_v13, %v12626_v41  ;;  %v2020_v6 = vadd.f32 %v13158_v59, %v1572_v5 }
 0x181   : > { %3338 = vmatpush1.bf16.msra.mxu0 %v2377_v9  ;;  %v2019_v9 = vadd.f32 %v13158_v59, %v1571_v56  ;;  %v11801_v56 = vld [vmem:[%s18355_s2 + $0x68] sm:$0xff] }
 0x182   : > { %v1570_v28 = vadd.f32 %v1442_v55, %v1040_v12  ;;  %v13286_v5 = vpop.permute.xlu0 %1284 }
 0x183   : > { %11356 = vset.pattern.permute.xlu1 %v19111_v11  ;;  %19166 = vst [vmem:[#allocation91_spill] sm:$0xff] %v13286_v5  ;;  %v2147_v12 = vmul.f32 0.01, %v2019_v9 }
 0x184   : > { %1835 = vperm.xlu1 %11356, %v370_v30   ;;  %v13263_v1 = vpop.permute.xlu1 %1224  ;;  %2466 = vperm.xlu0 %11382, %v11799_v32   ;;  %v1569_v30 = vadd.f32 %v1441_v50, %v1039_v34 }
 0x185   : > { %19163 = vst [vmem:[#allocation88_spill] sm:$0xff] %v13263_v1  ;;  %v2275_v43 = vmax.f32 %v2019_v9, %v2147_v12  ;;  %v1448_v27 = vmul.f32 %v12682_v13, %v13263_v1  ;;  %v1046_v9 = vmul.f32 %v12693_v25, %v13246_v24 }
 0x186   : > { %v13297_v42 = vpop.permute.xlu0 %1292 }
 0x187   : > { %19168 = vst [vmem:[#allocation93_spill] sm:$0xff] %v13297_v42 }
 0x188   : > { %858 = vperm.xlu1 %11356, %v11800_v40   ;;  %2474 = vperm.xlu0 %11382, %v11801_v56   ;;  %v2148_v40 = vmul.f32 0.01, %v2020_v6  ;;  %v1447_v56 = vmul.f32 %v12679_v15, %v13263_v1 }
 0x189   : > { %v13279_v54 = vpop.permute.xlu1 %1765 }
 0x18a   : > { %19165 = vst [vmem:[#allocation90_spill] sm:$0xff] %v13279_v54  ;;  %v2018_v57 = vadd.f32 %v13279_v54, %v1570_v28  ;;  %v2017_v32 = vadd.f32 %v13279_v54, %v1569_v30  ;;  %v11802_v28 = vld [vmem:[%s18355_s2 + $0x78] sm:$0xff]  ;;  %v2276_v54 = vmax.f32 %v2020_v6, %v2148_v40  ;;  %v1045_v6 = vmul.f32 %v12690_v23, %v13246_v24  ;;  %v13322_v12 = vpop.permute.xlu0 %1300  ;;  %v11808_v24 = vld [vmem:[%s18355_s2 + $0xc8] sm:$0xff] }
 0x18b   : > { %19171 = vst [vmem:[#allocation96_spill] sm:$0xff] %v13322_v12 }
 0x18c   : > { %863 = vperm.xlu1 %11356, %v311_v22   ;;  %v2146_v34 = vmul.f32 0.01, %v2018_v57  ;;  %v2145_v50 = vmul.f32 0.01, %v2017_v32  ;;  %2482 = vperm.xlu0 %11382, %v11802_v28   ;;  %v11805_v28 = vld [vmem:[%s18354_s1 + $0x150] sm:$0xff] }
 0x18d   : > { %v13291_v55 = vpop.permute.xlu1 %788 }
 0x18e   : > { %19167 = vst [vmem:[#allocation92_spill] sm:$0xff] %v13291_v55  ;;  %v2274_v30 = vmax.f32 %v2018_v57, %v2146_v34  ;;  %v2273_v59 = vmax.f32 %v2017_v32, %v2145_v50  ;;  %v11803_v57 = vld [vmem:[%s18355_s2 + $0x88] sm:$0xff]  ;;  %v1044_v32 = vmul.f32 %v12693_v25, %v13234_v37 }
 0x190   : > { %11357 = vset.pattern.permute.xlu1 %v19120_v19  ;;  %v2380_v41 = vpack.c.bf16 %v2276_v54, %v2274_v30  ;;  %v2379_v38 = vpack.c.bf16 %v2275_v43, %v2273_v59  ;;  %2490 = vperm.xlu0 %11382, %v11803_v57   ;;  %v1576_v59 = vadd.f32 %v1448_v27, %v1046_v9  ;;  %v11806_v57 = vld [vmem:[%s18355_s2 + $0xa8] sm:$0xff]  ;;  %v313_v9 = vld [vmem:[%s18354_s1 + $0x158] sm:$0xff] }
 0x191   : > { %1288 = vperm.xlu1 %11357, %v311_v22   ;;  %v13303_v17 = vpop.permute.xlu1 %793  ;;  %v372_v22 = vld [vmem:[%s18355_s2 + $0x130] sm:$0xff]  ;;  %v1575_v43 = vadd.f32 %v1447_v56, %v1045_v6  ;;  %v1043_v54 = vmul.f32 %v12690_v23, %v13234_v37  ;;  %v1446_v27 = vmul.f32 %v12682_v13, %v12636_v45 }
 0x192   : > { %19169 = vst [vmem:[#allocation94_spill] sm:$0xff] %v13303_v17  ;;  %3339 = vmatprep.subr.bf16.mxu0 %v2380_v41  ;;  %v11804_v41 = vld [vmem:[%s18355_s2 + $0x98] sm:$0xff]  ;;  %v2024_v34 = vadd.f32 %v13173_v49, %v1576_v59 }
 0x193   : > { %3340 = vmatpush1.bf16.msra.mxu0 %v2379_v38  ;;  %v1445_v38 = vmul.f32 %v12679_v15, %v12636_v45  ;;  %v2023_v50 = vadd.f32 %v13173_v49, %v1575_v43  ;;  %v1574_v30 = vadd.f32 %v1446_v27, %v1044_v32  ;;  %v13346_v43 = vpop.permute.xlu0 %1308  ;;  %v11807_v27 = vld [vmem:[%s18355_s2 + $0xb8] sm:$0xff] }
 0x194   : > { %2498 = vperm.xlu0 %11382, %v11804_v41   ;;  %19173 = vst [vmem:[#allocation98_spill] sm:$0xff] %v13346_v43  ;;  %v2152_v41 = vmul.f32 0.01, %v2024_v34 }
 0x195   : > { %11358 = vset.pattern.permute.xlu1 %v19111_v11  ;;  %v1573_v56 = vadd.f32 %v1445_v38, %v1043_v54  ;;  %v2151_v32 = vmul.f32 0.01, %v2023_v50 }
 0x196   : > { %1845 = vperm.xlu1 %11358, %v372_v22   ;;  %v13320_v40 = vpop.permute.xlu1 %1232  ;;  %v2280_v49 = vmax.f32 %v2024_v34, %v2152_v41  ;;  %v1049_v41 = vmul.f32 %v12690_v23, %v13303_v17 }
 0x197   : > { %19170 = vst [vmem:[#allocation95_spill] sm:$0xff] %v13320_v40 }
 0x198   : > { %2506 = vperm.xlu0 %11382, %v11806_v57  }
 0x19a   : > { %868 = vperm.xlu1 %11358, %v11805_v28  }
 0x19b   : > { %v13339_v6 = vpop.permute.xlu1 %1775 }
 0x19c   : > { %19172 = vst [vmem:[#allocation97_spill] sm:$0xff] %v13339_v6  ;;  %v2022_v22 = vadd.f32 %v13339_v6, %v1574_v30  ;;  %v2021_v59 = vadd.f32 %v13339_v6, %v1573_v56  ;;  %2514 = vperm.xlu0 %11382, %v11807_v27   ;;  %v2279_v30 = vmax.f32 %v2023_v50, %v2151_v32  ;;  %v13356_v6 = vpop.permute.xlu0 %1316  ;;  %v374_v32 = vld [vmem:[%s18355_s2 + $0x140] sm:$0xff] }
 0x19d   : > { %v1452_v56 = vmul.f32 %v12682_v13, %v13320_v40  ;;  %19175 = vst [vmem:[#allocation100_spill] sm:$0xff] %v13356_v6  ;;  %v1451_v27 = vmul.f32 %v12679_v15, %v13320_v40 }
 0x19e   : > { %873 = vperm.xlu1 %11358, %v313_v9   ;;  %v2150_v54 = vmul.f32 0.01, %v2022_v22  ;;  %v2149_v38 = vmul.f32 0.01, %v2021_v59 }
 0x19f   : > { %v13351_v28 = vpop.permute.xlu1 %798 }
 0x1a0   : > { %19174 = vst [vmem:[#allocation99_spill] sm:$0xff] %v13351_v28  ;;  %v2278_v57 = vmax.f32 %v2022_v22, %v2150_v54  ;;  %v2277_v37 = vmax.f32 %v2021_v59, %v2149_v38  ;;  %2522 = vperm.xlu0 %11382, %v11808_v24   ;;  %v1050_v59 = vmul.f32 %v12693_v25, %v13303_v17 }
 0x1a1   : > { %v1048_v54 = vmul.f32 %v12693_v25, %v13291_v55 }
 0x1a2   : > { %11359 = vset.pattern.permute.xlu1 %v19120_v19  ;;  %v2382_v34 = vpack.c.bf16 %v2280_v49, %v2278_v57  ;;  %v2381_v50 = vpack.c.bf16 %v2279_v30, %v2277_v37  ;;  %v1580_v24 = vadd.f32 %v1452_v56, %v1050_v59  ;;  %v1579_v49 = vadd.f32 %v1451_v27, %v1049_v41  ;;  %v13382_v57 = vpop.permute.xlu0 %1324  ;;  %v11810_v27 = vld [vmem:[%s18355_s2 + $0xe8] sm:$0xff]  ;;  %v11811_v59 = vld [vmem:[%s18354_s1 + $0x160] sm:$0xff] }
 0x1a3   : > { %1296 = vperm.xlu1 %11359, %v313_v9   ;;  %v13363_v22 = vpop.permute.xlu1 %803  ;;  %v11809_v9 = vld [vmem:[%s18355_s2 + $0xd8] sm:$0xff]  ;;  %v1047_v37 = vmul.f32 %v12690_v23, %v13291_v55  ;;  %19178 = vst [vmem:[#allocation103_spill] sm:$0xff] %v13382_v57  ;;  %v1449_v30 = vmul.f32 %v12679_v15, %v12644_v47  ;;  %v1450_v56 = vmul.f32 %v12682_v13, %v12644_v47 }
 0x1a4   : > { %19176 = vst [vmem:[#allocation101_spill] sm:$0xff] %v13363_v22  ;;  %3341 = vmatprep.subr.bf16.mxu0 %v2382_v34  ;;  %2530 = vperm.xlu0 %11382, %v11809_v9   ;;  %v2028_v34 = vadd.f32 %v13184_v3, %v1580_v24  ;;  %v315_v24 = vld [vmem:[%s18354_s1 + $0x168] sm:$0xff] }
 0x1a5   : > { %3342 = vmatpush1.bf16.msra.mxu0 %v2381_v50  ;;  %v2027_v50 = vadd.f32 %v13184_v3, %v1579_v49  ;;  %v1578_v41 = vadd.f32 %v1450_v56, %v1048_v54 }
 0x1a6   : > { %v2156_v40 = vmul.f32 0.01, %v2028_v34  ;;  %v13403_v55 = vpop.permute.xlu0 %1332 }
 0x1a7   : > { %11360 = vset.pattern.permute.xlu1 %v19111_v11  ;;  %19180 = vst [vmem:[#allocation105_spill] sm:$0xff] %v13403_v55  ;;  %v2155_v49 = vmul.f32 0.01, %v2027_v50 }
 0x1a8   : > { %1855 = vperm.xlu1 %11360, %v374_v32   ;;  %v13380_v38 = vpop.permute.xlu1 %1240  ;;  %2538 = vperm.xlu0 %11382, %v11810_v27   ;;  %v1577_v32 = vadd.f32 %v1449_v30, %v1047_v37  ;;  %v2284_v30 = vmax.f32 %v2028_v34, %v2156_v40 }
 0x1a9   : > { %19177 = vst [vmem:[#allocation102_spill] sm:$0xff] %v13380_v38  ;;  %v1456_v56 = vmul.f32 %v12682_v13, %v13380_v38  ;;  %v2283_v1 = vmax.f32 %v2027_v50, %v2155_v49  ;;  %v376_v50 = vld [vmem:[%s18355_s2 + $0x150] sm:$0xff] }
 0x1ac   : > { %878 = vperm.xlu1 %11360, %v11811_v59   ;;  %2546 = vperm.xlu0 %11382, %v13041_v51   ;;  %v13414_v51 = vpop.permute.xlu0 %1340 }
 0x1ad   : > { %v13396_v9 = vpop.permute.xlu1 %1785  ;;  %19182 = vst [vmem:[#allocation107_spill] sm:$0xff] %v13414_v51 }
 0x1ae   : > { %19179 = vst [vmem:[#allocation104_spill] sm:$0xff] %v13396_v9  ;;  %v2026_v17 = vadd.f32 %v13396_v9, %v1578_v41  ;;  %v2025_v27 = vadd.f32 %v13396_v9, %v1577_v32  ;;  %v1455_v32 = vmul.f32 %v12679_v15, %v13380_v38  ;;  %v1054_v9 = vmul.f32 %v12693_v25, %v13363_v22 }
 0x1b0   : > { %883 = vperm.xlu1 %11360, %v315_v24   ;;  %v2154_v59 = vmul.f32 0.01, %v2026_v17  ;;  %v2153_v54 = vmul.f32 0.01, %v2025_v27  ;;  %2554 = vperm.xlu0 %11382, %v13146_v58  }
 0x1b1   : > { %v13406_v37 = vpop.permute.xlu1 %808 }
 0x1b2   : > { %19181 = vst [vmem:[#allocation106_spill] sm:$0xff] %v13406_v37  ;;  %v2282_v41 = vmax.f32 %v2026_v17, %v2154_v59  ;;  %v2281_v3 = vmax.f32 %v2025_v27, %v2153_v54  ;;  %v1053_v17 = vmul.f32 %v12690_v23, %v13363_v22  ;;  %v1584_v27 = vadd.f32 %v1456_v56, %v1054_v9  ;;  %v11812_v56 = vld [vmem:[%s18354_s1 + $0x170] sm:$0xff] }
 0x1b3   : > { %v1453_v9 = vmul.f32 %v12679_v15, %v12658_v53  ;;  %v1454_v54 = vmul.f32 %v12682_v13, %v12658_v53 }
 0x1b4   : > { %11361 = vset.pattern.permute.xlu1 %v19120_v19  ;;  %v2384_v58 = vpack.c.bf16 %v2284_v30, %v2282_v41  ;;  %v2383_v34 = vpack.c.bf16 %v2283_v1, %v2281_v3  ;;  %2562 = vperm.xlu0 %11382, %v12847_v36   ;;  %v1583_v49 = vadd.f32 %v1455_v32, %v1053_v17  ;;  %v13433_v36 = vpop.permute.xlu0 %1348  ;;  %v317_v17 = vld [vmem:[%s18354_s1 + $0x178] sm:$0xff] }
 0x1b5   : > { %1304 = vperm.xlu1 %11361, %v315_v24   ;;  %v13418_v40 = vpop.permute.xlu1 %813  ;;  %v1051_v24 = vmul.f32 %v12690_v23, %v13351_v28  ;;  %v1052_v3 = vmul.f32 %v12693_v25, %v13351_v28  ;;  %19185 = vst [vmem:[#allocation110_spill] sm:$0xff] %v13433_v36  ;;  %v2032_v59 = vadd.f32 %v13212_v14, %v1584_v27 }
 0x1b6   : > { %19183 = vst [vmem:[#allocation108_spill] sm:$0xff] %v13418_v40  ;;  %3343 = vmatprep.subr.bf16.mxu0 %v2384_v58  ;;  %v2031_v30 = vadd.f32 %v13212_v14, %v1583_v49  ;;  %v1056_v58 = vmul.f32 %v12693_v25, %v13406_v37  ;;  %v1057_v28 = vmul.f32 %v12690_v23, %v13418_v40 }
 0x1b7   : > { %3344 = vmatpush1.bf16.msra.mxu0 %v2383_v34  ;;  %v1582_v41 = vadd.f32 %v1454_v54, %v1052_v3  ;;  %v1581_v32 = vadd.f32 %v1453_v9, %v1051_v24  ;;  %v1457_v3 = vmul.f32 %v12679_v15, %v12672_v2  ;;  %v1458_v9 = vmul.f32 %v12682_v13, %v12672_v2 }
 0x1b8   : > { %2570 = vperm.xlu0 %11382, %v12865_v62   ;;  %v1055_v62 = vmul.f32 %v12690_v23, %v13406_v37  ;;  %v13455_v27 = vpop.permute.xlu0 %1356 }
 0x1b9   : > { %11362 = vset.pattern.permute.xlu1 %v19111_v11  ;;  %19187 = vst [vmem:[#allocation112_spill] sm:$0xff] %v13455_v27  ;;  %v1586_v22 = vadd.f32 %v1458_v9, %v1056_v58 }
 0x1ba   : > { %1865 = vperm.xlu1 %11362, %v376_v50   ;;  %v13431_v1 = vpop.permute.xlu1 %1248  ;;  %v2160_v50 = vmul.f32 0.01, %v2032_v59  ;;  %v1585_v38 = vadd.f32 %v1457_v3, %v1055_v62  ;;  %v1462_v3 = vmul.f32 %v12682_v13, %v13229_v61 }
 0x1bb   : > { %19184 = vst [vmem:[#allocation109_spill] sm:$0xff] %v13431_v1  ;;  %v1460_v54 = vmul.f32 %v12682_v13, %v13431_v1 }
 0x1bc   : > { %2578 = vperm.xlu0 %11382, %v12883_v21   ;;  %v2159_v21 = vmul.f32 0.01, %v2031_v30  ;;  %v13477_v35 = vpop.permute.xlu0 %1364 }
 0x1be   : > { %888 = vperm.xlu1 %11362, %v11812_v56   ;;  %v1459_v56 = vmul.f32 %v12679_v15, %v13431_v1  ;;  %v2287_v2 = vmax.f32 %v2031_v30, %v2159_v21  ;;  %v1461_v21 = vmul.f32 %v12679_v15, %v13229_v61 }
 0x1bf   : > { %v13450_v34 = vpop.permute.xlu1 %1795 }
 0x1c0   : > { %19186 = vst [vmem:[#allocation111_spill] sm:$0xff] %v13450_v34  ;;  %v2030_v49 = vadd.f32 %v13450_v34, %v1582_v41  ;;  %v2029_v24 = vadd.f32 %v13450_v34, %v1581_v32  ;;  %2586 = vperm.xlu0 %11382, %v12905_v0   ;;  %v1058_v41 = vmul.f32 %v12693_v25, %v13418_v40 }
 0x1c1   : > { %v2288_v34 = vmax.f32 %v2032_v59, %v2160_v50  ;;  %v1587_v59 = vadd.f32 %v1459_v56, %v1057_v28  ;;  %v13491_v28 = vpop.permute.xlu0 %1372  ;;  %v11395_v56 = vld [vmem:[%s18356_s3 + $0x20] ss:$16 sps:$4 sm:$0xff]  }
 0x1c2   : > { %893 = vperm.xlu1 %11362, %v317_v17   ;;  %v2158_v14 = vmul.f32 0.01, %v2030_v49  ;;  %v2157_v37 = vmul.f32 0.01, %v2029_v24  ;;  %v1588_v1 = vadd.f32 %v1460_v54, %v1058_v41  ;;  %19191 = vst [vmem:[#allocation116_spill] sm:$0xff] %v13491_v28 }
 0x1c3   : > { %v13470_v32 = vpop.permute.xlu1 %1805 }
 0x1c4   : > { %19188 = vst [vmem:[#allocation113_spill] sm:$0xff] %v13470_v32  ;;  %v2286_v27 = vmax.f32 %v2030_v49, %v2158_v14  ;;  %v2285_v36 = vmax.f32 %v2029_v24, %v2157_v37  ;;  %v2034_v53 = vadd.f32 %v13470_v32, %v1586_v22  ;;  %v2033_v47 = vadd.f32 %v13470_v32, %v1585_v38  ;;  %v378_v22 = vld [vmem:[%s18355_s2 + $0x160] sm:$0xff]  ;;  %v319_v49 = vld [vmem:[%s18354_s1 + $0x188] sm:$0xff] }
 0x1c5   : > { %2594 = vperm.xlu0 %11382, %v12956_v44  }
 0x1c6   : > { %11363 = vset.pattern.permute.xlu1 %v19120_v19  ;;  %v2386_v0 = vpack.c.bf16 %v2288_v34, %v2286_v27  ;;  %v2385_v45 = vpack.c.bf16 %v2287_v2, %v2285_v36  ;;  %v2162_v38 = vmul.f32 0.01, %v2034_v53  ;;  %v2161_v2 = vmul.f32 0.01, %v2033_v47  ;;  %v11813_v27 = vld [vmem:[%s18354_s1 + $0x180] sm:$0xff] }
 0x1c7   : > { %1312 = vperm.xlu1 %11363, %v317_v17   ;;  %v13480_v62 = vpop.permute.xlu1 %1810 }
 0x1c8   : > { %19189 = vst [vmem:[#allocation114_spill] sm:$0xff] %v13480_v62  ;;  %3345 = vmatprep.subr.bf16.mxu0 %v2386_v0  ;;  %v2036_v14 = vadd.f32 %v13480_v62, %v1588_v1  ;;  %v2035_v37 = vadd.f32 %v13480_v62, %v1587_v59  ;;  %v2290_v1 = vmax.f32 %v2034_v53, %v2162_v38  ;;  %v13505_v53 = vpop.permute.xlu0 %818  ;;  %v11396_v0 = vld [vmem:[%s18356_s3 + $0x44] ss:$16 sps:$4 sm:$0xff]  }
 0x1c9   : > { %3346 = vmatpush1.bf16.msra.mxu0 %v2385_v45  ;;  %2602 = vperm.xlu0 %11382, %v13003_v39   ;;  %v2289_v45 = vmax.f32 %v2033_v47, %v2161_v2  ;;  %v11390_v47 = vld [vmem:[%s18356_s3] ss:$16 sps:$4 sm:$0xff]   ;;  %19193 = vst [vmem:[#allocation118_spill] sm:$0xff] %v13505_v53  ;;  %v1059_v9 = vmul.f32 %v12690_v23, %v13505_v53 }
 0x1ca   : > { %v2164_v36 = vmul.f32 0.01, %v2036_v14  ;;  %v2163_v30 = vmul.f32 0.01, %v2035_v37  ;;  %v1060_v54 = vmul.f32 %v12693_v25, %v13505_v53 }
 0x1cb   : > { %11364 = vset.pattern.permute.xlu1 %v19111_v11  ;;  %v13489_v44 = vpop.permute.xlu1 %823  ;;  %v1589_v59 = vadd.f32 %v1461_v21, %v1059_v9 }
 0x1cc   : > { %19190 = vst [vmem:[#allocation115_spill] sm:$0xff] %v13489_v44  ;;  %1875 = vperm.xlu1 %11364, %v378_v22   ;;  %v2292_v58 = vmax.f32 %v2036_v14, %v2164_v36  ;;  %v2291_v34 = vmax.f32 %v2035_v37, %v2163_v30  ;;  %v1590_v14 = vadd.f32 %v1462_v3, %v1060_v54 }
 0x1cd   : > { %2610 = vperm.xlu0 %11382, %v13056_v29   ;;  %v11393_v29 = vld [vmem:[%s18356_s3 + $0x24] ss:$16 sps:$4 sm:$0xff]  }
 0x1ce   : > { %v2388_v17 = vpack.c.bf16 %v2292_v58, %v2290_v1  ;;  %v2387_v50 = vpack.c.bf16 %v2291_v34, %v2289_v45  ;;  %v1062_v1 = vmul.f32 %v12693_v25, %v13489_v44  ;;  %v11398_v58 = vld [vmem:[%s18356_s3 + $0x40] ss:$16 sps:$4 sm:$0xff]  }
 0x1cf   : > { %v11814_v45 = vld [vmem:[%s18354_s1 + $0x190] sm:$0xff] }
 0x1d0   : > { %898 = vperm.xlu1 %11364, %v11813_v27   ;;  %v13497_v39 = vpop.permute.xlu1 %1256  ;;  %3347 = vmatprep.subr.bf16.mxu0 %v2388_v17 }
 0x1d1   : > { %19192 = vst [vmem:[#allocation117_spill] sm:$0xff] %v13497_v39  ;;  %3348 = vmatpush1.bf16.msra.mxu0 %v2387_v50  ;;  %2618 = vperm.xlu0 %11382, %v13078_v31   ;;  %v13522_v31 = vpop.permute.xlu0 %833  ;;  %v1463_v37 = vmul.f32 %v12679_v15, %v13497_v39  ;;  %v1464_v22 = vmul.f32 %v12682_v13, %v13497_v39 }
 0x1d2   : > { %19195 = vst [vmem:[#allocation120_spill] sm:$0xff] %v13522_v31  ;;  %v1065_v3 = vmul.f32 %v12690_v23, %v13522_v31  ;;  %v1066_v9 = vmul.f32 %v12693_v25, %v13522_v31 }
 0x1d3   : > { %v1592_v17 = vadd.f32 %v1464_v22, %v1062_v1 }
 0x1d4   : > { %903 = vperm.xlu1 %11364, %v319_v49   ;;  %3350 = vmatmul.mubr.bf16.vlgmr.msra.gmra.mrb[0].mxu0 %v11390_v47 }
 0x1d5   : > { %v13511_v24 = vpop.permute.xlu1 %828  ;;  %3359 = vmatprep.mubr.bf16.mxu0 %v11393_v29  ;;  %2626 = vperm.xlu0 %11382, %v13087_v63   ;;  %v380_v63 = vld [vmem:[%s18355_s2 + $0x170] sm:$0xff]  ;;  %v13542_v38 = vpop.permute.xlu0 %1815 }
 0x1d6   : > { %19194 = vst [vmem:[#allocation119_spill] sm:$0xff] %v13511_v24  ;;  %19197 = vst [vmem:[#allocation122_spill] sm:$0xff] %v13542_v38  ;;  %v2037_v36 = vadd.f32 %v13542_v38, %v1589_v59  ;;  %v2038_v30 = vadd.f32 %v13542_v38, %v1590_v14  ;;  %v11838_v38 = vld [vmem:[%s18355_s2 + $0x100] sm:$0xff] }
 0x1d8   : > { %11365 = vset.pattern.permute.xlu1 %v19120_v19  ;;  %v2165_v50 = vmul.f32 0.01, %v2037_v36  ;;  %v2166_v47 = vmul.f32 0.01, %v2038_v30 }
 0x1d9   : > { %1320 = vperm.xlu1 %11365, %v319_v49   ;;  %2634 = vperm.xlu0 %11382, %v13101_v4   ;;  %v1061_v4 = vmul.f32 %v12690_v23, %v13489_v44  ;;  %v321_v49 = vld [vmem:[%s18354_s1 + $0x198] sm:$0xff]  ;;  %v13574_v54 = vpop.permute.xlu0 %838 }
 0x1da   : > { %v13528_v41 = vpop.permute.xlu1 %1260  ;;  %19200 = vst [vmem:[#allocation125_spill] sm:$0xff] %v13574_v54  ;;  %v2294_v14 = vmax.f32 %v2038_v30, %v2166_v47  ;;  %v1063_v47 = vmul.f32 %v12690_v23, %v13511_v24  ;;  %v19280_v44 = vld [vmem:[#allocation24_spill] sm:$0xff] }
 0x1db   : > { %19196 = vst [vmem:[#allocation121_spill] sm:$0xff] %v13528_v41  ;;  %v1591_v34 = vadd.f32 %v1463_v37, %v1061_v4  ;;  %v2293_v37 = vmax.f32 %v2037_v36, %v2165_v50  ;;  %v1466_v36 = vmul.f32 %v12682_v13, %v13528_v41  ;;  %v11402_v50 = vld [vmem:[%s18356_s3 + $0x84] ss:$16 sps:$4 sm:$0xff]  }
 0x1dc   : > { %3360 = vmatmul.mubr.bf16.gmra.mrb[4].mxu0 %v11395_v56 }
 0x1dd   : > { %11366 = vset.pattern.permute.xlu1 %v19111_v11  ;;  %3369 = vmatprep.mubr.bf16.mxu0 %v11396_v0 }
 0x1de   : > { %1885 = vperm.xlu1 %11366, %v380_v63   ;;  %v13544_v2 = vpop.permute.xlu1 %1264  ;;  %2642 = vperm.xlu0 %11382, %v13110_v10   ;;  %v11399_v10 = vld [vmem:[%s18356_s3 + $0x64] ss:$16 sps:$4 sm:$0xff]  }
 0x1df   : > { %19198 = vst [vmem:[#allocation123_spill] sm:$0xff] %v13544_v2  ;;  %v1468_v59 = vmul.f32 %v12682_v13, %v13544_v2 }
 0x1e2   : > { %908 = vperm.xlu1 %11366, %v11814_v45   ;;  %2650 = vperm.xlu0 %11382, %v13128_v46   ;;  %v1467_v46 = vmul.f32 %v12679_v15, %v13544_v2 }
 0x1e3   : > { %v13562_v27 = vpop.permute.xlu1 %1820 }
 0x1e4   : > { %19199 = vst [vmem:[#allocation124_spill] sm:$0xff] %v13562_v27  ;;  %v2039_v29 = vadd.f32 %v13562_v27, %v1591_v34  ;;  %v2040_v21 = vadd.f32 %v13562_v27, %v1592_v17  ;;  %3370 = vmatmul.mubr.bf16.gmra.mrb[8].mxu0 %v11398_v58  ;;  %v1595_v1 = vadd.f32 %v1467_v46, %v1065_v3  ;;  %v11401_v17 = vld [vmem:[%s18356_s3 + $0x60] ss:$16 sps:$4 sm:$0xff]  }
 0x1e5   : > { %3379 = vmatprep.mubr.bf16.mxu0 %v11399_v10  ;;  %v1596_v34 = vadd.f32 %v1468_v59, %v1066_v9  ;;  %v1465_v10 = vmul.f32 %v12679_v15, %v13528_v41 }
 0x1e6   : > { %v2167_v56 = vmul.f32 0.01, %v2039_v29  ;;  %913 = vperm.xlu1 %11366, %v321_v49   ;;  %v2168_v0 = vmul.f32 0.01, %v2040_v21  ;;  %2658 = vperm.xlu0 %11382, %v13152_v48   ;;  %v13591_v48 = vpop.permute.xlu0 %1830 }
 0x1e7   : > { %v13580_v63 = vpop.permute.xlu1 %843  ;;  %19202 = vst [vmem:[#allocation127_spill] sm:$0xff] %v13591_v48  ;;  %v2044_v3 = vadd.f32 %v13591_v48, %v1596_v34 }
 0x1e8   : > { %19201 = vst [vmem:[#allocation126_spill] sm:$0xff] %v13580_v63  ;;  %v2296_v22 = vmax.f32 %v2040_v21, %v2168_v0  ;;  %v2295_v4 = vmax.f32 %v2039_v29, %v2167_v56  ;;  %v1064_v29 = vmul.f32 %v12693_v25, %v13511_v24  ;;  %v2043_v21 = vadd.f32 %v13591_v48, %v1595_v1  ;;  %v13612_v56 = vld [vmem:[%s18355_s2 + $0x1f8] sm:$0xff]  ;;  %v11815_v1 = vld [vmem:[%s18354_s1 + $0x1a0] sm:$0xff] }
 0x1e9   : > { %v1469_v48 = vmul.f32 %v12679_v15, %v13240_v7 }
 0x1ea   : > { %11367 = vset.pattern.permute.xlu1 %v19120_v19  ;;  %v2390_v58 = vpack.c.bf16 %v2296_v22, %v2294_v14  ;;  %v2389_v45 = vpack.c.bf16 %v2295_v4, %v2293_v37  ;;  %2666 = vperm.xlu0 %11382, %v13171_v18   ;;  %v1593_v18 = vadd.f32 %v1465_v10, %v1063_v47  ;;  %v2171_v14 = vmul.f32 0.01, %v2043_v21  ;;  %v11404_v22 = vld [vmem:[%s18356_s3 + $0x80] ss:$16 sps:$4 sm:$0xff]  }
 0x1eb   : > { %1328 = vperm.xlu1 %11367, %v321_v49   ;;  %v382_v49 = vld [vmem:[%s18355_s2 + $0x180] sm:$0xff]  ;;  %v1594_v9 = vadd.f32 %v1466_v36, %v1064_v29  ;;  %v2172_v37 = vmul.f32 0.01, %v2044_v3 }
 0x1ec   : > { %v13593_v30 = vpop.permute.xlu1 %1272  ;;  %3670 = vmatprep.subr.bf16.mxu0 %v2390_v58  ;;  %3380 = vmatmul.mubr.bf16.gmra.mrb[12].mxu0 %v11401_v17  ;;  %v323_v17 = vld [vmem:[%s18354_s1 + $0x1a8] sm:$0xff] }
 0x1ed   : > { %19203 = vst [vmem:[#allocation128_spill] sm:$0xff] %v13593_v30  ;;  %3671 = vmatpush1.bf16.msra.mxu0 %v2389_v45  ;;  %3389 = vmatprep.mubr.bf16.mxu0 %v11402_v50  ;;  %v11405_v45 = vld [vmem:[%s18356_s3 + $0xa4] ss:$16 sps:$4 sm:$0xff]   ;;  %v2300_v36 = vmax.f32 %v2044_v3, %v2172_v37  ;;  %v1471_v47 = vmul.f32 %v12679_v15, %v13593_v30 }
 0x1ee   : > { %2674 = vperm.xlu0 %11382, %v13612_v56   ;;  %v1472_v29 = vmul.f32 %v12682_v13, %v13593_v30  ;;  %v1069_v3 = vmul.f32 %v12690_v23, %v13580_v63  ;;  %v1068_v37 = vmul.f32 %v12693_v25, %v13574_v54 }
 0x1ef   : > { %11368 = vset.pattern.permute.xlu1 %v19111_v11 }
 0x1f0   : > { %1895 = vperm.xlu1 %11368, %v382_v49   ;;  %v2299_v49 = vmax.f32 %v2043_v21, %v2171_v14  ;;  %v1070_v21 = vmul.f32 %v12693_v25, %v13580_v63  ;;  %v1067_v14 = vmul.f32 %v12690_v23, %v13574_v54  ;;  %v19260_v54 = vld [vmem:[#allocation14_spill] sm:$0xff] }
 0x1f1   : > { %v13614_v0 = vpop.permute.xlu1 %1825 }
 0x1f2   : > { %19204 = vst [vmem:[#allocation129_spill] sm:$0xff] %v13614_v0  ;;  %v2041_v46 = vadd.f32 %v13614_v0, %v1593_v18  ;;  %v2042_v59 = vadd.f32 %v13614_v0, %v1594_v9 }
 0x1f4   : > { %v2169_v4 = vmul.f32 0.01, %v2041_v46  ;;  %918 = vperm.xlu1 %11368, %v11815_v1   ;;  %v2170_v58 = vmul.f32 0.01, %v2042_v59  ;;  %3390 = vmatmul.mubr.bf16.gmra.mrb[16].mxu0 %v11404_v22  ;;  %v11408_v22 = vld [vmem:[%s18356_s3 + $0xc4] ss:$16 sps:$4 sm:$0xff]  }
 0x1f5   : > { %v13628_v34 = vpop.permute.xlu1 %848  ;;  %3399 = vmatprep.mubr.bf16.mxu0 %v11405_v45  ;;  %v13658_v45 = vpop.permute.xlu0 %1840 }
 0x1f6   : > { %19205 = vst [vmem:[#allocation130_spill] sm:$0xff] %v13628_v34  ;;  %v2298_v10 = vmax.f32 %v2042_v59, %v2170_v58  ;;  %v2297_v50 = vmax.f32 %v2041_v46, %v2169_v4  ;;  %v11407_v46 = vld [vmem:[%s18356_s3 + $0xa0] ss:$16 sps:$4 sm:$0xff]   ;;  %v1470_v59 = vmul.f32 %v12682_v13, %v13240_v7  ;;  %v1599_v4 = vadd.f32 %v1471_v47, %v1069_v3 }
 0x1f7   : > { %v1600_v58 = vadd.f32 %v1472_v29, %v1070_v21  ;;  %19207 = vst [vmem:[#allocation132_spill] sm:$0xff] %v13658_v45  ;;  %v11410_v29 = vld [vmem:[%s18356_s3 + $0xc0] ss:$16 sps:$4 sm:$0xff]  }
 0x1f8   : > { %923 = vperm.xlu1 %11368, %v323_v17   ;;  %v2392_v9 = vpack.c.bf16 %v2300_v36, %v2298_v10  ;;  %v2391_v1 = vpack.c.bf16 %v2299_v49, %v2297_v50  ;;  %v384_v36 = vld [vmem:[%s18355_s2 + $0x190] sm:$0xff]  ;;  %v1597_v50 = vadd.f32 %v1469_v48, %v1067_v14  ;;  %v1598_v49 = vadd.f32 %v1470_v59, %v1068_v37 }
 0x1f9   : > { %v13637_v18 = vpop.permute.xlu1 %853  ;;  %v2048_v47 = vadd.f32 %v13658_v45, %v1600_v58  ;;  %v11411_v48 = vld [vmem:[%s18356_s3 + $0xe4] ss:$16 sps:$4 sm:$0xff]  }
 0x1fa   : > { %19206 = vst [vmem:[#allocation131_spill] sm:$0xff] %v13637_v18  ;;  %3672 = vmatprep.subr.bf16.mxu0 %v2392_v9  ;;  %v2047_v9 = vadd.f32 %v13658_v45, %v1599_v4  ;;  %v11816_v14 = vld [vmem:[%s18354_s1 + $0x1b0] sm:$0xff]  ;;  %v325_v4 = vld [vmem:[%s18354_s1 + $0x1b8] sm:$0xff] }
 0x1fb   : > { %3673 = vmatpush1.bf16.msra.mxu0 %v2391_v1 }
 0x1fc   : > { %11369 = vset.pattern.permute.xlu1 %v19120_v19  ;;  %3400 = vmatmul.mubr.bf16.gmra.mrb[20].mxu0 %v11407_v46  ;;  %v2175_v21 = vmul.f32 0.01, %v2047_v9  ;;  %v2176_v46 = vmul.f32 0.01, %v2048_v47 }
 0x1fd   : > { %1336 = vperm.xlu1 %11369, %v323_v17   ;;  %3409 = vmatprep.mubr.bf16.mxu0 %v11408_v22 }
 0x1fe   : > { %v13660_v10 = vpop.permute.xlu1 %1280 }
 0x1ff   : > { %19208 = vst [vmem:[#allocation133_spill] sm:$0xff] %v13660_v10 }
 0x201   : > { %11370 = vset.pattern.permute.xlu1 %v19111_v11 }
 0x202   : > { %1905 = vperm.xlu1 %11370, %v384_v36   ;;  %v2304_v36 = vmax.f32 %v2048_v47, %v2176_v46  ;;  %v11414_v47 = vld [vmem:[%s18356_s3 + $0x104] ss:$16 sps:$4 sm:$0xff]   ;;  %v1474_v46 = vmul.f32 %v12682_v13, %v13265_v8 }
 0x203   : > { %v13668_v17 = vpop.permute.xlu1 %1835 }
 0x204   : > { %19209 = vst [vmem:[#allocation134_spill] sm:$0xff] %v13668_v17  ;;  %v2045_v1 = vadd.f32 %v13668_v17, %v1597_v50  ;;  %v2046_v3 = vadd.f32 %v13668_v17, %v1598_v49  ;;  %3410 = vmatmul.mubr.bf16.gmra.mrb[24].mxu0 %v11410_v29  ;;  %v2303_v49 = vmax.f32 %v2047_v9, %v2175_v21  ;;  %v11413_v29 = vld [vmem:[%s18356_s3 + $0xe0] ss:$16 sps:$4 sm:$0xff]  }
 0x205   : > { %3419 = vmatprep.mubr.bf16.mxu0 %v11411_v48  ;;  %v1475_v17 = vmul.f32 %v12679_v15, %v13660_v10  ;;  %v1073_v9 = vmul.f32 %v12690_v23, %v13637_v18  ;;  %v1473_v21 = vmul.f32 %v12679_v15, %v13265_v8  ;;  %v19269_v8 = vld [vmem:[#allocation19_spill] sm:$0xff] }
 0x206   : > { %v2173_v59 = vmul.f32 0.01, %v2045_v1  ;;  %928 = vperm.xlu1 %11370, %v11816_v14   ;;  %v2174_v37 = vmul.f32 0.01, %v2046_v3  ;;  %v1476_v14 = vmul.f32 %v12682_v13, %v13660_v10 }
 0x207   : > { %v13681_v22 = vpop.permute.xlu1 %858 }
 0x208   : > { %19210 = vst [vmem:[#allocation135_spill] sm:$0xff] %v13681_v22  ;;  %v2302_v58 = vmax.f32 %v2046_v3, %v2174_v37  ;;  %v2301_v50 = vmax.f32 %v2045_v1, %v2173_v59  ;;  %v1074_v1 = vmul.f32 %v12693_v25, %v13637_v18  ;;  %v1603_v3 = vadd.f32 %v1475_v17, %v1073_v9  ;;  %v386_v17 = vld [vmem:[%s18355_s2 + $0x1a0] sm:$0xff] }
 0x209   : > { %v1071_v59 = vmul.f32 %v12690_v23, %v13628_v34  ;;  %v1072_v37 = vmul.f32 %v12693_v25, %v13628_v34 }
 0x20a   : > { %933 = vperm.xlu1 %11370, %v325_v4   ;;  %v2394_v0 = vpack.c.bf16 %v2304_v36, %v2302_v58  ;;  %v2393_v63 = vpack.c.bf16 %v2303_v49, %v2301_v50  ;;  %v1604_v48 = vadd.f32 %v1476_v14, %v1074_v1  ;;  %v11416_v36 = vld [vmem:[%s18356_s3 + $0x100] ss:$16 sps:$4 sm:$0xff]   ;;  %v11417_v14 = vld [vmem:[%s18356_s3 + $0x124] ss:$16 sps:$4 sm:$0xff]  }
 0x20b   : > { %v13690_v45 = vpop.permute.xlu1 %863  ;;  %v1601_v50 = vadd.f32 %v1473_v21, %v1071_v59  ;;  %v1602_v49 = vadd.f32 %v1474_v46, %v1072_v37  ;;  %v327_v59 = vld [vmem:[%s18354_s1 + $0x1c8] sm:$0xff] }
 0x20c   : > { %19211 = vst [vmem:[#allocation136_spill] sm:$0xff] %v13690_v45  ;;  %3674 = vmatprep.subr.bf16.mxu0 %v2394_v0  ;;  %3420 = vmatmul.mubr.bf16.gmra.mrb[28].mxu0 %v11413_v29  ;;  %v13711_v0 = vpop.permute.xlu0 %1850 }
 0x20d   : > { %3675 = vmatpush1.bf16.msra.mxu0 %v2393_v63  ;;  %19212 = vst [vmem:[#allocation137_spill] sm:$0xff] %v13711_v0  ;;  %3429 = vmatprep.mubr.bf16.mxu0 %v11414_v47  ;;  %v2052_v58 = vadd.f32 %v13711_v0, %v1604_v48 }
 0x20e   : > { %11371 = vset.pattern.permute.xlu1 %v19120_v19 }
 0x20f   : > { %1344 = vperm.xlu1 %11371, %v325_v4   ;;  %v2051_v4 = vadd.f32 %v13711_v0, %v1603_v3  ;;  %v2180_v3 = vmul.f32 0.01, %v2052_v58 }
 0x210   : > { %v13713_v63 = vpop.permute.xlu1 %1288 }
 0x211   : > { %19213 = vst [vmem:[#allocation138_spill] sm:$0xff] %v13713_v63  ;;  %v2179_v1 = vmul.f32 0.01, %v2051_v4 }
 0x213   : > { %11372 = vset.pattern.permute.xlu1 %v19111_v11 }
 0x214   : > { %1915 = vperm.xlu1 %11372, %v386_v17   ;;  %3430 = vmatmul.mubr.bf16.gmra.mrb[32].mxu0 %v11416_v36  ;;  %v11817_v17 = vld [vmem:[%s18354_s1 + $0x1c0] sm:$0xff] }
 0x215   : > { %v13727_v29 = vpop.permute.xlu1 %1845  ;;  %3439 = vmatprep.mubr.bf16.mxu0 %v11417_v14  ;;  %v11419_v36 = vld [vmem:[%s18356_s3 + $0x120] ss:$16 sps:$4 sm:$0xff]   ;;  %v1480_v14 = vmul.f32 %v12682_v13, %v13713_v63 }
 0x216   : > { %19214 = vst [vmem:[#allocation139_spill] sm:$0xff] %v13727_v29  ;;  %v2049_v47 = vadd.f32 %v13727_v29, %v1601_v50  ;;  %v2050_v9 = vadd.f32 %v13727_v29, %v1602_v49  ;;  %v2308_v50 = vmax.f32 %v2052_v58, %v2180_v3  ;;  %v2307_v29 = vmax.f32 %v2051_v4, %v2179_v1  ;;  %v11420_v58 = vld [vmem:[%s18356_s3 + $0x144] ss:$16 sps:$4 sm:$0xff]  }
 0x217   : > { %v1077_v4 = vmul.f32 %v12690_v23, %v13690_v45  ;;  %v1478_v3 = vmul.f32 %v12682_v13, %v13286_v5 }
 0x218   : > { %v2177_v48 = vmul.f32 0.01, %v2049_v47  ;;  %938 = vperm.xlu1 %11372, %v11817_v17   ;;  %v2178_v21 = vmul.f32 0.01, %v2050_v9  ;;  %v1479_v17 = vmul.f32 %v12679_v15, %v13713_v63 }
 0x219   : > { %v13734_v46 = vpop.permute.xlu1 %868 }
 0x21a   : > { %19215 = vst [vmem:[#allocation140_spill] sm:$0xff] %v13734_v46  ;;  %v2306_v37 = vmax.f32 %v2050_v9, %v2178_v21  ;;  %v2305_v49 = vmax.f32 %v2049_v47, %v2177_v48  ;;  %v1078_v47 = vmul.f32 %v12693_v25, %v13690_v45  ;;  %v1607_v9 = vadd.f32 %v1479_v17, %v1077_v4  ;;  %v13764_v21 = vpop.permute.xlu0 %1860 }
 0x21b   : > { %v1075_v48 = vmul.f32 %v12690_v23, %v13681_v22  ;;  %19217 = vst [vmem:[#allocation142_spill] sm:$0xff] %v13764_v21 }
 0x21c   : > { %943 = vperm.xlu1 %11372, %v327_v59   ;;  %v2396_v0 = vpack.c.bf16 %v2308_v50, %v2306_v37  ;;  %v2395_v18 = vpack.c.bf16 %v2307_v29, %v2305_v49  ;;  %3440 = vmatmul.mubr.bf16.gmra.mrb[36].mxu0 %v11419_v36  ;;  %v1608_v1 = vadd.f32 %v1480_v14, %v1078_v47  ;;  %v11422_v37 = vld [vmem:[%s18356_s3 + $0x140] ss:$16 sps:$4 sm:$0xff]   ;;  %v11423_v50 = vld [vmem:[%s18356_s3 + $0x164] ss:$16 sps:$4 sm:$0xff]  }
 0x21d   : > { %v13746_v34 = vpop.permute.xlu1 %873  ;;  %3449 = vmatprep.mubr.bf16.mxu0 %v11420_v58  ;;  %v1477_v29 = vmul.f32 %v12679_v15, %v13286_v5  ;;  %v2055_v49 = vadd.f32 %v13764_v21, %v1607_v9  ;;  %v11818_v9 = vld [vmem:[%s18354_s1 + $0x1d0] sm:$0xff] }
 0x21e   : > { %19216 = vst [vmem:[#allocation141_spill] sm:$0xff] %v13746_v34  ;;  %3676 = vmatprep.subr.bf16.mxu0 %v2396_v0  ;;  %v1076_v0 = vmul.f32 %v12693_v25, %v13681_v22  ;;  %v2056_v36 = vadd.f32 %v13764_v21, %v1608_v1  ;;  %v1081_v30 = vmul.f32 %v12690_v23, %v13746_v34 }
 0x21f   : > { %3677 = vmatpush1.bf16.msra.mxu0 %v2395_v18  ;;  %v1605_v17 = vadd.f32 %v1477_v29, %v1075_v48  ;;  %v2183_v45 = vmul.f32 0.01, %v2055_v49  ;;  %v329_v29 = vld [vmem:[%s18354_s1 + $0x1d8] sm:$0xff]  ;;  %v11426_v48 = vld [vmem:[%s18356_s3 + $0x184] ss:$16 sps:$4 sm:$0xff]  }
 0x220   : > { %11373 = vset.pattern.permute.xlu1 %v19120_v19  ;;  %v1606_v14 = vadd.f32 %v1478_v3, %v1076_v0  ;;  %v2184_v63 = vmul.f32 0.01, %v2056_v36  ;;  %v11425_v3 = vld [vmem:[%s18356_s3 + $0x160] ss:$16 sps:$4 sm:$0xff]  }
 0x221   : > { %1352 = vperm.xlu1 %11373, %v327_v59   ;;  %v388_v59 = vld [vmem:[%s18355_s2 + $0x1b0] sm:$0xff] }
 0x222   : > { %v13766_v18 = vpop.permute.xlu1 %1296 }
 0x223   : > { %19218 = vst [vmem:[#allocation143_spill] sm:$0xff] %v13766_v18 }
 0x224   : > { %3450 = vmatmul.mubr.bf16.gmra.mrb[40].mxu0 %v11422_v37  ;;  %v2312_v37 = vmax.f32 %v2056_v36, %v2184_v63  ;;  %v1481_v36 = vmul.f32 %v12679_v15, %v13297_v42 }
 0x225   : > { %11374 = vset.pattern.permute.xlu1 %v19111_v11  ;;  %3459 = vmatprep.mubr.bf16.mxu0 %v11423_v50 }
 0x226   : > { %1925 = vperm.xlu1 %11374, %v388_v59  }
 0x227   : > { %v13780_v58 = vpop.permute.xlu1 %1855 }
 0x228   : > { %19219 = vst [vmem:[#allocation144_spill] sm:$0xff] %v13780_v58  ;;  %v2053_v4 = vadd.f32 %v13780_v58, %v1605_v17  ;;  %v2054_v47 = vadd.f32 %v13780_v58, %v1606_v14  ;;  %v2311_v17 = vmax.f32 %v2055_v49, %v2183_v45  ;;  %v1483_v14 = vmul.f32 %v12679_v15, %v13766_v18  ;;  %v11428_v49 = vld [vmem:[%s18356_s3 + $0x180] ss:$16 sps:$4 sm:$0xff]  }
 0x22a   : > { %v2181_v22 = vmul.f32 0.01, %v2053_v4  ;;  %948 = vperm.xlu1 %11374, %v11818_v9   ;;  %v2182_v1 = vmul.f32 0.01, %v2054_v47  ;;  %v1484_v9 = vmul.f32 %v12682_v13, %v13766_v18  ;;  %v1611_v45 = vadd.f32 %v1483_v14, %v1081_v30 }
 0x22b   : > { %v13787_v59 = vpop.permute.xlu1 %878 }
 0x22c   : > { %19220 = vst [vmem:[#allocation145_spill] sm:$0xff] %v13787_v59  ;;  %v2310_v0 = vmax.f32 %v2054_v47, %v2182_v1  ;;  %v2309_v50 = vmax.f32 %v2053_v4, %v2181_v22  ;;  %3460 = vmatmul.mubr.bf16.gmra.mrb[44].mxu0 %v11425_v3  ;;  %v1082_v22 = vmul.f32 %v12693_v25, %v13746_v34  ;;  %v11429_v1 = vld [vmem:[%s18356_s3 + $0x1a4] ss:$16 sps:$4 sm:$0xff]  }
 0x22d   : > { %3469 = vmatprep.mubr.bf16.mxu0 %v11426_v48  ;;  %v1482_v4 = vmul.f32 %v12682_v13, %v13297_v42  ;;  %v1079_v47 = vmul.f32 %v12690_v23, %v13734_v46 }
 0x22e   : > { %953 = vperm.xlu1 %11374, %v329_v29   ;;  %v2398_v58 = vpack.c.bf16 %v2312_v37, %v2310_v0  ;;  %v2397_v10 = vpack.c.bf16 %v2311_v17, %v2309_v50  ;;  %v1612_v63 = vadd.f32 %v1484_v9, %v1082_v22 }
 0x22f   : > { %v13802_v21 = vpop.permute.xlu1 %883  ;;  %v1609_v0 = vadd.f32 %v1481_v36, %v1079_v47  ;;  %v11432_v36 = vld [vmem:[%s18356_s3 + $0x1c4] ss:$16 sps:$4 sm:$0xff]   ;;  %v331_v47 = vld [vmem:[%s18354_s1 + $0x1e8] sm:$0xff] }
 0x230   : > { %19221 = vst [vmem:[#allocation146_spill] sm:$0xff] %v13802_v21  ;;  %3678 = vmatprep.subr.bf16.mxu0 %v2398_v58  ;;  %v13820_v58 = vpop.permute.xlu0 %1870  ;;  %v1085_v18 = vmul.f32 %v12690_v23, %v13802_v21 }
 0x231   : > { %3679 = vmatpush1.bf16.msra.mxu0 %v2397_v10  ;;  %v1080_v10 = vmul.f32 %v12693_v25, %v13734_v46  ;;  %19222 = vst [vmem:[#allocation147_spill] sm:$0xff] %v13820_v58  ;;  %v2059_v3 = vadd.f32 %v13820_v58, %v1611_v45  ;;  %v2060_v48 = vadd.f32 %v13820_v58, %v1612_v63  ;;  %v11431_v45 = vld [vmem:[%s18356_s3 + $0x1a0] ss:$16 sps:$4 sm:$0xff]  }
 0x232   : > { %11375 = vset.pattern.permute.xlu1 %v19120_v19  ;;  %v11819_v63 = vld [vmem:[%s18354_s1 + $0x1e0] sm:$0xff] }
 0x233   : > { %1360 = vperm.xlu1 %11375, %v329_v29   ;;  %v390_v29 = vld [vmem:[%s18355_s2 + $0x1c0] sm:$0xff]  ;;  %v1610_v37 = vadd.f32 %v1482_v4, %v1080_v10  ;;  %v2187_v9 = vmul.f32 0.01, %v2059_v3  ;;  %v2188_v22 = vmul.f32 0.01, %v2060_v48 }
 0x234   : > { %v13822_v30 = vpop.permute.xlu1 %1304  ;;  %3470 = vmatmul.mubr.bf16.gmra.mrb[48].mxu0 %v11428_v49 }
 0x235   : > { %19223 = vst [vmem:[#allocation148_spill] sm:$0xff] %v13822_v30  ;;  %3479 = vmatprep.mubr.bf16.mxu0 %v11429_v1  ;;  %v2316_v1 = vmax.f32 %v2060_v48, %v2188_v22  ;;  %v11435_v48 = vld [vmem:[%s18356_s3 + $0x1e4] ss:$16 sps:$4 sm:$0xff]   ;;  %v1083_v22 = vmul.f32 %v12690_v23, %v13787_v59 }
 0x237   : > { %11376 = vset.pattern.permute.xlu1 %v19111_v11 }
 0x238   : > { %1935 = vperm.xlu1 %11376, %v390_v29  }
 0x239   : > { %v13833_v50 = vpop.permute.xlu1 %1865 }
 0x23a   : > { %19224 = vst [vmem:[#allocation149_spill] sm:$0xff] %v13833_v50  ;;  %v2057_v17 = vadd.f32 %v13833_v50, %v1609_v0  ;;  %v2058_v14 = vadd.f32 %v13833_v50, %v1610_v37  ;;  %v2315_v0 = vmax.f32 %v2059_v3, %v2187_v9  ;;  %v1487_v37 = vmul.f32 %v12679_v15, %v13822_v30  ;;  %v11434_v3 = vld [vmem:[%s18356_s3 + $0x1c0] ss:$16 sps:$4 sm:$0xff]  }
 0x23b   : > { %v1485_v9 = vmul.f32 %v12679_v15, %v13322_v12 }
 0x23c   : > { %v2185_v46 = vmul.f32 0.01, %v2057_v17  ;;  %958 = vperm.xlu1 %11376, %v11819_v63   ;;  %v2186_v49 = vmul.f32 0.01, %v2058_v14  ;;  %3480 = vmatmul.mubr.bf16.gmra.mrb[52].mxu0 %v11431_v45  ;;  %v1488_v63 = vmul.f32 %v12682_v13, %v13822_v30  ;;  %v13876_v45 = vpop.permute.xlu0 %1880  ;;  %v19255_v30 = vld [vmem:[#allocation11_spill] sm:$0xff] }
 0x23d   : > { %v13846_v4 = vpop.permute.xlu1 %888  ;;  %3489 = vmatprep.mubr.bf16.mxu0 %v11432_v36  ;;  %19227 = vst [vmem:[#allocation152_spill] sm:$0xff] %v13876_v45 }
 0x23e   : > { %19225 = vst [vmem:[#allocation150_spill] sm:$0xff] %v13846_v4  ;;  %v2314_v10 = vmax.f32 %v2058_v14, %v2186_v49  ;;  %v2313_v29 = vmax.f32 %v2057_v17, %v2185_v46  ;;  %v1086_v46 = vmul.f32 %v12693_v25, %v13802_v21  ;;  %v1615_v17 = vadd.f32 %v1487_v37, %v1085_v18  ;;  %v392_v18 = vld [vmem:[%s18355_s2 + $0x1d0] sm:$0xff] }
 0x240   : > { %963 = vperm.xlu1 %11376, %v331_v47   ;;  %v2400_v58 = vpack.c.bf16 %v2316_v1, %v2314_v10  ;;  %v2399_v34 = vpack.c.bf16 %v2315_v0, %v2313_v29  ;;  %v1616_v14 = vadd.f32 %v1488_v63, %v1086_v46  ;;  %v2063_v36 = vadd.f32 %v13876_v45, %v1615_v17  ;;  %v11437_v0 = vld [vmem:[%s18356_s3 + $0x1e0] ss:$16 sps:$4 sm:$0xff]   ;;  %v11438_v46 = vld [vmem:[%s18356_s3 + $0x204] ss:$16 sps:$4 sm:$0xff]  }
 0x241   : > { %v13855_v50 = vpop.permute.xlu1 %893  ;;  %v1613_v10 = vadd.f32 %v1485_v9, %v1083_v22  ;;  %v333_v22 = vld [vmem:[%s18354_s1 + $0x1f8] sm:$0xff] }
 0x242   : > { %19226 = vst [vmem:[#allocation151_spill] sm:$0xff] %v13855_v50  ;;  %3680 = vmatprep.subr.bf16.mxu0 %v2400_v58  ;;  %v1486_v58 = vmul.f32 %v12682_v13, %v13322_v12 }
 0x243   : > { %3681 = vmatpush1.bf16.msra.mxu0 %v2399_v34  ;;  %v1084_v34 = vmul.f32 %v12693_v25, %v13787_v59 }
 0x244   : > { %11377 = vset.pattern.permute.xlu1 %v19120_v19  ;;  %3490 = vmatmul.mubr.bf16.gmra.mrb[56].mxu0 %v11434_v3  ;;  %v2191_v3 = vmul.f32 0.01, %v2063_v36 }
 0x245   : > { %1368 = vperm.xlu1 %11377, %v331_v47   ;;  %3499 = vmatprep.mubr.bf16.mxu0 %v11435_v48  ;;  %v2064_v47 = vadd.f32 %v13876_v45, %v1616_v14  ;;  %v1614_v1 = vadd.f32 %v1486_v58, %v1084_v34  ;;  %v11820_v14 = vld [vmem:[%s18354_s1 + $0x1f0] sm:$0xff] }
 0x246   : > { %v13878_v49 = vpop.permute.xlu1 %1312 }
 0x247   : > { %19228 = vst [vmem:[#allocation153_spill] sm:$0xff] %v13878_v49  ;;  %v2192_v48 = vmul.f32 0.01, %v2064_v47 }
 0x249   : > { %11378 = vset.pattern.permute.xlu1 %v19111_v11 }
 0x24a   : > { %1945 = vperm.xlu1 %11378, %v392_v18   ;;  %v2320_v18 = vmax.f32 %v2064_v47, %v2192_v48  ;;  %v11441_v47 = vld [vmem:[%s18356_s3 + $0x224] ss:$16 sps:$4 sm:$0xff]   ;;  %v1490_v48 = vmul.f32 %v12682_v13, %v13346_v43 }
 0x24b   : > { %v13886_v29 = vpop.permute.xlu1 %1875 }
 0x24c   : > { %19229 = vst [vmem:[#allocation154_spill] sm:$0xff] %v13886_v29  ;;  %v2061_v37 = vadd.f32 %v13886_v29, %v1613_v10  ;;  %v2062_v63 = vadd.f32 %v13886_v29, %v1614_v1  ;;  %3500 = vmatmul.mubr.bf16.gmra.mrb[60].mxu0 %v11437_v0  ;;  %v2319_v1 = vmax.f32 %v2063_v36, %v2191_v3  ;;  %v11440_v0 = vld [vmem:[%s18356_s3 + $0x200] ss:$16 sps:$4 sm:$0xff]  }
 0x24d   : > { %3509 = vmatprep.mubr.bf16.mxu0 %v11438_v46  ;;  %v1491_v29 = vmul.f32 %v12679_v15, %v13878_v49  ;;  %v1089_v36 = vmul.f32 %v12690_v23, %v13855_v50  ;;  %v1489_v3 = vmul.f32 %v12679_v15, %v13346_v43  ;;  %v19268_v43 = vld [vmem:[#allocation20_spill] sm:$0xff] }
 0x24e   : > { %v2189_v17 = vmul.f32 0.01, %v2061_v37  ;;  %968 = vperm.xlu1 %11378, %v11820_v14   ;;  %v2190_v9 = vmul.f32 0.01, %v2062_v63  ;;  %v1492_v14 = vmul.f32 %v12682_v13, %v13878_v49 }
 0x24f   : > { %v13899_v58 = vpop.permute.xlu1 %898 }
 0x250   : > { %19230 = vst [vmem:[#allocation155_spill] sm:$0xff] %v13899_v58  ;;  %v2318_v34 = vmax.f32 %v2062_v63, %v2190_v9  ;;  %v2317_v10 = vmax.f32 %v2061_v37, %v2189_v17  ;;  %v1090_v37 = vmul.f32 %v12693_v25, %v13855_v50  ;;  %v1619_v63 = vadd.f32 %v1491_v29, %v1089_v36  ;;  %v394_v29 = vld [vmem:[%s18355_s2 + $0x1e0] sm:$0xff] }
 0x251   : > { %v1087_v17 = vmul.f32 %v12690_v23, %v13846_v4  ;;  %v1088_v9 = vmul.f32 %v12693_v25, %v13846_v4  ;;  %v11446_v4 = vld [vmem:[%s18356_s3 + $0x240] ss:$16 sps:$4 sm:$0xff]  }
 0x252   : > { %973 = vperm.xlu1 %11378, %v333_v22   ;;  %v2402_v59 = vpack.c.bf16 %v2320_v18, %v2318_v34  ;;  %v2401_v21 = vpack.c.bf16 %v2319_v1, %v2317_v10  ;;  %v1620_v46 = vadd.f32 %v1492_v14, %v1090_v37  ;;  %v11443_v18 = vld [vmem:[%s18356_s3 + $0x220] ss:$16 sps:$4 sm:$0xff]   ;;  %v11444_v14 = vld [vmem:[%s18356_s3 + $0x244] ss:$16 sps:$4 sm:$0xff]  }
 0x253   : > { %v13908_v45 = vpop.permute.xlu1 %903  ;;  %v1617_v10 = vadd.f32 %v1489_v3, %v1087_v17  ;;  %v1618_v1 = vadd.f32 %v1490_v48, %v1088_v9  ;;  %v19254_v50 = vld [vmem:[#allocation10_spill] sm:$0xff] }
 0x254   : > { %19231 = vst [vmem:[#allocation156_spill] sm:$0xff] %v13908_v45  ;;  %3682 = vmatprep.subr.bf16.mxu0 %v2402_v59  ;;  %3510 = vmatmul.mubr.bf16.gmra.mrb[64].mxu0 %v11440_v0  ;;  %v13929_v59 = vpop.permute.xlu0 %1890 }
 0x255   : > { %3683 = vmatpush1.bf16.msra.mxu0 %v2401_v21  ;;  %19232 = vst [vmem:[#allocation157_spill] sm:$0xff] %v13929_v59  ;;  %3519 = vmatprep.mubr.bf16.mxu0 %v11441_v47  ;;  %v2068_v34 = vadd.f32 %v13929_v59, %v1620_v46  ;;  %v396_v47 = vld [vmem:[%s18355_s2 + $0x1f0] sm:$0xff] }
 0x256   : > { %11380 = vset.pattern.permute.xlu1 %v19120_v19 }
 0x257   : > { %1376 = vperm.xlu1 %11380, %v333_v22   ;;  %v2067_v22 = vadd.f32 %v13929_v59, %v1619_v63  ;;  %v2196_v46 = vmul.f32 0.01, %v2068_v34 }
 0x258   : > { %v13931_v21 = vpop.permute.xlu1 %1320 }
 0x259   : > { %19233 = vst [vmem:[#allocation158_spill] sm:$0xff] %v13931_v21  ;;  %v2195_v63 = vmul.f32 0.01, %v2067_v22  ;;  %v2324_v9 = vmax.f32 %v2068_v34, %v2196_v46  ;;  %v1091_v46 = vmul.f32 %v12690_v23, %v13899_v58 }
 0x25b   : > { %11381 = vset.pattern.permute.xlu1 %v19111_v11  ;;  %v2323_v59 = vmax.f32 %v2067_v22, %v2195_v63  ;;  %v1493_v63 = vmul.f32 %v12679_v15, %v13356_v6 }
 0x25c   : > { %1955 = vperm.xlu1 %11381, %v394_v29   ;;  %3520 = vmatmul.mubr.bf16.gmra.mrb[68].mxu0 %v11443_v18  ;;  %v11447_v18 = vld [vmem:[%s18356_s3 + $0x264] ss:$16 sps:$4 sm:$0xff]  }
 0x25d   : > { %v13945_v0 = vpop.permute.xlu1 %1885  ;;  %3529 = vmatprep.mubr.bf16.mxu0 %v11444_v14 }
 0x25e   : > { %19234 = vst [vmem:[#allocation159_spill] sm:$0xff] %v13945_v0  ;;  %v2065_v36 = vadd.f32 %v13945_v0, %v1617_v10  ;;  %v2066_v37 = vadd.f32 %v13945_v0, %v1618_v1  ;;  %v1495_v10 = vmul.f32 %v12679_v15, %v13931_v21  ;;  %v1496_v1 = vmul.f32 %v12682_v13, %v13931_v21 }
 0x260   : > { %v2193_v29 = vmul.f32 0.01, %v2065_v36  ;;  %1965 = vperm.xlu1 %11381, %v396_v47   ;;  %v2194_v3 = vmul.f32 0.01, %v2066_v37  ;;  %v1093_v47 = vmul.f32 %v12690_v23, %v13908_v45 }
 0x261   : > { %v13952_v48 = vpop.permute.xlu1 %908 }
 0x262   : > { %19235 = vst [vmem:[#allocation160_spill] sm:$0xff] %v13952_v48  ;;  %v2322_v17 = vmax.f32 %v2066_v37, %v2194_v3  ;;  %v2321_v11 = vmax.f32 %v2065_v36, %v2193_v29  ;;  %v1623_v36 = vadd.f32 %v1495_v10, %v1093_v47  ;;  %v11449_v3 = vld [vmem:[%s18356_s3 + $0x260] ss:$16 sps:$4 sm:$0xff]   ;;  %v1621_v10 = vadd.f32 %v1493_v63, %v1091_v46  ;;  %v11453_v46 = vld [vmem:[%s18356_s3 + $0x2a4] ss:$16 sps:$4 sm:$0xff]  }
 0x264   : > { %1970 = vperm.xlu1 %11381, %v13612_v56   ;;  %v2404_v34 = vpack.c.bf16 %v2324_v9, %v2322_v17  ;;  %v2403_v22 = vpack.c.bf16 %v2323_v59, %v2321_v11  ;;  %v1094_v56 = vmul.f32 %v12693_v25, %v13908_v45  ;;  %3530 = vmatmul.mubr.bf16.gmra.mrb[72].mxu0 %v11446_v4  ;;  %v13976_v59 = vpop.permute.xlu0 %1900  ;;  %v11450_v17 = vld [vmem:[%s18356_s3 + $0x284] ss:$16 sps:$4 sm:$0xff]  }
 0x265   : > { %v13965_v14 = vpop.permute.xlu1 %913  ;;  %3539 = vmatprep.mubr.bf16.mxu0 %v11447_v18  ;;  %v1494_v11 = vmul.f32 %v12682_v13, %v13356_v6  ;;  %19237 = vst [vmem:[#allocation162_spill] sm:$0xff] %v13976_v59  ;;  %v1092_v4 = vmul.f32 %v12693_v25, %v13899_v58  ;;  %v2071_v18 = vadd.f32 %v13976_v59, %v1623_v36  ;;  %v11823_v36 = vld [vmem:[%s18355_s2 + $0x20] sm:$0xff] }
 0x266   : > { %19236 = vst [vmem:[#allocation161_spill] sm:$0xff] %v13965_v14  ;;  %3684 = vmatprep.subr.bf16.mxu0 %v2404_v34  ;;  %v1624_v37 = vadd.f32 %v1496_v1, %v1094_v56  ;;  %v11822_v34 = vld [vmem:[%s18355_s2 + $0x10] sm:$0xff] }
 0x267   : > { %3685 = vmatpush1.bf16.msra.mxu0 %v2403_v22  ;;  %v1622_v1 = vadd.f32 %v1494_v11, %v1092_v4  ;;  %v2199_v0 = vmul.f32 0.01, %v2071_v18  ;;  %v11452_v11 = vld [vmem:[%s18356_s3 + $0x280] ss:$16 sps:$4 sm:$0xff]  }
 0x268   : > { %11383 = vset.pattern.permute.xlu1 %v19120_v19  ;;  %v11821_v19 = vld [vmem:[%s18355_s2 + $0x8] sm:$0xff]  ;;  %v2072_v9 = vadd.f32 %v13976_v59, %v1624_v37 }
 0x269   : > { %2426 = vperm.xlu1 %11383, %v11821_v19  }
 0x26a   : > { %v13982_v29 = vpop.permute.xlu1 %1328  ;;  %v2200_v19 = vmul.f32 0.01, %v2072_v9 }
 0x26b   : > { %19238 = vst [vmem:[#allocation163_spill] sm:$0xff] %v13982_v29 }
 0x26c   : > { %3540 = vmatmul.mubr.bf16.gmra.mrb[76].mxu0 %v11449_v3  ;;  %v2328_v3 = vmax.f32 %v2072_v9, %v2200_v19  ;;  %v11825_v9 = vld [vmem:[%s18355_s2 + $0x40] sm:$0xff]  ;;  %v14032_v19 = vpop.permute.xlu0 %1910 }
 0x26d   : > { %2430 = vperm.xlu1 %11383, %v11822_v34   ;;  %3549 = vmatprep.mubr.bf16.mxu0 %v11450_v17  ;;  %v1499_v34 = vmul.f32 %v12679_v15, %v13982_v29  ;;  %19242 = vst [vmem:[#allocation167_spill] sm:$0xff] %v14032_v19 }
 0x26f   : > { %v13998_v22 = vpop.permute.xlu1 %1895 }
 0x270   : > { %19239 = vst [vmem:[#allocation164_spill] sm:$0xff] %v13998_v22  ;;  %v2069_v47 = vadd.f32 %v13998_v22, %v1621_v10  ;;  %v2070_v56 = vadd.f32 %v13998_v22, %v1622_v1  ;;  %v2327_v10 = vmax.f32 %v2071_v18, %v2199_v0  ;;  %v11824_v1 = vld [vmem:[%s18355_s2 + $0x30] sm:$0xff]  ;;  %v1098_v0 = vmul.f32 %v12693_v25, %v13965_v14 }
 0x271   : > { %2438 = vperm.xlu1 %11383, %v11823_v36   ;;  %v1500_v36 = vmul.f32 %v12682_v13, %v13982_v29 }
 0x272   : > { %v2197_v37 = vmul.f32 0.01, %v2069_v47  ;;  %v2198_v58 = vmul.f32 0.01, %v2070_v56 }
 0x273   : > { %v14005_v63 = vpop.permute.xlu1 %918 }
 0x274   : > { %19240 = vst [vmem:[#allocation165_spill] sm:$0xff] %v14005_v63  ;;  %v2326_v4 = vmax.f32 %v2070_v56, %v2198_v58  ;;  %v2325_v17 = vmax.f32 %v2069_v47, %v2197_v37  ;;  %3550 = vmatmul.mubr.bf16.gmra.mrb[80].mxu0 %v11452_v11  ;;  %v1097_v58 = vmul.f32 %v12690_v23, %v13965_v14  ;;  %v11455_v56 = vld [vmem:[%s18356_s3 + $0x2a0] ss:$16 sps:$4 sm:$0xff]   ;;  %v11456_v11 = vld [vmem:[%s18356_s3 + $0x2c4] ss:$16 sps:$4 sm:$0xff]  }
 0x275   : > { %2446 = vperm.xlu1 %11383, %v11824_v1   ;;  %3559 = vmatprep.mubr.bf16.mxu0 %v11453_v46  ;;  %v1628_v47 = vadd.f32 %v1500_v36, %v1098_v0  ;;  %v1095_v37 = vmul.f32 %v12690_v23, %v13952_v48  ;;  %v1497_v46 = vmul.f32 %v12679_v15, %v13382_v57 }
 0x276   : > { %v2406_v59 = vpack.c.bf16 %v2328_v3, %v2326_v4  ;;  %v2405_v45 = vpack.c.bf16 %v2327_v10, %v2325_v17  ;;  %v1627_v18 = vadd.f32 %v1499_v34, %v1097_v58  ;;  %v1498_v4 = vmul.f32 %v12682_v13, %v13382_v57  ;;  %v11826_v3 = vld [vmem:[%s18355_s2 + $0x50] sm:$0xff] }
 0x277   : > { %v14020_v22 = vpop.permute.xlu1 %923  ;;  %v2076_v17 = vadd.f32 %v14032_v19, %v1628_v47  ;;  %v1625_v1 = vadd.f32 %v1497_v46, %v1095_v37  ;;  %v11459_v37 = vld [vmem:[%s18356_s3 + $0x2e4] ss:$16 sps:$4 sm:$0xff]  }
 0x278   : > { %19241 = vst [vmem:[#allocation166_spill] sm:$0xff] %v14020_v22  ;;  %3686 = vmatprep.subr.bf16.mxu0 %v2406_v59  ;;  %v1096_v59 = vmul.f32 %v12693_v25, %v13952_v48  ;;  %v2075_v10 = vadd.f32 %v14032_v19, %v1627_v18  ;;  %v11458_v18 = vld [vmem:[%s18356_s3 + $0x2c0] ss:$16 sps:$4 sm:$0xff]  }
 0x279   : > { %3687 = vmatpush1.bf16.msra.mxu0 %v2405_v45  ;;  %2454 = vperm.xlu1 %11383, %v11825_v9   ;;  %v11827_v9 = vld [vmem:[%s18355_s2 + $0x60] sm:$0xff] }
 0x27a   : > { %v1626_v34 = vadd.f32 %v1498_v4, %v1096_v59  ;;  %v2203_v48 = vmul.f32 0.01, %v2075_v10 }
 0x27c   : > { %v14038_v45 = vpop.permute.xlu1 %1336  ;;  %3560 = vmatmul.mubr.bf16.gmra.mrb[84].mxu0 %v11455_v56 }
 0x27d   : > { %19243 = vst [vmem:[#allocation168_spill] sm:$0xff] %v14038_v45  ;;  %2462 = vperm.xlu1 %11383, %v11826_v3   ;;  %3569 = vmatprep.mubr.bf16.mxu0 %v11456_v11  ;;  %v2204_v3 = vmul.f32 0.01, %v2076_v17  ;;  %v11828_v11 = vld [vmem:[%s18355_s2 + $0x70] sm:$0xff] }
 0x27f   : > { %v2332_v4 = vmax.f32 %v2076_v17, %v2204_v3  ;;  %v1102_v17 = vmul.f32 %v12693_v25, %v14020_v22 }
 0x281   : > { %v14052_v36 = vpop.permute.xlu1 %1905  ;;  %2470 = vperm.xlu1 %11383, %v11827_v9   ;;  %v1503_v9 = vmul.f32 %v12679_v15, %v14038_v45 }
 0x282   : > { %19244 = vst [vmem:[#allocation169_spill] sm:$0xff] %v14052_v36  ;;  %v2073_v58 = vadd.f32 %v14052_v36, %v1625_v1  ;;  %v2074_v0 = vadd.f32 %v14052_v36, %v1626_v34  ;;  %v2331_v34 = vmax.f32 %v2075_v10, %v2203_v48  ;;  %v1504_v36 = vmul.f32 %v12682_v13, %v14038_v45  ;;  %v11461_v10 = vld [vmem:[%s18356_s3 + $0x2e0] ss:$16 sps:$4 sm:$0xff]  }
 0x283   : > { %v1101_v48 = vmul.f32 %v12690_v23, %v14020_v22 }
 0x284   : > { %v2201_v47 = vmul.f32 0.01, %v2073_v58  ;;  %v2202_v56 = vmul.f32 0.01, %v2074_v0  ;;  %3570 = vmatmul.mubr.bf16.gmra.mrb[88].mxu0 %v11458_v18  ;;  %v1632_v3 = vadd.f32 %v1504_v36, %v1102_v17  ;;  %v14089_v18 = vpop.permute.xlu0 %1920  ;;  %v1501_v36 = vmul.f32 %v12679_v15, %v13403_v55  ;;  %v11832_v17 = vld [vmem:[%s12352_s11 + $0x4] sm:$0xf] }
 0x285   : > { %v14065_v59 = vpop.permute.xlu1 %928  ;;  %2478 = vperm.xlu1 %11383, %v11828_v11   ;;  %3579 = vmatprep.mubr.bf16.mxu0 %v11459_v37  ;;  %v11829_v11 = vld [vmem:[%s18355_s2 + $0x80] sm:$0xff]  ;;  %19247 = vst [vmem:[#allocation172_spill] sm:$0xff] %v14089_v18  ;;  %v1502_v37 = vmul.f32 %v12682_v13, %v13403_v55  ;;  %v19261_v55 = vld [vmem:[#allocation15_spill] sm:$0xff] }
 0x286   : > { %19245 = vst [vmem:[#allocation170_spill] sm:$0xff] %v14065_v59  ;;  %v2330_v46 = vmax.f32 %v2074_v0, %v2202_v56  ;;  %v2329_v1 = vmax.f32 %v2073_v58, %v2201_v47  ;;  %v11462_v58 = vld [vmem:[%s18356_s3 + $0x304] ss:$16 sps:$4 sm:$0xff]   ;;  %v1631_v0 = vadd.f32 %v1503_v9, %v1101_v48  ;;  %v1099_v47 = vmul.f32 %v12690_v23, %v14005_v63  ;;  %v11464_v48 = vld [vmem:[%s18356_s3 + $0x300] ss:$16 sps:$4 sm:$0xff]  }
 0x287   : > { %v1100_v56 = vmul.f32 %v12693_v25, %v14005_v63  ;;  %v11831_v9 = vld [vmem:[%s18355_s2 + $0xa0] sm:$0xff]  ;;  %v19253_v63 = vld [vmem:[#allocation7_spill] sm:$0xff] }
 0x288   : > { %v2408_v14 = vpack.c.bf16 %v2332_v4, %v2330_v46  ;;  %v2407_v29 = vpack.c.bf16 %v2331_v34, %v2329_v1  ;;  %v2080_v46 = vadd.f32 %v14089_v18, %v1632_v3  ;;  %v2079_v4 = vadd.f32 %v14089_v18, %v1631_v0  ;;  %v11465_v3 = vld [vmem:[%s18356_s3 + $0x324] ss:$16 sps:$4 sm:$0xff]  }
 0x289   : > { %v14074_v19 = vpop.permute.xlu1 %933  ;;  %2486 = vperm.xlu1 %11383, %v11829_v11   ;;  %v1629_v1 = vadd.f32 %v1501_v36, %v1099_v47  ;;  %v1630_v34 = vadd.f32 %v1502_v37, %v1100_v56  ;;  %v11833_v37 = vld [vmem:[%s18355_s2 + $0xb0] sm:$0xff]  ;;  %v14139_v22 = vrot.slane %v19253_v63, %v12656_v52 }
 0x28a   : > { %19246 = vst [vmem:[#allocation171_spill] sm:$0xff] %v14074_v19  ;;  %3688 = vmatprep.subr.bf16.mxu0 %v2408_v14  ;;  %v2208_v47 = vmul.f32 0.01, %v2080_v46  ;;  %v2207_v56 = vmul.f32 0.01, %v2079_v4 }
 0x28b   : > { %3689 = vmatpush1.bf16.msra.mxu0 %v2407_v29  ;;  %v11830_v29 = vld [vmem:[%s18355_s2 + $0x90] sm:$0xff]  ;;  %v6797_v24 = vmul.f32 %v14139_v22, %v19260_v54 }
 0x28c   : > { %3580 = vmatmul.mubr.bf16.gmra.mrb[92].mxu0 %v11461_v10  ;;  %v6775_v10 = vrot.slane %v11832_v17, %v12656_v52  ;;  %v2336_v45 = vmax.f32 %v2080_v46, %v2208_v47  ;;  %v11834_v46 = vld [vmem:[%s18355_s2 + $0xc0] sm:$0xff]  ;;  %v19257_v47 = vld [vmem:[#allocation12_spill] sm:$0xff] }
 0x28d   : > { %2494 = vperm.xlu1 %11383, %v11830_v29   ;;  %3589 = vmatprep.mubr.bf16.mxu0 %v11462_v58 }
 0x28e   : > { %v14095_v14 = vpop.permute.xlu1 %1344  ;;  %v14135_v18 = vrot.slane %v6775_v10, %v12656_v52 }
 0x28f   : > { %19248 = vst [vmem:[#allocation173_spill] sm:$0xff] %v14095_v14 }
 0x291   : > { %2502 = vperm.xlu1 %11383, %v11831_v9  }
 0x293   : > { %v14109_v11 = vpop.permute.xlu1 %1915 }
 0x294   : > { %19249 = vst [vmem:[#allocation174_spill] sm:$0xff] %v14109_v11  ;;  %v2077_v58 = vadd.f32 %v14109_v11, %v1629_v1  ;;  %v2078_v0 = vadd.f32 %v14109_v11, %v1630_v34  ;;  %3590 = vmatmul.mubr.bf16.gmra.mrb[96].mxu0 %v11464_v48  ;;  %v19251_v1 = vld [vmem:[#allocation8_spill] sm:$0xff]  ;;  %v19252_v34 = vld [vmem:[#allocation9_spill] sm:$0xff]  ;;  %v2335_v48 = vmax.f32 %v2079_v4, %v2207_v56 }
 0x295   : > { %2510 = vperm.xlu1 %11383, %v11833_v37   ;;  %v14128_v17 = vmul.f32 %v19251_v1, %v12535_v60  ;;  %v14132_v11 = vmul.f32 %v19252_v34, %v12535_v60  ;;  %3599 = vmatprep.mubr.bf16.mxu0 %v11465_v3  ;;  %v14143_v49 = vmul.f32 %v19251_v1, %v19254_v50 }
 0x296   : > { %v2205_v29 = vmul.f32 0.01, %v2077_v58  ;;  %v2206_v36 = vmul.f32 0.01, %v2078_v0  ;;  %v14147_v60 = vmul.f32 %v19252_v34, %v19254_v50  ;;  %v14151_v10 = vmul.f32 %v19251_v1, %v19255_v30 }
 0x297   : > { %v14124_v9 = vpop.permute.xlu1 %938  ;;  %v14155_v63 = vmul.f32 %v19252_v34, %v19255_v30  ;;  %v1507_v4 = vmul.f32 %v12679_v15, %v14095_v14  ;;  %v1508_v50 = vmul.f32 %v12682_v13, %v14095_v14  ;;  %v11467_v30 = vld [vmem:[%s18356_s3 + $0x320] ss:$16 sps:$4 sm:$0xff]   ;;  %v6944_v56 = vmul.f32 %v19251_v1, %v19257_v47 }
 0x298   : > { %19250 = vst [vmem:[#allocation175_spill] sm:$0xff] %v14124_v9  ;;  %v2334_v37 = vmax.f32 %v2078_v0, %v2206_v36  ;;  %v2333_v21 = vmax.f32 %v2077_v58, %v2205_v29  ;;  %v6945_v29 = vmul.f32 %v19252_v34, %v19257_v47  ;;  %v19258_v36 = vld [vmem:[#allocation13_spill] sm:$0xff]  ;;  %v1105_v47 = vmul.f32 %v12690_v23, %v14074_v19 }
 0x299   : > { %2518 = vperm.xlu1 %11383, %v11834_v46   ;;  %v14175_v46 = vmul.f32 %v19251_v1, %v19258_v36  ;;  %v14179_v52 = vmul.f32 %v19252_v34, %v19258_v36  ;;  %v1106_v14 = vmul.f32 %v12693_v25, %v14074_v19  ;;  %v6796_v36 = vmul.f32 %v14135_v18, %v19260_v54 }
 0x29a   : > { %v2410_v0 = vpack.c.bf16 %v2336_v45, %v2334_v37  ;;  %v2409_v3 = vpack.c.bf16 %v2335_v48, %v2333_v21  ;;  %v11468_v21 = vld [vmem:[%s18356_s3 + $0x344] ss:$16 sps:$4 sm:$0xff]   ;;  %v14198_v2 = vmul.f32 %v19251_v1, %v19261_v55  ;;  %v14205_v19 = vmul.f32 %v19252_v34, %v19261_v55 }
 0x29b   : > { %v14164_v58 = vpop.permute.xlu1 %943  ;;  %v19259_v45 = vld [vmem:[#allocation16_spill] sm:$0xff]  ;;  %v1635_v31 = vadd.f32 %v1507_v4, %v1105_v47  ;;  %v1636_v57 = vadd.f32 %v1508_v50, %v1106_v14  ;;  %v14211_v54 = vmul.f32 %v19251_v1, %v12575_v16  ;;  %v1104_v55 = vmul.f32 %v12693_v25, %v14065_v59 }
 0x29c   : > { %19256 = vst [vmem:[#allocation8_spill] sm:$0xff] %v14164_v58  ;;  %v6942_v37 = vmul.f32 %v19251_v1, %v19259_v45  ;;  %v6943_v48 = vmul.f32 %v19252_v34, %v19259_v45  ;;  %3690 = vmatprep.subr.bf16.mxu0 %v2410_v0  ;;  %v11835_v45 = vld [vmem:[%s18355_s2 + $0xd0] sm:$0xff]  ;;  %v19262_v0 = vld [vmem:[#allocation18_spill] sm:$0xff]  ;;  %3600 = vmatmul.mubr.bf16.gmra.mrb[100].mxu0 %v11467_v30 }
 0x29d   : > { %3691 = vmatpush1.bf16.msra.mxu0 %v2409_v3  ;;  %2526 = vperm.xlu1 %11383, %v11835_v45   ;;  %v6798_v41 = vmul.f32 %v14135_v18, %v19262_v0  ;;  %v6799_v3 = vmul.f32 %v14139_v22, %v19262_v0  ;;  %v1103_v45 = vmul.f32 %v12690_v23, %v14065_v59  ;;  %v14245_v59 = vpop.permute.xlu0 %1930 }
 0x29e   : > { %3609 = vmatprep.mubr.bf16.mxu0 %v11468_v21  ;;  %v14223_v14 = vmul.f32 %v19252_v34, %v12575_v16  ;;  %v14227_v4 = vmul.f32 %v19251_v1, %v12583_v20  ;;  %v14229_v50 = vadd.f32 %v6942_v37, %v6796_v36  ;;  %v14231_v30 = vadd.f32 %v6943_v48, %v6797_v24  ;;  %v11836_v24 = vld [vmem:[%s18355_s2 + $0xe0] sm:$0xff] }
 0x29f   : > { %v14235_v47 = vmul.f32 %v19252_v34, %v12583_v20  ;;  %v14239_v0 = vmul.f32 %v19251_v1, %v12594_v26  ;;  %v1505_v16 = vmul.f32 %v12679_v15, %v13414_v51  ;;  %v1506_v21 = vmul.f32 %v12682_v13, %v13414_v51  ;;  %19266 = vst [vmem:[#allocation11_spill] sm:$0xff] %v14245_v59  ;;  %v11470_v51 = vld [vmem:[%s18356_s3 + $0x340] ss:$16 sps:$4 sm:$0xff]  }
 0x2a0   : > { %v14219_v6 = vpop.permute.xlu1 %1352  ;;  %19264 = vst [vmem:[#allocation7_spill] sm:$0xff] %v14223_v14  ;;  %v14252_v20 = vmul.f32 %v19252_v34, %v12594_v26  ;;  %v7072_v37 = vadd.f32 %v6944_v56, %v6798_v41  ;;  %v2084_v48 = vadd.f32 %v14245_v59, %v1636_v57  ;;  %v2083_v36 = vadd.f32 %v14245_v59, %v1635_v31  ;;  %v19274_v59 = vld [vmem:[#allocation21_spill] sm:$0xff] }
 0x2a1   : > { %19263 = vst [vmem:[#allocation9_spill] sm:$0xff] %v14219_v6  ;;  %19265 = vst [vmem:[#allocation10_spill] sm:$0xff] %v14235_v47  ;;  %2534 = vperm.xlu1 %11383, %v11836_v24   ;;  %v6946_v12 = vmul.f32 %v19251_v1, %v19268_v43  ;;  %v1633_v42 = vadd.f32 %v1505_v16, %v1103_v45  ;;  %v1634_v5 = vadd.f32 %v1506_v21, %v1104_v55  ;;  %v11471_v24 = vld [vmem:[%s18356_s3 + $0x364] ss:$16 sps:$4 sm:$0xff]   ;;  %v19272_v55 = vld [vmem:[#allocation25_spill] sm:$0xff] }
 0x2a2   : > { %19267 = vst [vmem:[#allocation12_spill] sm:$0xff] %v14252_v20  ;;  %v7073_v26 = vadd.f32 %v6945_v29, %v6799_v3  ;;  %v6800_v41 = vmul.f32 %v14135_v18, %v19269_v8  ;;  %v6801_v57 = vmul.f32 %v14139_v22, %v19269_v8  ;;  %v14270_v31 = vmul.f32 %v19251_v1, %v12601_v33  ;;  %v11837_v8 = vld [vmem:[%s18355_s2 + $0xf0] sm:$0xff] }
 0x2a3   : > { %v6947_v56 = vmul.f32 %v19252_v34, %v19268_v43  ;;  %v6802_v16 = vmul.f32 %v14135_v18, %v19272_v55  ;;  %v6803_v29 = vmul.f32 %v14139_v22, %v19272_v55  ;;  %v14287_v43 = vmul.f32 %v19252_v34, %v12601_v33 }
 0x2a4   : > { %19270 = vst [vmem:[#allocation13_spill] sm:$0xff] %v14270_v31  ;;  %v14291_v7 = vmul.f32 %v19251_v1, %v19274_v59  ;;  %v2212_v27 = vmul.f32 0.01, %v2084_v48  ;;  %v2211_v32 = vmul.f32 0.01, %v2083_v36  ;;  %3610 = vmatmul.mubr.bf16.gmra.mrb[104].mxu0 %v11470_v51  ;;  %v14309_v51 = vmul.f32 %v19251_v1, %v19280_v44 }
 0x2a5   : > { %v14274_v45 = vpop.permute.xlu1 %1925  ;;  %2542 = vperm.xlu1 %11383, %v11837_v8   ;;  %19273 = vst [vmem:[#allocation14_spill] sm:$0xff] %v14287_v43  ;;  %3619 = vmatprep.mubr.bf16.mxu0 %v11471_v24  ;;  %v19277_v8 = vld [vmem:[#allocation22_spill] sm:$0xff]  ;;  %v14324_v40 = vadd.f32 %v14175_v46, %v6802_v16  ;;  %v19287_v16 = vld [vmem:[#allocation27_spill] sm:$0xff] }
 0x2a6   : > { %19271 = vst [vmem:[#allocation16_spill] sm:$0xff] %v14274_v45  ;;  %v2081_v3 = vadd.f32 %v14274_v45, %v1633_v42  ;;  %v2082_v21 = vadd.f32 %v14274_v45, %v1634_v5  ;;  %19275 = vst [vmem:[#allocation15_spill] sm:$0xff] %v14291_v7  ;;  %v14295_v42 = vmul.f32 %v19252_v34, %v19274_v59  ;;  %v19284_v24 = vld [vmem:[#allocation26_spill] sm:$0xff]  ;;  %v11841_v43 = vld [vmem:[%s18355_s2 + $0x130] sm:$0xff] }
 0x2a7   : > { %v14297_v5 = vadd.f32 %v6946_v12, %v6800_v41  ;;  %v14301_v33 = vmul.f32 %v19251_v1, %v19277_v8  ;;  %v14305_v62 = vmul.f32 %v19252_v34, %v19277_v8  ;;  %19281 = vst [vmem:[#allocation25_spill] sm:$0xff] %v14309_v51  ;;  %v14313_v59 = vadd.f32 %v6947_v56, %v6801_v57  ;;  %v19313_v7 = vld [vmem:[#allocation40_spill] sm:$0xff] }
 0x2a8   : > { %19276 = vst [vmem:[#allocation18_spill] sm:$0xff] %v14295_v42  ;;  %v2209_v55 = vmul.f32 0.01, %v2081_v3  ;;  %v2210_v45 = vmul.f32 0.01, %v2082_v21  ;;  %v14317_v12 = vmul.f32 %v19252_v34, %v19280_v44  ;;  %v14321_v41 = vmul.f32 %v19251_v1, %v19284_v24  ;;  %v14428_v42 = vpop.permute.xlu0 %1940 }
 0x2a9   : > { %19278 = vst [vmem:[#allocation20_spill] sm:$0xff] %v14301_v33  ;;  %19279 = vst [vmem:[#allocation19_spill] sm:$0xff] %v14305_v62  ;;  %v14311_v39 = vpop.permute.xlu1 %948  ;;  %v14327_v8 = vadd.f32 %v14179_v52, %v6803_v29  ;;  %2550 = vperm.xlu1 %11383, %v11838_v38   ;;  %v2340_v56 = vmax.f32 %v2084_v48, %v2212_v27  ;;  %v2339_v44 = vmax.f32 %v2083_v36, %v2211_v32  ;;  %v19288_v29 = vld [vmem:[#allocation29_spill] sm:$0xff]  ;;  %v11474_v38 = vld [vmem:[%s18356_s3 + $0x384] ss:$16 sps:$4 sm:$0xff]  }
 0x2aa   : > { %19282 = vst [vmem:[#allocation21_spill] sm:$0xff] %v14311_v39  ;;  %19283 = vst [vmem:[#allocation22_spill] sm:$0xff] %v14317_v12  ;;  %v2338_v57 = vmax.f32 %v2082_v21, %v2210_v45  ;;  %v2337_v53 = vmax.f32 %v2081_v3, %v2209_v55  ;;  %v11473_v12 = vld [vmem:[%s18356_s3 + $0x360] ss:$16 sps:$4 sm:$0xff]   ;;  %v14337_v46 = vmul.f32 %v19252_v34, %v19284_v24 }
 0x2ab   : > { %19285 = vst [vmem:[#allocation24_spill] sm:$0xff] %v14321_v41  ;;  %v6804_v52 = vmul.f32 %v14135_v18, %v19287_v16  ;;  %v6950_v41 = vmul.f32 %v19251_v1, %v19288_v29  ;;  %v19289_v27 = vld [vmem:[#allocation32_spill] sm:$0xff]  ;;  %v1511_v48 = vmul.f32 %v12679_v15, %v14219_v6  ;;  %v1512_v36 = vmul.f32 %v12682_v13, %v14219_v6 }
 0x2ac   : > { %19286 = vst [vmem:[#allocation26_spill] sm:$0xff] %v14337_v46  ;;  %v14347_v32 = vadd.f32 %v7073_v26, %v19289_v27  ;;  %v2412_v3 = vpack.c.bf16 %v2340_v56, %v2338_v57  ;;  %v2411_v21 = vpack.c.bf16 %v2339_v44, %v2337_v53  ;;  %v6805_v55 = vmul.f32 %v14139_v22, %v19287_v16  ;;  %v19291_v24 = vld [vmem:[#allocation28_spill] sm:$0xff]  ;;  %v19293_v57 = vld [vmem:[#allocation35_spill] sm:$0xff] }
 0x2ad   : > { %v14353_v45 = vpop.permute.xlu1 %953  ;;  %v14359_v46 = vmul.f32 %v19251_v1, %v19291_v24  ;;  %v6951_v26 = vmul.f32 %v19252_v34, %v19288_v29  ;;  %v14364_v51 = vadd.f32 %v7072_v37, %v19289_v27  ;;  %v11839_v6 = vld [vmem:[%s18355_s2 + $0x110] sm:$0xff]  ;;  %v6791_v53 = vmul.f32 %v14139_v22, %v19293_v57  ;;  %3620 = vmatmul.mubr.bf16.gmra.mrb[108].mxu0 %v11473_v12 }
 0x2ae   : > { %19290 = vst [vmem:[#allocation27_spill] sm:$0xff] %v14353_v45  ;;  %2558 = vperm.xlu1 %11383, %v11839_v6   ;;  %v1109_v56 = vmul.f32 %v12690_v23, %v14164_v58  ;;  %v1110_v44 = vmul.f32 %v12693_v25, %v14164_v58  ;;  %3692 = vmatprep.subr.bf16.mxu0 %v2412_v3  ;;  %v19295_v16 = vld [vmem:[#allocation31_spill] sm:$0xff]  ;;  %v14390_v12 = vmul.f32 0.01, %v14347_v32 }
 0x2af   : > { %19292 = vst [vmem:[#allocation29_spill] sm:$0xff] %v14359_v46  ;;  %v14377_v37 = vmul.f32 %v19252_v34, %v19291_v24  ;;  %v14381_v29 = vmul.f32 %v19251_v1, %v19295_v16  ;;  %v14385_v6 = vmul.f32 %v19252_v34, %v19295_v16  ;;  %3693 = vmatpush1.bf16.msra.mxu0 %v2411_v21  ;;  %v14393_v3 = vmul.f32 0.01, %v14364_v51  ;;  %v19298_v24 = vld [vmem:[#allocation34_spill] sm:$0xff] }
 0x2b0   : > { %3629 = vmatprep.mubr.bf16.mxu0 %v11474_v38  ;;  %v14387_v27 = vadd.f32 %v6950_v41, %v6804_v52  ;;  %v1639_v46 = vadd.f32 %v1511_v48, %v1109_v56  ;;  %v1640_v58 = vadd.f32 %v1512_v36, %v1110_v44  ;;  %v1108_v21 = vmul.f32 %v12693_v25, %v14124_v9  ;;  %v11840_v41 = vld [vmem:[%s18355_s2 + $0x120] sm:$0xff] }
 0x2b1   : > { %19294 = vst [vmem:[#allocation32_spill] sm:$0xff] %v14377_v37  ;;  %19296 = vst [vmem:[#allocation28_spill] sm:$0xff] %v14381_v29  ;;  %v6806_v37 = vmul.f32 %v14135_v18, %v19298_v24  ;;  %v1107_v29 = vmul.f32 %v12690_v23, %v14124_v9  ;;  %v6790_v52 = vmul.f32 %v14135_v18, %v19293_v57  ;;  %v19300_v48 = vld [vmem:[#allocation37_spill] sm:$0xff]  ;;  %v19304_v57 = vld [vmem:[#allocation110_spill] sm:$0xff] }
 0x2b2   : > { %19297 = vst [vmem:[#allocation35_spill] sm:$0xff] %v14385_v6  ;;  %v14401_v38 = vpop.permute.xlu1 %1360  ;;  %2566 = vperm.xlu1 %11383, %v11840_v41   ;;  %v6792_v36 = vmul.f32 %v14135_v18, %v19300_v48  ;;  %v11476_v56 = vld [vmem:[%s18356_s3 + $0x380] ss:$16 sps:$4 sm:$0xff]   ;;  %v7065_v44 = vadd.f32 %v14132_v11, %v6791_v53  ;;  %v14414_v16 = vadd.f32 %v6951_v26, %v6805_v55  ;;  %v11477_v11 = vld [vmem:[%s18356_s3 + $0x3a4] ss:$16 sps:$4 sm:$0xff]  }
 0x2b3   : > { %19299 = vst [vmem:[#allocation31_spill] sm:$0xff] %v14401_v38  ;;  %v19301_v9 = vld [vmem:[#allocation33_spill] sm:$0xff]  ;;  %v1509_v62 = vmul.f32 %v12679_v15, %v19304_v57  ;;  %v1510_v33 = vmul.f32 %v12682_v13, %v19304_v57  ;;  %v6807_v55 = vmul.f32 %v14139_v22, %v19298_v24  ;;  %v2088_v26 = vadd.f32 %v14428_v42, %v1640_v58 }
 0x2b4   : > { %v14418_v6 = vmul.f32 %v19251_v1, %v19301_v9  ;;  %v14422_v41 = vmul.f32 %v19252_v34, %v19301_v9  ;;  %19305 = vst [vmem:[#allocation33_spill] sm:$0xff] %v14428_v42  ;;  %v2087_v9 = vadd.f32 %v14428_v42, %v1639_v46  ;;  %v7064_v58 = vadd.f32 %v14128_v17, %v6790_v52  ;;  %v19310_v52 = vld [vmem:[#allocation36_spill] sm:$0xff] }
 0x2b5   : > { %v1637_v57 = vadd.f32 %v1509_v62, %v1107_v29  ;;  %v6793_v46 = vmul.f32 %v14139_v22, %v19300_v48  ;;  %v7066_v24 = vadd.f32 %v14151_v10, %v6792_v36  ;;  %3630 = vmatmul.mubr.bf16.gmra.mrb[112].mxu0 %v11476_v56  ;;  %v19307_v62 = vld [vmem:[#allocation17_spill] sm:$0xff]  ;;  %v19309_v29 = vld [vmem:[#allocation39_spill] sm:$0xff]  ;;  %v6808_v10 = vmul.f32 %v14135_v18, %v19310_v52 }
 0x2b6   : > { %19302 = vst [vmem:[#allocation34_spill] sm:$0xff] %v14418_v6  ;;  %19303 = vst [vmem:[#allocation37_spill] sm:$0xff] %v14422_v41  ;;  %v14440_v6 = vadd.f32 %v14198_v2, %v6806_v37  ;;  %v1638_v41 = vadd.f32 %v1510_v33, %v1108_v21  ;;  %2574 = vperm.xlu1 %11383, %v11841_v43   ;;  %v14454_v2 = vadd.f32 %v7065_v44, %v19307_v62  ;;  %v19308_v33 = vld [vmem:[#allocation38_spill] sm:$0xff] }
 0x2b7   : > { %v14451_v53 = vpop.permute.xlu1 %1935  ;;  %v6954_v37 = vmul.f32 %v19251_v1, %v19308_v33  ;;  %v6794_v21 = vmul.f32 %v14135_v18, %v19309_v29  ;;  %3639 = vmatprep.mubr.bf16.mxu0 %v11477_v11  ;;  %v2216_v48 = vmul.f32 0.01, %v2088_v26  ;;  %v2215_v36 = vmul.f32 0.01, %v2087_v9 }
 0x2b8   : > { %19306 = vst [vmem:[#allocation176_spill] sm:$0xff] %v14451_v53  ;;  %v2085_v43 = vadd.f32 %v14451_v53, %v1637_v57  ;;  %v2086_v17 = vadd.f32 %v14451_v53, %v1638_v41  ;;  %v14465_v56 = vadd.f32 %v14205_v19, %v6807_v55  ;;  %v14469_v44 = vmul.f32 %v14139_v22, %v19310_v52  ;;  %v11842_v41 = vld [vmem:[%s18355_s2 + $0x140] sm:$0xff] }
 0x2b9   : > { %v14472_v42 = vadd.f32 %v7066_v24, %v19313_v7  ;;  %v14479_v11 = vmul.f32 %v19252_v34, %v19308_v33  ;;  %v14483_v19 = vmul.f32 %v14139_v22, %v19309_v29  ;;  %v19315_v55 = vld [vmem:[#allocation41_spill] sm:$0xff]  ;;  %v14496_v31 = vadd.f32 %v14143_v49, %v6794_v21  ;;  %v11480_v29 = vld [vmem:[%s18356_s3 + $0x3c4] ss:$16 sps:$4 sm:$0xff]  }
 0x2ba   : > { %19311 = vst [vmem:[#allocation17_spill] sm:$0xff] %v14465_v56  ;;  %19312 = vst [vmem:[#allocation38_spill] sm:$0xff] %v14469_v44  ;;  %v2213_v61 = vmul.f32 0.01, %v2085_v43  ;;  %v2214_v57 = vmul.f32 0.01, %v2086_v17  ;;  %2582 = vperm.xlu1 %11383, %v11842_v41   ;;  %v14487_v52 = vadd.f32 %v14324_v40, %v19315_v55  ;;  %v7067_v41 = vadd.f32 %v14155_v63, %v6793_v46 }
 0x2bb   : > { %19314 = vst [vmem:[#allocation39_spill] sm:$0xff] %v14479_v11  ;;  %v14489_v24 = vpop.permute.xlu1 %958  ;;  %v11479_v53 = vld [vmem:[%s18356_s3 + $0x3a0] ss:$16 sps:$4 sm:$0xff]   ;;  %v7082_v33 = vadd.f32 %v6954_v37, %v6808_v10  ;;  %v14502_v20 = vmul.f32 0.01, %v14454_v2  ;;  %v14505_v40 = vadd.f32 %v7064_v58, %v19307_v62  ;;  %v2344_v14 = vmax.f32 %v2088_v26, %v2216_v48 }
 0x2bc   : > { %19316 = vst [vmem:[#allocation36_spill] sm:$0xff] %v14487_v52  ;;  %19317 = vst [vmem:[#allocation40_spill] sm:$0xff] %v14489_v24  ;;  %v2342_v47 = vmax.f32 %v2086_v17, %v2214_v57  ;;  %v2341_v56 = vmax.f32 %v2085_v43, %v2213_v61  ;;  %v2343_v11 = vmax.f32 %v2087_v9, %v2215_v36  ;;  %v14508_v63 = vmul.f32 0.01, %v14472_v42  ;;  %v19318_v49 = vld [vmem:[#allocation42_spill] sm:$0xff]  ;;  %v11843_v58 = vld [vmem:[%s18355_s2 + $0x150] sm:$0xff] }
 0x2bd   : > { %v14512_v46 = vadd.f32 %v14229_v50, %v19318_v49  ;;  %v1515_v37 = vmul.f32 %v12679_v15, %v14401_v38  ;;  %v1516_v21 = vmul.f32 %v12682_v13, %v14401_v38  ;;  %v14522_v61 = vmul.f32 0.01, %v14487_v52  ;;  %v19319_v26 = vld [vmem:[#allocation44_spill] sm:$0xff]  ;;  %3640 = vmatmul.mubr.bf16.gmra.mrb[116].mxu0 %v11479_v53  ;;  %v19321_v17 = vld [vmem:[#allocation43_spill] sm:$0xff] }
 0x2be   : > { %2590 = vperm.xlu1 %11383, %v11843_v58   ;;  %v14526_v9 = vadd.f32 %v14297_v5, %v19319_v26  ;;  %v2414_v62 = vpack.c.bf16 %v2344_v14, %v2342_v47  ;;  %v2413_v43 = vpack.c.bf16 %v2343_v11, %v2341_v56  ;;  %v6810_v10 = vmul.f32 %v14135_v18, %v19321_v17  ;;  %v19322_v5 = vld [vmem:[#allocation46_spill] sm:$0xff]  ;;  %v19324_v14 = vld [vmem:[#allocation47_spill] sm:$0xff]  ;;  %v19325_v53 = vld [vmem:[#allocation48_spill] sm:$0xff] }
 0x2bf   : > { %v14528_v50 = vpop.permute.xlu1 %963  ;;  %v1113_v48 = vmul.f32 %v12690_v23, %v14353_v45  ;;  %v1114_v36 = vmul.f32 %v12693_v25, %v14353_v45  ;;  %3649 = vmatprep.mubr.bf16.mxu0 %v11480_v29  ;;  %v14537_v57 = vadd.f32 %v7067_v41, %v19313_v7  ;;  %v14541_v58 = vadd.f32 %v14387_v27, %v19322_v5  ;;  %v11844_v29 = vld [vmem:[%s18355_s2 + $0x160] sm:$0xff] }
 0x2c0   : > { %19320 = vst [vmem:[#allocation41_spill] sm:$0xff] %v14528_v50  ;;  %v6958_v47 = vmul.f32 %v19251_v1, %v19324_v14  ;;  %v14546_v56 = vadd.f32 %v7082_v33, %v19325_v53  ;;  %3694 = vmatprep.subr.bf16.mxu0 %v2414_v62  ;;  %v14551_v45 = vmul.f32 0.01, %v14512_v46  ;;  %v14555_v7 = vmul.f32 %v14139_v22, %v19321_v17  ;;  %v19328_v62 = vld [vmem:[#allocation45_spill] sm:$0xff] }
 0x2c1   : > { %19323 = vst [vmem:[#allocation42_spill] sm:$0xff] %v14541_v58  ;;  %v1643_v41 = vadd.f32 %v1515_v37, %v1113_v48  ;;  %3695 = vmatpush1.bf16.msra.mxu0 %v2413_v43  ;;  %v1644_v27 = vadd.f32 %v1516_v21, %v1114_v36  ;;  %v14561_v33 = vmul.f32 0.01, %v14526_v9  ;;  %v6812_v11 = vmul.f32 %v14135_v18, %v19328_v62  ;;  %v19330_v17 = vld [vmem:[#allocation49_spill] sm:$0xff] }
 0x2c2   : > { %19326 = vst [vmem:[#allocation44_spill] sm:$0xff] %v14546_v56  ;;  %19327 = vst [vmem:[#allocation43_spill] sm:$0xff] %v14555_v7  ;;  %2598 = vperm.xlu1 %11383, %v11844_v29   ;;  %v14567_v38 = vmul.f32 %v14139_v22, %v19328_v62  ;;  %v14571_v37 = vadd.f32 %v14440_v6, %v19330_v17  ;;  %v11482_v21 = vld [vmem:[%s18356_s3 + $0x3c0] ss:$16 sps:$4 sm:$0xff]   ;;  %v14578_v43 = vmul.f32 %v19252_v34, %v19324_v14  ;;  %v11483_v6 = vld [vmem:[%s18356_s3 + $0x3e4] ss:$16 sps:$4 sm:$0xff]  }
 0x2c3   : > { %v14581_v48 = vadd.f32 %v14211_v54, %v6810_v10  ;;  %v1111_v36 = vmul.f32 %v12690_v23, %v14311_v39  ;;  %v1112_v29 = vmul.f32 %v12693_v25, %v14311_v39  ;;  %v14596_v14 = vmul.f32 0.01, %v14546_v56  ;;  %v14598_v10 = vpop.permute.xlu0 %1950  ;;  %v19337_v7 = vld [vmem:[#allocation112_spill] sm:$0xff] }
 0x2c4   : > { %19329 = vst [vmem:[#allocation46_spill] sm:$0xff] %v14567_v38  ;;  %19331 = vst [vmem:[#allocation47_spill] sm:$0xff] %v14571_v37  ;;  %v14587_v62 = vpop.permute.xlu1 %1368  ;;  %v14593_v38 = vmul.f32 0.01, %v14541_v58  ;;  %v7086_v54 = vadd.f32 %v6958_v47, %v6812_v11  ;;  %v1513_v39 = vmul.f32 %v12679_v15, %v19337_v7  ;;  %v1514_v53 = vmul.f32 %v12682_v13, %v19337_v7  ;;  %v11845_v56 = vld [vmem:[%s18355_s2 + $0x170] sm:$0xff]  ;;  %v19341_v58 = vld [vmem:[#allocation50_spill] sm:$0xff] }
 0x2c5   : > { %19332 = vst [vmem:[#allocation45_spill] sm:$0xff] %v14578_v43  ;;  %19333 = vst [vmem:[#allocation177_spill] sm:$0xff] %v14587_v62  ;;  %v14601_v43 = vmul.f32 0.01, %v14537_v57  ;;  %v2092_v17 = vadd.f32 %v14598_v10, %v1644_v27  ;;  %v2091_v44 = vadd.f32 %v14598_v10, %v1643_v41  ;;  %v14613_v47 = vmul.f32 0.01, %v14571_v37  ;;  %3650 = vmatmul.mubr.bf16.gmra.mrb[120].mxu0 %v11482_v21 }
 0x2c6   : > { %19334 = vst [vmem:[#allocation178_spill] sm:$0xff] %v14593_v38  ;;  %19335 = vst [vmem:[#allocation179_spill] sm:$0xff] %v14596_v14  ;;  %2606 = vperm.xlu1 %11383, %v11845_v56   ;;  %v19339_v11 = vld [vmem:[#allocation52_spill] sm:$0xff]  ;;  %v6814_v38 = vmul.f32 %v14135_v18, %v19341_v58  ;;  %v14621_v7 = vmul.f32 0.01, %v14505_v40  ;;  %v19342_v27 = vld [vmem:[#allocation53_spill] sm:$0xff]  ;;  %v1642_v28 = vadd.f32 %v1514_v53, %v1112_v29  ;;  %3659 = vmatprep.mubr.bf16.mxu0 %v11483_v6 }
 0x2c7   : > { %19336 = vst [vmem:[#allocation180_spill] sm:$0xff] %v14598_v10  ;;  %19338 = vst [vmem:[#allocation181_spill] sm:$0xff] %v14613_v47  ;;  %v14616_v14 = vadd.f32 %v7086_v54, %v19339_v11  ;;  %v6962_v41 = vmul.f32 %v19251_v1, %v19342_v27  ;;  %v1641_v10 = vadd.f32 %v1513_v39, %v1111_v36  ;;  %v19343_v37 = vld [vmem:[#allocation51_spill] sm:$0xff]  ;;  %v2219_v36 = vmul.f32 0.01, %v2091_v44  ;;  %v11846_v29 = vld [vmem:[%s18355_s2 + $0x180] sm:$0xff] }
 0x2c8   : > { %v7069_v56 = vadd.f32 %v14147_v60, %v14483_v19  ;;  %v6816_v54 = vmul.f32 %v14135_v18, %v19343_v37  ;;  %v14633_v21 = vadd.f32 %v14231_v30, %v19318_v49  ;;  %v19345_v47 = vld [vmem:[#allocation23_spill] sm:$0xff]  ;;  %v14641_v39 = vadd.f32 %v14313_v59, %v19319_v26 }
 0x2c9   : > { %19340 = vst [vmem:[#allocation182_spill] sm:$0xff] %v14616_v14  ;;  %v14629_v11 = vpop.permute.xlu1 %1945  ;;  %v14637_v52 = vadd.f32 %v14496_v31, %v19345_v47  ;;  %v2220_v19 = vmul.f32 0.01, %v2092_v17  ;;  %v14649_v30 = vmul.f32 0.01, %v14616_v14  ;;  %v14653_v31 = vmul.f32 %v14139_v22, %v19341_v58 }
 0x2ca   : > { %19344 = vst [vmem:[#allocation50_spill] sm:$0xff] %v14629_v11  ;;  %v2089_v53 = vadd.f32 %v14629_v11, %v1641_v10  ;;  %v2090_v60 = vadd.f32 %v14629_v11, %v1642_v28  ;;  %2614 = vperm.xlu1 %11383, %v11846_v29   ;;  %v14657_v59 = vmul.f32 %v14139_v22, %v19343_v37  ;;  %v11485_v49 = vld [vmem:[%s18356_s3 + $0x3e0] ss:$16 sps:$4 sm:$0xff]   ;;  %v11488_v29 = vld [vmem:[%s18356_s3 + $0xc] ss:$16 sps:$4 sm:$0xff]  }
 0x2cb   : > { %19346 = vst [vmem:[#allocation53_spill] sm:$0xff] %v14649_v30  ;;  %v14660_v28 = vadd.f32 %v14227_v4, %v6814_v38  ;;  %v7090_v26 = vadd.f32 %v6962_v41, %v6816_v54  ;;  %v7197_v58 = vadd.f32 %v7069_v56, %v19345_v47  ;;  %v7451_v37 = vmax.f32 %v14537_v57, %v14601_v43  ;;  %v11847_v47 = vld [vmem:[%s18355_s2 + $0x190] sm:$0xff] }
 0x2cc   : > { %19347 = vst [vmem:[#allocation51_spill] sm:$0xff] %v14657_v59  ;;  %v2217_v6 = vmul.f32 0.01, %v2089_v53  ;;  %v2218_v10 = vmul.f32 0.01, %v2090_v60  ;;  %v7448_v4 = vmax.f32 %v14505_v40, %v14621_v7  ;;  %v7450_v38 = vmax.f32 %v14472_v42, %v14508_v63  ;;  %v19349_v7 = vld [vmem:[#allocation57_spill] sm:$0xff] }
 0x2cd   : > { %v14669_v11 = vpop.permute.xlu1 %968  ;;  %v7327_v41 = vmul.f32 0.01, %v14633_v21  ;;  %v2348_v54 = vmax.f32 %v2092_v17, %v2220_v19  ;;  %v2347_v14 = vmax.f32 %v2091_v44, %v2219_v36  ;;  %v7324_v30 = vmul.f32 0.01, %v14637_v52  ;;  %3660 = vmatmul.mubr.bf16.gmra.mrb[124].mxu0 %v11485_v49  ;;  %v19350_v17 = vld [vmem:[#allocation54_spill] sm:$0xff] }
 0x2ce   : > { %19348 = vst [vmem:[#allocation23_spill] sm:$0xff] %v14669_v11  ;;  %v7331_v59 = vmul.f32 0.01, %v14641_v39  ;;  %2622 = vperm.xlu1 %11383, %v11847_v47   ;;  %v1519_v57 = vmul.f32 %v12679_v15, %v14587_v62  ;;  %v1520_v40 = vmul.f32 %v12682_v13, %v14587_v62  ;;  %v2346_v42 = vmax.f32 %v2090_v60, %v2218_v10 }
 0x2cf   : > { %v2345_v63 = vmax.f32 %v2089_v53, %v2217_v6  ;;  %v14688_v44 = vadd.f32 %v7090_v26, %v19349_v7  ;;  %v14692_v43 = vadd.f32 %v14581_v48, %v19350_v17  ;;  %3702 = vmatprep.mubr.bf16.mxu0 %v11488_v29  ;;  %v7325_v56 = vmul.f32 0.01, %v7197_v58 }
 0x2d0   : > { %v7454_v19 = vmax.f32 %v14512_v46, %v14551_v45  ;;  %v1117_v36 = vmul.f32 %v12690_v23, %v14528_v50  ;;  %v1118_v60 = vmul.f32 %v12693_v25, %v14528_v50  ;;  %v2416_v49 = vpack.c.bf16 %v2348_v54, %v2346_v42  ;;  %v11848_v46 = vld [vmem:[%s18355_s2 + $0x1a0] sm:$0xff] }
 0x2d1   : > { %v14700_v53 = vpop.permute.xlu1 %973  ;;  %v2415_v26 = vpack.c.bf16 %v2347_v14, %v2345_v63  ;;  %v19352_v6 = vmax.f32 %v14454_v2, %v14502_v20  ;;  %v7455_v10 = vmax.f32 %v14633_v21, %v7327_v41  ;;  %v7452_v29 = vmax.f32 %v14637_v52, %v7324_v30 }
 0x2d2   : > { %19351 = vst [vmem:[#allocation57_spill] sm:$0xff] %v14700_v53  ;;  %v14711_v45 = vadd.f32 %v14327_v8, %v19315_v55  ;;  %2630 = vperm.xlu1 %11383, %v11848_v46   ;;  %v1647_v54 = vadd.f32 %v1519_v57, %v1117_v36  ;;  %3696 = vmatprep.subr.bf16.mxu0 %v2416_v49  ;;  %v14728_v30 = vmul.f32 0.01, %v14688_v44  ;;  %v19358_v49 = vld [vmem:[#allocation56_spill] sm:$0xff] }
 0x2d3   : > { %v14705_v48 = vpack.c.bf16 %v7451_v37, %v19352_v6  ;;  %v1648_v14 = vadd.f32 %v1520_v40, %v1118_v60  ;;  %v7459_v20 = vmax.f32 %v14641_v39, %v7331_v59  ;;  %v7458_v2 = vmax.f32 %v14526_v9, %v14561_v33  ;;  %3697 = vmatpush1.bf16.msra.mxu0 %v2415_v26  ;;  %v19353_v39 = vld [vmem:[#allocation55_spill] sm:$0xff] }
 0x2d4   : > { %v14721_v52 = vmul.f32 %v19252_v34, %v19342_v27  ;;  %v14723_v8 = vpack.c.bf16 %v7450_v38, %v7448_v4  ;;  %v7453_v55 = vmax.f32 %v7197_v58, %v7325_v56  ;;  %v7207_v21 = vadd.f32 %v14414_v16, %v19322_v5  ;;  %v14737_v27 = vpop.permute.xlu0 %1960  ;;  %v11849_v38 = vld [vmem:[%s18355_s2 + $0x1b0] sm:$0xff] }
 0x2d5   : > { %v14731_v37 = vmul.f32 0.01, %v14692_v43  ;;  %v6818_v9 = vmul.f32 %v14135_v18, %v19353_v39  ;;  %v14735_v33 = vpack.c.bf16 %v7454_v19, %v7452_v29  ;;  %19354 = vst [vmem:[#allocation54_spill] sm:$0xff] %v14737_v27  ;;  %v1115_v59 = vmul.f32 %v12690_v23, %v14489_v24 }
 0x2d6   : > { %v1116_v58 = vmul.f32 %v12693_v25, %v14489_v24  ;;  %v14743_v16 = vpop.permute.xlu1 %1376  ;;  %v14745_v5 = vpack.c.bf16 %v7455_v10, %v7453_v55  ;;  %v7333_v4 = vmul.f32 0.01, %v14711_v45  ;;  %2638 = vperm.xlu1 %11383, %v11849_v38   ;;  %v2096_v41 = vadd.f32 %v14737_v27, %v1648_v14 }
 0x2d7   : > { %19355 = vst [vmem:[#allocation55_spill] sm:$0xff] %v14743_v16  ;;  %v2095_v47 = vadd.f32 %v14737_v27, %v1647_v54  ;;  %v19356_v57 = vmax.f32 %v14347_v32, %v14390_v12  ;;  %v19357_v42 = vmax.f32 %v14364_v51, %v14393_v3  ;;  %v14765_v56 = vmul.f32 %v14139_v22, %v19353_v39  ;;  %v19359_v3 = vld [vmem:[#allocation36_spill] sm:$0xff]  ;;  %v11850_v54 = vld [vmem:[%s18355_s2 + $0x1c0] sm:$0xff] }
 0x2d8   : > { %v1517_v19 = vmul.f32 %v12679_v15, %v13477_v35  ;;  %v1518_v36 = vmul.f32 %v12682_v13, %v13477_v35  ;;  %v7335_v60 = vmul.f32 0.01, %v7207_v21  ;;  %v14773_v32 = vmul.f32 %v14135_v18, %v19358_v49  ;;  %v19370_v27 = vld [vmem:[#allocation181_spill] sm:$0xff] }
 0x2d9   : > { %v14756_v40 = vpack.c.bf16 %v7459_v20, %v19356_v57  ;;  %v14761_v63 = vpack.c.bf16 %v7458_v2, %v19357_v42  ;;  %v14776_v12 = vadd.f32 %v14239_v0, %v6818_v9  ;;  %v1119_v51 = vmul.f32 %v12690_v23, %v14669_v11  ;;  %v19360_v0 = vld [vmem:[#allocation116_spill] sm:$0xff]  ;;  %v19364_v42 = vld [vmem:[#allocation38_spill] sm:$0xff] }
 0x2da   : > { %v7460_v26 = vmax.f32 %v19359_v3, %v14522_v61  ;;  %v14784_v6 = vmul.f32 %v14139_v22, %v19358_v49  ;;  %v1645_v10 = vadd.f32 %v1517_v19, %v1115_v59  ;;  %v1646_v29 = vadd.f32 %v1518_v36, %v1116_v58  ;;  %2646 = vperm.xlu1 %11383, %v11850_v54   ;;  %v19362_v59 = vld [vmem:[#allocation178_spill] sm:$0xff]  ;;  %v19365_v19 = vld [vmem:[#allocation39_spill] sm:$0xff]  ;;  %v19366_v49 = vld [vmem:[#allocation49_spill] sm:$0xff] }
 0x2db   : > { %v7461_v46 = vmax.f32 %v14711_v45, %v7333_v4  ;;  %v1521_v14 = vmul.f32 %v12679_v15, %v19360_v0  ;;  %v1120_v20 = vmul.f32 %v12693_v25, %v14669_v11  ;;  %v14794_v61 = vpop.permute.xlu1 %1955  ;;  %v2224_v2 = vmul.f32 0.01, %v2096_v41  ;;  %v19363_v58 = vld [vmem:[#allocation42_spill] sm:$0xff]  ;;  %v19367_v3 = vld [vmem:[#allocation17_spill] sm:$0xff] }
 0x2dc   : > { %19361 = vst [vmem:[#allocation56_spill] sm:$0xff] %v14794_v61  ;;  %v2223_v55 = vmul.f32 0.01, %v2095_v47  ;;  %v2093_v39 = vadd.f32 %v14794_v61, %v1645_v10  ;;  %v2094_v9 = vadd.f32 %v14794_v61, %v1646_v29  ;;  %v7463_v45 = vmax.f32 %v7207_v21, %v7335_v60 }
 0x2dd   : > { %v7462_v4 = vmax.f32 %v19363_v58, %v19362_v59  ;;  %v1522_v38 = vmul.f32 %v12682_v13, %v19360_v0  ;;  %v1649_v57 = vadd.f32 %v1521_v14, %v1119_v51  ;;  %v7083_v36 = vadd.f32 %v19365_v19, %v19364_v42  ;;  %v11851_v59 = vld [vmem:[%s18355_s2 + $0x1d0] sm:$0xff] }
 0x2de   : > { %v14806_v54 = vadd.f32 %v19367_v3, %v19366_v49  ;;  %v1523_v10 = vmul.f32 %v12679_v15, %v14743_v16  ;;  %v1524_v21 = vmul.f32 %v12682_v13, %v14743_v16  ;;  %v2221_v60 = vmul.f32 0.01, %v2093_v39  ;;  %2654 = vperm.xlu1 %11383, %v11851_v59   ;;  %v19369_v59 = vld [vmem:[#allocation48_spill] sm:$0xff] }
 0x2df   : > { %v2222_v29 = vmul.f32 0.01, %v2094_v9  ;;  %v1121_v51 = vmul.f32 %v12690_v23, %v14700_v53  ;;  %v14817_v14 = vpop.permute.xlu1 %1965  ;;  %v2352_v58 = vmax.f32 %v2096_v41, %v2224_v2  ;;  %v2351_v42 = vmax.f32 %v2095_v47, %v2223_v55  ;;  %v19371_v23 = vld [vmem:[#allocation47_spill] sm:$0xff]  ;;  %v19372_v2 = vld [vmem:[#allocation58_spill] sm:$0xff] }
 0x2e0   : > { %19368 = vst [vmem:[#allocation36_spill] sm:$0xff] %v14817_v14  ;;  %v1650_v19 = vadd.f32 %v1522_v38, %v1120_v20  ;;  %v1122_v15 = vmul.f32 %v12693_v25, %v14700_v53  ;;  %v2097_v13 = vadd.f32 %v14817_v14, %v1649_v57  ;;  %v2349_v3 = vmax.f32 %v2093_v39, %v2221_v60  ;;  %v11852_v25 = vld [vmem:[%s18355_s2 + $0x1e0] sm:$0xff] }
 0x2e1   : > { %v2350_v49 = vmax.f32 %v2094_v9, %v2222_v29  ;;  %v14823_v11 = vpack.c.bf16 %v7463_v45, %v7461_v46  ;;  %v7211_v16 = vadd.f32 %v7083_v36, %v19369_v59  ;;  %v7464_v50 = vmax.f32 %v19371_v23, %v19370_v27  ;;  %v19374_v9 = vld [vmem:[#allocation43_spill] sm:$0xff]  ;;  %v19376_v27 = vld [vmem:[#allocation46_spill] sm:$0xff]  ;;  %v19377_v57 = vld [vmem:[#allocation45_spill] sm:$0xff] }
 0x2e2   : > { %v2098_v61 = vadd.f32 %v14817_v14, %v1650_v19  ;;  %v1651_v24 = vadd.f32 %v1523_v10, %v1121_v51  ;;  %v2417_v47 = vpack.c.bf16 %v2351_v42, %v2349_v3  ;;  %v1652_v20 = vadd.f32 %v1524_v21, %v1122_v15  ;;  %2662 = vperm.xlu1 %11383, %v11852_v25   ;;  %v19375_v45 = vld [vmem:[#allocation7_spill] sm:$0xff]  ;;  %v19379_v42 = vld [vmem:[#allocation44_spill] sm:$0xff]  ;;  %v19380_v19 = vld [vmem:[#allocation10_spill] sm:$0xff] }
 0x2e3   : > { %v2418_v41 = vpack.c.bf16 %v2352_v58, %v2350_v49  ;;  %v6966_v55 = vmul.f32 %v19251_v1, %v19372_v2  ;;  %v14833_v39 = vpop.permute.xlu1 %1970  ;;  %v14835_v46 = vpack.c.bf16 %v7462_v4, %v7460_v26  ;;  %v7085_v38 = vadd.f32 %v19375_v45, %v19374_v9  ;;  %v19378_v58 = vld [vmem:[#allocation179_spill] sm:$0xff] }
 0x2e4   : > { %19373 = vst [vmem:[#allocation116_spill] sm:$0xff] %v14833_v39  ;;  %v7087_v36 = vadd.f32 %v19377_v57, %v19376_v27  ;;  %v2225_v10 = vmul.f32 0.01, %v2097_v13  ;;  %v2099_v21 = vadd.f32 %v14833_v39, %v1651_v24  ;;  %v2100_v60 = vadd.f32 %v14833_v39, %v1652_v20  ;;  %v19381_v24 = vld [vmem:[#allocation52_spill] sm:$0xff]  ;;  %v19382_v20 = vld [vmem:[#allocation59_spill] sm:$0xff] }
 0x2e5   : > { %3698 = vmatprep.subr.bf16.mxu0 %v2418_v41  ;;  %v2226_v29 = vmul.f32 0.01, %v2098_v61  ;;  %v7337_v51 = vmul.f32 0.01, %v14806_v54  ;;  %v7466_v26 = vmax.f32 %v19379_v42, %v19378_v58  ;;  %v14847_v4 = vadd.f32 %v7085_v38, %v19350_v17  ;;  %v11853_v41 = vld [vmem:[%s18355_s2 + $0x1f0] sm:$0xff] }
 0x2e6   : > { %3699 = vmatpush1.bf16.msra.mxu0 %v2417_v47  ;;  %v7089_v15 = vadd.f32 %v19380_v19, %v14653_v31  ;;  %v2227_v49 = vmul.f32 0.01, %v2099_v21  ;;  %v2228_v3 = vmul.f32 0.01, %v2100_v60  ;;  %v7339_v59 = vmul.f32 0.01, %v7211_v16  ;;  %2670 = vperm.xlu1 %11383, %v11853_v41  }
 0x2e7   : > { %v7215_v23 = vadd.f32 %v7087_v36, %v19381_v24  ;;  %v7094_v47 = vadd.f32 %v6966_v55, %v14773_v32  ;;  %v14858_v25 = vadd.f32 %v14660_v28, %v19382_v20  ;;  %v19383_v17 = vld [vmem:[#allocation51_spill] sm:$0xff]  ;;  %v2354_v45 = vmax.f32 %v2098_v61, %v2226_v29  ;;  %v19385_v61 = vld [vmem:[#allocation61_spill] sm:$0xff] }
 0x2e8   : > { %v7091_v9 = vadd.f32 %v14721_v52, %v19383_v17  ;;  %v14863_v31 = vadd.f32 %v7089_v15, %v19382_v20  ;;  %v2356_v38 = vmax.f32 %v2100_v60, %v2228_v3  ;;  %v2353_v27 = vmax.f32 %v2097_v13, %v2225_v10  ;;  %v19384_v58 = vld [vmem:[#allocation63_spill] sm:$0xff]  ;;  %v19386_v60 = vld [vmem:[#allocation62_spill] sm:$0xff]  ;;  %v19389_v20 = vld [vmem:[#allocation12_spill] sm:$0xff] }
 0x2e9   : > { %v2355_v57 = vmax.f32 %v2099_v21, %v2227_v49  ;;  %v6967_v36 = vmul.f32 %v19252_v34, %v19372_v2  ;;  %v6970_v32 = vmul.f32 %v19251_v1, %v19384_v58  ;;  %v7465_v55 = vmax.f32 %v14806_v54, %v7337_v51  ;;  %v11486_v51 = vld [vmem:[%s18356_s3 + $0x8] ss:$16 sps:$4 sm:$0xff]  }
 0x2ea   : > { %v7341_v28 = vmul.f32 0.01, %v14847_v4  ;;  %v2420_v42 = vpack.c.bf16 %v2356_v38, %v2354_v45  ;;  %v7343_v52 = vmul.f32 0.01, %v7215_v23  ;;  %v7468_v15 = vmax.f32 %v14692_v43, %v14731_v37  ;;  %v19387_v49 = vld [vmem:[#allocation53_spill] sm:$0xff]  ;;  %v19388_v43 = vld [vmem:[#allocation182_spill] sm:$0xff] }
 0x2eb   : > { %v2419_v19 = vpack.c.bf16 %v2355_v57, %v2353_v27  ;;  %v6824_v13 = vmul.f32 %v14135_v18, %v19385_v61  ;;  %v7467_v10 = vmax.f32 %v7211_v16, %v7339_v59  ;;  %v14875_v21 = vpack.c.bf16 %v7466_v26, %v7464_v50  ;;  %v11489_v50 = vld [vmem:[%s18356_s3 + $0x2c] ss:$16 sps:$4 sm:$0xff]   ;;  %v19392_v57 = vld [vmem:[#allocation64_spill] sm:$0xff] }
 0x2ec   : > { %v7219_v2 = vadd.f32 %v7091_v9, %v19349_v7  ;;  %v14879_v29 = vadd.f32 %v7094_v47, %v19386_v60  ;;  %v7344_v54 = vmul.f32 0.01, %v14858_v25  ;;  %3700 = vmatprep.subr.bf16.mxu0 %v2420_v42  ;;  %v7470_v37 = vmax.f32 %v19388_v43, %v19387_v49  ;;  %v19390_v9 = vld [vmem:[#allocation60_spill] sm:$0xff] }
 0x2ed   : > { %v7345_v3 = vmul.f32 0.01, %v14863_v31  ;;  %v7098_v16 = vadd.f32 %v6970_v32, %v6824_v13  ;;  %3701 = vmatpush1.bf16.msra.mxu0 %v2419_v19  ;;  %v14891_v7 = vpack.c.bf16 %v7467_v10, %v7465_v55  ;;  %v7469_v26 = vmax.f32 %v14847_v4, %v7341_v28  ;;  %v19391_v4 = vld [vmem:[#allocation68_spill] sm:$0xff]  ;;  %v19393_v32 = vld [vmem:[#allocation67_spill] sm:$0xff]  ;;  %v19394_v28 = vld [vmem:[#allocation66_spill] sm:$0xff] }
 0x2ee   : > { %v7095_v59 = vadd.f32 %v6967_v36, %v14784_v6  ;;  %v6971_v24 = vmul.f32 %v19252_v34, %v19384_v58  ;;  %7640 = vmatprep.subr.bf16.mxu0 %v14705_v48  ;;  %v7471_v41 = vmax.f32 %v7215_v23, %v7343_v52  ;;  %v14898_v47 = vpack.c.bf16 %v7470_v37, %v7468_v15  ;;  %v19395_v15 = vld [vmem:[#allocation65_spill] sm:$0xff] }
 0x2ef   : > { %v7093_v17 = vadd.f32 %v19389_v20, %v14765_v56  ;;  %v6822_v45 = vmul.f32 %v14135_v18, %v19390_v9  ;;  %v6825_v38 = vmul.f32 %v14139_v22, %v19385_v61  ;;  %v6974_v6 = vmul.f32 %v19251_v1, %v19391_v4  ;;  %v19396_v10 = vld [vmem:[#allocation13_spill] sm:$0xff] }
 0x2f0   : > { %v7347_v27 = vmul.f32 0.01, %v7219_v2  ;;  %v14910_v36 = vadd.f32 %v14776_v12, %v19392_v57  ;;  %3703 = vmatmul.mubr.bf16.vlgmr.msra.gmra.mrb[0].mxu0 %v11486_v51  ;;  %v7473_v48 = vmax.f32 %v14863_v31, %v7345_v3  ;;  %v7472_v23 = vmax.f32 %v14858_v25, %v7344_v54  ;;  %v19397_v51 = vld [vmem:[#allocation84_spill] sm:$0xff] }
 0x2f1   : > { %v7221_v56 = vadd.f32 %v7093_v17, %v19392_v57  ;;  %v7350_v58 = vmul.f32 0.01, %v14879_v29  ;;  %v14917_v55 = vadd.f32 %v7098_v16, %v19393_v32  ;;  %v6828_v42 = vmul.f32 %v14135_v18, %v19394_v28  ;;  %7641 = vmatpush1.bf16.msra.mxu0 %v14723_v8  ;;  %3712 = vmatprep.mubr.bf16.mxu0 %v11489_v50  ;;  %v19400_v17 = vld [vmem:[#allocation72_spill] sm:$0xff] }
 0x2f2   : > { %v7223_v12 = vadd.f32 %v7095_v59, %v19386_v60  ;;  %v6823_v31 = vmul.f32 %v14139_v22, %v19390_v9  ;;  %7642 = vmatprep.subr.bf16.mxu0 %v14745_v5  ;;  %v14926_v25 = vpack.c.bf16 %v7471_v41, %v7469_v26  ;;  %v7474_v19 = vmax.f32 %v14688_v44, %v14728_v30  ;;  %v11491_v5 = vld [vmem:[%s18356_s3 + $0x28] ss:$16 sps:$4 sm:$0xff]  }
 0x2f3   : > { %v7099_v52 = vadd.f32 %v6971_v24, %v6825_v38  ;;  %v6826_v61 = vmul.f32 %v14135_v18, %v19395_v15  ;;  %v7102_v13 = vadd.f32 %v6974_v6, %v6828_v42  ;;  %v7096_v8 = vadd.f32 %v19396_v10, %v6822_v45  ;;  %v19398_v26 = vld [vmem:[#allocation69_spill] sm:$0xff]  ;;  %v19399_v24 = vld [vmem:[#allocation14_spill] sm:$0xff]  ;;  %v19402_v38 = vld [vmem:[#allocation15_spill] sm:$0xff] }
 0x2f4   : > { %v7475_v54 = vmax.f32 %v7219_v2, %v7347_v27  ;;  %v7348_v60 = vmul.f32 0.01, %v14910_v36  ;;  %v14936_v49 = vmul.f32 %v19252_v34, %v19397_v51  ;;  %v14941_v43 = vpack.c.bf16 %v7474_v19, %v7472_v23  ;;  %v11492_v2 = vld [vmem:[%s18356_s3 + $0x4c] ss:$16 sps:$4 sm:$0xff]  }
 0x2f5   : > { %v7349_v44 = vmul.f32 0.01, %v7221_v56  ;;  %v14944_v30 = vmul.f32 0.01, %v14917_v55  ;;  %7643 = vmatpush1.bf16.msra.mxu0 %v14735_v33  ;;  %v7351_v3 = vmul.f32 0.01, %v7223_v12  ;;  %v7478_v16 = vmax.f32 %v14879_v29, %v7350_v58 }
 0x2f6   : > { %v14950_v37 = vpack.c.bf16 %v7475_v54, %v7473_v48  ;;  %v6975_v50 = vmul.f32 %v19252_v34, %v19391_v4  ;;  %v14956_v59 = vadd.f32 %v7096_v8, %v19398_v26  ;;  %7644 = vmatprep.subr.bf16.mxu0 %v14756_v40  ;;  %v7097_v41 = vadd.f32 %v19399_v24, %v6823_v31  ;;  %v19401_v29 = vld [vmem:[#allocation73_spill] sm:$0xff]  ;;  %v19403_v48 = vld [vmem:[#allocation71_spill] sm:$0xff]  ;;  %v19406_v54 = vld [vmem:[#allocation76_spill] sm:$0xff] }
 0x2f7   : > { %v14961_v33 = vadd.f32 %v7099_v52, %v19393_v32  ;;  %v6827_v20 = vmul.f32 %v14139_v22, %v19395_v15  ;;  %v14966_v9 = vadd.f32 %v7102_v13, %v19400_v17  ;;  %v6978_v45 = vmul.f32 %v19251_v1, %v19401_v29  ;;  %v19405_v52 = vld [vmem:[#allocation18_spill] sm:$0xff] }
 0x2f8   : > { %v7100_v4 = vadd.f32 %v19402_v38, %v6826_v61  ;;  %v6829_v6 = vmul.f32 %v14139_v22, %v19394_v28  ;;  %3713 = vmatmul.mubr.bf16.gmra.mrb[4].mxu0 %v11491_v5  ;;  %v7477_v40 = vmax.f32 %v7221_v56, %v7349_v44  ;;  %v7476_v27 = vmax.f32 %v14910_v36, %v7348_v60  ;;  %v19404_v28 = vld [vmem:[#allocation70_spill] sm:$0xff]  ;;  %v19407_v5 = vld [vmem:[#allocation81_spill] sm:$0xff] }
 0x2f9   : > { %v14975_v57 = vadd.f32 %v7097_v41, %v19398_v26  ;;  %v6832_v23 = vmul.f32 %v14135_v18, %v19403_v48  ;;  %7645 = vmatpush1.bf16.msra.mxu0 %v14761_v63  ;;  %3722 = vmatprep.mubr.bf16.mxu0 %v11492_v2  ;;  %v7479_v58 = vmax.f32 %v7223_v12, %v7351_v3  ;;  %v7352_v42 = vmul.f32 0.01, %v14956_v59  ;;  %v19408_v3 = vld [vmem:[#allocation20_spill] sm:$0xff]  ;;  %v19409_v41 = vld [vmem:[#allocation74_spill] sm:$0xff] }
 0x2fa   : > { %v7482_v32 = vmax.f32 %v14917_v55, %v14944_v30  ;;  %v6830_v56 = vmul.f32 %v14135_v18, %v19404_v28  ;;  %7646 = vmatprep.subr.bf16.mxu0 %v14823_v11  ;;  %v14987_v36 = vmul.f32 0.01, %v14961_v33  ;;  %v7103_v31 = vadd.f32 %v6975_v50, %v6829_v6  ;;  %v11494_v11 = vld [vmem:[%s18356_s3 + $0x48] ss:$16 sps:$4 sm:$0xff]   ;;  %v11495_v30 = vld [vmem:[%s18356_s3 + $0x6c] ss:$16 sps:$4 sm:$0xff]  }
 0x2fb   : > { %v14990_v19 = vmul.f32 0.01, %v14966_v9  ;;  %v6979_v63 = vmul.f32 %v19252_v34, %v19401_v29  ;;  %v7106_v12 = vadd.f32 %v6978_v45, %v6832_v23  ;;  %v7101_v55 = vadd.f32 %v19405_v52, %v6827_v20 }
 0x2fc   : > { %v6831_v15 = vmul.f32 %v14139_v22, %v19404_v28  ;;  %v15000_v61 = vpack.c.bf16 %v7479_v58, %v7477_v40  ;;  %v15002_v13 = vpack.c.bf16 %v7478_v16, %v7476_v27  ;;  %v15005_v10 = vmul.f32 0.01, %v14975_v57  ;;  %v19413_v58 = vld [vmem:[#allocation83_spill] sm:$0xff]  ;;  %v19414_v28 = vld [vmem:[#allocation88_spill] sm:$0xff] }
 0x2fd   : > { %v6833_v8 = vmul.f32 %v14139_v22, %v19403_v48  ;;  %v15010_v60 = vadd.f32 %v7100_v4, %v19406_v54  ;;  %v6982_v44 = vmul.f32 %v19251_v1, %v19407_v5  ;;  %7647 = vmatpush1.bf16.msra.mxu0 %v14835_v46  ;;  %v7229_v2 = vadd.f32 %v7101_v55, %v19406_v54  ;;  %v19410_v46 = vld [vmem:[#allocation80_spill] sm:$0xff]  ;;  %v19411_v4 = vld [vmem:[#allocation78_spill] sm:$0xff]  ;;  %v19416_v55 = vld [vmem:[#allocation25_spill] sm:$0xff] }
 0x2fe   : > { %v7104_v16 = vadd.f32 %v19408_v3, %v6830_v56  ;;  %7648 = vmatprep.subr.bf16.mxu0 %v14891_v7  ;;  %v7483_v50 = vmax.f32 %v14961_v33, %v14987_v36  ;;  %v7480_v26 = vmax.f32 %v14956_v59, %v7352_v42  ;;  %v7231_v24 = vadd.f32 %v7103_v31, %v19400_v17  ;;  %v19412_v17 = vld [vmem:[#allocation19_spill] sm:$0xff] }
 0x2ff   : > { %v15026_v20 = vadd.f32 %v7106_v12, %v19409_v41  ;;  %v6836_v29 = vmul.f32 %v14135_v18, %v19410_v46  ;;  %v7486_v45 = vmax.f32 %v14966_v9, %v14990_v19  ;;  %v7107_v38 = vadd.f32 %v6979_v63, %v6833_v8  ;;  %v19415_v63 = vld [vmem:[#allocation87_spill] sm:$0xff] }
 0x300   : > { %v6834_v7 = vmul.f32 %v14135_v18, %v19411_v4  ;;  %v6983_v33 = vmul.f32 %v19252_v34, %v19407_v5  ;;  %3723 = vmatmul.mubr.bf16.gmra.mrb[8].mxu0 %v11494_v11  ;;  %v7481_v59 = vmax.f32 %v14975_v57, %v15005_v10  ;;  %v7105_v6 = vadd.f32 %v19412_v17, %v6831_v15  ;;  %v19417_v10 = vld [vmem:[#allocation75_spill] sm:$0xff] }
 0x301   : > { %v7356_v40 = vmul.f32 0.01, %v15010_v60  ;;  %v6835_v27 = vmul.f32 %v14139_v22, %v19411_v4  ;;  %v7110_v48 = vadd.f32 %v6982_v44, %v6836_v29  ;;  %7649 = vmatpush1.bf16.msra.mxu0 %v14875_v21  ;;  %3732 = vmatprep.mubr.bf16.mxu0 %v11495_v30  ;;  %v7357_v9 = vmul.f32 0.01, %v7229_v2  ;;  %v19418_v44 = vld [vmem:[#allocation22_spill] sm:$0xff] }
 0x302   : > { %v6837_v23 = vmul.f32 %v14139_v22, %v19410_v46  ;;  %v15046_v42 = vadd.f32 %v7104_v16, %v19413_v58  ;;  %v6987_v57 = vmul.f32 %v19252_v34, %v19414_v28  ;;  %7650 = vmatprep.subr.bf16.mxu0 %v14926_v25  ;;  %v7233_v56 = vadd.f32 %v7105_v6, %v19413_v58  ;;  %v11497_v25 = vld [vmem:[%s18356_s3 + $0x68] ss:$16 sps:$4 sm:$0xff]  }
 0x303   : > { %v7362_v36 = vmul.f32 0.01, %v15026_v20  ;;  %v15053_v31 = vpack.c.bf16 %v7482_v32, %v7480_v26  ;;  %v7359_v21 = vmul.f32 0.01, %v7231_v24  ;;  %v7235_v19 = vadd.f32 %v7107_v38, %v19409_v41  ;;  %v11498_v32 = vld [vmem:[%s18356_s3 + $0x8c] ss:$16 sps:$4 sm:$0xff]  }
 0x304   : > { %v6841_v12 = vmul.f32 %v14139_v22, %v19415_v63  ;;  %v6986_v52 = vmul.f32 %v19251_v1, %v19414_v28  ;;  %v7108_v15 = vadd.f32 %v19416_v55, %v6834_v7  ;;  %v7111_v11 = vadd.f32 %v6983_v33, %v6837_v23  ;;  %v19419_v46 = vld [vmem:[#allocation85_spill] sm:$0xff]  ;;  %v19420_v4 = vld [vmem:[#allocation90_spill] sm:$0xff] }
 0x305   : > { %v15065_v8 = vadd.f32 %v7110_v48, %v19417_v10  ;;  %7651 = vmatpush1.bf16.msra.mxu0 %v14898_v47  ;;  %v7485_v54 = vmax.f32 %v7229_v2, %v7357_v9  ;;  %v7484_v5 = vmax.f32 %v15010_v60, %v7356_v40  ;;  %v7109_v30 = vadd.f32 %v19418_v44, %v6835_v27  ;;  %v19421_v23 = vld [vmem:[#allocation77_spill] sm:$0xff]  ;;  %v19422_v28 = vld [vmem:[#allocation118_spill] sm:$0xff] }
 0x306   : > { %v7360_v3 = vmul.f32 0.01, %v15046_v42  ;;  %v6840_v16 = vmul.f32 %v14135_v18, %v19415_v63  ;;  %7652 = vmatprep.subr.bf16.mxu0 %v14950_v37  ;;  %v7361_v26 = vmul.f32 0.01, %v7233_v56  ;;  %v7115_v41 = vadd.f32 %v6987_v57, %v6841_v12  ;;  %v11501_v55 = vld [vmem:[%s18356_s3 + $0xac] ss:$16 sps:$4 sm:$0xff]  }
 0x307   : > { %v6839_v47 = vmul.f32 %v14139_v22, %v19419_v46  ;;  %v7487_v29 = vmax.f32 %v7231_v24, %v7359_v21  ;;  %v7363_v38 = vmul.f32 0.01, %v7235_v19  ;;  %v7237_v2 = vadd.f32 %v7109_v30, %v19420_v4  ;;  %v19428_v44 = vld [vmem:[#allocation94_spill] sm:$0xff] }
 0x308   : > { %v6838_v60 = vmul.f32 %v14135_v18, %v19419_v46  ;;  %v7114_v7 = vadd.f32 %v6986_v52, %v6840_v16  ;;  %v7236_v33 = vadd.f32 %v7108_v15, %v19420_v4  ;;  %3733 = vmatmul.mubr.bf16.gmra.mrb[12].mxu0 %v11497_v25  ;;  %v7239_v17 = vadd.f32 %v7111_v11, %v19417_v10  ;;  %v19426_v52 = vld [vmem:[#allocation95_spill] sm:$0xff]  ;;  %v19427_v25 = vld [vmem:[#allocation97_spill] sm:$0xff] }
 0x309   : > { %v7366_v37 = vmul.f32 0.01, %v15065_v8  ;;  %7653 = vmatpush1.bf16.msra.mxu0 %v14941_v43  ;;  %v7593_v6 = vpack.c.bf16 %v7483_v50, %v7481_v59  ;;  %3742 = vmatprep.mubr.bf16.mxu0 %v11498_v32  ;;  %v7595_v40 = vpack.c.bf16 %v7487_v29, %v7485_v54  ;;  %v7490_v24 = vmax.f32 %v15026_v20, %v7362_v36  ;;  %v19423_v43 = vld [vmem:[#allocation26_spill] sm:$0xff]  ;;  %v19424_v36 = vld [vmem:[#allocation24_spill] sm:$0xff] }
 0x30a   : > { %7654 = vmatprep.subr.bf16.mxu0 %v15000_v61  ;;  %v7594_v27 = vpack.c.bf16 %v7486_v45, %v7484_v5  ;;  %v7489_v48 = vmax.f32 %v7233_v56, %v7361_v26  ;;  %v7488_v9 = vmax.f32 %v15046_v42, %v7360_v3  ;;  %v15090_v58 = vadd.f32 %v7115_v41, %v19421_v23  ;;  %v11500_v45 = vld [vmem:[%s18356_s3 + $0x88] ss:$16 sps:$4 sm:$0xff]  }
 0x30b   : > { %v6855_v57 = vmul.f32 %v14139_v22, %v19422_v28  ;;  %v7491_v21 = vmax.f32 %v7235_v19, %v7363_v38  ;;  %v7365_v63 = vmul.f32 0.01, %v7237_v2  ;;  %v7113_v50 = vadd.f32 %v19423_v43, %v6839_v47  ;;  %v19425_v56 = vld [vmem:[#allocation92_spill] sm:$0xff] }
 0x30c   : > { %v15096_v59 = vadd.f32 %v7114_v7, %v19421_v23  ;;  %v7364_v20 = vmul.f32 0.01, %v7236_v33  ;;  %v7112_v61 = vadd.f32 %v19424_v36, %v6838_v60  ;;  %v7367_v42 = vmul.f32 0.01, %v7239_v17  ;;  %v19429_v29 = vld [vmem:[#allocation32_spill] sm:$0xff]  ;;  %v19430_v7 = vld [vmem:[#allocation99_spill] sm:$0xff] }
 0x30d   : > { %v6843_v12 = vmul.f32 %v14139_v22, %v19425_v56  ;;  %v6991_v19 = vmul.f32 %v19252_v34, %v19426_v52  ;;  %7655 = vmatpush1.bf16.msra.mxu0 %v15002_v13  ;;  %v7494_v15 = vmax.f32 %v15065_v8, %v7366_v37  ;;  %v7241_v11 = vadd.f32 %v7113_v50, %v19427_v25  ;;  %v19431_v37 = vld [vmem:[#allocation102_spill] sm:$0xff]  ;;  %v19433_v23 = vld [vmem:[#allocation104_spill] sm:$0xff]  ;;  %v11504_v36 = vld [vmem:[%s18356_s3 + $0xcc] ss:$16 sps:$4 sm:$0xff]  }
 0x30e   : > { %v6842_v10 = vmul.f32 %v14135_v18, %v19425_v56  ;;  %7656 = vmatprep.subr.bf16.mxu0 %v7593_v6  ;;  %v7597_v32 = vpack.c.bf16 %v7491_v21, %v7489_v48  ;;  %v7596_v54 = vpack.c.bf16 %v7490_v24, %v7488_v9  ;;  %v7371_v5 = vmul.f32 0.01, %v15090_v58  ;;  %v19432_v24 = vld [vmem:[#allocation29_spill] sm:$0xff] }
 0x30f   : > { %v6845_v30 = vmul.f32 %v14139_v22, %v19428_v44  ;;  %v6990_v13 = vmul.f32 %v19251_v1, %v19426_v52  ;;  %v15120_v3 = vadd.f32 %v7112_v61, %v19427_v25  ;;  %v7493_v8 = vmax.f32 %v7237_v2, %v7365_v63  ;;  %v11503_v43 = vld [vmem:[%s18356_s3 + $0xa8] ss:$16 sps:$4 sm:$0xff]  }
 0x310   : > { %v15123_v16 = vmul.f32 0.01, %v15096_v59  ;;  %v6844_v26 = vmul.f32 %v14135_v18, %v19428_v44  ;;  %3743 = vmatmul.mubr.bf16.gmra.mrb[16].mxu0 %v11500_v45  ;;  %v7495_v41 = vmax.f32 %v7239_v17, %v7367_v42  ;;  %v7492_v46 = vmax.f32 %v7236_v33, %v7364_v20  ;;  %v19435_v61 = vld [vmem:[#allocation79_spill] sm:$0xff]  ;;  %v19436_v42 = vld [vmem:[#allocation122_spill] sm:$0xff]  ;;  %v19437_v52 = vld [vmem:[#allocation109_spill] sm:$0xff] }
 0x311   : > { %7657 = vmatpush1.bf16.msra.mxu0 %v15053_v31  ;;  %3752 = vmatprep.mubr.bf16.mxu0 %v11501_v55  ;;  %v7369_v47 = vmul.f32 0.01, %v7241_v11  ;;  %v7117_v38 = vadd.f32 %v19429_v29, %v6843_v12  ;;  %v7119_v4 = vadd.f32 %v6991_v19, %v6845_v30  ;;  %v7129_v60 = vadd.f32 %v14936_v49, %v6855_v57  ;;  %v19434_v57 = vld [vmem:[#allocation101_spill] sm:$0xff]  ;;  %v19438_v19 = vld [vmem:[#allocation35_spill] sm:$0xff]  ;;  %v19440_v30 = vld [vmem:[#allocation108_spill] sm:$0xff] }
 0x312   : > { %v6847_v2 = vmul.f32 %v14139_v22, %v19430_v7  ;;  %v6995_v6 = vmul.f32 %v19252_v34, %v19431_v37  ;;  %v7116_v48 = vadd.f32 %v19432_v24, %v6842_v10  ;;  %7658 = vmatprep.subr.bf16.mxu0 %v7595_v40  ;;  %v7499_v33 = vmax.f32 %v15090_v58, %v7371_v5  ;;  %v19439_v5 = vld [vmem:[#allocation106_spill] sm:$0xff] }
 0x313   : > { %v7118_v17 = vadd.f32 %v6990_v13, %v6844_v26  ;;  %v7368_v31 = vmul.f32 0.01, %v15120_v3  ;;  %v7599_v9 = vpack.c.bf16 %v7495_v41, %v7493_v8  ;;  %v15138_v21 = vadd.f32 %v7117_v38, %v19433_v23  ;;  %v19441_v8 = vld [vmem:[#allocation28_spill] sm:$0xff]  ;;  %v19443_v38 = vld [vmem:[#allocation117_spill] sm:$0xff] }
 0x314   : > { %v6846_v49 = vmul.f32 %v14135_v18, %v19430_v7  ;;  %v6849_v63 = vmul.f32 %v14139_v22, %v19434_v57  ;;  %v7598_v40 = vpack.c.bf16 %v7494_v15, %v7492_v46  ;;  %v7498_v58 = vmax.f32 %v15096_v59, %v15123_v16  ;;  %v19442_v16 = vld [vmem:[#allocation111_spill] sm:$0xff] }
 0x315   : > { %v6994_v50 = vmul.f32 %v19251_v1, %v19431_v37  ;;  %7659 = vmatpush1.bf16.msra.mxu0 %v7594_v27  ;;  %v7497_v20 = vmax.f32 %v7241_v11, %v7369_v47  ;;  %v7247_v45 = vadd.f32 %v7119_v4, %v19435_v61  ;;  %v15156_v56 = vadd.f32 %v7129_v60, %v19436_v42  ;;  %v19444_v60 = vld [vmem:[#allocation82_spill] sm:$0xff] }
 0x316   : > { %v15159_v12 = vadd.f32 %v7116_v48, %v19433_v23  ;;  %v6999_v59 = vmul.f32 %v19252_v34, %v19437_v52  ;;  %7660 = vmatprep.subr.bf16.mxu0 %v7597_v32  ;;  %v7121_v55 = vadd.f32 %v19438_v19, %v6847_v2  ;;  %v7123_v27 = vadd.f32 %v6995_v6, %v6849_v63  ;;  %v19445_v48 = vld [vmem:[#allocation115_spill] sm:$0xff] }
 0x317   : > { %v6848_v15 = vmul.f32 %v14135_v18, %v19434_v57  ;;  %v7496_v25 = vmax.f32 %v15120_v3, %v7368_v31  ;;  %v7373_v11 = vmul.f32 0.01, %v15138_v21  ;;  %v7246_v10 = vadd.f32 %v7118_v17, %v19435_v61  ;;  %v11506_v17 = vld [vmem:[%s18356_s3 + $0xc8] ss:$16 sps:$4 sm:$0xff]  }
 0x318   : > { %v6851_v44 = vmul.f32 %v14139_v22, %v19439_v5  ;;  %v6853_v13 = vmul.f32 %v14139_v22, %v19440_v30  ;;  %v7120_v32 = vadd.f32 %v19441_v8, %v6846_v49  ;;  %3753 = vmatmul.mubr.bf16.gmra.mrb[20].mxu0 %v11503_v43  ;;  %v7249_v26 = vadd.f32 %v7121_v55, %v19442_v16  ;;  %v19447_v49 = vld [vmem:[#allocation114_spill] sm:$0xff] }
 0x319   : > { %v7122_v41 = vadd.f32 %v6994_v50, %v6848_v15  ;;  %v6998_v46 = vmul.f32 %v19251_v1, %v19437_v52  ;;  %7661 = vmatpush1.bf16.msra.mxu0 %v7596_v54  ;;  %v7601_v3 = vpack.c.bf16 %v7499_v33, %v7497_v20  ;;  %3762 = vmatprep.mubr.bf16.mxu0 %v11504_v36  ;;  %v7375_v47 = vmul.f32 0.01, %v7247_v45  ;;  %v19448_v52 = vld [vmem:[#allocation113_spill] sm:$0xff] }
 0x31a   : > { %v7372_v29 = vmul.f32 0.01, %v15159_v12  ;;  %v7003_v4 = vmul.f32 %v19252_v34, %v19443_v38  ;;  %7662 = vmatprep.subr.bf16.mxu0 %v7599_v9  ;;  %v7251_v7 = vadd.f32 %v7123_v27, %v19444_v60  ;;  %v7127_v2 = vadd.f32 %v6999_v59, %v6853_v13  ;;  %v19446_v9 = vld [vmem:[#allocation37_spill] sm:$0xff]  ;;  %v19449_v27 = vld [vmem:[#allocation34_spill] sm:$0xff] }
 0x31b   : > { %v6850_v37 = vmul.f32 %v14135_v18, %v19439_v5  ;;  %v6852_v6 = vmul.f32 %v14135_v18, %v19440_v30  ;;  %v7248_v54 = vadd.f32 %v7120_v32, %v19442_v16  ;;  %v7501_v24 = vmax.f32 %v15138_v21, %v7373_v11  ;;  %v11507_v21 = vld [vmem:[%s18356_s3 + $0xec] ss:$16 sps:$4 sm:$0xff]   ;;  %v19450_v30 = vld [vmem:[#allocation124_spill] sm:$0xff] }
 0x31c   : > { %v6857_v33 = vmul.f32 %v14139_v22, %v19445_v48  ;;  %v7377_v31 = vmul.f32 0.01, %v7249_v26  ;;  %v7125_v23 = vadd.f32 %v19446_v9, %v6851_v44  ;;  %v7255_v57 = vadd.f32 %v7127_v2, %v19447_v49 }
 0x31d   : > { %v7126_v63 = vadd.f32 %v6998_v46, %v6852_v6  ;;  %7663 = vmatpush1.bf16.msra.mxu0 %v7598_v40  ;;  %v7503_v43 = vmax.f32 %v7247_v45, %v7375_v47  ;;  %v7374_v50 = vmul.f32 0.01, %v7246_v10  ;;  %v7250_v20 = vadd.f32 %v7122_v41, %v19444_v60 }
 0x31e   : > { %7664 = vmatprep.subr.bf16.mxu0 %v7601_v3  ;;  %v7600_v36 = vpack.c.bf16 %v7498_v58, %v7496_v25  ;;  %v7379_v61 = vmul.f32 0.01, %v7251_v7  ;;  %v7253_v59 = vadd.f32 %v7125_v23, %v19448_v52  ;;  %v7131_v19 = vadd.f32 %v7003_v4, %v6857_v33  ;;  %v11512_v23 = vld [vmem:[%s18356_s3 + $0x108] ss:$16 sps:$4 sm:$0xff]  }
 0x31f   : > { %v7376_v55 = vmul.f32 0.01, %v7248_v54  ;;  %v7124_v15 = vadd.f32 %v19449_v27, %v6850_v37  ;;  %v7254_v11 = vadd.f32 %v7126_v63, %v19447_v49  ;;  %v7500_v40 = vmax.f32 %v15159_v12, %v7372_v29  ;;  %v11509_v12 = vld [vmem:[%s18356_s3 + $0xe8] ss:$16 sps:$4 sm:$0xff]   ;;  %v11513_v49 = vld [vmem:[%s18356_s3 + $0x12c] ss:$16 sps:$4 sm:$0xff]  }
 0x320   : > { %3763 = vmatmul.mubr.bf16.gmra.mrb[24].mxu0 %v11506_v17  ;;  %v7603_v45 = vpack.c.bf16 %v7503_v43, %v7501_v24  ;;  %v7505_v5 = vmax.f32 %v7249_v26, %v7377_v31  ;;  %v7383_v44 = vmul.f32 0.01, %v7255_v57  ;;  %v7259_v13 = vadd.f32 %v7131_v19, %v19450_v30  ;;  %v11518_v63 = vld [vmem:[%s18356_s3 + $0x148] ss:$16 sps:$4 sm:$0xff]   ;;  %v11519_v43 = vld [vmem:[%s18356_s3 + $0x16c] ss:$16 sps:$4 sm:$0xff]  }
 0x321   : > { %v7252_v8 = vadd.f32 %v7124_v15, %v19448_v52  ;;  %7665 = vmatpush1.bf16.msra.mxu0 %v7600_v36  ;;  %v7502_v58 = vmax.f32 %v7246_v10, %v7374_v50  ;;  %3772 = vmatprep.mubr.bf16.mxu0 %v11507_v21  ;;  %v7378_v25 = vmul.f32 0.01, %v7250_v20  ;;  %v7507_v32 = vmax.f32 %v7251_v7, %v7379_v61  ;;  %v11510_v7 = vld [vmem:[%s18356_s3 + $0x10c] ss:$16 sps:$4 sm:$0xff]   ;;  %v11521_v50 = vld [vmem:[%s18356_s3 + $0x168] ss:$16 sps:$4 sm:$0xff]  }
 0x322   : > { %7666 = vmatprep.subr.bf16.mxu0 %v7603_v45  ;;  %v7381_v16 = vmul.f32 0.01, %v7253_v59  ;;  %v7382_v41 = vmul.f32 0.01, %v7254_v11  ;;  %v7504_v3 = vmax.f32 %v7248_v54, %v7376_v55  ;;  %v7511_v26 = vmax.f32 %v7255_v57, %v7383_v44  ;;  %v11516_v57 = vld [vmem:[%s18356_s3 + $0x14c] ss:$16 sps:$4 sm:$0xff]  }
 0x323   : > { %v7602_v46 = vpack.c.bf16 %v7502_v58, %v7500_v40  ;;  %v7605_v47 = vpack.c.bf16 %v7507_v32, %v7505_v5  ;;  %v7385_v29 = vmul.f32 0.01, %v15156_v56  ;;  %v7387_v4 = vmul.f32 0.01, %v7259_v13  ;;  %v11522_v21 = vld [vmem:[%s18356_s3 + $0x18c] ss:$16 sps:$4 sm:$0xff]  }
 0x324   : > { %v7380_v60 = vmul.f32 0.01, %v7252_v8  ;;  %v7506_v10 = vmax.f32 %v7250_v20, %v7378_v25  ;;  %v7509_v2 = vmax.f32 %v7253_v59, %v7381_v16  ;;  %v7510_v6 = vmax.f32 %v7254_v11, %v7382_v41  ;;  %v11524_v20 = vld [vmem:[%s18356_s3 + $0x188] ss:$16 sps:$4 sm:$0xff]   ;;  %v11525_v36 = vld [vmem:[%s18356_s3 + $0x1ac] ss:$16 sps:$4 sm:$0xff]  }
 0x325   : > { %7667 = vmatpush1.bf16.msra.mxu0 %v7602_v46  ;;  %v7513_v24 = vmax.f32 %v15156_v56, %v7385_v29  ;;  %v7515_v33 = vmax.f32 %v7259_v13, %v7387_v4  ;;  %v11515_v56 = vld [vmem:[%s18356_s3 + $0x128] ss:$16 sps:$4 sm:$0xff]   ;;  %v11528_v52 = vld [vmem:[%s18356_s3 + $0x1cc] ss:$16 sps:$4 sm:$0xff]   ;;  %v7000_v41 = vmul.f32 %v19251_v1, %v19397_v51 }
 0x326   : > { %7668 = vmatprep.subr.bf16.mxu0 %v7605_v47  ;;  %v7604_v37 = vpack.c.bf16 %v7506_v10, %v7504_v3  ;;  %v7607_v54 = vpack.c.bf16 %v7511_v26, %v7509_v2  ;;  %v7508_v17 = vmax.f32 %v7252_v8, %v7380_v60  ;;  %v11527_v61 = vld [vmem:[%s18356_s3 + $0x1a8] ss:$16 sps:$4 sm:$0xff]   ;;  %v11531_v19 = vld [vmem:[%s18356_s3 + $0x1ec] ss:$16 sps:$4 sm:$0xff]   ;;  %v6854_v47 = vmul.f32 %v14135_v18, %v19422_v28 }
 0x327   : > { %v7609_v9 = vpack.c.bf16 %v7515_v33, %v7513_v24  ;;  %v11530_v59 = vld [vmem:[%s18356_s3 + $0x1c8] ss:$16 sps:$4 sm:$0xff]   ;;  %v11534_v27 = vld [vmem:[%s18356_s3 + $0x20c] ss:$16 sps:$4 sm:$0xff]  }
 0x328   : > { %3773 = vmatmul.mubr.bf16.gmra.mrb[28].mxu0 %v11509_v12  ;;  %v7606_v31 = vpack.c.bf16 %v7510_v6, %v7508_v17  ;;  %v11533_v55 = vld [vmem:[%s18356_s3 + $0x1e8] ss:$16 sps:$4 sm:$0xff]   ;;  %v11537_v11 = vld [vmem:[%s18356_s3 + $0x22c] ss:$16 sps:$4 sm:$0xff]  }
 0x329   : > { %7669 = vmatpush1.bf16.msra.mxu0 %v7604_v37  ;;  %3782 = vmatprep.mubr.bf16.mxu0 %v11510_v7  ;;  %v11536_v15 = vld [vmem:[%s18356_s3 + $0x208] ss:$16 sps:$4 sm:$0xff]   ;;  %v11540_v45 = vld [vmem:[%s18356_s3 + $0x24c] ss:$16 sps:$4 sm:$0xff]  }
 0x32a   : > { %7670 = vmatprep.subr.bf16.mxu0 %v7607_v54  ;;  %v11539_v40 = vld [vmem:[%s18356_s3 + $0x228] ss:$16 sps:$4 sm:$0xff]   ;;  %v11543_v44 = vld [vmem:[%s18356_s3 + $0x26c] ss:$16 sps:$4 sm:$0xff]  }
 0x32b   : > { %v11542_v5 = vld [vmem:[%s18356_s3 + $0x248] ss:$16 sps:$4 sm:$0xff]   ;;  %v11546_v8 = vld [vmem:[%s18356_s3 + $0x28c] ss:$16 sps:$4 sm:$0xff]  }
 0x32c   : > { %v11545_v13 = vld [vmem:[%s18356_s3 + $0x268] ss:$16 sps:$4 sm:$0xff]   ;;  %v11549_v25 = vld [vmem:[%s18356_s3 + $0x2ac] ss:$16 sps:$4 sm:$0xff]  }
 0x32d   : > { %7671 = vmatpush1.bf16.msra.mxu0 %v7606_v31  ;;  %v11548_v58 = vld [vmem:[%s18356_s3 + $0x288] ss:$16 sps:$4 sm:$0xff]   ;;  %v11552_v16 = vld [vmem:[%s18356_s3 + $0x2cc] ss:$16 sps:$4 sm:$0xff]  }
 0x32e   : > { %7993 = vmatprep.subr.bf16.mxu0 %v7609_v9  ;;  %v11551_v32 = vld [vmem:[%s18356_s3 + $0x2a8] ss:$16 sps:$4 sm:$0xff]  }
 0x32f   : > { %v19451_v46 = vld [vmem:[#allocation86_spill] sm:$0xff]  ;;  %v19452_v26 = vld [vmem:[#allocation89_spill] sm:$0xff]  ;;  %v19453_v51 = vld [vmem:[#allocation91_spill] sm:$0xff] }
 0x330   : > { %3783 = vmatmul.mubr.bf16.gmra.mrb[32].mxu0 %v11512_v23  ;;  %v15300_v3 = vmul.f32 %v19251_v1, %v19451_v46  ;;  %v15306_v12 = vmul.f32 %v19252_v34, %v19451_v46  ;;  %v15310_v29 = vmul.f32 %v19251_v1, %v19452_v26  ;;  %v15314_v4 = vmul.f32 %v19252_v34, %v19452_v26  ;;  %v19454_v10 = vld [vmem:[#allocation93_spill] sm:$0xff]  ;;  %v19455_v37 = vld [vmem:[#allocation96_spill] sm:$0xff]  ;;  %v19456_v24 = vld [vmem:[#allocation98_spill] sm:$0xff] }
 0x331   : > { %3792 = vmatprep.mubr.bf16.mxu0 %v11513_v49  ;;  %v15318_v60 = vmul.f32 %v19251_v1, %v19453_v51  ;;  %v15322_v28 = vmul.f32 %v19252_v34, %v19453_v51  ;;  %v15326_v7 = vmul.f32 %v19251_v1, %v19454_v10  ;;  %v15330_v2 = vmul.f32 %v19252_v34, %v19454_v10  ;;  %v19457_v31 = vld [vmem:[#allocation100_spill] sm:$0xff]  ;;  %v19458_v49 = vld [vmem:[#allocation103_spill] sm:$0xff] }
 0x332   : > { %v15334_v6 = vmul.f32 %v19251_v1, %v19455_v37  ;;  %v15338_v54 = vmul.f32 %v19252_v34, %v19455_v37  ;;  %v15342_v33 = vmul.f32 %v19251_v1, %v19456_v24  ;;  %v15346_v17 = vmul.f32 %v19252_v34, %v19456_v24 }
 0x333   : > { %v15350_v9 = vmul.f32 %v19251_v1, %v19457_v31  ;;  %v15354_v23 = vmul.f32 %v19252_v34, %v19457_v31 }
 0x338   : > { %3793 = vmatmul.mubr.bf16.gmra.mrb[36].mxu0 %v11515_v56  ;;  %v15358_v56 = vmul.f32 %v19251_v1, %v19458_v49 }
 0x339   : > { %3802 = vmatprep.mubr.bf16.mxu0 %v11516_v57  ;;  %v7002_v57 = vmul.f32 %v19251_v1, %v19443_v38  ;;  %v11555_v38 = vld [vmem:[%s18356_s3 + $0x2ec] ss:$16 sps:$4 sm:$0xff]  }
 0x340   : > { %3803 = vmatmul.mubr.bf16.gmra.mrb[40].mxu0 %v11518_v63  ;;  %v7128_v63 = vadd.f32 %v7000_v41, %v6854_v47  ;;  %v19466_v41 = vld [vmem:[#allocation128_spill] sm:$0xff] }
 0x341   : > { %3812 = vmatprep.mubr.bf16.mxu0 %v11519_v43  ;;  %v11554_v43 = vld [vmem:[%s18356_s3 + $0x2c8] ss:$16 sps:$4 sm:$0xff]   ;;  %v7010_v46 = vmul.f32 %v19251_v1, %v19466_v41  ;;  %v7011_v47 = vmul.f32 %v19252_v34, %v19466_v41 }
 0x342   : > { %v19473_v41 = vld [vmem:[#allocation112_spill] sm:$0xff] }
 0x348   : > { %3813 = vmatmul.mubr.bf16.gmra.mrb[44].mxu0 %v11521_v50  ;;  %v15367_v50 = vmul.f32 %v19252_v34, %v19458_v49 }
 0x349   : > { %3822 = vmatprep.mubr.bf16.mxu0 %v11522_v21  ;;  %v19459_v21 = vld [vmem:[#allocation120_spill] sm:$0xff] }
 0x350   : > { %3823 = vmatmul.mubr.bf16.gmra.mrb[48].mxu0 %v11524_v20  ;;  %v6861_v20 = vmul.f32 %v14139_v22, %v19459_v21 }
 0x351   : > { %3832 = vmatprep.mubr.bf16.mxu0 %v11525_v36  ;;  %v19460_v36 = vld [vmem:[#allocation121_spill] sm:$0xff] }
 0x358   : > { %3833 = vmatmul.mubr.bf16.gmra.mrb[52].mxu0 %v11527_v61  ;;  %v7005_v61 = vmul.f32 %v19252_v34, %v19460_v36 }
 0x359   : > { %3842 = vmatprep.mubr.bf16.mxu0 %v11528_v52  ;;  %v19461_v52 = vld [vmem:[#allocation123_spill] sm:$0xff] }
 0x360   : > { %3843 = vmatmul.mubr.bf16.gmra.mrb[56].mxu0 %v11530_v59  ;;  %v7007_v59 = vmul.f32 %v19252_v34, %v19461_v52 }
 0x361   : > { %3852 = vmatprep.mubr.bf16.mxu0 %v11531_v19  ;;  %v6856_v19 = vmul.f32 %v14135_v18, %v19445_v48 }
 0x362   : > { %v7135_v51 = vadd.f32 %v7007_v59, %v6861_v20  ;;  %v19471_v59 = vld [vmem:[#allocation131_spill] sm:$0xff] }
 0x368   : > { %3853 = vmatmul.mubr.bf16.gmra.mrb[60].mxu0 %v11533_v55  ;;  %v6860_v55 = vmul.f32 %v14135_v18, %v19459_v21  ;;  %v19469_v21 = vld [vmem:[#allocation129_spill] sm:$0xff] }
 0x369   : > { %3862 = vmatprep.mubr.bf16.mxu0 %v11534_v27  ;;  %v7004_v27 = vmul.f32 %v19251_v1, %v19460_v36 }
 0x370   : > { %3863 = vmatmul.mubr.bf16.gmra.mrb[64].mxu0 %v11536_v15  ;;  %v7006_v15 = vmul.f32 %v19251_v1, %v19461_v52 }
 0x371   : > { %3872 = vmatprep.mubr.bf16.mxu0 %v11537_v11  ;;  %v19462_v11 = vld [vmem:[#allocation105_spill] sm:$0xff] }
 0x372   : > { %v7134_v10 = vadd.f32 %v7006_v15, %v6860_v55  ;;  %v11558_v15 = vld [vmem:[%s18356_s3 + $0x30c] ss:$16 sps:$4 sm:$0xff]  }
 0x378   : > { %3873 = vmatmul.mubr.bf16.gmra.mrb[68].mxu0 %v11539_v40  ;;  %v15388_v40 = vmul.f32 %v19251_v1, %v19462_v11 }
 0x379   : > { %3882 = vmatprep.mubr.bf16.mxu0 %v11540_v45  ;;  %v15392_v45 = vmul.f32 %v19252_v34, %v19462_v11  ;;  %v19472_v11 = vld [vmem:[#allocation127_spill] sm:$0xff] }
 0x380   : > { %3883 = vmatmul.mubr.bf16.gmra.mrb[72].mxu0 %v11542_v5  ;;  %v19463_v5 = vld [vmem:[#allocation107_spill] sm:$0xff] }
 0x381   : > { %3892 = vmatprep.mubr.bf16.mxu0 %v11543_v44  ;;  %v15396_v48 = vmul.f32 %v19251_v1, %v19463_v5  ;;  %v19464_v44 = vld [vmem:[#allocation119_spill] sm:$0xff]  ;;  %v15423_v20 = vmul.f32 %v19252_v34, %v19463_v5  ;;  %v7263_v5 = vadd.f32 %v7135_v51, %v19472_v11  ;;  %v15457_v51 = vmul.f32 %v19251_v1, %v13477_v35 }
 0x383   : > { %19476 = vst [vmem:[#allocation38_spill] sm:$0xff] %v15457_v51 }
 0x388   : > { %3893 = vmatmul.mubr.bf16.gmra.mrb[76].mxu0 %v11545_v13  ;;  %v6859_v13 = vmul.f32 %v14139_v22, %v19464_v44 }
 0x389   : > { %3902 = vmatprep.mubr.bf16.mxu0 %v11546_v8  ;;  %v6858_v8 = vmul.f32 %v14135_v18, %v19464_v44 }
 0x38a   : > { %v7133_v26 = vadd.f32 %v7005_v61, %v6859_v13 }
 0x38b   : > { %v7132_v24 = vadd.f32 %v7004_v27, %v6858_v8  ;;  %v7262_v8 = vadd.f32 %v7134_v10, %v19472_v11  ;;  %v15461_v10 = vmul.f32 %v19252_v34, %v13477_v35  ;;  %v19480_v11 = vld [vmem:[#allocation130_spill] sm:$0xff] }
 0x38c   : > { %v7261_v36 = vadd.f32 %v7133_v26, %v19469_v21  ;;  %v15447_v26 = vmul.f32 %v19251_v1, %v19473_v41 }
 0x38d   : > { %v7260_v52 = vadd.f32 %v7132_v24, %v19469_v21  ;;  %19477 = vst [vmem:[#allocation39_spill] sm:$0xff] %v15461_v10 }
 0x38e   : > { %19474 = vst [vmem:[#allocation178_spill] sm:$0xff] %v15447_v26  ;;  %v7389_v24 = vmul.f32 0.01, %v7261_v36 }
 0x390   : > { %3903 = vmatmul.mubr.bf16.gmra.mrb[80].mxu0 %v11548_v58  ;;  %v15403_v58 = vadd.f32 %v7128_v63, %v19436_v42  ;;  %v19467_v42 = vld [vmem:[#allocation133_spill] sm:$0xff] }
 0x391   : > { %3912 = vmatprep.mubr.bf16.mxu0 %v11549_v25  ;;  %v19465_v25 = vld [vmem:[#allocation125_spill] sm:$0xff]  ;;  %v7014_v31 = vmul.f32 %v19251_v1, %v19467_v42  ;;  %v7015_v21 = vmul.f32 %v19252_v34, %v19467_v42  ;;  %v6869_v42 = vmul.f32 %v14139_v22, %v19471_v59 }
 0x392   : > { %v6863_v49 = vmul.f32 %v14139_v22, %v19465_v25  ;;  %v7384_v55 = vmul.f32 0.01, %v15403_v58 }
 0x398   : > { %3913 = vmatmul.mubr.bf16.gmra.mrb[84].mxu0 %v11551_v32  ;;  %v6862_v32 = vmul.f32 %v14135_v18, %v19465_v25 }
 0x399   : > { %3922 = vmatprep.mubr.bf16.mxu0 %v11552_v16  ;;  %v7130_v16 = vadd.f32 %v7002_v57, %v6856_v19  ;;  %v19468_v57 = vld [vmem:[#allocation126_spill] sm:$0xff] }
 0x39a   : > { %v6864_v63 = vmul.f32 %v14135_v18, %v19468_v57  ;;  %v11557_v19 = vld [vmem:[%s18356_s3 + $0x2e8] ss:$16 sps:$4 sm:$0xff]  }
 0x39b   : > { %v7258_v37 = vadd.f32 %v7130_v16, %v19450_v30  ;;  %v19470_v30 = vld [vmem:[#allocation110_spill] sm:$0xff] }
 0x39c   : > { %v15427_v61 = vmul.f32 %v19251_v1, %v19470_v30  ;;  %v7138_v27 = vadd.f32 %v7010_v46, %v6864_v63  ;;  %v15442_v13 = vmul.f32 %v19252_v34, %v19470_v30  ;;  %v7136_v46 = vadd.f32 %v15300_v3, %v6862_v32  ;;  %v19478_v63 = vld [vmem:[#allocation132_spill] sm:$0xff]  ;;  %v19479_v30 = vld [vmem:[#allocation137_spill] sm:$0xff] }
 0x39d   : > { %v7386_v25 = vmul.f32 0.01, %v7258_v37  ;;  %v7512_v3 = vmax.f32 %v15403_v58, %v7384_v55  ;;  %v15481_v55 = vmul.f32 %v19251_v1, %v19360_v0 }
 0x39f   : > { %v7514_v35 = vmax.f32 %v7258_v37, %v7386_v25  ;;  %19482 = vst [vmem:[#allocation49_spill] sm:$0xff] %v15481_v55  ;;  %v11560_v37 = vld [vmem:[%s18356_s3 + $0x308] ss:$16 sps:$4 sm:$0xff]  }
 0x3a0   : > { %3923 = vmatmul.mubr.bf16.gmra.mrb[88].mxu0 %v11554_v43  ;;  %v6865_v43 = vmul.f32 %v14139_v22, %v19468_v57  ;;  %v7137_v57 = vadd.f32 %v15306_v12, %v6863_v49  ;;  %v7391_v12 = vmul.f32 0.01, %v7263_v5  ;;  %v7390_v49 = vmul.f32 0.01, %v7262_v8  ;;  %v19484_v55 = vld [vmem:[#allocation135_spill] sm:$0xff] }
 0x3a1   : > { %3932 = vmatprep.mubr.bf16.mxu0 %v11555_v38  ;;  %v6868_v38 = vmul.f32 %v14135_v18, %v19471_v59  ;;  %v15502_v59 = vpack.c.bf16 %v7514_v35, %v7512_v3  ;;  %v6870_v39 = vmul.f32 %v14135_v18, %v19484_v55  ;;  %v19486_v35 = vld [vmem:[#allocation136_spill] sm:$0xff] }
 0x3a2   : > { %v7139_v44 = vadd.f32 %v7011_v47, %v6865_v43  ;;  %v15453_v47 = vmul.f32 %v19252_v34, %v19473_v41  ;;  %v15464_v43 = vadd.f32 %v7138_v27, %v19478_v63  ;;  %v19481_v27 = vld [vmem:[#allocation134_spill] sm:$0xff] }
 0x3a3   : > { %v7142_v16 = vadd.f32 %v7014_v31, %v6868_v38  ;;  %v7388_v31 = vmul.f32 0.01, %v7260_v52  ;;  %v7264_v41 = vadd.f32 %v7136_v46, %v19481_v27  ;;  %v7265_v58 = vadd.f32 %v7137_v57, %v19481_v27  ;;  %v11561_v46 = vld [vmem:[%s18356_s3 + $0x32c] ss:$16 sps:$4 sm:$0xff]  }
 0x3a4   : > { %19475 = vst [vmem:[#allocation42_spill] sm:$0xff] %v15453_v47  ;;  %v15468_v32 = vadd.f32 %v7139_v44, %v19478_v63  ;;  %v15485_v44 = vmul.f32 %v19252_v34, %v19360_v0  ;;  %v7518_v63 = vmax.f32 %v7262_v8, %v7390_v49  ;;  %v7143_v27 = vadd.f32 %v7015_v21, %v6869_v42 }
 0x3a5   : > { %v15473_v38 = vadd.f32 %v7142_v16, %v19479_v30  ;;  %v7516_v25 = vmax.f32 %v7260_v52, %v7388_v31  ;;  %v6867_v16 = vmul.f32 %v14139_v22, %v19480_v11  ;;  %v7392_v52 = vmul.f32 0.01, %v7264_v41 }
 0x3a6   : > { %19483 = vst [vmem:[#allocation17_spill] sm:$0xff] %v15485_v44  ;;  %v7395_v0 = vmul.f32 0.01, %v15468_v32  ;;  %v15525_v42 = vadd.f32 %v7143_v27, %v19479_v30  ;;  %v11563_v30 = vld [vmem:[%s18356_s3 + $0x328] ss:$16 sps:$4 sm:$0xff]  }
 0x3a7   : > { %v15500_v57 = vmul.f32 0.01, %v15473_v38  ;;  %v15513_v3 = vpack.c.bf16 %v7518_v63, %v7516_v25  ;;  %v7141_v21 = vadd.f32 %v15314_v4, %v6867_v16  ;;  %v6872_v25 = vmul.f32 %v14135_v18, %v19486_v35  ;;  %v19489_v27 = vld [vmem:[#allocation139_spill] sm:$0xff] }
 0x3a8   : > { %3933 = vmatmul.mubr.bf16.gmra.mrb[92].mxu0 %v11557_v19  ;;  %v6866_v19 = vmul.f32 %v14135_v18, %v19480_v11  ;;  %v7393_v11 = vmul.f32 0.01, %v7265_v58  ;;  %v7520_v4 = vmax.f32 %v7264_v41, %v7392_v52  ;;  %v11564_v41 = vld [vmem:[%s18356_s3 + $0x34c] ss:$16 sps:$4 sm:$0xff]   ;;  %v7399_v52 = vmul.f32 0.01, %v15525_v42 }
 0x3a9   : > { %3942 = vmatprep.mubr.bf16.mxu0 %v11558_v15  ;;  %v7517_v15 = vmax.f32 %v7261_v36, %v7389_v24  ;;  %v7394_v36 = vmul.f32 0.01, %v15464_v43  ;;  %v7519_v24 = vmax.f32 %v7263_v5, %v7391_v12  ;;  %v6871_v5 = vmul.f32 %v14139_v22, %v19484_v55  ;;  %v19485_v12 = vld [vmem:[#allocation138_spill] sm:$0xff] }
 0x3aa   : > { %v7140_v31 = vadd.f32 %v15310_v29, %v6866_v19  ;;  %v7019_v44 = vmul.f32 %v19252_v34, %v19485_v12  ;;  %v7018_v8 = vmul.f32 %v19251_v1, %v19485_v12  ;;  %v7523_v29 = vmax.f32 %v15468_v32, %v7395_v0 }
 0x3ab   : > { %v15505_v14 = vpack.c.bf16 %v7519_v24, %v7517_v15  ;;  %v7522_v49 = vmax.f32 %v15464_v43, %v7394_v36  ;;  %v6873_v19 = vmul.f32 %v14139_v22, %v19486_v35  ;;  %v19487_v15 = vld [vmem:[#allocation143_spill] sm:$0xff]  ;;  %v7521_v32 = vmax.f32 %v7265_v58, %v7393_v11  ;;  %v19488_v36 = vld [vmem:[#allocation141_spill] sm:$0xff]  ;;  %v19491_v11 = vld [vmem:[#allocation144_spill] sm:$0xff] }
 0x3ac   : > { %v7023_v55 = vmul.f32 %v19252_v34, %v19487_v15  ;;  %v7022_v43 = vmul.f32 %v19251_v1, %v19487_v15  ;;  %v6877_v16 = vmul.f32 %v14139_v22, %v19488_v36  ;;  %v7145_v24 = vadd.f32 %v15322_v28, %v6871_v5 }
 0x3ad   : > { %v7147_v0 = vadd.f32 %v7019_v44, %v6873_v19  ;;  %v7146_v63 = vadd.f32 %v7018_v8, %v6872_v25  ;;  %v7268_v12 = vadd.f32 %v7140_v31, %v19489_v27  ;;  %v6876_v35 = vmul.f32 %v14135_v18, %v19488_v36  ;;  %v19492_v19 = vld [vmem:[#allocation148_spill] sm:$0xff] }
 0x3ae   : > { %v7269_v58 = vadd.f32 %v7141_v21, %v19489_v27  ;;  %v7273_v28 = vadd.f32 %v7145_v24, %v19491_v11  ;;  %v7151_v44 = vadd.f32 %v7023_v55, %v6877_v16  ;;  %v7026_v15 = vmul.f32 %v19251_v1, %v19492_v19  ;;  %v19493_v27 = vld [vmem:[#allocation142_spill] sm:$0xff] }
 0x3af   : > { %v7150_v5 = vadd.f32 %v7022_v43, %v6876_v35  ;;  %v7027_v21 = vmul.f32 %v19252_v34, %v19492_v19  ;;  %v15558_v25 = vpack.c.bf16 %v7523_v29, %v7521_v32  ;;  %v15560_v36 = vpack.c.bf16 %v7522_v49, %v7520_v4  ;;  %v19495_v29 = vld [vmem:[#allocation147_spill] sm:$0xff] }
 0x3b0   : > { %3943 = vmatmul.mubr.bf16.gmra.mrb[96].mxu0 %v11560_v37  ;;  %v7275_v24 = vadd.f32 %v7147_v0, %v19493_v27  ;;  %v7274_v55 = vadd.f32 %v7146_v63, %v19493_v27  ;;  %v7396_v16 = vmul.f32 0.01, %v7268_v12  ;;  %v15570_v32 = vadd.f32 %v7151_v44, %v19495_v29 }
 0x3b1   : > { %3952 = vmatprep.mubr.bf16.mxu0 %v11561_v46  ;;  %v7144_v46 = vadd.f32 %v15318_v60, %v6870_v39  ;;  %v19490_v39 = vld [vmem:[#allocation140_spill] sm:$0xff]  ;;  %v15573_v49 = vadd.f32 %v7150_v5, %v19495_v29  ;;  %v7527_v19 = vmax.f32 %v15525_v42, %v7399_v52  ;;  %v11567_v5 = vld [vmem:[%s18356_s3 + $0x36c] ss:$16 sps:$4 sm:$0xff]  }
 0x3b2   : > { %v6875_v60 = vmul.f32 %v14139_v22, %v19490_v39  ;;  %v6874_v31 = vmul.f32 %v14135_v18, %v19490_v39  ;;  %v19494_v39 = vld [vmem:[#allocation146_spill] sm:$0xff]  ;;  %v7403_v27 = vmul.f32 0.01, %v7275_v24  ;;  %v19498_v29 = vld [vmem:[#allocation153_spill] sm:$0xff]  ;;  %v7407_v52 = vmul.f32 0.01, %v15570_v32 }
 0x3b3   : > { %v7272_v8 = vadd.f32 %v7144_v46, %v19491_v11  ;;  %v6880_v43 = vmul.f32 %v14135_v18, %v19494_v39  ;;  %v7397_v46 = vmul.f32 0.01, %v7269_v58  ;;  %v6881_v35 = vmul.f32 %v14139_v22, %v19494_v39  ;;  %v19496_v39 = vld [vmem:[#allocation149_spill] sm:$0xff] }
 0x3b4   : > { %v7401_v11 = vmul.f32 0.01, %v7273_v28  ;;  %v7148_v63 = vadd.f32 %v15326_v7, %v6874_v31  ;;  %v19497_v7 = vld [vmem:[#allocation145_spill] sm:$0xff]  ;;  %v7030_v53 = vmul.f32 %v19251_v1, %v19498_v29 }
 0x3b5   : > { %v7400_v4 = vmul.f32 0.01, %v7272_v8  ;;  %v7154_v0 = vadd.f32 %v7026_v15, %v6880_v43  ;;  %v7525_v15 = vmax.f32 %v7269_v58, %v7397_v46  ;;  %v7524_v43 = vmax.f32 %v7268_v12, %v7396_v16  ;;  %v19500_v58 = vld [vmem:[#allocation151_spill] sm:$0xff] }
 0x3b6   : > { %v7276_v44 = vadd.f32 %v7148_v63, %v19496_v39  ;;  %v6878_v31 = vmul.f32 %v14135_v18, %v19497_v7  ;;  %v7529_v42 = vmax.f32 %v7273_v28, %v7401_v11  ;;  %v6884_v12 = vmul.f32 %v14135_v18, %v19500_v58 }
 0x3b7   : > { %v7531_v16 = vmax.f32 %v7275_v24, %v7403_v27  ;;  %v15601_v11 = vpack.c.bf16 %v7527_v19, %v7525_v15  ;;  %v7535_v24 = vmax.f32 %v15570_v32, %v7407_v52  ;;  %v15615_v27 = vpop.permute.xlu0 %2422  ;;  %v11569_v32 = vld [vmem:[%s18356_s3 + $0x368] ss:$16 sps:$4 sm:$0xff]   ;;  %v11570_v52 = vld [vmem:[%s18356_s3 + $0x38c] ss:$16 sps:$4 sm:$0xff]  }
 0x3b8   : > { %3953 = vmatmul.mubr.bf16.gmra.mrb[100].mxu0 %v11563_v30  ;;  %v7149_v30 = vadd.f32 %v15330_v2, %v6875_v60  ;;  %v7155_v2 = vadd.f32 %v7027_v21, %v6881_v35  ;;  %v7402_v60 = vmul.f32 0.01, %v7274_v55  ;;  %v7406_v21 = vmul.f32 0.01, %v15573_v49  ;;  %19502 = vst [vmem:[#allocation48_spill] sm:$0xff] %v15615_v27 }
 0x3b9   : > { %3962 = vmatprep.mubr.bf16.mxu0 %v11564_v41  ;;  %v11566_v41 = vld [vmem:[%s18356_s3 + $0x348] ss:$16 sps:$4 sm:$0xff]   ;;  %v6879_v35 = vmul.f32 %v14139_v22, %v19497_v7  ;;  %v7404_v28 = vmul.f32 0.01, %v7276_v44  ;;  %v19501_v7 = vmax.f32 %v15473_v38, %v15500_v57  ;;  %v15609_v62 = vpack.c.bf16 %v7531_v16, %v7529_v42  ;;  %v15635_v42 = vpop.permute.xlu1 %2426 }
 0x3ba   : > { %v7277_v37 = vadd.f32 %v7149_v30, %v19496_v39  ;;  %v19499_v30 = vld [vmem:[#allocation152_spill] sm:$0xff]  ;;  %v7528_v39 = vmax.f32 %v7272_v8, %v7400_v4  ;;  %v7158_v8 = vadd.f32 %v7030_v53, %v6884_v12  ;;  %v7152_v4 = vadd.f32 %v15334_v6, %v6878_v31  ;;  %19504 = vst [vmem:[#allocation181_spill] sm:$0xff] %v15635_v42  ;;  %v19506_v16 = vld [vmem:[#allocation154_spill] sm:$0xff] }
 0x3bb   : > { %v15594_v63 = vadd.f32 %v7154_v0, %v19499_v30  ;;  %v15599_v10 = vadd.f32 %v7155_v2, %v19499_v30  ;;  %v15606_v51 = vpack.c.bf16 %v19501_v7, %v7524_v43  ;;  %v7530_v0 = vmax.f32 %v7274_v55, %v7402_v60  ;;  %v19503_v55 = vld [vmem:[#allocation150_spill] sm:$0xff] }
 0x3bc   : > { %v7405_v46 = vmul.f32 0.01, %v7277_v37  ;;  %v7534_v38 = vmax.f32 %v15573_v49, %v7406_v21  ;;  %v7153_v57 = vadd.f32 %v15338_v54, %v6879_v35  ;;  %v6882_v53 = vmul.f32 %v14135_v18, %v19503_v55  ;;  %v19505_v35 = vld [vmem:[#allocation157_spill] sm:$0xff] }
 0x3bd   : > { %v15617_v2 = vpack.c.bf16 %v7530_v0, %v7528_v39  ;;  %v15628_v15 = vmul.f32 0.01, %v15599_v10  ;;  %v6883_v43 = vmul.f32 %v14139_v22, %v19503_v55  ;;  %v7031_v54 = vmul.f32 %v19252_v34, %v19498_v29 }
 0x3be   : > { %v7532_v21 = vmax.f32 %v7276_v44, %v7404_v28  ;;  %v15643_v30 = vadd.f32 %v7158_v8, %v19505_v35  ;;  %v19507_v44 = vld [vmem:[#allocation158_spill] sm:$0xff] }
 0x3bf   : > { %v7035_v28 = vmul.f32 %v19252_v34, %v19507_v44 }
 0x3c0   : > { %3963 = vmatmul.mubr.bf16.gmra.mrb[104].mxu0 %v11566_v41  ;;  %v15613_v41 = vmul.f32 0.01, %v15594_v63 }
 0x3c1   : > { %3972 = vmatprep.mubr.bf16.mxu0 %v11567_v5  ;;  %v7533_v5 = vmax.f32 %v7277_v37, %v7405_v46  ;;  %v6885_v37 = vmul.f32 %v14139_v22, %v19500_v58  ;;  %v15647_v46 = vadd.f32 %v7152_v4, %v19506_v16  ;;  %v7156_v58 = vadd.f32 %v15342_v33, %v6882_v53 }
 0x3c2   : > { %v7539_v4 = vmax.f32 %v15599_v10, %v15628_v15  ;;  %v11572_v15 = vld [vmem:[%s18356_s3 + $0x388] ss:$16 sps:$4 sm:$0xff]  }
 0x3c3   : > { %v3704_v19 = vpop.f32.mrb[0].mxu0  ;;  %v15656_v55 = vpack.c.bf16 %v7535_v24, %v7533_v5  ;;  %v15668_v53 = vmul.f32 0.01, %v15647_v46 }
 0x3c4   : > { %v10264_v6 = vadd.f32 %v3704_v19, %v15615_v27  ;;  %v3706_v60 = vpop.f32.mrb[1].mxu0  ;;  %v15651_v19 = vadd.f32 %v7153_v57, %v19506_v16  ;;  %v15663_v57 = vmul.f32 0.01, %v15643_v30  ;;  %v19508_v16 = vld [vmem:[#allocation156_spill] sm:$0xff] }
 0x3c5   : > { %v10265_v49 = vadd.f32 %v3706_v60, %v15615_v27  ;;  %v3708_v31 = vpop.f32.mrb[2].mxu0 }
 0x3c6   : > { %v4023_v39 = vmul.f32 0.01, %v10264_v6  ;;  %v3710_v12 = vpop.f32.mrb[3].mxu0  ;;  %v10266_v29 = vadd.f32 %v3708_v31, %v15635_v42  ;;  %v15658_v31 = vpack.c.bf16 %v7534_v38, %v7532_v21 }
 0x3c7   : > { %v4024_v7 = vmul.f32 0.01, %v10265_v49  ;;  %v10267_v0 = vadd.f32 %v3710_v12, %v15635_v42  ;;  %v7159_v12 = vadd.f32 %v7031_v54, %v6885_v37  ;;  %v6889_v42 = vmul.f32 %v14139_v22, %v19508_v16 }
 0x3c8   : > { %3973 = vmatmul.mubr.bf16.gmra.mrb[108].mxu0 %v11569_v32  ;;  %v4025_v8 = vmul.f32 0.01, %v10266_v29  ;;  %v4151_v27 = vmax.f32 %v10264_v6, %v4023_v39  ;;  %v15670_v32 = vpop.permute.xlu1 %2430  ;;  %v7538_v6 = vmax.f32 %v15594_v63, %v15613_v41  ;;  %v11584_v39 = vld [vmem:[#allocation3 + $0x4] ss:$16 sps:$4 sm:$0xff]  }
 0x3c9   : > { %v4026_v60 = vmul.f32 0.01, %v10267_v0  ;;  %3982 = vmatprep.mubr.bf16.mxu0 %v11570_v52  ;;  %19509 = vst [vmem:[#allocation47_spill] sm:$0xff] %v15670_v32  ;;  %v4152_v38 = vmax.f32 %v10265_v49, %v4024_v7  ;;  %v7409_v52 = vmul.f32 0.01, %v15651_v19  ;;  %v7163_v37 = vadd.f32 %v7035_v28, %v6889_v42  ;;  %v15682_v7 = vpop.permute.xlu0 %2434  ;;  %5271 = vmatprep.mubr.bf16.mxu1 %v11584_v39 }
 0x3ca   : > { %v4153_v33 = vmax.f32 %v10266_v29, %v4025_v8  ;;  %v19510_v29 = vld [vmem:[#allocation155_spill] sm:$0xff]  ;;  %19511 = vst [vmem:[#allocation58_spill] sm:$0xff] %v15682_v7  ;;  %v7157_v28 = vadd.f32 %v15346_v17, %v6883_v43  ;;  %v7536_v17 = vmax.f32 %v15647_v46, %v15668_v53  ;;  %v19512_v43 = vld [vmem:[#allocation162_spill] sm:$0xff] }
 0x3cb   : > { %v3714_v24 = vpop.f32.mrb[4].mxu0  ;;  %v4154_v5 = vmax.f32 %v10267_v0, %v4026_v60  ;;  %v6886_v8 = vmul.f32 %v14135_v18, %v19510_v29  ;;  %v15703_v39 = vadd.f32 %v7163_v37, %v19512_v43 }
 0x3cc   : > { %v3716_v10 = vpop.f32.mrb[5].mxu0  ;;  %v4279_v54 = vpack.c.bf16 %v4153_v33, %v4151_v27  ;;  %v10268_v21 = vadd.f32 %v3714_v24, %v15670_v32  ;;  %v11573_v27 = vld [vmem:[%s18356_s3 + $0x3ac] ss:$16 sps:$4 sm:$0xff]   ;;  %v15688_v33 = vadd.f32 %v7159_v12, %v19505_v35  ;;  %v7537_v35 = vmax.f32 %v15651_v19, %v7409_v52 }
 0x3cd   : > { %v10269_v49 = vadd.f32 %v3716_v10, %v15670_v32  ;;  %v3718_v0 = vpop.f32.mrb[6].mxu0  ;;  %v4280_v60 = vpack.c.bf16 %v4154_v5, %v4152_v38  ;;  %v6887_v38 = vmul.f32 %v14139_v22, %v19510_v29  ;;  %v7034_v12 = vmul.f32 %v19251_v1, %v19507_v44 }
 0x3ce   : > { %v10270_v63 = vadd.f32 %v3718_v0, %v15682_v7  ;;  %v3720_v41 = vpop.f32.mrb[7].mxu0  ;;  %v4027_v42 = vmul.f32 0.01, %v10268_v21  ;;  %v15706_v29 = vadd.f32 %v15350_v9, %v6886_v8  ;;  %v15712_v19 = vmul.f32 0.01, %v15688_v33 }
 0x3cf   : > { %v4028_v5 = vmul.f32 0.01, %v10269_v49  ;;  %v10271_v10 = vadd.f32 %v3720_v41, %v15682_v7  ;;  %5239 = vmatprep.subr.bf16.mxu1 %v4280_v60  ;;  %v19513_v60 = vld [vmem:[#allocation159_spill] sm:$0xff]  ;;  %v6888_v44 = vmul.f32 %v14135_v18, %v19508_v16 }
 0x3d0   : > { %v4029_v0 = vmul.f32 0.01, %v10270_v63  ;;  %3983 = vmatmul.mubr.bf16.gmra.mrb[112].mxu0 %v11572_v15  ;;  %5240 = vmatpush1.bf16.msra.mxu1 %v4279_v54  ;;  %v15709_v41 = vadd.f32 %v7157_v28, %v19513_v60  ;;  %v15717_v52 = vadd.f32 %v7156_v58, %v19513_v60  ;;  %v4155_v53 = vmax.f32 %v10268_v21, %v4027_v42  ;;  %v19514_v15 = vld [vmem:[#allocation163_spill] sm:$0xff]  ;;  %v19517_v42 = vld [vmem:[#allocation161_spill] sm:$0xff] }
 0x3d1   : > { %v4030_v24 = vmul.f32 0.01, %v10271_v10  ;;  %3992 = vmatprep.mubr.bf16.mxu0 %v11573_v27  ;;  %v7039_v9 = vmul.f32 %v19252_v34, %v19514_v15  ;;  %v4156_v54 = vmax.f32 %v10269_v49, %v4028_v5  ;;  %v15721_v27 = vpop.permute.xlu1 %2438  ;;  %v15723_v28 = vpack.c.bf16 %v7539_v4, %v7537_v35  ;;  %v11575_v16 = vld [vmem:[%s18356_s3 + $0x3a8] ss:$16 sps:$4 sm:$0xff]   ;;  %v15735_v5 = vpop.permute.xlu0 %2442  ;;  %v11576_v35 = vld [vmem:[%s18356_s3 + $0x3cc] ss:$16 sps:$4 sm:$0xff]  }
 0x3d2   : > { %v4157_v46 = vmax.f32 %v10270_v63, %v4029_v0  ;;  %19515 = vst [vmem:[#allocation43_spill] sm:$0xff] %v15721_v27  ;;  %v7162_v7 = vadd.f32 %v7034_v12, %v6888_v44  ;;  %v15730_v21 = vmul.f32 0.01, %v15703_v39  ;;  %v6893_v49 = vmul.f32 %v14139_v22, %v19517_v42  ;;  %19518 = vst [vmem:[#allocation46_spill] sm:$0xff] %v15735_v5 }
 0x3d3   : > { %v4158_v37 = vmax.f32 %v10271_v10, %v4030_v24  ;;  %v3724_v8 = vpop.f32.mrb[8].mxu0  ;;  %19516 = vst [vmem:[#allocation7_spill] sm:$0xff] %v15723_v28  ;;  %v7413_v12 = vmul.f32 0.01, %v15709_v41  ;;  %v7412_v0 = vmul.f32 0.01, %v15717_v52  ;;  %v7543_v26 = vmax.f32 %v15688_v33, %v15712_v19 }
 0x3d4   : > { %v3726_v32 = vpop.f32.mrb[9].mxu0  ;;  %v4281_v58 = vpack.c.bf16 %v4157_v46, %v4155_v53  ;;  %v10272_v63 = vadd.f32 %v3724_v8, %v15721_v27  ;;  %v15743_v53 = vpack.c.bf16 %v7538_v6, %v7536_v17  ;;  %v19519_v8 = vld [vmem:[#allocation160_spill] sm:$0xff]  ;;  %v15752_v28 = vadd.f32 %v7162_v7, %v19512_v43 }
 0x3d5   : > { %v10273_v24 = vadd.f32 %v3726_v32, %v15721_v27  ;;  %v3728_v4 = vpop.f32.mrb[10].mxu0  ;;  %v4282_v10 = vpack.c.bf16 %v4158_v37, %v4156_v54  ;;  %v6890_v32 = vmul.f32 %v14135_v18, %v19519_v8  ;;  %v7167_v37 = vadd.f32 %v7039_v9, %v6893_v49  ;;  %v15765_v49 = vpop.permute.xlu1 %2446 }
 0x3d6   : > { %v10274_v60 = vadd.f32 %v3728_v4, %v15735_v5  ;;  %v3730_v44 = vpop.f32.mrb[11].mxu0  ;;  %v4031_v46 = vmul.f32 0.01, %v10272_v63  ;;  %v7161_v4 = vadd.f32 %v15354_v23, %v6887_v38  ;;  %v6891_v6 = vmul.f32 %v14139_v22, %v19519_v8  ;;  %19520 = vst [vmem:[#allocation45_spill] sm:$0xff] %v15765_v49 }
 0x3d7   : > { %v4032_v27 = vmul.f32 0.01, %v10273_v24  ;;  %v10275_v54 = vadd.f32 %v3730_v44, %v15735_v5  ;;  %5241 = vmatprep.subr.bf16.mxu1 %v4282_v10  ;;  %v7541_v44 = vmax.f32 %v15709_v41, %v7413_v12  ;;  %v7540_v23 = vmax.f32 %v15717_v52, %v7412_v0  ;;  %v19521_v10 = vld [vmem:[#allocation167_spill] sm:$0xff]  ;;  %v15784_v0 = vpop.permute.xlu0 %2450 }
 0x3d8   : > { %v4033_v47 = vmul.f32 0.01, %v10274_v60  ;;  %3993 = vmatmul.mubr.bf16.gmra.mrb[116].mxu0 %v11575_v16  ;;  %5242 = vmatpush1.bf16.msra.mxu1 %v4281_v58  ;;  %v7038_v16 = vmul.f32 %v19251_v1, %v19514_v15  ;;  %v4159_v33 = vmax.f32 %v10272_v63, %v4031_v46  ;;  %v15763_v7 = vadd.f32 %v15358_v56, %v6890_v32  ;;  %v19522_v15 = vld [vmem:[#allocation164_spill] sm:$0xff]  ;;  %v11579_v46 = vld [vmem:[%s18356_s3 + $0x3ec] ss:$16 sps:$4 sm:$0xff]  }
 0x3d9   : > { %v4034_v17 = vmul.f32 0.01, %v10275_v54  ;;  %4002 = vmatprep.mubr.bf16.mxu0 %v11576_v35  ;;  %v4160_v38 = vmax.f32 %v10273_v24, %v4032_v27  ;;  %v15768_v41 = vadd.f32 %v7167_v37, %v19521_v10  ;;  %v6892_v35 = vmul.f32 %v14135_v18, %v19517_v42  ;;  %19523 = vst [vmem:[#allocation179_spill] sm:$0xff] %v15784_v0  ;;  %v15818_v5 = vpop.permute.xlu1 %2454 }
 0x3da   : > { %v4161_v58 = vmax.f32 %v10274_v60, %v4033_v47  ;;  %v11578_v47 = vld [vmem:[%s18356_s3 + $0x3c8] ss:$16 sps:$4 sm:$0xff]   ;;  %v15777_v27 = vadd.f32 %v7161_v4, %v19522_v15  ;;  %v15781_v63 = vadd.f32 %v15706_v29, %v19522_v15  ;;  %v15790_v8 = vmul.f32 0.01, %v15752_v28  ;;  %19528 = vst [vmem:[#allocation44_spill] sm:$0xff] %v15818_v5 }
 0x3db   : > { %v4162_v43 = vmax.f32 %v10275_v54, %v4034_v17  ;;  %v3734_v19 = vpop.f32.mrb[12].mxu0  ;;  %v7166_v32 = vadd.f32 %v7038_v16, %v6892_v35  ;;  %v19524_v54 = vld [vmem:[#allocation168_spill] sm:$0xff]  ;;  %v19526_v35 = vmax.f32 %v15643_v30, %v15663_v57  ;;  %v19527_v30 = vld [vmem:[#allocation165_spill] sm:$0xff] }
 0x3dc   : > { %v3736_v12 = vpop.f32.mrb[13].mxu0  ;;  %v4283_v52 = vpack.c.bf16 %v4161_v58, %v4159_v33  ;;  %v10276_v56 = vadd.f32 %v3734_v19, %v15765_v49  ;;  %v7043_v37 = vmul.f32 %v19252_v34, %v19524_v54  ;;  %v19525_v19 = vld [vmem:[#allocation166_spill] sm:$0xff]  ;;  %v6894_v57 = vmul.f32 %v14135_v18, %v19527_v30 }
 0x3dd   : > { %v10277_v24 = vadd.f32 %v3736_v12, %v15765_v49  ;;  %v3738_v42 = vpop.f32.mrb[14].mxu0  ;;  %v4284_v60 = vpack.c.bf16 %v4162_v43, %v4160_v38  ;;  %v15796_v38 = vpack.c.bf16 %v7543_v26, %v7541_v44  ;;  %v15799_v43 = vmul.f32 0.01, %v15768_v41 }
 0x3de   : > { %v10278_v29 = vadd.f32 %v3738_v42, %v15784_v0  ;;  %v3740_v4 = vpop.f32.mrb[15].mxu0  ;;  %v4035_v17 = vmul.f32 0.01, %v10276_v56  ;;  %v6897_v12 = vmul.f32 %v14139_v22, %v19525_v19  ;;  %v15806_v15 = vpack.c.bf16 %v19526_v35, %v7540_v23 }
 0x3df   : > { %v4036_v58 = vmul.f32 0.01, %v10277_v24  ;;  %v10279_v33 = vadd.f32 %v3740_v4, %v15784_v0  ;;  %5243 = vmatprep.subr.bf16.mxu1 %v4284_v60  ;;  %v7417_v42 = vmul.f32 0.01, %v15777_v27  ;;  %v7416_v60 = vmul.f32 0.01, %v15781_v63 }
 0x3e0   : > { %v4037_v16 = vmul.f32 0.01, %v10278_v29  ;;  %4003 = vmatmul.mubr.bf16.gmra.mrb[120].mxu0 %v11578_v47  ;;  %5244 = vmatpush1.bf16.msra.mxu1 %v4283_v52  ;;  %v7546_v44 = vmax.f32 %v15752_v28, %v15790_v8  ;;  %v7165_v4 = vadd.f32 %v15367_v50, %v6891_v6  ;;  %v4163_v0 = vmax.f32 %v10276_v56, %v4035_v17  ;;  %v11581_v6 = vld [vmem:[%s18356_s3 + $0x3e8] ss:$16 sps:$4 sm:$0xff]  }
 0x3e1   : > { %v4038_v26 = vmul.f32 0.01, %v10279_v33  ;;  %4012 = vmatprep.mubr.bf16.mxu0 %v11579_v46  ;;  %v15814_v47 = vadd.f32 %v7166_v32, %v19521_v10  ;;  %v7171_v52 = vadd.f32 %v7043_v37, %v6897_v12  ;;  %v4164_v23 = vmax.f32 %v10277_v24, %v4036_v58  ;;  %v15832_v37 = vpop.permute.xlu0 %2458  ;;  %v19530_v12 = vld [vmem:[#allocation172_spill] sm:$0xff]  ;;  %v15871_v46 = vpop.permute.xlu1 %2462 }
 0x3e2   : > { %v4165_v9 = vmax.f32 %v10278_v29, %v4037_v16  ;;  %v6895_v50 = vmul.f32 %v14139_v22, %v19527_v30  ;;  %v7545_v24 = vmax.f32 %v15777_v27, %v7417_v42  ;;  %v7042_v8 = vmul.f32 %v19251_v1, %v19524_v54  ;;  %19529 = vst [vmem:[#allocation10_spill] sm:$0xff] %v15832_v37  ;;  %v19531_v16 = vld [vmem:[#allocation169_spill] sm:$0xff] }
 0x3e3   : > { %v4166_v35 = vmax.f32 %v10279_v33, %v4038_v26  ;;  %v3744_v49 = vpop.f32.mrb[16].mxu0  ;;  %v7544_v58 = vmax.f32 %v15781_v63, %v7416_v60  ;;  %v6896_v33 = vmul.f32 %v14135_v18, %v19525_v19  ;;  %v15839_v27 = vadd.f32 %v7171_v52, %v19530_v12  ;;  %v19532_v60 = vld [vmem:[#allocation173_spill] sm:$0xff]  ;;  %19535 = vst [vmem:[#allocation52_spill] sm:$0xff] %v15871_v46 }
 0x3e4   : > { %v3746_v28 = vpop.f32.mrb[17].mxu0  ;;  %v4285_v10 = vpack.c.bf16 %v4165_v9, %v4163_v0  ;;  %v10280_v56 = vadd.f32 %v3744_v49, %v15818_v5  ;;  %v15843_v54 = vadd.f32 %v15763_v7, %v19531_v16  ;;  %v15847_v63 = vadd.f32 %v7165_v4, %v19531_v16 }
 0x3e5   : > { %v10281_v32 = vadd.f32 %v3746_v28, %v15818_v5  ;;  %v3748_v29 = vpop.f32.mrb[18].mxu0  ;;  %v4286_v17 = vpack.c.bf16 %v4166_v35, %v4164_v23  ;;  %v7047_v19 = vmul.f32 %v19252_v34, %v19532_v60  ;;  %v7168_v30 = vadd.f32 %v15388_v40, %v6894_v57  ;;  %v11854_v28 = vld [vmem:[%s18356_s3 + $0x4] ss:$16 sps:$4 sm:$0xff]   ;;  %v19534_v40 = vld [vmem:[#allocation171_spill] sm:$0xff] }
 0x3e6   : > { %v10282_v9 = vadd.f32 %v3748_v29, %v15832_v37  ;;  %v3750_v0 = vpop.f32.mrb[19].mxu0  ;;  %v4039_v49 = vmul.f32 0.01, %v10280_v56  ;;  %v15853_v52 = vmul.f32 0.01, %v15814_v47  ;;  %v7170_v7 = vadd.f32 %v7042_v8, %v6896_v33 }
 0x3e7   : > { %v4040_v42 = vmul.f32 0.01, %v10281_v32  ;;  %v10283_v26 = vadd.f32 %v3750_v0, %v15832_v37  ;;  %5245 = vmatprep.subr.bf16.mxu1 %v4286_v17  ;;  %v19533_v4 = vmax.f32 %v15703_v39, %v15730_v21  ;;  %v15863_v17 = vpack.c.bf16 %v7546_v44, %v7544_v58  ;;  %v11989_v37 = vld [vmem:[%s18356_s3 + $0xa8] ss:$16 sps:$4 sm:$0xff]   ;;  %v11990_v5 = vld [vmem:[%s18356_s3 + $0xcc] ss:$16 sps:$4 sm:$0xff]  }
 0x3e8   : > { %v4041_v23 = vmul.f32 0.01, %v10282_v9  ;;  %4013 = vmatmul.mubr.bf16.gmra.mrb[124].mxu0 %v11581_v6  ;;  %5246 = vmatpush1.bf16.msra.mxu1 %v4285_v10  ;;  %v6901_v57 = vmul.f32 %v14139_v22, %v19534_v40  ;;  %v4167_v10 = vmax.f32 %v10280_v56, %v4039_v49  ;;  %v15868_v8 = vmul.f32 0.01, %v15839_v27 }
 0x3e9   : > { %v4042_v35 = vmul.f32 0.01, %v10283_v26  ;;  %7672 = vmatprep.mubr.bf16.mxu0 %v11854_v28  ;;  %v15861_v29 = vpack.c.bf16 %v19533_v4, %v7545_v24  ;;  %v7420_v33 = vmul.f32 0.01, %v15843_v54  ;;  %v4168_v0 = vmax.f32 %v10281_v32, %v4040_v42  ;;  %v15880_v32 = vpop.permute.xlu0 %2466 }
 0x3ea   : > { %v4169_v6 = vmax.f32 %v10282_v9, %v4041_v23  ;;  %v7421_v39 = vmul.f32 0.01, %v15847_v63  ;;  %v7550_v58 = vmax.f32 %v15814_v47, %v15853_v52  ;;  %v7175_v56 = vadd.f32 %v7047_v19, %v6901_v57  ;;  %v19536_v9 = vld [vmem:[#allocation170_spill] sm:$0xff]  ;;  %19537 = vst [vmem:[#allocation59_spill] sm:$0xff] %v15880_v32 }
 0x3eb   : > { %v4170_v16 = vmax.f32 %v10283_v26, %v4042_v35  ;;  %v3754_v28 = vpop.f32.mrb[20].mxu0  ;;  %v6898_v49 = vmul.f32 %v14135_v18, %v19536_v9  ;;  %v15883_v35 = vadd.f32 %v7170_v7, %v19530_v12  ;;  %v7555_v47 = vmax.f32 %v15839_v27, %v15868_v8 }
 0x3ec   : > { %v3756_v21 = vpop.f32.mrb[21].mxu0  ;;  %v4287_v44 = vpack.c.bf16 %v4169_v6, %v4167_v10  ;;  %v10284_v24 = vadd.f32 %v3754_v28, %v15871_v46  ;;  %v7169_v28 = vadd.f32 %v15392_v45, %v6895_v50  ;;  %v7549_v57 = vmax.f32 %v15847_v63, %v7421_v39  ;;  %v11855_v45 = vld [vmem:[%s18356_s3] ss:$16 sps:$4 sm:$0xff]  }
 0x3ed   : > { %v10285_v23 = vadd.f32 %v3756_v21, %v15871_v46  ;;  %v3758_v42 = vpop.f32.mrb[22].mxu0  ;;  %v4288_v26 = vpack.c.bf16 %v4170_v16, %v4168_v0  ;;  %v7548_v0 = vmax.f32 %v15843_v54, %v7420_v33  ;;  %v6899_v12 = vmul.f32 %v14139_v22, %v19536_v9  ;;  %v19538_v50 = vld [vmem:[#allocation11_spill] sm:$0xff] }
 0x3ee   : > { %v10286_v4 = vadd.f32 %v3758_v42, %v15880_v32  ;;  %v3760_v6 = vpop.f32.mrb[23].mxu0  ;;  %v4043_v10 = vmul.f32 0.01, %v10284_v24  ;;  %v7046_v7 = vmul.f32 %v19251_v1, %v19532_v60  ;;  %v15900_v21 = vadd.f32 %v7175_v56, %v19538_v50  ;;  %v19539_v42 = vld [vmem:[#allocation174_spill] sm:$0xff]  ;;  %v16936_v46 = vld [vmem:[%s18355_s2 + $0x1d0] sm:$0xff] }
 0x3ef   : > { %v4044_v19 = vmul.f32 0.01, %v10285_v23  ;;  %v10287_v52 = vadd.f32 %v3760_v6, %v15880_v32  ;;  %5247 = vmatprep.subr.bf16.mxu1 %v4288_v26  ;;  %v15903_v63 = vadd.f32 %v7168_v30, %v19539_v42  ;;  %v15906_v54 = vadd.f32 %v15396_v48, %v6898_v49  ;;  %v11856_v60 = vld [vmem:[%s18356_s3 + $0x24] ss:$16 sps:$4 sm:$0xff]   ;;  %v15921_v26 = vpop.permute.xlu1 %2470  ;;  %v16930_v32 = vld [vmem:[%s18355_s2 + $0x1b8] sm:$0xff]  ;;  %19623 = vst [vmem:[#allocation122_spill] sm:$0xff] %v16936_v46 }
 0x3f0   : > { %v4045_v16 = vmul.f32 0.01, %v10286_v4  ;;  %5248 = vmatpush1.bf16.msra.mxu1 %v4287_v44  ;;  %7673 = vmatmul.mubr.bf16.vlgmr.msra.gmra.mrb[128].mxu0 %v11855_v45  ;;  %v15913_v39 = vmul.f32 0.01, %v15883_v35  ;;  %v6900_v44 = vmul.f32 %v14135_v18, %v19534_v40  ;;  %v4171_v30 = vmax.f32 %v10284_v24, %v4043_v10  ;;  %19540 = vst [vmem:[#allocation51_spill] sm:$0xff] %v15921_v26  ;;  %v19542_v10 = vld [vmem:[#allocation9_spill] sm:$0xff] }
 0x3f1   : > { %v4046_v33 = vmul.f32 0.01, %v10287_v52  ;;  %7994 = vmatpush1.bf16.msra.mxu0 %v15502_v59  ;;  %7682 = vmatprep.mubr.bf16.mxu0 %v11856_v60  ;;  %v15919_v48 = vadd.f32 %v7169_v28, %v19539_v42  ;;  %v4172_v9 = vmax.f32 %v10285_v23, %v4044_v19  ;;  %v19541_v6 = vmax.f32 %v15768_v41, %v15799_v43  ;;  %v15941_v43 = vpop.permute.xlu0 %2474 }
 0x3f2   : > { %v4173_v56 = vmax.f32 %v10286_v4, %v4045_v16  ;;  %7995 = vmatprep.subr.bf16.mxu0 %v15505_v14  ;;  %v15928_v60 = vpack.c.bf16 %v7550_v58, %v7548_v0  ;;  %v7174_v40 = vadd.f32 %v7046_v7, %v6900_v44  ;;  %v15932_v24 = vmul.f32 0.01, %v15900_v21  ;;  %19543 = vst [vmem:[#allocation63_spill] sm:$0xff] %v15941_v43 }
 0x3f3   : > { %v4174_v59 = vmax.f32 %v10287_v52, %v4046_v33  ;;  %v3764_v49 = vpop.f32.mrb[24].mxu0  ;;  %v15926_v45 = vpack.c.bf16 %v19541_v6, %v7549_v57  ;;  %v15935_v23 = vmul.f32 0.01, %v15903_v63  ;;  %v7051_v28 = vmul.f32 %v19252_v34, %v19542_v10  ;;  %v19544_v33 = vld [vmem:[#allocation8_spill] sm:$0xff] }
 0x3f4   : > { %v3766_v4 = vpop.f32.mrb[25].mxu0  ;;  %v4289_v16 = vpack.c.bf16 %v4173_v56, %v4171_v30  ;;  %v10288_v14 = vadd.f32 %v3764_v49, %v15921_v26  ;;  %v7425_v7 = vmul.f32 0.01, %v15919_v48  ;;  %v7554_v42 = vmax.f32 %v15883_v35, %v15913_v39  ;;  %v11857_v49 = vld [vmem:[%s18356_s3 + $0x20] ss:$16 sps:$4 sm:$0xff]  }
 0x3f5   : > { %v10289_v41 = vadd.f32 %v3766_v4, %v15921_v26  ;;  %7996 = vmatpush1.bf16.msra.mxu0 %v15513_v3  ;;  %v3768_v58 = vpop.f32.mrb[26].mxu0  ;;  %v4290_v19 = vpack.c.bf16 %v4174_v59, %v4172_v9  ;;  %v6905_v44 = vmul.f32 %v14139_v22, %v19544_v33  ;;  %v7173_v30 = vadd.f32 %v15423_v20, %v6899_v12  ;;  %v19545_v9 = vld [vmem:[#allocation175_spill] sm:$0xff]  ;;  %v11858_v4 = vld [vmem:[%s18356_s3 + $0x44] ss:$16 sps:$4 sm:$0xff]  }
 0x3f6   : > { %v10290_v52 = vadd.f32 %v3768_v58, %v15941_v43  ;;  %7997 = vmatprep.subr.bf16.mxu0 %v15558_v25  ;;  %v3770_v57 = vpop.f32.mrb[27].mxu0  ;;  %v4047_v0 = vmul.f32 0.01, %v10288_v14  ;;  %v6902_v59 = vmul.f32 %v14135_v18, %v19545_v9  ;;  %v15960_v39 = vadd.f32 %v7174_v40, %v19538_v50  ;;  %v19547_v35 = vld [vmem:[#allocation16_spill] sm:$0xff]  ;;  %v11984_v26 = vld [vmem:[%s18356_s3 + $0xac] ss:$16 sps:$4 sm:$0xff]  }
 0x3f7   : > { %v4048_v56 = vmul.f32 0.01, %v10289_v41  ;;  %v10291_v3 = vadd.f32 %v3770_v57, %v15941_v43  ;;  %5249 = vmatprep.subr.bf16.mxu1 %v4290_v19  ;;  %v6903_v6 = vmul.f32 %v14139_v22, %v19545_v9  ;;  %v7050_v20 = vmul.f32 %v19251_v1, %v19542_v10  ;;  %v11983_v43 = vld [vmem:[%s18356_s3 + $0x88] ss:$16 sps:$4 sm:$0xff]  }
 0x3f8   : > { %v4049_v25 = vmul.f32 0.01, %v10290_v52  ;;  %5250 = vmatpush1.bf16.msra.mxu1 %v4289_v16  ;;  %7683 = vmatmul.mubr.bf16.gmra.mrb[132].mxu0 %v11857_v49  ;;  %v7179_v16 = vadd.f32 %v7051_v28, %v6905_v44  ;;  %v4175_v50 = vmax.f32 %v10288_v14, %v4047_v0  ;;  %v7553_v40 = vmax.f32 %v15919_v48, %v7425_v7  ;;  %v15976_v49 = vpop.permute.xlu1 %2478 }
 0x3f9   : > { %v4050_v12 = vmul.f32 0.01, %v10291_v3  ;;  %7998 = vmatpush1.bf16.msra.mxu0 %v15560_v36  ;;  %7692 = vmatprep.mubr.bf16.mxu0 %v11858_v4  ;;  %v7552_v19 = vmax.f32 %v15903_v63, %v15935_v23  ;;  %v6904_v10 = vmul.f32 %v14135_v18, %v19544_v33  ;;  %v4176_v57 = vmax.f32 %v10289_v41, %v4048_v56  ;;  %v19549_v33 = vld [vmem:[#allocation33_spill] sm:$0xff] }
 0x3fa   : > { %v4177_v58 = vmax.f32 %v10290_v52, %v4049_v25  ;;  %7999 = vmatprep.subr.bf16.mxu0 %v15601_v11  ;;  %19546 = vst [vmem:[#allocation61_spill] sm:$0xff] %v15976_v49  ;;  %v15979_v4 = vadd.f32 %v7173_v30, %v19547_v35  ;;  %v15983_v11 = vadd.f32 %v15906_v54, %v19547_v35  ;;  %v15987_v63 = vmul.f32 0.01, %v15960_v39  ;;  %v15991_v52 = vpop.permute.xlu0 %2482 }
 0x3fb   : > { %v4178_v36 = vmax.f32 %v10291_v3, %v4050_v12  ;;  %v3774_v9 = vpop.f32.mrb[28].mxu0  ;;  %v7178_v23 = vadd.f32 %v7050_v20, %v6904_v10  ;;  %19548 = vst [vmem:[#allocation62_spill] sm:$0xff] %v15991_v52  ;;  %v15994_v44 = vadd.f32 %v7179_v16, %v19549_v33  ;;  %v7176_v54 = vadd.f32 %v15427_v61, %v6902_v59  ;;  %v19552_v10 = vld [vmem:[#allocation27_spill] sm:$0xff] }
 0x3fc   : > { %v3776_v14 = vpop.f32.mrb[29].mxu0  ;;  %v4291_v48 = vpack.c.bf16 %v4177_v58, %v4175_v50  ;;  %v10292_v28 = vadd.f32 %v3774_v9, %v15976_v49  ;;  %v16002_v25 = vpack.c.bf16 %v7555_v47, %v7553_v40  ;;  %v16005_v20 = vpack.c.bf16 %v7554_v42, %v7552_v19  ;;  %v19550_v47 = vld [vmem:[#allocation31_spill] sm:$0xff]  ;;  %v11860_v58 = vld [vmem:[%s18356_s3 + $0x64] ss:$16 sps:$4 sm:$0xff]  }
 0x3fd   : > { %v10293_v41 = vadd.f32 %v3776_v14, %v15976_v49  ;;  %8000 = vmatpush1.bf16.msra.mxu0 %v15606_v51  ;;  %v3778_v0 = vpop.f32.mrb[30].mxu0  ;;  %v4292_v7 = vpack.c.bf16 %v4178_v36, %v4176_v57  ;;  %v7429_v12 = vmul.f32 0.01, %v15979_v4  ;;  %v7428_v61 = vmul.f32 0.01, %v15983_v11  ;;  %v16906_v49 = vld [vmem:[%s18355_s2 + $0x1b0] sm:$0xff] }
 0x3fe   : > { %v10294_v56 = vadd.f32 %v3778_v0, %v15991_v52  ;;  %8001 = vmatprep.subr.bf16.mxu0 %v15609_v62  ;;  %v3780_v3 = vpop.f32.mrb[31].mxu0  ;;  %v4051_v30 = vmul.f32 0.01, %v10292_v28  ;;  %v11859_v62 = vld [vmem:[%s18356_s3 + $0x40] ss:$16 sps:$4 sm:$0xff]   ;;  %v7558_v27 = vmax.f32 %v15960_v39, %v15987_v63  ;;  %v7177_v8 = vadd.f32 %v15442_v13, %v6903_v6 }
 0x3ff   : > { %v4052_v51 = vmul.f32 0.01, %v10293_v41  ;;  %v10295_v35 = vadd.f32 %v3780_v3, %v15991_v52  ;;  %5251 = vmatprep.subr.bf16.mxu1 %v4292_v7  ;;  %v7055_v42 = vmul.f32 %v19252_v34, %v19550_v47  ;;  %v16022_v50 = vmul.f32 0.01, %v15994_v44  ;;  %v19551_v39 = vld [vmem:[#allocation21_spill] sm:$0xff] }
 0x400   : > { %v4053_v59 = vmul.f32 0.01, %v10294_v56  ;;  %5252 = vmatpush1.bf16.msra.mxu1 %v4291_v48  ;;  %7693 = vmatmul.mubr.bf16.gmra.mrb[136].mxu0 %v11859_v62  ;;  %v16025_v40 = vadd.f32 %v7178_v23, %v19549_v33  ;;  %v6906_v13 = vmul.f32 %v14135_v18, %v19551_v39  ;;  %v6907_v6 = vmul.f32 %v14139_v22, %v19551_v39  ;;  %v16034_v48 = vpop.permute.xlu1 %2486  ;;  %v19557_v39 = vld [vmem:[#allocation178_spill] sm:$0xff]  ;;  %v16900_v52 = vld [vmem:[%s18355_s2 + $0x198] sm:$0xff] }
 0x401   : > { %v4054_v16 = vmul.f32 0.01, %v10295_v35  ;;  %8002 = vmatpush1.bf16.msra.mxu0 %v15617_v2  ;;  %7702 = vmatprep.mubr.bf16.mxu0 %v11860_v58  ;;  %v4179_v2 = vmax.f32 %v10292_v28, %v4051_v30  ;;  %v6909_v57 = vmul.f32 %v14139_v22, %v19552_v10  ;;  %v4180_v36 = vmax.f32 %v10293_v41, %v4052_v51  ;;  %v16043_v41 = vpop.permute.xlu0 %2490 }
 0x402   : > { %v4181_v19 = vmax.f32 %v10294_v56, %v4053_v59  ;;  %8003 = vmatprep.subr.bf16.mxu0 %v15656_v55  ;;  %19553 = vst [vmem:[#allocation53_spill] sm:$0xff] %v16034_v48  ;;  %v7557_v63 = vmax.f32 %v15979_v4, %v7429_v12  ;;  %v7054_v23 = vmul.f32 %v19251_v1, %v19550_v47  ;;  %19554 = vst [vmem:[#allocation182_spill] sm:$0xff] %v16043_v41  ;;  %v19555_v12 = vld [vmem:[#allocation7_spill] sm:$0xff]  ;;  %v19556_v59 = vld [vmem:[#allocation176_spill] sm:$0xff] }
 0x403   : > { %v4182_v9 = vmax.f32 %v10295_v35, %v4054_v16  ;;  %v3784_v14 = vpop.f32.mrb[32].mxu0  ;;  %v7556_v55 = vmax.f32 %v15983_v11, %v7428_v61  ;;  %v16046_v30 = vmul.f32 0.01, %v16025_v40  ;;  %v7183_v4 = vadd.f32 %v7055_v42, %v6909_v57 }
 0x404   : > { %v3786_v0 = vpop.f32.mrb[33].mxu0  ;;  %v4293_v7 = vpack.c.bf16 %v4181_v19, %v4179_v2  ;;  %v10296_v33 = vadd.f32 %v3784_v14, %v16034_v48  ;;  %v6908_v51 = vmul.f32 %v14135_v18, %v19552_v10  ;;  %v16053_v62 = vadd.f32 %v7177_v8, %v19556_v59  ;;  %v11861_v8 = vld [vmem:[%s18356_s3 + $0x60] ss:$16 sps:$4 sm:$0xff]  }
 0x405   : > { %v10297_v28 = vadd.f32 %v3786_v0, %v16034_v48  ;;  %8004 = vmatpush1.bf16.msra.mxu0 %v15658_v31  ;;  %v3788_v56 = vpop.f32.mrb[34].mxu0  ;;  %v4294_v3 = vpack.c.bf16 %v4182_v9, %v4180_v36  ;;  %v16056_v31 = vadd.f32 %v7176_v54, %v19556_v59  ;;  %v7563_v42 = vmax.f32 %v15994_v44, %v16022_v50  ;;  %v19559_v14 = vld [vmem:[#allocation180_spill] sm:$0xff]  ;;  %v19570_v50 = vld [vmem:[#allocation39_spill] sm:$0xff] }
 0x406   : > { %v10298_v35 = vadd.f32 %v3788_v56, %v16043_v41  ;;  %8005 = vmatprep.subr.bf16.mxu0 %v19555_v12  ;;  %v3790_v11 = vpop.f32.mrb[35].mxu0  ;;  %v4055_v61 = vmul.f32 0.01, %v10296_v33  ;;  %v7182_v58 = vadd.f32 %v7054_v23, %v6908_v51  ;;  %v16062_v19 = vadd.f32 %v19557_v39, %v6906_v13  ;;  %v11862_v13 = vld [vmem:[%s18356_s3 + $0x84] ss:$16 sps:$4 sm:$0xff]   ;;  %v19561_v56 = vld [vmem:[#allocation177_spill] sm:$0xff] }
 0x407   : > { %v4056_v47 = vmul.f32 0.01, %v10297_v28  ;;  %v10299_v16 = vadd.f32 %v3790_v11, %v16043_v41  ;;  %5253 = vmatprep.subr.bf16.mxu1 %v4294_v3  ;;  %v19558_v54 = vmax.f32 %v15900_v21, %v15932_v24  ;;  %v16076_v36 = vpack.c.bf16 %v7558_v27, %v7556_v55  ;;  %v11977_v41 = vld [vmem:[%s18356_s3 + $0x68] ss:$16 sps:$4 sm:$0xff]   ;;  %v11978_v48 = vld [vmem:[%s18356_s3 + $0x8c] ss:$16 sps:$4 sm:$0xff]  }
 0x408   : > { %v4057_v2 = vmul.f32 0.01, %v10298_v35  ;;  %5254 = vmatpush1.bf16.msra.mxu1 %v4293_v7  ;;  %7703 = vmatmul.mubr.bf16.gmra.mrb[140].mxu0 %v11861_v8  ;;  %v7562_v9 = vmax.f32 %v16025_v40, %v16046_v30  ;;  %v16081_v23 = vadd.f32 %v7183_v4, %v19559_v14  ;;  %v4183_v21 = vmax.f32 %v10296_v33, %v4055_v61  ;;  %v16089_v40 = vpop.permute.xlu1 %2494  ;;  %v19563_v30 = vld [vmem:[#allocation40_spill] sm:$0xff] }
 0x409   : > { %v16070_v10 = vpack.c.bf16 %v19558_v54, %v7557_v63  ;;  %v4058_v57 = vmul.f32 0.01, %v10299_v16  ;;  %8006 = vmatpush1.bf16.msra.mxu0 %v15743_v53  ;;  %7712 = vmatprep.mubr.bf16.mxu0 %v11862_v13  ;;  %v7433_v24 = vmul.f32 0.01, %v16053_v62  ;;  %v19560_v53 = vld [vmem:[#allocation42_spill] sm:$0xff]  ;;  %v7059_v27 = vmul.f32 %v19252_v34, %v19561_v56  ;;  %19562 = vst [vmem:[#allocation12_spill] sm:$0xff] %v16089_v40 }
 0x40a   : > { %v4185_v0 = vmax.f32 %v10298_v35, %v4057_v2  ;;  %8007 = vmatprep.subr.bf16.mxu0 %v15796_v38  ;;  %v7181_v63 = vadd.f32 %v19560_v53, %v6907_v6  ;;  %v7432_v7 = vmul.f32 0.01, %v16056_v31  ;;  %v4184_v55 = vmax.f32 %v10297_v28, %v4056_v47  ;;  %v19564_v6 = vld [vmem:[#allocation41_spill] sm:$0xff]  ;;  %v16101_v28 = vpop.permute.xlu0 %2498  ;;  %v19566_v53 = vld [vmem:[#allocation38_spill] sm:$0xff] }
 0x40b   : > { %v4186_v3 = vmax.f32 %v10299_v16, %v4058_v57  ;;  %v3794_v51 = vpop.f32.mrb[36].mxu0  ;;  %v6910_v4 = vmul.f32 %v14135_v18, %v19563_v30  ;;  %v16095_v12 = vadd.f32 %v7182_v58, %v19559_v14  ;;  %v6913_v11 = vmul.f32 %v14139_v22, %v19564_v6  ;;  %19565 = vst [vmem:[#allocation60_spill] sm:$0xff] %v16101_v28 }
 0x40c   : > { %v3796_v35 = vpop.f32.mrb[37].mxu0  ;;  %v4295_v38 = vpack.c.bf16 %v4185_v0, %v4183_v21  ;;  %v10300_v33 = vadd.f32 %v3794_v51, %v16089_v40  ;;  %v16104_v16 = vmul.f32 0.01, %v16081_v23  ;;  %v7058_v39 = vmul.f32 %v19251_v1, %v19561_v56 }
 0x40d   : > { %v10301_v61 = vadd.f32 %v3796_v35, %v16089_v40  ;;  %8008 = vmatpush1.bf16.msra.mxu0 %v15806_v15  ;;  %v3798_v59 = vpop.f32.mrb[38].mxu0  ;;  %v4296_v47 = vpack.c.bf16 %v4186_v3, %v4184_v55  ;;  %v7561_v54 = vmax.f32 %v16053_v62, %v7433_v24  ;;  %v7560_v13 = vmax.f32 %v16056_v31, %v7432_v7  ;;  %v11863_v62 = vld [vmem:[%s18356_s3 + $0x80] ss:$16 sps:$4 sm:$0xff]   ;;  %v11864_v31 = vld [vmem:[%s18356_s3 + $0xa4] ss:$16 sps:$4 sm:$0xff]  }
 0x40e   : > { %v10302_v58 = vadd.f32 %v3798_v59, %v16101_v28  ;;  %8009 = vmatprep.subr.bf16.mxu0 %v15861_v29  ;;  %v3800_v2 = vpop.f32.mrb[39].mxu0  ;;  %v4059_v8 = vmul.f32 0.01, %v10300_v33  ;;  %v7187_v14 = vadd.f32 %v7059_v27, %v6913_v11  ;;  %v6911_v0 = vmul.f32 %v14139_v22, %v19563_v30  ;;  %v19567_v7 = vld [vmem:[#allocation50_spill] sm:$0xff]  ;;  %v16876_v40 = vld [vmem:[%s18355_s2 + $0x190] sm:$0xff] }
 0x40f   : > { %v4060_v57 = vmul.f32 0.01, %v10301_v61  ;;  %v10303_v15 = vadd.f32 %v3800_v2, %v16101_v28  ;;  %5255 = vmatprep.subr.bf16.mxu1 %v4296_v47  ;;  %v6912_v21 = vmul.f32 %v14135_v18, %v19564_v6  ;;  %v16118_v56 = vadd.f32 %v19566_v53, %v6910_v4  ;;  %v16141_v6 = vpop.permute.xlu1 %2502  ;;  %v19569_v59 = vld [vmem:[#allocation54_spill] sm:$0xff]  ;;  %v16870_v28 = vld [vmem:[%s18355_s2 + $0x178] sm:$0xff] }
 0x410   : > { %v4061_v29 = vmul.f32 0.01, %v10302_v58  ;;  %5256 = vmatpush1.bf16.msra.mxu1 %v4295_v38  ;;  %7713 = vmatmul.mubr.bf16.gmra.mrb[144].mxu0 %v11863_v62  ;;  %v16128_v27 = vadd.f32 %v7181_v63, %v19567_v7  ;;  %v7567_v55 = vmax.f32 %v16081_v23, %v16104_v16  ;;  %v16133_v3 = vmul.f32 0.01, %v16095_v12  ;;  %19568 = vst [vmem:[#allocation68_spill] sm:$0xff] %v16141_v6 }
 0x411   : > { %v4062_v24 = vmul.f32 0.01, %v10303_v15  ;;  %8010 = vmatpush1.bf16.msra.mxu0 %v15863_v17  ;;  %7722 = vmatprep.mubr.bf16.mxu0 %v11864_v31  ;;  %v7186_v51 = vadd.f32 %v7058_v39, %v6912_v21  ;;  %v4187_v4 = vmax.f32 %v10300_v33, %v4059_v8  ;;  %v16139_v17 = vpack.c.bf16 %v7563_v42, %v7561_v54  ;;  %v19572_v54 = vld [vmem:[#allocation55_spill] sm:$0xff] }
 0x412   : > { %v4189_v30 = vmax.f32 %v10302_v58, %v4061_v29  ;;  %8011 = vmatprep.subr.bf16.mxu0 %v15926_v45  ;;  %v4188_v35 = vmax.f32 %v10301_v61, %v4060_v57  ;;  %v16143_v11 = vpack.c.bf16 %v7562_v9, %v7560_v13  ;;  %v16146_v47 = vadd.f32 %v7187_v14, %v19569_v59  ;;  %v16156_v58 = vpop.permute.xlu0 %2506 }
 0x413   : > { %v4190_v38 = vmax.f32 %v10303_v15, %v4062_v24  ;;  %v3804_v63 = vpop.f32.mrb[40].mxu0  ;;  %v16150_v39 = vadd.f32 %v16062_v19, %v19567_v7  ;;  %v7185_v42 = vadd.f32 %v19570_v50, %v6911_v0  ;;  %19571 = vst [vmem:[#allocation64_spill] sm:$0xff] %v16156_v58  ;;  %v16159_v8 = vmul.f32 0.01, %v16128_v27  ;;  %v19573_v0 = vld [vmem:[#allocation23_spill] sm:$0xff]  ;;  %v19574_v24 = vld [vmem:[#allocation57_spill] sm:$0xff] }
 0x414   : > { %v3806_v45 = vpop.f32.mrb[41].mxu0  ;;  %v4297_v33 = vpack.c.bf16 %v4189_v30, %v4187_v4  ;;  %v10304_v44 = vadd.f32 %v3804_v63, %v16141_v6  ;;  %v7566_v19 = vmax.f32 %v16095_v12, %v16133_v3  ;;  %v7063_v57 = vmul.f32 %v19252_v34, %v19572_v54  ;;  %v11865_v7 = vld [vmem:[%s18356_s3 + $0xa0] ss:$16 sps:$4 sm:$0xff]  }
 0x415   : > { %v10305_v61 = vadd.f32 %v3806_v45, %v16141_v6  ;;  %8012 = vmatpush1.bf16.msra.mxu0 %v15928_v60  ;;  %v3808_v9 = vpop.f32.mrb[42].mxu0  ;;  %v4298_v2 = vpack.c.bf16 %v4190_v38, %v4188_v35  ;;  %v16168_v60 = vadd.f32 %v7186_v51, %v19569_v59  ;;  %v6915_v21 = vmul.f32 %v14139_v22, %v19573_v0  ;;  %v19575_v51 = vld [vmem:[#allocation56_spill] sm:$0xff]  ;;  %v11972_v6 = vld [vmem:[%s18356_s3 + $0x6c] ss:$16 sps:$4 sm:$0xff]  }
 0x416   : > { %v10306_v15 = vadd.f32 %v3808_v9, %v16156_v58  ;;  %8013 = vmatprep.subr.bf16.mxu0 %v16002_v25  ;;  %v3810_v13 = vpop.f32.mrb[43].mxu0  ;;  %v4063_v14 = vmul.f32 0.01, %v10304_v44  ;;  %v16174_v62 = vmul.f32 0.01, %v16146_v47  ;;  %v6917_v25 = vmul.f32 %v14139_v22, %v19574_v24 }
 0x417   : > { %v4064_v53 = vmul.f32 0.01, %v10305_v61  ;;  %v10307_v29 = vadd.f32 %v3810_v13, %v16156_v58  ;;  %5257 = vmatprep.subr.bf16.mxu1 %v4298_v2  ;;  %v16177_v34 = vmul.f32 0.01, %v16150_v39  ;;  %v16185_v30 = vadd.f32 %v7185_v42, %v19575_v51  ;;  %v11866_v22 = vld [vmem:[%s18356_s3 + $0xc4] ss:$16 sps:$4 sm:$0xff]   ;;  %v16204_v2 = vpop.permute.xlu1 %2510 }
 0x418   : > { %v4065_v31 = vmul.f32 0.01, %v10306_v15  ;;  %5258 = vmatpush1.bf16.msra.mxu1 %v4297_v33  ;;  %7723 = vmatmul.mubr.bf16.gmra.mrb[148].mxu0 %v11865_v7  ;;  %v6914_v4 = vmul.f32 %v14135_v18, %v19573_v0  ;;  %v7062_v35 = vmul.f32 %v19251_v1, %v19572_v54  ;;  %v7565_v63 = vmax.f32 %v16128_v27, %v16159_v8  ;;  %v19577_v54 = vld [vmem:[#allocation17_spill] sm:$0xff]  ;;  %v19581_v7 = vld [vmem:[#allocation36_spill] sm:$0xff] }
 0x419   : > { %v4066_v38 = vmul.f32 0.01, %v10307_v29  ;;  %8014 = vmatpush1.bf16.msra.mxu0 %v16005_v20  ;;  %7732 = vmatprep.mubr.bf16.mxu0 %v11866_v22  ;;  %v6916_v59 = vmul.f32 %v14135_v18, %v19574_v24  ;;  %v4191_v33 = vmax.f32 %v10304_v44, %v4063_v14  ;;  %v7191_v50 = vadd.f32 %v7063_v57, %v6917_v25  ;;  %v11971_v58 = vld [vmem:[%s18356_s3 + $0x48] ss:$16 sps:$4 sm:$0xff]  }
 0x41a   : > { %v4193_v45 = vmax.f32 %v10306_v15, %v4065_v31  ;;  %8015 = vmatprep.subr.bf16.mxu0 %v16070_v10  ;;  %v16202_v1 = vadd.f32 %v16118_v56, %v19575_v51  ;;  %v4192_v20 = vmax.f32 %v10305_v61, %v4064_v53  ;;  %19576 = vst [vmem:[#allocation67_spill] sm:$0xff] %v16204_v2  ;;  %v7441_v18 = vmul.f32 0.01, %v16185_v30  ;;  %v19578_v10 = vld [vmem:[#allocation116_spill] sm:$0xff]  ;;  %v16214_v61 = vpop.permute.xlu0 %2514  ;;  %v19580_v53 = vld [vmem:[#allocation49_spill] sm:$0xff] }
 0x41b   : > { %v4194_v42 = vmax.f32 %v10307_v29, %v4066_v38  ;;  %v3814_v9 = vpop.f32.mrb[44].mxu0  ;;  %v7189_v13 = vadd.f32 %v19577_v54, %v6915_v21  ;;  %v16210_v44 = vadd.f32 %v7191_v50, %v19578_v10  ;;  %v7190_v57 = vadd.f32 %v7062_v35, %v6916_v59  ;;  %19579 = vst [vmem:[#allocation66_spill] sm:$0xff] %v16214_v61 }
 0x41c   : > { %v3816_v27 = vpop.f32.mrb[45].mxu0  ;;  %v4299_v8 = vpack.c.bf16 %v4193_v45, %v4191_v33  ;;  %v10308_v15 = vadd.f32 %v3814_v9, %v16204_v2  ;;  %v7564_v21 = vmax.f32 %v16150_v39, %v16177_v34  ;;  %v7188_v29 = vadd.f32 %v19580_v53, %v6914_v4  ;;  %v11867_v34 = vld [vmem:[%s18356_s3 + $0xc0] ss:$16 sps:$4 sm:$0xff]  }
 0x41d   : > { %v10309_v56 = vadd.f32 %v3816_v27, %v16204_v2  ;;  %8016 = vmatpush1.bf16.msra.mxu0 %v16076_v36  ;;  %v3818_v14 = vpop.f32.mrb[46].mxu0  ;;  %v4300_v0 = vpack.c.bf16 %v4194_v42, %v4192_v20  ;;  %v7317_v51 = vadd.f32 %v7189_v13, %v19581_v7  ;;  %v7440_v35 = vmul.f32 0.01, %v16202_v1  ;;  %v11868_v20 = vld [vmem:[%s18356_s3 + $0xe4] ss:$16 sps:$4 sm:$0xff]  }
 0x41e   : > { %v10310_v24 = vadd.f32 %v3818_v14, %v16214_v61  ;;  %8017 = vmatprep.subr.bf16.mxu0 %v16139_v17  ;;  %v3820_v25 = vpop.f32.mrb[47].mxu0  ;;  %v4067_v31 = vmul.f32 0.01, %v10308_v15  ;;  %v16224_v36 = vadd.f32 %v7190_v57, %v19578_v10  ;;  %v7635_v17 = vpack.c.bf16 %v7567_v55, %v7565_v63  ;;  %v16846_v2 = vld [vmem:[%s18355_s2 + $0x170] sm:$0xff] }
 0x41f   : > { %v4068_v38 = vmul.f32 0.01, %v10309_v56  ;;  %v10311_v22 = vadd.f32 %v3820_v25, %v16214_v61  ;;  %5259 = vmatprep.subr.bf16.mxu1 %v4300_v0  ;;  %v7569_v4 = vmax.f32 %v16185_v30, %v7441_v18  ;;  %v7447_v59 = vmul.f32 0.01, %v16210_v44  ;;  %v16840_v61 = vld [vmem:[%s18355_s2 + $0x158] sm:$0xff] }
 0x420   : > { %v4069_v39 = vmul.f32 0.01, %v10310_v24  ;;  %5260 = vmatpush1.bf16.msra.mxu1 %v4299_v8  ;;  %7733 = vmatmul.mubr.bf16.gmra.mrb[152].mxu0 %v11867_v34  ;;  %v7316_v45 = vadd.f32 %v7188_v29, %v19581_v7  ;;  %v7571_v50 = vmax.f32 %v16146_v47, %v16174_v62  ;;  %v7442_v23 = vmul.f32 0.01, %v16168_v60  ;;  %v16247_v62 = vpop.permute.xlu1 %2518 }
 0x421   : > { %v4070_v33 = vmul.f32 0.01, %v10311_v22  ;;  %8018 = vmatpush1.bf16.msra.mxu0 %v16143_v11  ;;  %7742 = vmatprep.mubr.bf16.mxu0 %v11868_v20  ;;  %v7634_v55 = vpack.c.bf16 %v7566_v19, %v7564_v21  ;;  %v4195_v30 = vmax.f32 %v10308_v15, %v4067_v31  ;;  %v7445_v63 = vmul.f32 0.01, %v7317_v51  ;;  %19582 = vst [vmem:[#allocation65_spill] sm:$0xff] %v16247_v62  ;;  %v16253_v19 = vpop.permute.xlu0 %2522 }
 0x422   : > { %v4197_v16 = vmax.f32 %v10310_v24, %v4069_v39  ;;  %8019 = vmatprep.subr.bf16.mxu0 %v7635_v17  ;;  %v7446_v11 = vmul.f32 0.01, %v16224_v36  ;;  %v4196_v42 = vmax.f32 %v10309_v56, %v4068_v38  ;;  %v7568_v54 = vmax.f32 %v16202_v1, %v7440_v35  ;;  %19583 = vst [vmem:[#allocation13_spill] sm:$0xff] %v16253_v19  ;;  %v11869_v31 = vld [vmem:[%s18356_s3 + $0xe0] ss:$16 sps:$4 sm:$0xff]  }
 0x423   : > { %v4198_v9 = vmax.f32 %v10311_v22, %v4070_v33  ;;  %v3824_v47 = vpop.f32.mrb[48].mxu0  ;;  %v7637_v27 = vpack.c.bf16 %v7571_v50, %v7569_v4  ;;  %v7575_v18 = vmax.f32 %v16210_v44, %v7447_v59  ;;  %v7444_v12 = vmul.f32 0.01, %v7316_v45 }
 0x424   : > { %v3826_v13 = vpop.f32.mrb[49].mxu0  ;;  %v4301_v8 = vpack.c.bf16 %v4197_v16, %v4195_v30  ;;  %v10312_v10 = vadd.f32 %v3824_v47, %v16247_v62  ;;  %v7570_v56 = vmax.f32 %v16168_v60, %v7442_v23  ;;  %v7573_v0 = vmax.f32 %v7317_v51, %v7445_v63  ;;  %v11870_v51 = vld [vmem:[%s18356_s3 + $0x104] ss:$16 sps:$4 sm:$0xff]   ;;  %v16265_v17 = vpop.permute.xlu1 %2526  ;;  %v11871_v47 = vld [vmem:[%s18356_s3 + $0x100] ss:$16 sps:$4 sm:$0xff]  }
 0x425   : > { %v10313_v3 = vadd.f32 %v3826_v13, %v16247_v62  ;;  %8020 = vmatpush1.bf16.msra.mxu0 %v7634_v55  ;;  %v3828_v15 = vpop.f32.mrb[50].mxu0  ;;  %v4302_v57 = vpack.c.bf16 %v4198_v9, %v4196_v42  ;;  %v7574_v24 = vmax.f32 %v16224_v36, %v7446_v11  ;;  %v7572_v35 = vmax.f32 %v7316_v45, %v7444_v12  ;;  %v16269_v20 = vpop.permute.xlu0 %2530  ;;  %v11872_v13 = vld [vmem:[%s18356_s3 + $0x124] ss:$16 sps:$4 sm:$0xff]   ;;  %v11966_v62 = vld [vmem:[%s18356_s3 + $0x4c] ss:$16 sps:$4 sm:$0xff]  }
 0x426   : > { %v10314_v14 = vadd.f32 %v3828_v15, %v16253_v19  ;;  %8021 = vmatprep.subr.bf16.mxu0 %v7637_v27  ;;  %v3830_v1 = vpop.f32.mrb[51].mxu0  ;;  %v4071_v21 = vmul.f32 0.01, %v10312_v10  ;;  %v7636_v29 = vpack.c.bf16 %v7570_v56, %v7568_v54  ;;  %v7639_v60 = vpack.c.bf16 %v7575_v18, %v7573_v0  ;;  %19584 = vst [vmem:[#allocation84_spill] sm:$0xff] %v16265_v17 }
 0x427   : > { %v4072_v53 = vmul.f32 0.01, %v10313_v3  ;;  %v10315_v44 = vadd.f32 %v3830_v1, %v16253_v19  ;;  %5261 = vmatprep.subr.bf16.mxu1 %v4302_v57  ;;  %v7638_v4 = vpack.c.bf16 %v7574_v24, %v7572_v35  ;;  %19585 = vst [vmem:[#allocation69_spill] sm:$0xff] %v16269_v20  ;;  %v11874_v35 = vld [vmem:[%s18356_s3 + $0x144] ss:$16 sps:$4 sm:$0xff]  }
 0x428   : > { %v4073_v25 = vmul.f32 0.01, %v10314_v14  ;;  %5262 = vmatpush1.bf16.msra.mxu1 %v4301_v8  ;;  %7743 = vmatmul.mubr.bf16.gmra.mrb[156].mxu0 %v11869_v31  ;;  %v4199_v22 = vmax.f32 %v10312_v10, %v4071_v21  ;;  %v11965_v19 = vld [vmem:[%s18356_s3 + $0x28] ss:$16 sps:$4 sm:$0xff]  }
 0x429   : > { %v4074_v7 = vmul.f32 0.01, %v10315_v44  ;;  %8022 = vmatpush1.bf16.msra.mxu0 %v7636_v29  ;;  %7752 = vmatprep.mubr.bf16.mxu0 %v11870_v51  ;;  %v4200_v36 = vmax.f32 %v10313_v3, %v4072_v53  ;;  %v16279_v3 = vpop.permute.xlu1 %2534  ;;  %v16283_v1 = vpop.permute.xlu0 %2538 }
 0x42a   : > { %v4201_v38 = vmax.f32 %v10314_v14, %v4073_v25  ;;  %8023 = vmatprep.subr.bf16.mxu0 %v7639_v60  ;;  %19586 = vst [vmem:[#allocation14_spill] sm:$0xff] %v16279_v3  ;;  %19587 = vst [vmem:[#allocation72_spill] sm:$0xff] %v16283_v1  ;;  %v11873_v60 = vld [vmem:[%s18356_s3 + $0x120] ss:$16 sps:$4 sm:$0xff]  }
 0x42b   : > { %v4202_v39 = vmax.f32 %v10315_v44, %v4074_v7  ;;  %v3834_v34 = vpop.f32.mrb[52].mxu0 }
 0x42c   : > { %v3836_v59 = vpop.f32.mrb[53].mxu0  ;;  %v4303_v33 = vpack.c.bf16 %v4201_v38, %v4199_v22  ;;  %v10316_v50 = vadd.f32 %v3834_v34, %v16265_v17 }
 0x42d   : > { %v10317_v45 = vadd.f32 %v3836_v59, %v16265_v17  ;;  %8024 = vmatpush1.bf16.msra.mxu0 %v7638_v4  ;;  %v3838_v23 = vpop.f32.mrb[54].mxu0  ;;  %v4304_v16 = vpack.c.bf16 %v4202_v39, %v4200_v36  ;;  %v16293_v34 = vpop.permute.xlu1 %2542  ;;  %v16816_v17 = vld [vmem:[%s18355_s2 + $0x150] sm:$0xff] }
 0x42e   : > { %v10318_v55 = vadd.f32 %v3838_v23, %v16269_v20  ;;  %v3840_v30 = vpop.f32.mrb[55].mxu0  ;;  %v4075_v63 = vmul.f32 0.01, %v10316_v50  ;;  %19588 = vst [vmem:[#allocation73_spill] sm:$0xff] %v16293_v34 }
 0x42f   : > { %v4076_v11 = vmul.f32 0.01, %v10317_v45  ;;  %v10319_v42 = vadd.f32 %v3840_v30, %v16269_v20  ;;  %5263 = vmatprep.subr.bf16.mxu1 %v4304_v16  ;;  %v16810_v20 = vld [vmem:[%s18355_s2 + $0x138] sm:$0xff] }
 0x430   : > { %v4077_v9 = vmul.f32 0.01, %v10318_v55  ;;  %5264 = vmatpush1.bf16.msra.mxu1 %v4303_v33  ;;  %7753 = vmatmul.mubr.bf16.gmra.mrb[160].mxu0 %v11871_v47  ;;  %v4203_v8 = vmax.f32 %v10316_v50, %v4075_v63  ;;  %v11875_v47 = vld [vmem:[%s18356_s3 + $0x140] ss:$16 sps:$4 sm:$0xff]  }
 0x431   : > { %v4078_v54 = vmul.f32 0.01, %v10319_v42  ;;  %7762 = vmatprep.mubr.bf16.mxu0 %v11872_v13  ;;  %v4204_v18 = vmax.f32 %v10317_v45, %v4076_v11  ;;  %v16297_v45 = vpop.permute.xlu0 %2546  ;;  %v11876_v13 = vld [vmem:[%s18356_s3 + $0x164] ss:$16 sps:$4 sm:$0xff]  }
 0x432   : > { %v4205_v27 = vmax.f32 %v10318_v55, %v4077_v9  ;;  %19589 = vst [vmem:[#allocation15_spill] sm:$0xff] %v16297_v45 }
 0x433   : > { %v4206_v10 = vmax.f32 %v10319_v42, %v4078_v54  ;;  %v3844_v12 = vpop.f32.mrb[56].mxu0 }
 0x434   : > { %v3846_v15 = vpop.f32.mrb[57].mxu0  ;;  %v4305_v57 = vpack.c.bf16 %v4205_v27, %v4203_v8  ;;  %v10320_v56 = vadd.f32 %v3844_v12, %v16279_v3 }
 0x435   : > { %v10321_v14 = vadd.f32 %v3846_v15, %v16279_v3  ;;  %v3848_v0 = vpop.f32.mrb[58].mxu0  ;;  %v4306_v21 = vpack.c.bf16 %v4206_v10, %v4204_v18  ;;  %v16307_v15 = vpop.permute.xlu1 %2550  ;;  %v11960_v3 = vld [vmem:[%s18356_s3 + $0x2c] ss:$16 sps:$4 sm:$0xff]  }
 0x436   : > { %v10322_v53 = vadd.f32 %v3848_v0, %v16283_v1  ;;  %v3850_v44 = vpop.f32.mrb[59].mxu0  ;;  %v4079_v29 = vmul.f32 0.01, %v10320_v56  ;;  %19590 = vst [vmem:[#allocation71_spill] sm:$0xff] %v16307_v15 }
 0x437   : > { %v4080_v24 = vmul.f32 0.01, %v10321_v14  ;;  %v10323_v25 = vadd.f32 %v3850_v44, %v16283_v1  ;;  %5265 = vmatprep.subr.bf16.mxu1 %v4306_v21  ;;  %v16311_v21 = vpop.permute.xlu0 %2554  ;;  %v11959_v1 = vld [vmem:[%s18356_s3 + $0x8] ss:$16 sps:$4 sm:$0xff]  }
 0x438   : > { %v4081_v31 = vmul.f32 0.01, %v10322_v53  ;;  %5266 = vmatpush1.bf16.msra.mxu1 %v4305_v57  ;;  %7763 = vmatmul.mubr.bf16.gmra.mrb[164].mxu0 %v11873_v60  ;;  %v4207_v38 = vmax.f32 %v10320_v56, %v4079_v29  ;;  %19591 = vst [vmem:[#allocation70_spill] sm:$0xff] %v16311_v21 }
 0x439   : > { %v4082_v7 = vmul.f32 0.01, %v10323_v25  ;;  %7772 = vmatprep.mubr.bf16.mxu0 %v11874_v35  ;;  %v4208_v22 = vmax.f32 %v10321_v14, %v4080_v24 }
 0x43a   : > { %v4209_v51 = vmax.f32 %v10322_v53, %v4081_v31 }
 0x43b   : > { %v4210_v36 = vmax.f32 %v10323_v25, %v4082_v7  ;;  %v3854_v39 = vpop.f32.mrb[60].mxu0  ;;  %v11582_v7 = vld [vmem:[#allocation3] ss:$16 sps:$4 sm:$0xff]  }
 0x43c   : > { %v3856_v4 = vpop.f32.mrb[61].mxu0  ;;  %v4307_v59 = vpack.c.bf16 %v4209_v51, %v4207_v38  ;;  %v10324_v33 = vadd.f32 %v3854_v39, %v16293_v34  ;;  %v11877_v51 = vld [vmem:[%s18356_s3 + $0x160] ss:$16 sps:$4 sm:$0xff]   ;;  %v11585_v38 = vld [vmem:[#allocation3 + $0x24] ss:$16 sps:$4 sm:$0xff]  }
 0x43d   : > { %v10325_v50 = vadd.f32 %v3856_v4, %v16293_v34  ;;  %v3858_v23 = vpop.f32.mrb[62].mxu0  ;;  %v4308_v16 = vpack.c.bf16 %v4210_v36, %v4208_v22  ;;  %v11878_v36 = vld [vmem:[%s18356_s3 + $0x184] ss:$16 sps:$4 sm:$0xff]  }
 0x43e   : > { %v10326_v55 = vadd.f32 %v3858_v23, %v16297_v45  ;;  %v3860_v30 = vpop.f32.mrb[63].mxu0  ;;  %v4083_v63 = vmul.f32 0.01, %v10324_v33  ;;  %v16321_v23 = vpop.permute.xlu1 %2558  ;;  %v16786_v34 = vld [vmem:[%s18355_s2 + $0x130] sm:$0xff] }
 0x43f   : > { %v4084_v11 = vmul.f32 0.01, %v10325_v50  ;;  %v10327_v42 = vadd.f32 %v3860_v30, %v16297_v45  ;;  %5267 = vmatprep.subr.bf16.mxu1 %v4308_v16  ;;  %19592 = vst [vmem:[#allocation18_spill] sm:$0xff] %v16321_v23  ;;  %v16780_v45 = vld [vmem:[%s18355_s2 + $0x118] sm:$0xff] }
 0x440   : > { %v4085_v9 = vmul.f32 0.01, %v10326_v55  ;;  %5268 = vmatpush1.bf16.msra.mxu1 %v4307_v59  ;;  %7773 = vmatmul.mubr.bf16.gmra.mrb[168].mxu0 %v11875_v47  ;;  %v4211_v8 = vmax.f32 %v10324_v33, %v4083_v63 }
 0x441   : > { %v4086_v54 = vmul.f32 0.01, %v10327_v42  ;;  %7782 = vmatprep.mubr.bf16.mxu0 %v11876_v13  ;;  %v4212_v18 = vmax.f32 %v10325_v50, %v4084_v11  ;;  %v16325_v11 = vpop.permute.xlu0 %2562 }
 0x442   : > { %v4213_v27 = vmax.f32 %v10326_v55, %v4085_v9  ;;  %19593 = vst [vmem:[#allocation76_spill] sm:$0xff] %v16325_v11 }
 0x443   : > { %v4214_v10 = vmax.f32 %v10327_v42, %v4086_v54  ;;  %v3864_v12 = vpop.f32.mrb[64].mxu0 }
 0x444   : > { %v3866_v57 = vpop.f32.mrb[65].mxu0  ;;  %v10328_v56 = vadd.f32 %v3864_v12, %v16307_v15  ;;  %v4309_v14 = vpack.c.bf16 %v4213_v27, %v4211_v8  ;;  %v11879_v12 = vld [vmem:[%s18356_s3 + $0x180] ss:$16 sps:$4 sm:$0xff]  }
 0x445   : > { %v10329_v0 = vadd.f32 %v3866_v57, %v16307_v15  ;;  %v3868_v53 = vpop.f32.mrb[66].mxu0  ;;  %v4310_v44 = vpack.c.bf16 %v4214_v10, %v4212_v18  ;;  %v11587_v18 = vld [vmem:[#allocation3 + $0x20] ss:$16 sps:$4 sm:$0xff]   ;;  %v11588_v57 = vld [vmem:[#allocation3 + $0x44] ss:$16 sps:$4 sm:$0xff]  }
 0x446   : > { %v10330_v29 = vadd.f32 %v3868_v53, %v16311_v21  ;;  %v4087_v24 = vmul.f32 0.01, %v10328_v56  ;;  %v3870_v25 = vpop.f32.mrb[67].mxu0  ;;  %v11954_v15 = vld [vmem:[%s18356_s3 + $0xc] ss:$16 sps:$4 sm:$0xff]  }
 0x447   : > { %v4088_v31 = vmul.f32 0.01, %v10329_v0  ;;  %v10331_v60 = vadd.f32 %v3870_v25, %v16311_v21  ;;  %5269 = vmatprep.subr.bf16.mxu1 %v4310_v44  ;;  %v11953_v21 = vld [vmem:[%s18356_s3 + $0x3e0] ss:$16 sps:$4 sm:$0xff]  }
 0x448   : > { %v4089_v35 = vmul.f32 0.01, %v10330_v29  ;;  %5270 = vmatpush1.bf16.msra.mxu1 %v4309_v14  ;;  %7783 = vmatmul.mubr.bf16.gmra.mrb[172].mxu0 %v11877_v51  ;;  %v4215_v39 = vmax.f32 %v10328_v56, %v4087_v24  ;;  %v11880_v14 = vld [vmem:[%s18356_s3 + $0x1a4] ss:$16 sps:$4 sm:$0xff]   ;;  %v16335_v24 = vpop.permute.xlu1 %2566 }
 0x449   : > { %v4090_v22 = vmul.f32 0.01, %v10331_v60  ;;  %7792 = vmatprep.mubr.bf16.mxu0 %v11878_v36  ;;  %v4216_v59 = vmax.f32 %v10329_v0, %v4088_v31  ;;  %19594 = vst [vmem:[#allocation81_spill] sm:$0xff] %v16335_v24 }
 0x44a   : > { %v4217_v4 = vmax.f32 %v10330_v29, %v4089_v35  ;;  %v16338_v35 = vpop.permute.xlu0 %2570 }
 0x44b   : > { %v4218_v33 = vmax.f32 %v10331_v60, %v4090_v22  ;;  %v3874_v50 = vpop.f32.mrb[68].mxu0  ;;  %5272 = vmatmul.mubr.bf16.vlgmr.msra.gmra.mrb[0].mxu1 %v11582_v7  ;;  %19595 = vst [vmem:[#allocation20_spill] sm:$0xff] %v16338_v35 }
 0x44c   : > { %v4311_v16 = vpack.c.bf16 %v4217_v4, %v4215_v39  ;;  %v3876_v55 = vpop.f32.mrb[69].mxu0  ;;  %v10332_v30 = vadd.f32 %v3874_v50, %v16321_v23  ;;  %5281 = vmatprep.mubr.bf16.mxu1 %v11585_v38  ;;  %v11590_v50 = vld [vmem:[#allocation3 + $0x40] ss:$16 sps:$4 sm:$0xff]  }
 0x44d   : > { %v10333_v63 = vadd.f32 %v3876_v55, %v16321_v23  ;;  %v3878_v42 = vpop.f32.mrb[70].mxu0  ;;  %v4312_v9 = vpack.c.bf16 %v4218_v33, %v4216_v59  ;;  %v11881_v55 = vld [vmem:[%s18356_s3 + $0x1a0] ss:$16 sps:$4 sm:$0xff]  }
 0x44e   : > { %v10334_v47 = vadd.f32 %v3878_v42, %v16325_v11  ;;  %v4091_v54 = vmul.f32 0.01, %v10332_v30  ;;  %v3880_v13 = vpop.f32.mrb[71].mxu0  ;;  %v11882_v42 = vld [vmem:[%s18356_s3 + $0x1c4] ss:$16 sps:$4 sm:$0xff]  }
 0x44f   : > { %v4092_v27 = vmul.f32 0.01, %v10333_v63  ;;  %v10335_v8 = vadd.f32 %v3880_v13, %v16325_v11  ;;  %5592 = vmatprep.subr.bf16.mxu1 %v4312_v9  ;;  %v16750_v11 = vld [vmem:[%s18355_s2 + $0xf8] sm:$0xff]  ;;  %v16756_v23 = vld [vmem:[%s18355_s2 + $0x110] sm:$0xff] }
 0x450   : > { %v4093_v10 = vmul.f32 0.01, %v10334_v47  ;;  %5593 = vmatpush1.bf16.msra.mxu1 %v4311_v16  ;;  %7793 = vmatmul.mubr.bf16.gmra.mrb[176].mxu0 %v11879_v12  ;;  %v4219_v0 = vmax.f32 %v10332_v30, %v4091_v54  ;;  %v11591_v30 = vld [vmem:[#allocation3 + $0x64] ss:$16 sps:$4 sm:$0xff]  }
 0x451   : > { %v4094_v56 = vmul.f32 0.01, %v10335_v8  ;;  %7802 = vmatprep.mubr.bf16.mxu0 %v11880_v14  ;;  %v4220_v44 = vmax.f32 %v10333_v63, %v4092_v27  ;;  %v16349_v27 = vpop.permute.xlu1 %2574 }
 0x452   : > { %v4221_v53 = vmax.f32 %v10334_v47, %v4093_v10  ;;  %19596 = vst [vmem:[#allocation74_spill] sm:$0xff] %v16349_v27 }
 0x453   : > { %v4222_v29 = vmax.f32 %v10335_v8, %v4094_v56  ;;  %v3884_v25 = vpop.f32.mrb[72].mxu0  ;;  %5282 = vmatmul.mubr.bf16.gmra.mrb[4].mxu1 %v11587_v18 }
 0x454   : > { %v4313_v31 = vpack.c.bf16 %v4221_v53, %v4219_v0  ;;  %v10336_v60 = vadd.f32 %v3884_v25, %v16335_v24  ;;  %v3886_v7 = vpop.f32.mrb[73].mxu0  ;;  %5291 = vmatprep.mubr.bf16.mxu1 %v11588_v57  ;;  %v16352_v57 = vpop.permute.xlu0 %2578 }
 0x455   : > { %v10337_v51 = vadd.f32 %v3886_v7, %v16335_v24  ;;  %v3888_v38 = vpop.f32.mrb[74].mxu0  ;;  %v4314_v22 = vpack.c.bf16 %v4222_v29, %v4220_v44  ;;  %19597 = vst [vmem:[#allocation80_spill] sm:$0xff] %v16352_v57  ;;  %v11948_v24 = vld [vmem:[%s18356_s3 + $0x3e4] ss:$16 sps:$4 sm:$0xff]  }
 0x456   : > { %v4095_v36 = vmul.f32 0.01, %v10336_v60  ;;  %v10338_v39 = vadd.f32 %v3888_v38, %v16338_v35  ;;  %v3890_v4 = vpop.f32.mrb[75].mxu0  ;;  %v11594_v38 = vld [vmem:[#allocation3 + $0x84] ss:$16 sps:$4 sm:$0xff]  }
 0x457   : > { %v4096_v59 = vmul.f32 0.01, %v10337_v51  ;;  %v10339_v33 = vadd.f32 %v3890_v4, %v16338_v35  ;;  %5594 = vmatprep.subr.bf16.mxu1 %v4314_v22  ;;  %v11947_v35 = vld [vmem:[%s18356_s3 + $0x3c0] ss:$16 sps:$4 sm:$0xff]  }
 0x458   : > { %v4097_v16 = vmul.f32 0.01, %v10338_v39  ;;  %5595 = vmatpush1.bf16.msra.mxu1 %v4313_v31  ;;  %7803 = vmatmul.mubr.bf16.gmra.mrb[180].mxu0 %v11881_v55  ;;  %v4223_v9 = vmax.f32 %v10336_v60, %v4095_v36  ;;  %v11593_v60 = vld [vmem:[#allocation3 + $0x60] ss:$16 sps:$4 sm:$0xff]  }
 0x459   : > { %v4098_v63 = vmul.f32 0.01, %v10339_v33  ;;  %7812 = vmatprep.mubr.bf16.mxu0 %v11882_v42  ;;  %v4224_v54 = vmax.f32 %v10337_v51, %v4096_v59  ;;  %v11883_v51 = vld [vmem:[%s18356_s3 + $0x1c0] ss:$16 sps:$4 sm:$0xff]   ;;  %v11884_v36 = vld [vmem:[%s18356_s3 + $0x1e4] ss:$16 sps:$4 sm:$0xff]   ;;  %v16363_v59 = vpop.permute.xlu1 %2582  ;;  %v16366_v42 = vpop.permute.xlu0 %2586 }
 0x45a   : > { %v4225_v47 = vmax.f32 %v10338_v39, %v4097_v16  ;;  %19598 = vst [vmem:[#allocation78_spill] sm:$0xff] %v16363_v59  ;;  %19599 = vst [vmem:[#allocation19_spill] sm:$0xff] %v16366_v42 }
 0x45b   : > { %v4226_v13 = vmax.f32 %v10339_v33, %v4098_v63  ;;  %v3894_v8 = vpop.f32.mrb[76].mxu0  ;;  %5292 = vmatmul.mubr.bf16.gmra.mrb[8].mxu1 %v11590_v50 }
 0x45c   : > { %v4315_v18 = vpack.c.bf16 %v4225_v47, %v4223_v9  ;;  %v10340_v10 = vadd.f32 %v3894_v8, %v16349_v27  ;;  %v3896_v12 = vpop.f32.mrb[77].mxu0  ;;  %5301 = vmatprep.mubr.bf16.mxu1 %v11591_v30 }
 0x45d   : > { %v10341_v56 = vadd.f32 %v3896_v12, %v16349_v27  ;;  %v3898_v14 = vpop.f32.mrb[78].mxu0  ;;  %v4316_v0 = vpack.c.bf16 %v4226_v13, %v4224_v54  ;;  %v16726_v27 = vld [vmem:[%s18355_s2 + $0xf0] sm:$0xff] }
 0x45e   : > { %v4099_v53 = vmul.f32 0.01, %v10340_v10  ;;  %v10342_v44 = vadd.f32 %v3898_v14, %v16352_v57  ;;  %v3900_v29 = vpop.f32.mrb[79].mxu0 }
 0x45f   : > { %v4100_v25 = vmul.f32 0.01, %v10341_v56  ;;  %v10343_v31 = vadd.f32 %v3900_v29, %v16352_v57  ;;  %5596 = vmatprep.subr.bf16.mxu1 %v4316_v0  ;;  %v11885_v0 = vld [vmem:[%s18356_s3 + $0x1e0] ss:$16 sps:$4 sm:$0xff]   ;;  %v11886_v29 = vld [vmem:[%s18356_s3 + $0x204] ss:$16 sps:$4 sm:$0xff]  }
 0x460   : > { %v4101_v7 = vmul.f32 0.01, %v10342_v44  ;;  %5597 = vmatpush1.bf16.msra.mxu1 %v4315_v18  ;;  %7813 = vmatmul.mubr.bf16.gmra.mrb[184].mxu0 %v11883_v51  ;;  %v4227_v39 = vmax.f32 %v10340_v10, %v4099_v53  ;;  %v11597_v53 = vld [vmem:[#allocation3 + $0xa4] ss:$16 sps:$4 sm:$0xff]  }
 0x461   : > { %v4102_v22 = vmul.f32 0.01, %v10343_v31  ;;  %7822 = vmatprep.mubr.bf16.mxu0 %v11884_v36  ;;  %v4228_v33 = vmax.f32 %v10341_v56, %v4100_v25  ;;  %v11596_v56 = vld [vmem:[#allocation3 + $0x80] ss:$16 sps:$4 sm:$0xff]  }
 0x462   : > { %v4229_v4 = vmax.f32 %v10342_v44, %v4101_v7 }
 0x463   : > { %v4230_v50 = vmax.f32 %v10343_v31, %v4102_v22  ;;  %v3904_v16 = vpop.f32.mrb[80].mxu0  ;;  %5302 = vmatmul.mubr.bf16.gmra.mrb[12].mxu1 %v11593_v60  ;;  %v16377_v60 = vpop.permute.xlu1 %2590 }
 0x464   : > { %v4317_v55 = vpack.c.bf16 %v4229_v4, %v4227_v39  ;;  %v10344_v30 = vadd.f32 %v3904_v16, %v16363_v59  ;;  %v3906_v63 = vpop.f32.mrb[81].mxu0  ;;  %5311 = vmatprep.mubr.bf16.mxu1 %v11594_v38  ;;  %19600 = vst [vmem:[#allocation83_spill] sm:$0xff] %v16377_v60  ;;  %v16380_v4 = vpop.permute.xlu0 %2594 }
 0x465   : > { %v10345_v9 = vadd.f32 %v3906_v63, %v16363_v59  ;;  %v3908_v47 = vpop.f32.mrb[82].mxu0  ;;  %v4318_v54 = vpack.c.bf16 %v4230_v50, %v4228_v33  ;;  %19601 = vst [vmem:[#allocation88_spill] sm:$0xff] %v16380_v4  ;;  %v16611_v59 = vld [vmem:[%s18355_s2 + $0x68] sm:$0xff] }
 0x466   : > { %v4103_v13 = vmul.f32 0.01, %v10344_v30  ;;  %v10346_v8 = vadd.f32 %v3908_v47, %v16366_v42  ;;  %v3910_v18 = vpop.f32.mrb[83].mxu0 }
 0x467   : > { %v4104_v10 = vmul.f32 0.01, %v10345_v9  ;;  %v10347_v12 = vadd.f32 %v3910_v18, %v16366_v42  ;;  %5598 = vmatprep.subr.bf16.mxu1 %v4318_v54  ;;  %v11599_v54 = vld [vmem:[#allocation3 + $0xa0] ss:$16 sps:$4 sm:$0xff]   ;;  %v11600_v18 = vld [vmem:[#allocation3 + $0xc4] ss:$16 sps:$4 sm:$0xff]  }
 0x468   : > { %v4105_v14 = vmul.f32 0.01, %v10346_v8  ;;  %5599 = vmatpush1.bf16.msra.mxu1 %v4317_v55  ;;  %7823 = vmatmul.mubr.bf16.gmra.mrb[188].mxu0 %v11885_v0  ;;  %v4231_v25 = vmax.f32 %v10344_v30, %v4103_v13  ;;  %v16391_v0 = vpop.permute.xlu1 %2598  ;;  %v16600_v42 = vld [vmem:[%s18355_s2 + $0x70] sm:$0xff] }
 0x469   : > { %v4106_v44 = vmul.f32 0.01, %v10347_v12  ;;  %7832 = vmatprep.mubr.bf16.mxu0 %v11886_v29  ;;  %v4232_v7 = vmax.f32 %v10345_v9, %v4104_v10  ;;  %19602 = vst [vmem:[#allocation87_spill] sm:$0xff] %v16391_v0 }
 0x46a   : > { %v4233_v31 = vmax.f32 %v10346_v8, %v4105_v14  ;;  %v11887_v8 = vld [vmem:[%s18356_s3 + $0x200] ss:$16 sps:$4 sm:$0xff]  }
 0x46b   : > { %v4234_v51 = vmax.f32 %v10347_v12, %v4106_v44  ;;  %v3914_v38 = vpop.f32.mrb[84].mxu0  ;;  %5312 = vmatmul.mubr.bf16.gmra.mrb[16].mxu1 %v11596_v56  ;;  %v11888_v12 = vld [vmem:[%s18356_s3 + $0x224] ss:$16 sps:$4 sm:$0xff]  }
 0x46c   : > { %v4319_v22 = vpack.c.bf16 %v4233_v31, %v4231_v25  ;;  %v10348_v36 = vadd.f32 %v3914_v38, %v16377_v60  ;;  %v3916_v39 = vpop.f32.mrb[85].mxu0  ;;  %5321 = vmatprep.mubr.bf16.mxu1 %v11597_v53 }
 0x46d   : > { %v10349_v33 = vadd.f32 %v3916_v39, %v16377_v60  ;;  %v3918_v50 = vpop.f32.mrb[86].mxu0  ;;  %v4320_v16 = vpack.c.bf16 %v4234_v51, %v4232_v7  ;;  %v16394_v51 = vpop.permute.xlu0 %2602 }
 0x46e   : > { %v4107_v55 = vmul.f32 0.01, %v10348_v36  ;;  %v10350_v30 = vadd.f32 %v3918_v50, %v16380_v4  ;;  %v3920_v63 = vpop.f32.mrb[87].mxu0  ;;  %19603 = vst [vmem:[#allocation25_spill] sm:$0xff] %v16394_v51 }
 0x46f   : > { %v4108_v47 = vmul.f32 0.01, %v10349_v33  ;;  %v10351_v9 = vadd.f32 %v3920_v63, %v16380_v4  ;;  %5600 = vmatprep.subr.bf16.mxu1 %v4320_v16 }
 0x470   : > { %v4109_v13 = vmul.f32 0.01, %v10350_v30  ;;  %5601 = vmatpush1.bf16.msra.mxu1 %v4319_v22  ;;  %7833 = vmatmul.mubr.bf16.gmra.mrb[192].mxu0 %v11887_v8  ;;  %v4235_v56 = vmax.f32 %v10348_v36, %v4107_v55 }
 0x471   : > { %v4110_v10 = vmul.f32 0.01, %v10351_v9  ;;  %7842 = vmatprep.mubr.bf16.mxu0 %v11888_v12  ;;  %v4236_v53 = vmax.f32 %v10349_v33, %v4108_v47  ;;  %v11889_v47 = vld [vmem:[%s18356_s3 + $0x220] ss:$16 sps:$4 sm:$0xff]  }
 0x472   : > { %v4237_v14 = vmax.f32 %v10350_v30, %v4109_v13  ;;  %v11602_v30 = vld [vmem:[#allocation3 + $0xc0] ss:$16 sps:$4 sm:$0xff]  }
 0x473   : > { %v4238_v44 = vmax.f32 %v10351_v9, %v4110_v10  ;;  %v3924_v29 = vpop.f32.mrb[88].mxu0  ;;  %5322 = vmatmul.mubr.bf16.gmra.mrb[20].mxu1 %v11599_v54  ;;  %v11603_v9 = vld [vmem:[#allocation3 + $0xe4] ss:$16 sps:$4 sm:$0xff]   ;;  %v16405_v10 = vpop.permute.xlu1 %2606 }
 0x474   : > { %v4321_v25 = vpack.c.bf16 %v4237_v14, %v4235_v56  ;;  %v10352_v31 = vadd.f32 %v3924_v29, %v16391_v0  ;;  %v3926_v7 = vpop.f32.mrb[89].mxu0  ;;  %5331 = vmatprep.mubr.bf16.mxu1 %v11600_v18  ;;  %v11890_v13 = vld [vmem:[%s18356_s3 + $0x244] ss:$16 sps:$4 sm:$0xff]   ;;  %19604 = vst [vmem:[#allocation75_spill] sm:$0xff] %v16405_v10 }
 0x475   : > { %v10353_v38 = vadd.f32 %v3926_v7, %v16391_v0  ;;  %v3928_v22 = vpop.f32.mrb[90].mxu0  ;;  %v4322_v39 = vpack.c.bf16 %v4238_v44, %v4236_v53  ;;  %v16573_v0 = vld [vmem:[%s18355_s2 + $0x48] sm:$0xff] }
 0x476   : > { %v4111_v50 = vmul.f32 0.01, %v10352_v31  ;;  %v10354_v36 = vadd.f32 %v3928_v22, %v16394_v51  ;;  %v3930_v16 = vpop.f32.mrb[91].mxu0 }
 0x477   : > { %v4112_v55 = vmul.f32 0.01, %v10353_v38  ;;  %v10355_v33 = vadd.f32 %v3930_v16, %v16394_v51  ;;  %5602 = vmatprep.subr.bf16.mxu1 %v4322_v39  ;;  %v16562_v51 = vld [vmem:[%s18355_s2 + $0x50] sm:$0xff] }
 0x478   : > { %v4113_v63 = vmul.f32 0.01, %v10354_v36  ;;  %5603 = vmatpush1.bf16.msra.mxu1 %v4321_v25  ;;  %7843 = vmatmul.mubr.bf16.gmra.mrb[196].mxu0 %v11889_v47  ;;  %v4239_v8 = vmax.f32 %v10352_v31, %v4111_v50  ;;  %v16408_v25 = vpop.permute.xlu0 %2610 }
 0x479   : > { %v4114_v54 = vmul.f32 0.01, %v10355_v33  ;;  %7852 = vmatprep.mubr.bf16.mxu0 %v11890_v13  ;;  %v4240_v12 = vmax.f32 %v10353_v38, %v4112_v55  ;;  %19605 = vst [vmem:[#allocation22_spill] sm:$0xff] %v16408_v25  ;;  %v11605_v55 = vld [vmem:[#allocation3 + $0xe0] ss:$16 sps:$4 sm:$0xff]  }
 0x47a   : > { %v4241_v18 = vmax.f32 %v10354_v36, %v4113_v63  ;;  %v11606_v63 = vld [vmem:[#allocation3 + $0x104] ss:$16 sps:$4 sm:$0xff]  }
 0x47b   : > { %v4242_v56 = vmax.f32 %v10355_v33, %v4114_v54  ;;  %v3934_v14 = vpop.f32.mrb[92].mxu0  ;;  %5332 = vmatmul.mubr.bf16.gmra.mrb[24].mxu1 %v11602_v30  ;;  %v11891_v30 = vld [vmem:[%s18356_s3 + $0x240] ss:$16 sps:$4 sm:$0xff]  }
 0x47c   : > { %v4323_v53 = vpack.c.bf16 %v4241_v18, %v4239_v8  ;;  %v10356_v44 = vadd.f32 %v3934_v14, %v16405_v10  ;;  %v3936_v29 = vpop.f32.mrb[93].mxu0  ;;  %5341 = vmatprep.mubr.bf16.mxu1 %v11603_v9  ;;  %v11892_v9 = vld [vmem:[%s18356_s3 + $0x264] ss:$16 sps:$4 sm:$0xff]   ;;  %v16419_v8 = vpop.permute.xlu1 %2614 }
 0x47d   : > { %v10357_v7 = vadd.f32 %v3936_v29, %v16405_v10  ;;  %v3938_v22 = vpop.f32.mrb[94].mxu0  ;;  %v4324_v39 = vpack.c.bf16 %v4242_v56, %v4240_v12  ;;  %19606 = vst [vmem:[#allocation85_spill] sm:$0xff] %v16419_v8 }
 0x47e   : > { %v4115_v16 = vmul.f32 0.01, %v10356_v44  ;;  %v10358_v31 = vadd.f32 %v3938_v22, %v16408_v25  ;;  %v3940_v50 = vpop.f32.mrb[95].mxu0  ;;  %v16422_v22 = vpop.permute.xlu0 %2618 }
 0x47f   : > { %v4116_v36 = vmul.f32 0.01, %v10357_v7  ;;  %v10359_v38 = vadd.f32 %v3940_v50, %v16408_v25  ;;  %5604 = vmatprep.subr.bf16.mxu1 %v4324_v39  ;;  %19607 = vst [vmem:[#allocation90_spill] sm:$0xff] %v16422_v22 }
 0x480   : > { %v4117_v33 = vmul.f32 0.01, %v10358_v31  ;;  %5605 = vmatpush1.bf16.msra.mxu1 %v4323_v53  ;;  %7853 = vmatmul.mubr.bf16.gmra.mrb[200].mxu0 %v11891_v30  ;;  %v4243_v54 = vmax.f32 %v10356_v44, %v4115_v16 }
 0x481   : > { %v4118_v47 = vmul.f32 0.01, %v10359_v38  ;;  %7862 = vmatprep.mubr.bf16.mxu0 %v11892_v9  ;;  %v4244_v18 = vmax.f32 %v10357_v7, %v4116_v36  ;;  %v11608_v36 = vld [vmem:[#allocation3 + $0x100] ss:$16 sps:$4 sm:$0xff]  }
 0x482   : > { %v4245_v13 = vmax.f32 %v10358_v31, %v4117_v33  ;;  %v11609_v33 = vld [vmem:[#allocation3 + $0x124] ss:$16 sps:$4 sm:$0xff]  }
 0x483   : > { %v4246_v12 = vmax.f32 %v10359_v38, %v4118_v47  ;;  %v3944_v56 = vpop.f32.mrb[96].mxu0  ;;  %5342 = vmatmul.mubr.bf16.gmra.mrb[28].mxu1 %v11605_v55  ;;  %v11893_v55 = vld [vmem:[%s18356_s3 + $0x260] ss:$16 sps:$4 sm:$0xff]   ;;  %v11894_v47 = vld [vmem:[%s18356_s3 + $0x284] ss:$16 sps:$4 sm:$0xff]  }
 0x484   : > { %v4325_v14 = vpack.c.bf16 %v4245_v13, %v4243_v54  ;;  %v10360_v53 = vadd.f32 %v3944_v56, %v16419_v8  ;;  %v3946_v29 = vpop.f32.mrb[97].mxu0  ;;  %5351 = vmatprep.mubr.bf16.mxu1 %v11606_v63 }
 0x485   : > { %v10361_v39 = vadd.f32 %v3946_v29, %v16419_v8  ;;  %v3948_v50 = vpop.f32.mrb[98].mxu0  ;;  %v4326_v30 = vpack.c.bf16 %v4246_v12, %v4244_v18  ;;  %v16433_v18 = vpop.permute.xlu1 %2622 }
 0x486   : > { %v4119_v9 = vmul.f32 0.01, %v10360_v53  ;;  %v10362_v44 = vadd.f32 %v3948_v50, %v16422_v22  ;;  %v3950_v16 = vpop.f32.mrb[99].mxu0  ;;  %19608 = vst [vmem:[#allocation77_spill] sm:$0xff] %v16433_v18 }
 0x487   : > { %v4120_v31 = vmul.f32 0.01, %v10361_v39  ;;  %v10363_v7 = vadd.f32 %v3950_v16, %v16422_v22  ;;  %5606 = vmatprep.subr.bf16.mxu1 %v4326_v30  ;;  %v16436_v16 = vpop.permute.xlu0 %2626 }
 0x488   : > { %v4121_v38 = vmul.f32 0.01, %v10362_v44  ;;  %5607 = vmatpush1.bf16.msra.mxu1 %v4325_v14  ;;  %7863 = vmatmul.mubr.bf16.gmra.mrb[204].mxu0 %v11893_v55  ;;  %v4247_v54 = vmax.f32 %v10360_v53, %v4119_v9  ;;  %19609 = vst [vmem:[#allocation118_spill] sm:$0xff] %v16436_v16 }
 0x489   : > { %v4122_v63 = vmul.f32 0.01, %v10363_v7  ;;  %7872 = vmatprep.mubr.bf16.mxu0 %v11894_v47  ;;  %v4248_v12 = vmax.f32 %v10361_v39, %v4120_v31  ;;  %v11611_v31 = vld [vmem:[#allocation3 + $0x120] ss:$16 sps:$4 sm:$0xff]  }
 0x48a   : > { %v4249_v13 = vmax.f32 %v10362_v44, %v4121_v38  ;;  %v11612_v38 = vld [vmem:[#allocation3 + $0x144] ss:$16 sps:$4 sm:$0xff]  }
 0x48b   : > { %v4250_v56 = vmax.f32 %v10363_v7, %v4122_v63  ;;  %v3954_v29 = vpop.f32.mrb[100].mxu0  ;;  %5352 = vmatmul.mubr.bf16.gmra.mrb[32].mxu1 %v11608_v36  ;;  %v11895_v36 = vld [vmem:[%s18356_s3 + $0x280] ss:$16 sps:$4 sm:$0xff]   ;;  %v11896_v63 = vld [vmem:[%s18356_s3 + $0x2a4] ss:$16 sps:$4 sm:$0xff]  }
 0x48c   : > { %v4327_v14 = vpack.c.bf16 %v4249_v13, %v4247_v54  ;;  %v10364_v50 = vadd.f32 %v3954_v29, %v16433_v18  ;;  %v3956_v30 = vpop.f32.mrb[101].mxu0  ;;  %5361 = vmatprep.mubr.bf16.mxu1 %v11609_v33  ;;  %v16447_v13 = vpop.permute.xlu1 %2630 }
 0x48d   : > { %v10365_v55 = vadd.f32 %v3956_v30, %v16433_v18  ;;  %v3958_v22 = vpop.f32.mrb[102].mxu0  ;;  %v4328_v8 = vpack.c.bf16 %v4250_v56, %v4248_v12  ;;  %19610 = vst [vmem:[#allocation26_spill] sm:$0xff] %v16447_v13 }
 0x48e   : > { %v4123_v47 = vmul.f32 0.01, %v10364_v50  ;;  %v10366_v53 = vadd.f32 %v3958_v22, %v16436_v16  ;;  %v3960_v9 = vpop.f32.mrb[103].mxu0 }
 0x48f   : > { %v4124_v44 = vmul.f32 0.01, %v10365_v55  ;;  %v10367_v39 = vadd.f32 %v3960_v9, %v16436_v16  ;;  %5608 = vmatprep.subr.bf16.mxu1 %v4328_v8  ;;  %v16450_v9 = vpop.permute.xlu0 %2634 }
 0x490   : > { %v4125_v7 = vmul.f32 0.01, %v10366_v53  ;;  %5609 = vmatpush1.bf16.msra.mxu1 %v4327_v14  ;;  %7873 = vmatmul.mubr.bf16.gmra.mrb[208].mxu0 %v11895_v36  ;;  %v4251_v22 = vmax.f32 %v10364_v50, %v4123_v47  ;;  %19611 = vst [vmem:[#allocation24_spill] sm:$0xff] %v16450_v9 }
 0x491   : > { %v4126_v33 = vmul.f32 0.01, %v10367_v39  ;;  %7882 = vmatprep.mubr.bf16.mxu0 %v11896_v63  ;;  %v4252_v8 = vmax.f32 %v10365_v55, %v4124_v44  ;;  %v11614_v44 = vld [vmem:[#allocation3 + $0x140] ss:$16 sps:$4 sm:$0xff]  }
 0x492   : > { %v4253_v54 = vmax.f32 %v10366_v53, %v4125_v7  ;;  %v11615_v7 = vld [vmem:[#allocation3 + $0x164] ss:$16 sps:$4 sm:$0xff]  }
 0x493   : > { %v4254_v12 = vmax.f32 %v10367_v39, %v4126_v33  ;;  %v3964_v56 = vpop.f32.mrb[104].mxu0  ;;  %5362 = vmatmul.mubr.bf16.gmra.mrb[36].mxu1 %v11611_v31  ;;  %v11897_v31 = vld [vmem:[%s18356_s3 + $0x2a0] ss:$16 sps:$4 sm:$0xff]   ;;  %v11898_v33 = vld [vmem:[%s18356_s3 + $0x2c4] ss:$16 sps:$4 sm:$0xff]  }
 0x494   : > { %v4329_v29 = vpack.c.bf16 %v4253_v54, %v4251_v22  ;;  %v10368_v14 = vadd.f32 %v3964_v56, %v16447_v13  ;;  %v3966_v30 = vpop.f32.mrb[105].mxu0  ;;  %5371 = vmatprep.mubr.bf16.mxu1 %v11612_v38  ;;  %v16461_v54 = vpop.permute.xlu1 %2638 }
 0x495   : > { %v10369_v36 = vadd.f32 %v3966_v30, %v16447_v13  ;;  %v3968_v16 = vpop.f32.mrb[106].mxu0  ;;  %v4330_v18 = vpack.c.bf16 %v4254_v12, %v4252_v8  ;;  %19612 = vst [vmem:[#allocation92_spill] sm:$0xff] %v16461_v54 }
 0x496   : > { %v4127_v63 = vmul.f32 0.01, %v10368_v14  ;;  %v10370_v50 = vadd.f32 %v3968_v16, %v16450_v9  ;;  %v3970_v47 = vpop.f32.mrb[107].mxu0 }
 0x497   : > { %v4128_v53 = vmul.f32 0.01, %v10369_v36  ;;  %v10371_v55 = vadd.f32 %v3970_v47, %v16450_v9  ;;  %5610 = vmatprep.subr.bf16.mxu1 %v4330_v18  ;;  %v16464_v47 = vpop.permute.xlu0 %2642 }
 0x498   : > { %v4129_v39 = vmul.f32 0.01, %v10370_v50  ;;  %5611 = vmatpush1.bf16.msra.mxu1 %v4329_v29  ;;  %7883 = vmatmul.mubr.bf16.gmra.mrb[212].mxu0 %v11897_v31  ;;  %v4255_v16 = vmax.f32 %v10368_v14, %v4127_v63  ;;  %19613 = vst [vmem:[#allocation95_spill] sm:$0xff] %v16464_v47 }
 0x499   : > { %v4130_v38 = vmul.f32 0.01, %v10371_v55  ;;  %7892 = vmatprep.mubr.bf16.mxu0 %v11898_v33  ;;  %v4256_v18 = vmax.f32 %v10369_v36, %v4128_v53  ;;  %v11617_v53 = vld [vmem:[#allocation3 + $0x160] ss:$16 sps:$4 sm:$0xff]  }
 0x49a   : > { %v4257_v22 = vmax.f32 %v10370_v50, %v4129_v39  ;;  %v11618_v39 = vld [vmem:[#allocation3 + $0x184] ss:$16 sps:$4 sm:$0xff]  }
 0x49b   : > { %v4258_v8 = vmax.f32 %v10371_v55, %v4130_v38  ;;  %v3974_v12 = vpop.f32.mrb[108].mxu0  ;;  %5372 = vmatmul.mubr.bf16.gmra.mrb[40].mxu1 %v11614_v44  ;;  %v11899_v44 = vld [vmem:[%s18356_s3 + $0x2c0] ss:$16 sps:$4 sm:$0xff]   ;;  %v11900_v38 = vld [vmem:[%s18356_s3 + $0x2e4] ss:$16 sps:$4 sm:$0xff]  }
 0x49c   : > { %v4331_v56 = vpack.c.bf16 %v4257_v22, %v4255_v16  ;;  %v10372_v29 = vadd.f32 %v3974_v12, %v16461_v54  ;;  %v3976_v30 = vpop.f32.mrb[109].mxu0  ;;  %5381 = vmatprep.mubr.bf16.mxu1 %v11615_v7 }
 0x49d   : > { %v10373_v31 = vadd.f32 %v3976_v30, %v16461_v54  ;;  %v3978_v9 = vpop.f32.mrb[110].mxu0  ;;  %v4332_v13 = vpack.c.bf16 %v4258_v8, %v4256_v18  ;;  %v16481_v18 = vpop.permute.xlu1 %2646  ;;  %v16486_v30 = vld [vmem:[%s18355_s2 + $0x8] sm:$0xff] }
 0x49e   : > { %v4131_v33 = vmul.f32 0.01, %v10372_v29  ;;  %v10374_v14 = vadd.f32 %v3978_v9, %v16464_v47  ;;  %v3980_v63 = vpop.f32.mrb[111].mxu0  ;;  %v12219_v9 = vmov 2   ;;  %19614 = vst [vmem:[#allocation97_spill] sm:$0xff] %v16481_v18  ;;  %v16535_v54 = vld [vmem:[%s18355_s2 + $0x28] sm:$0xff] }
 0x49f   : > { %v4132_v50 = vmul.f32 0.01, %v10373_v31  ;;  %v10375_v36 = vadd.f32 %v3980_v63, %v16464_v47  ;;  %5612 = vmatprep.subr.bf16.mxu1 %v4332_v13  ;;  %11384 = vset.pattern.permute.xlu1 %v12219_v9  ;;  %v16478_v13 = vld [vmem:[%s18355_s2] sm:$0xff]  ;;  %v16490_v63 = vpop.permute.xlu0 %2650  ;;  %v16524_v47 = vld [vmem:[%s18355_s2 + $0x30] sm:$0xff] }
 0x4a0   : > { %v4133_v55 = vmul.f32 0.01, %v10374_v14  ;;  %5613 = vmatpush1.bf16.msra.mxu1 %v4331_v56  ;;  %7893 = vmatmul.mubr.bf16.gmra.mrb[216].mxu0 %v11899_v44  ;;  %v4259_v16 = vmax.f32 %v10372_v29, %v4131_v33  ;;  %19615 = vst [vmem:[#allocation94_spill] sm:$0xff] %v16490_v63 }
 0x4a1   : > { %v4134_v7 = vmul.f32 0.01, %v10375_v36  ;;  %7902 = vmatprep.mubr.bf16.mxu0 %v11900_v38  ;;  %4344 = vperm.xlu1 %11384, %v16478_v13   ;;  %v4260_v8 = vmax.f32 %v10373_v31, %v4132_v50 }
 0x4a2   : > { %v4261_v22 = vmax.f32 %v10374_v14, %v4133_v55  ;;  %11385 = vset.pattern.permute.xlu0 %v12219_v9  ;;  %v11620_v9 = vld [vmem:[#allocation3 + $0x180] ss:$16 sps:$4 sm:$0xff]  }
 0x4a3   : > { %v4262_v12 = vmax.f32 %v10375_v36, %v4134_v7  ;;  %v3984_v56 = vpop.f32.mrb[112].mxu0  ;;  %5382 = vmatmul.mubr.bf16.gmra.mrb[44].mxu1 %v11617_v53  ;;  %4348 = vperm.xlu0 %11385, %v16486_v30   ;;  %v16497_v7 = vld [vmem:[%s18355_s2 + $0x10] sm:$0xff] }
 0x4a4   : > { %v4333_v29 = vpack.c.bf16 %v4261_v22, %v4259_v16  ;;  %v10376_v33 = vadd.f32 %v3984_v56, %v16481_v18  ;;  %v3986_v14 = vpop.f32.mrb[113].mxu0  ;;  %5391 = vmatprep.mubr.bf16.mxu1 %v11618_v39  ;;  %v16504_v16 = vld [vmem:[%s18355_s2 + $0x20] sm:$0xff] }
 0x4a5   : > { %v10377_v55 = vadd.f32 %v3986_v14, %v16481_v18  ;;  %v3988_v31 = vpop.f32.mrb[114].mxu0  ;;  %v4334_v50 = vpack.c.bf16 %v4262_v12, %v4260_v8  ;;  %4352 = vperm.xlu1 %11384, %v16497_v7   ;;  %v11905_v8 = vld [vmem:[%s18356_s3 + $0x2e0] ss:$16 sps:$4 sm:$0xff]   ;;  %v11621_v12 = vld [vmem:[#allocation3 + $0x1a4] ss:$16 sps:$4 sm:$0xff]  }
 0x4a6   : > { %v4135_v36 = vmul.f32 0.01, %v10376_v33  ;;  %v10378_v53 = vadd.f32 %v3988_v31, %v16490_v63  ;;  %v3990_v44 = vpop.f32.mrb[115].mxu0  ;;  %v11906_v14 = vld [vmem:[%s18356_s3 + $0x304] ss:$16 sps:$4 sm:$0xff]  }
 0x4a7   : > { %v4136_v38 = vmul.f32 0.01, %v10377_v55  ;;  %v10379_v39 = vadd.f32 %v3990_v44, %v16490_v63  ;;  %5614 = vmatprep.subr.bf16.mxu1 %v4334_v50  ;;  %4360 = vperm.xlu0 %11385, %v16504_v16   ;;  %v16516_v44 = vld [vmem:[%s18355_s2 + $0x18] sm:$0xff] }
 0x4a8   : > { %v4137_v22 = vmul.f32 0.01, %v10378_v53  ;;  %5615 = vmatpush1.bf16.msra.mxu1 %v4333_v29  ;;  %7903 = vmatmul.mubr.bf16.gmra.mrb[220].mxu0 %v11905_v8  ;;  %v4263_v31 = vmax.f32 %v10376_v33, %v4135_v36  ;;  %v16519_v29 = vpop.permute.xlu1 %2654 }
 0x4a9   : > { %v4138_v56 = vmul.f32 0.01, %v10379_v39  ;;  %7912 = vmatprep.mubr.bf16.mxu0 %v11906_v14  ;;  %4356 = vperm.xlu1 %11384, %v16516_v44   ;;  %19616 = vst [vmem:[#allocation32_spill] sm:$0xff] %v16519_v29  ;;  %v4264_v63 = vmax.f32 %v10377_v55, %v4136_v38 }
 0x4aa   : > { %v4265_v50 = vmax.f32 %v10378_v53, %v4137_v22  ;;  %v16528_v22 = vpop.permute.xlu0 %2658 }
 0x4ab   : > { %v4266_v8 = vmax.f32 %v10379_v39, %v4138_v56  ;;  %v3994_v18 = vpop.f32.mrb[116].mxu0  ;;  %5392 = vmatmul.mubr.bf16.gmra.mrb[48].mxu1 %v11620_v9  ;;  %4368 = vperm.xlu0 %11385, %v16524_v47   ;;  %19617 = vst [vmem:[#allocation99_spill] sm:$0xff] %v16528_v22 }
 0x4ac   : > { %v4335_v33 = vpack.c.bf16 %v4265_v50, %v4263_v31  ;;  %v10380_v36 = vadd.f32 %v3994_v18, %v16519_v29  ;;  %v3996_v53 = vpop.f32.mrb[117].mxu0  ;;  %5401 = vmatprep.mubr.bf16.mxu1 %v11621_v12  ;;  %v11623_v31 = vld [vmem:[#allocation3 + $0x1a0] ss:$16 sps:$4 sm:$0xff]  }
 0x4ad   : > { %v10381_v14 = vadd.f32 %v3996_v53, %v16519_v29  ;;  %v3998_v55 = vpop.f32.mrb[118].mxu0  ;;  %v4336_v38 = vpack.c.bf16 %v4266_v8, %v4264_v63  ;;  %4364 = vperm.xlu1 %11384, %v16535_v54   ;;  %v16542_v63 = vld [vmem:[%s18355_s2 + $0x40] sm:$0xff]  ;;  %v16554_v29 = vld [vmem:[%s18355_s2 + $0x38] sm:$0xff] }
 0x4ae   : > { %v4139_v39 = vmul.f32 0.01, %v10380_v36  ;;  %v10382_v9 = vadd.f32 %v3998_v55, %v16528_v22  ;;  %v4000_v56 = vpop.f32.mrb[119].mxu0  ;;  %v11911_v8 = vld [vmem:[%s18356_s3 + $0x300] ss:$16 sps:$4 sm:$0xff]  }
 0x4af   : > { %v4140_v18 = vmul.f32 0.01, %v10381_v14  ;;  %v10383_v12 = vadd.f32 %v4000_v56, %v16528_v22  ;;  %5616 = vmatprep.subr.bf16.mxu1 %v4336_v38  ;;  %4376 = vperm.xlu0 %11385, %v16542_v63   ;;  %v11624_v53 = vld [vmem:[#allocation3 + $0x1c4] ss:$16 sps:$4 sm:$0xff]  }
 0x4b0   : > { %v4141_v50 = vmul.f32 0.01, %v10382_v9  ;;  %5617 = vmatpush1.bf16.msra.mxu1 %v4335_v33  ;;  %7913 = vmatmul.mubr.bf16.gmra.mrb[224].mxu0 %v11911_v8  ;;  %v11912_v38 = vld [vmem:[%s18356_s3 + $0x324] ss:$16 sps:$4 sm:$0xff]   ;;  %v4267_v56 = vmax.f32 %v10380_v36, %v4139_v39  ;;  %v16557_v33 = vpop.permute.xlu1 %2662 }
 0x4b1   : > { %v4142_v55 = vmul.f32 0.01, %v10383_v12  ;;  %7922 = vmatprep.mubr.bf16.mxu0 %v11912_v38  ;;  %4372 = vperm.xlu1 %11384, %v16554_v29   ;;  %19618 = vst [vmem:[#allocation102_spill] sm:$0xff] %v16557_v33  ;;  %v4268_v25 = vmax.f32 %v10381_v14, %v4140_v18 }
 0x4b2   : > { %v4269_v22 = vmax.f32 %v10382_v9, %v4141_v50  ;;  %v16566_v50 = vpop.permute.xlu0 %2666 }
 0x4b3   : > { %v4270_v8 = vmax.f32 %v10383_v12, %v4142_v55  ;;  %v4004_v10 = vpop.f32.mrb[120].mxu0  ;;  %5402 = vmatmul.mubr.bf16.gmra.mrb[52].mxu1 %v11623_v31  ;;  %4384 = vperm.xlu0 %11385, %v16562_v51   ;;  %19619 = vst [vmem:[#allocation29_spill] sm:$0xff] %v16566_v50 }
 0x4b4   : > { %v4337_v36 = vpack.c.bf16 %v4269_v22, %v4267_v56  ;;  %v10384_v39 = vadd.f32 %v4004_v10, %v16557_v33  ;;  %v4006_v9 = vpop.f32.mrb[121].mxu0  ;;  %5411 = vmatprep.mubr.bf16.mxu1 %v11624_v53  ;;  %v11626_v53 = vld [vmem:[#allocation3 + $0x1c0] ss:$16 sps:$4 sm:$0xff]  }
 0x4b5   : > { %v10385_v38 = vadd.f32 %v4006_v9, %v16557_v33  ;;  %v4008_v14 = vpop.f32.mrb[122].mxu0  ;;  %v4338_v18 = vpack.c.bf16 %v4270_v8, %v4268_v25  ;;  %4380 = vperm.xlu1 %11384, %v16573_v0   ;;  %v16580_v25 = vld [vmem:[%s18355_s2 + $0x60] sm:$0xff]  ;;  %v16592_v33 = vld [vmem:[%s18355_s2 + $0x58] sm:$0xff] }
 0x4b6   : > { %v4143_v12 = vmul.f32 0.01, %v10384_v39  ;;  %v10386_v31 = vadd.f32 %v4008_v14, %v16566_v50  ;;  %v4010_v55 = vpop.f32.mrb[123].mxu0  ;;  %v11917_v8 = vld [vmem:[%s18356_s3 + $0x320] ss:$16 sps:$4 sm:$0xff]  }
 0x4b7   : > { %v4144_v10 = vmul.f32 0.01, %v10385_v38  ;;  %v10387_v22 = vadd.f32 %v4010_v55, %v16566_v50  ;;  %5618 = vmatprep.subr.bf16.mxu1 %v4338_v18  ;;  %4392 = vperm.xlu0 %11385, %v16580_v25   ;;  %v11627_v9 = vld [vmem:[#allocation3 + $0x1e4] ss:$16 sps:$4 sm:$0xff]  }
 0x4b8   : > { %v4145_v56 = vmul.f32 0.01, %v10386_v31  ;;  %5619 = vmatpush1.bf16.msra.mxu1 %v4337_v36  ;;  %7923 = vmatmul.mubr.bf16.gmra.mrb[228].mxu0 %v11917_v8  ;;  %v11918_v18 = vld [vmem:[%s18356_s3 + $0x344] ss:$16 sps:$4 sm:$0xff]   ;;  %v4271_v55 = vmax.f32 %v10384_v39, %v4143_v12  ;;  %v16595_v36 = vpop.permute.xlu1 %2670 }
 0x4b9   : > { %v4146_v14 = vmul.f32 0.01, %v10387_v22  ;;  %7932 = vmatprep.mubr.bf16.mxu0 %v11918_v18  ;;  %4388 = vperm.xlu1 %11384, %v16592_v33   ;;  %19620 = vst [vmem:[#allocation104_spill] sm:$0xff] %v16595_v36  ;;  %v4272_v4 = vmax.f32 %v10385_v38, %v4144_v10 }
 0x4ba   : > { %v4273_v50 = vmax.f32 %v10386_v31, %v4145_v56  ;;  %v16604_v56 = vpop.permute.xlu0 %2674 }
 0x4bb   : > { %v4274_v8 = vmax.f32 %v10387_v22, %v4146_v14  ;;  %v4014_v60 = vpop.f32.mrb[124].mxu0  ;;  %5412 = vmatmul.mubr.bf16.gmra.mrb[56].mxu1 %v11626_v53  ;;  %4400 = vperm.xlu0 %11385, %v16600_v42   ;;  %19621 = vst [vmem:[#allocation101_spill] sm:$0xff] %v16604_v56 }
 0x4bc   : > { %v4339_v39 = vpack.c.bf16 %v4273_v50, %v4271_v55  ;;  %v10388_v12 = vadd.f32 %v4014_v60, %v16595_v36  ;;  %v4016_v31 = vpop.f32.mrb[125].mxu0  ;;  %5421 = vmatprep.mubr.bf16.mxu1 %v11627_v9  ;;  %v11629_v9 = vld [vmem:[#allocation3 + $0x1e0] ss:$16 sps:$4 sm:$0xff]  }
 0x4bd   : > { %v10389_v18 = vadd.f32 %v4016_v31, %v16595_v36  ;;  %v4018_v38 = vpop.f32.mrb[126].mxu0  ;;  %v4340_v10 = vpack.c.bf16 %v4274_v8, %v4272_v4  ;;  %4396 = vperm.xlu1 %11384, %v16611_v59   ;;  %v16618_v4 = vld [vmem:[%s18355_s2 + $0x80] sm:$0xff]  ;;  %v16630_v36 = vld [vmem:[%s18355_s2 + $0x78] sm:$0xff] }
 0x4be   : > { %v4147_v22 = vmul.f32 0.01, %v10388_v12  ;;  %v10390_v53 = vadd.f32 %v4018_v38, %v16604_v56  ;;  %v4020_v14 = vpop.f32.mrb[127].mxu0  ;;  %v11923_v8 = vld [vmem:[%s18356_s3 + $0x340] ss:$16 sps:$4 sm:$0xff]  }
 0x4bf   : > { %v4148_v60 = vmul.f32 0.01, %v10389_v18  ;;  %v10391_v50 = vadd.f32 %v4020_v14, %v16604_v56  ;;  %5620 = vmatprep.subr.bf16.mxu1 %v4340_v10  ;;  %4408 = vperm.xlu0 %11385, %v16618_v4   ;;  %v11630_v31 = vld [vmem:[#allocation3 + $0x204] ss:$16 sps:$4 sm:$0xff]  }
 0x4c0   : > { %v4149_v55 = vmul.f32 0.01, %v10390_v53  ;;  %5621 = vmatpush1.bf16.msra.mxu1 %v4339_v39  ;;  %7933 = vmatmul.mubr.bf16.gmra.mrb[232].mxu0 %v11923_v8  ;;  %v11924_v10 = vld [vmem:[%s18356_s3 + $0x364] ss:$16 sps:$4 sm:$0xff]   ;;  %v4275_v14 = vmax.f32 %v10388_v12, %v4147_v22  ;;  %v16642_v22 = vld [vmem:[%s18355_s2 + $0x88] sm:$0xff] }
 0x4c1   : > { %v4150_v38 = vmul.f32 0.01, %v10391_v50  ;;  %7942 = vmatprep.mubr.bf16.mxu0 %v11924_v10  ;;  %4404 = vperm.xlu1 %11384, %v16630_v36   ;;  %v4276_v39 = vmax.f32 %v10389_v18, %v4148_v60  ;;  %v16636_v8 = vld [vmem:[%s18355_s2 + $0x90] sm:$0xff] }
 0x4c2   : > { %v4277_v56 = vmax.f32 %v10390_v53, %v4149_v55  ;;  %v11632_v18 = vld [vmem:[#allocation3 + $0x200] ss:$16 sps:$4 sm:$0xff]   ;;  %v16672_v55 = vld [vmem:[%s18355_s2 + $0xa8] sm:$0xff] }
 0x4c3   : > { %v4278_v57 = vmax.f32 %v10391_v50, %v4150_v38  ;;  %5422 = vmatmul.mubr.bf16.gmra.mrb[60].mxu1 %v11629_v9  ;;  %4416 = vperm.xlu0 %11385, %v16636_v8   ;;  %v16648_v53 = vld [vmem:[%s18355_s2 + $0xa0] sm:$0xff]  ;;  %v16660_v50 = vld [vmem:[%s18355_s2 + $0x98] sm:$0xff]  ;;  %v16666_v9 = vld [vmem:[%s18355_s2 + $0xb0] sm:$0xff] }
 0x4c4   : > { %v4341_v10 = vpack.c.bf16 %v4277_v56, %v4275_v14  ;;  %5431 = vmatprep.mubr.bf16.mxu1 %v11630_v31  ;;  %v11633_v56 = vld [vmem:[#allocation3 + $0x224] ss:$16 sps:$4 sm:$0xff]   ;;  %v11635_v31 = vld [vmem:[#allocation3 + $0x220] ss:$16 sps:$4 sm:$0xff]  }
 0x4c5   : > { %v4342_v12 = vpack.c.bf16 %v4278_v57, %v4276_v39  ;;  %4412 = vperm.xlu1 %11384, %v16642_v22   ;;  %v11929_v57 = vld [vmem:[%s18356_s3 + $0x360] ss:$16 sps:$4 sm:$0xff]   ;;  %v11930_v60 = vld [vmem:[%s18356_s3 + $0x384] ss:$16 sps:$4 sm:$0xff]  }
 0x4c6   : > { %v16678_v38 = vld [vmem:[%s18355_s2 + $0xc0] sm:$0xff] }
 0x4c7   : > { %5622 = vmatprep.subr.bf16.mxu1 %v4342_v12  ;;  %4424 = vperm.xlu0 %11385, %v16648_v53   ;;  %v11935_v14 = vld [vmem:[%s18356_s3 + $0x380] ss:$16 sps:$4 sm:$0xff]   ;;  %v11636_v39 = vld [vmem:[#allocation3 + $0x244] ss:$16 sps:$4 sm:$0xff]  }
 0x4c8   : > { %5623 = vmatpush1.bf16.msra.mxu1 %v4341_v10  ;;  %7943 = vmatmul.mubr.bf16.gmra.mrb[236].mxu0 %v11929_v57  ;;  %v11936_v10 = vld [vmem:[%s18356_s3 + $0x3a4] ss:$16 sps:$4 sm:$0xff]   ;;  %v16690_v12 = vld [vmem:[%s18355_s2 + $0xb8] sm:$0xff]  ;;  %v16702_v57 = vld [vmem:[%s18355_s2 + $0xc8] sm:$0xff] }
 0x4c9   : > { %7952 = vmatprep.mubr.bf16.mxu0 %v11930_v60  ;;  %4420 = vperm.xlu1 %11384, %v16660_v50   ;;  %v16708_v60 = vld [vmem:[%s18355_s2 + $0xe0] sm:$0xff] }
 0x4cb   : > { %5432 = vmatmul.mubr.bf16.gmra.mrb[64].mxu1 %v11632_v18  ;;  %4432 = vperm.xlu0 %11385, %v16666_v9   ;;  %v16696_v18 = vld [vmem:[%s18355_s2 + $0xd0] sm:$0xff] }
 0x4cc   : > { %5441 = vmatprep.mubr.bf16.mxu1 %v11633_v56  ;;  %v11638_v56 = vld [vmem:[#allocation3 + $0x240] ss:$16 sps:$4 sm:$0xff]  }
 0x4cd   : > { %4428 = vperm.xlu1 %11384, %v16672_v55  }
 0x4cf   : > { %4440 = vperm.xlu0 %11385, %v16678_v38  }
 0x4d0   : > { %7953 = vmatmul.mubr.bf16.gmra.mrb[240].mxu0 %v11935_v14  ;;  %v11639_v14 = vld [vmem:[#allocation3 + $0x264] ss:$16 sps:$4 sm:$0xff]  }
 0x4d1   : > { %7962 = vmatprep.mubr.bf16.mxu0 %v11936_v10  ;;  %4436 = vperm.xlu1 %11384, %v16690_v12   ;;  %v16720_v10 = vld [vmem:[%s18355_s2 + $0xd8] sm:$0xff] }
 0x4d3   : > { %5442 = vmatmul.mubr.bf16.gmra.mrb[68].mxu1 %v11635_v31  ;;  %4448 = vperm.xlu0 %11385, %v16696_v18   ;;  %v11941_v31 = vld [vmem:[%s18356_s3 + $0x3a0] ss:$16 sps:$4 sm:$0xff]  }
 0x4d4   : > { %5451 = vmatprep.mubr.bf16.mxu1 %v11636_v39  ;;  %v11942_v39 = vld [vmem:[%s18356_s3 + $0x3c4] ss:$16 sps:$4 sm:$0xff]  }
 0x4d5   : > { %4444 = vperm.xlu1 %11384, %v16702_v57  }
 0x4d7   : > { %4456 = vperm.xlu0 %11385, %v16708_v60  }
 0x4d8   : > { %7963 = vmatmul.mubr.bf16.gmra.mrb[244].mxu0 %v11941_v31  ;;  %v16732_v31 = vld [vmem:[%s18355_s2 + $0xe8] sm:$0xff] }
 0x4d9   : > { %7972 = vmatprep.mubr.bf16.mxu0 %v11942_v39  ;;  %4452 = vperm.xlu1 %11384, %v16720_v10   ;;  %v11641_v39 = vld [vmem:[#allocation3 + $0x260] ss:$16 sps:$4 sm:$0xff]  }
 0x4db   : > { %5452 = vmatmul.mubr.bf16.gmra.mrb[72].mxu1 %v11638_v56  ;;  %4464 = vperm.xlu0 %11385, %v16726_v27   ;;  %v16738_v56 = vld [vmem:[%s18355_s2 + $0x100] sm:$0xff] }
 0x4dc   : > { %5461 = vmatprep.mubr.bf16.mxu1 %v11639_v14  ;;  %v11642_v14 = vld [vmem:[#allocation3 + $0x284] ss:$16 sps:$4 sm:$0xff]  }
 0x4dd   : > { %4460 = vperm.xlu1 %11384, %v16732_v31  }
 0x4df   : > { %4472 = vperm.xlu0 %11385, %v16738_v56  }
 0x4e0   : > { %7973 = vmatmul.mubr.bf16.gmra.mrb[248].mxu0 %v11947_v35  ;;  %v11644_v35 = vld [vmem:[#allocation3 + $0x280] ss:$16 sps:$4 sm:$0xff]  }
 0x4e1   : > { %7982 = vmatprep.mubr.bf16.mxu0 %v11948_v24  ;;  %4468 = vperm.xlu1 %11384, %v16750_v11   ;;  %v16762_v24 = vld [vmem:[%s18355_s2 + $0x108] sm:$0xff] }
 0x4e3   : > { %5462 = vmatmul.mubr.bf16.gmra.mrb[76].mxu1 %v11641_v39  ;;  %4480 = vperm.xlu0 %11385, %v16756_v23   ;;  %v16768_v39 = vld [vmem:[%s18355_s2 + $0x120] sm:$0xff] }
 0x4e4   : > { %5471 = vmatprep.mubr.bf16.mxu1 %v11642_v14  ;;  %v11645_v14 = vld [vmem:[#allocation3 + $0x2a4] ss:$16 sps:$4 sm:$0xff]  }
 0x4e5   : > { %4476 = vperm.xlu1 %11384, %v16762_v24  }
 0x4e7   : > { %4488 = vperm.xlu0 %11385, %v16768_v39  }
 0x4e8   : > { %7983 = vmatmul.mubr.bf16.gmra.mrb[252].mxu0 %v11953_v21  ;;  %v11647_v21 = vld [vmem:[#allocation3 + $0x2a0] ss:$16 sps:$4 sm:$0xff]  }
 0x4e9   : > { %8025 = vmatprep.mubr.bf16.mxu0 %v11954_v15  ;;  %4484 = vperm.xlu1 %11384, %v16780_v45   ;;  %v16792_v15 = vld [vmem:[%s18355_s2 + $0x128] sm:$0xff] }
 0x4eb   : > { %5472 = vmatmul.mubr.bf16.gmra.mrb[80].mxu1 %v11644_v35  ;;  %4496 = vperm.xlu0 %11385, %v16786_v34   ;;  %v16798_v35 = vld [vmem:[%s18355_s2 + $0x140] sm:$0xff] }
 0x4ec   : > { %5481 = vmatprep.mubr.bf16.mxu1 %v11645_v14  ;;  %v11648_v14 = vld [vmem:[#allocation3 + $0x2c4] ss:$16 sps:$4 sm:$0xff]  }
 0x4ed   : > { %4492 = vperm.xlu1 %11384, %v16792_v15  }
 0x4ef   : > { %4504 = vperm.xlu0 %11385, %v16798_v35  }
 0x4f0   : > { %8026 = vmatmul.mubr.bf16.vlgmr.msra.gmra.mrb[128].mxu0 %v11959_v1  ;;  %v11650_v1 = vld [vmem:[#allocation3 + $0x2c0] ss:$16 sps:$4 sm:$0xff]  }
 0x4f1   : > { %8035 = vmatprep.mubr.bf16.mxu0 %v11960_v3  ;;  %4500 = vperm.xlu1 %11384, %v16810_v20   ;;  %v16822_v3 = vld [vmem:[%s18355_s2 + $0x148] sm:$0xff] }
 0x4f3   : > { %5482 = vmatmul.mubr.bf16.gmra.mrb[84].mxu1 %v11647_v21  ;;  %4512 = vperm.xlu0 %11385, %v16816_v17   ;;  %v16828_v21 = vld [vmem:[%s18355_s2 + $0x160] sm:$0xff] }
 0x4f4   : > { %5491 = vmatprep.mubr.bf16.mxu1 %v11648_v14  ;;  %v11651_v14 = vld [vmem:[#allocation3 + $0x2e4] ss:$16 sps:$4 sm:$0xff]  }
 0x4f5   : > { %4508 = vperm.xlu1 %11384, %v16822_v3  }
 0x4f7   : > { %4520 = vperm.xlu0 %11385, %v16828_v21  }
 0x4f8   : > { %8036 = vmatmul.mubr.bf16.gmra.mrb[132].mxu0 %v11965_v19  ;;  %v11653_v19 = vld [vmem:[#allocation3 + $0x2e0] ss:$16 sps:$4 sm:$0xff]  }
 0x4f9   : > { %8045 = vmatprep.mubr.bf16.mxu0 %v11966_v62  ;;  %4516 = vperm.xlu1 %11384, %v16840_v61   ;;  %v16852_v62 = vld [vmem:[%s18355_s2 + $0x168] sm:$0xff] }
 0x4fb   : > { %5492 = vmatmul.mubr.bf16.gmra.mrb[88].mxu1 %v11650_v1  ;;  %4528 = vperm.xlu0 %11385, %v16846_v2   ;;  %v16858_v1 = vld [vmem:[%s18355_s2 + $0x180] sm:$0xff] }
 0x4fc   : > { %5501 = vmatprep.mubr.bf16.mxu1 %v11651_v14  ;;  %v11654_v14 = vld [vmem:[#allocation3 + $0x304] ss:$16 sps:$4 sm:$0xff]  }
 0x4fd   : > { %4524 = vperm.xlu1 %11384, %v16852_v62  }
 0x4ff   : > { %4536 = vperm.xlu0 %11385, %v16858_v1  }
 0x500   : > { %8046 = vmatmul.mubr.bf16.gmra.mrb[136].mxu0 %v11971_v58  ;;  %v11656_v58 = vld [vmem:[#allocation3 + $0x300] ss:$16 sps:$4 sm:$0xff]  }
 0x501   : > { %8055 = vmatprep.mubr.bf16.mxu0 %v11972_v6  ;;  %4532 = vperm.xlu1 %11384, %v16870_v28   ;;  %v16882_v6 = vld [vmem:[%s18355_s2 + $0x188] sm:$0xff] }
 0x503   : > { %5502 = vmatmul.mubr.bf16.gmra.mrb[92].mxu1 %v11653_v19  ;;  %4544 = vperm.xlu0 %11385, %v16876_v40   ;;  %v16888_v19 = vld [vmem:[%s18355_s2 + $0x1a0] sm:$0xff] }
 0x504   : > { %5511 = vmatprep.mubr.bf16.mxu1 %v11654_v14  ;;  %v11657_v14 = vld [vmem:[#allocation3 + $0x324] ss:$16 sps:$4 sm:$0xff]  }
 0x505   : > { %4540 = vperm.xlu1 %11384, %v16882_v6  }
 0x507   : > { %4552 = vperm.xlu0 %11385, %v16888_v19  }
 0x508   : > { %8056 = vmatmul.mubr.bf16.gmra.mrb[140].mxu0 %v11977_v41  ;;  %v11659_v41 = vld [vmem:[#allocation3 + $0x320] ss:$16 sps:$4 sm:$0xff]  }
 0x509   : > { %8065 = vmatprep.mubr.bf16.mxu0 %v11978_v48  ;;  %4548 = vperm.xlu1 %11384, %v16900_v52   ;;  %v16912_v48 = vld [vmem:[%s18355_s2 + $0x1a8] sm:$0xff] }
 0x50b   : > { %5512 = vmatmul.mubr.bf16.gmra.mrb[96].mxu1 %v11656_v58  ;;  %4560 = vperm.xlu0 %11385, %v16906_v49   ;;  %v16918_v58 = vld [vmem:[%s18355_s2 + $0x1c0] sm:$0xff] }
 0x50c   : > { %5521 = vmatprep.mubr.bf16.mxu1 %v11657_v14  ;;  %19622 = vst [vmem:[#allocation79_spill] sm:$0xff] %v16918_v58  ;;  %v11660_v14 = vld [vmem:[#allocation3 + $0x344] ss:$16 sps:$4 sm:$0xff]  }
 0x50d   : > { %4556 = vperm.xlu1 %11384, %v16912_v48  }
 0x50f   : > { %4568 = vperm.xlu0 %11385, %v16918_v58   ;;  %v11995_v58 = vld [vmem:[%s18356_s3 + $0xec] ss:$16 sps:$4 sm:$0xff]  }
 0x510   : > { %8066 = vmatmul.mubr.bf16.gmra.mrb[144].mxu0 %v11983_v43  ;;  %v11662_v43 = vld [vmem:[#allocation3 + $0x340] ss:$16 sps:$4 sm:$0xff]  }
 0x511   : > { %8075 = vmatprep.mubr.bf16.mxu0 %v11984_v26  ;;  %4564 = vperm.xlu1 %11384, %v16930_v32   ;;  %v16942_v26 = vld [vmem:[%s18355_s2 + $0x1c8] sm:$0xff] }
 0x513   : > { %5522 = vmatmul.mubr.bf16.gmra.mrb[100].mxu1 %v11659_v41  ;;  %4576 = vperm.xlu0 %11385, %v16936_v46   ;;  %v16948_v41 = vld [vmem:[%s18355_s2 + $0x1e0] sm:$0xff]  ;;  %v16960_v46 = vld [vmem:[%s18355_s2 + $0x1d8] sm:$0xff] }
 0x514   : > { %5531 = vmatprep.mubr.bf16.mxu1 %v11660_v14  ;;  %19624 = vst [vmem:[#allocation109_spill] sm:$0xff] %v16948_v41  ;;  %v11663_v14 = vld [vmem:[#allocation3 + $0x364] ss:$16 sps:$4 sm:$0xff]   ;;  %19625 = vst [vmem:[#allocation35_spill] sm:$0xff] %v16960_v46 }
 0x515   : > { %4572 = vperm.xlu1 %11384, %v16942_v26  }
 0x517   : > { %4584 = vperm.xlu0 %11385, %v16948_v41   ;;  %v16966_v41 = vld [vmem:[%s18355_s2 + $0x1f0] sm:$0xff] }
 0x518   : > { %8076 = vmatmul.mubr.bf16.gmra.mrb[148].mxu0 %v11989_v37  ;;  %19626 = vst [vmem:[#allocation106_spill] sm:$0xff] %v16966_v41  ;;  %v11665_v37 = vld [vmem:[#allocation3 + $0x360] ss:$16 sps:$4 sm:$0xff]  }
 0x519   : > { %8085 = vmatprep.mubr.bf16.mxu0 %v11990_v5  ;;  %4580 = vperm.xlu1 %11384, %v16960_v46   ;;  %v16972_v5 = vld [vmem:[%s18355_s2 + $0x1e8] sm:$0xff] }
 0x51a   : > { %19627 = vst [vmem:[#allocation108_spill] sm:$0xff] %v16972_v5  ;;  %v11666_v46 = vld [vmem:[#allocation3 + $0x384] ss:$16 sps:$4 sm:$0xff]  }
 0x51b   : > { %5532 = vmatmul.mubr.bf16.gmra.mrb[104].mxu1 %v11662_v43  ;;  %4592 = vperm.xlu0 %11385, %v16966_v41   ;;  %v11994_v43 = vld [vmem:[%s18356_s3 + $0xc8] ss:$16 sps:$4 sm:$0xff]   ;;  %v12220_v41 = vmov 3  }
 0x51c   : > { %5541 = vmatprep.mubr.bf16.mxu1 %v11663_v14  ;;  %v16984_v14 = vld [vmem:[%s18355_s2 + $0x1f8] sm:$0xff] }
 0x51d   : > { %4588 = vperm.xlu1 %11384, %v16972_v5   ;;  %19628 = vst [vmem:[#allocation28_spill] sm:$0xff] %v16984_v14  ;;  %v11669_v5 = vld [vmem:[#allocation3 + $0x3a4] ss:$16 sps:$4 sm:$0xff]  }
 0x51f   : > { %11386 = vset.pattern.permute.xlu0 %v12220_v41 }
 0x520   : > { %8086 = vmatmul.mubr.bf16.gmra.mrb[152].mxu0 %v11994_v43  ;;  %6202 = vperm.xlu0 %11386, %v16478_v13   ;;  %v11668_v43 = vld [vmem:[#allocation3 + $0x380] ss:$16 sps:$4 sm:$0xff]   ;;  %v11999_v13 = vld [vmem:[%s18356_s3 + $0x108] ss:$16 sps:$4 sm:$0xff]  }
 0x521   : > { %8095 = vmatprep.mubr.bf16.mxu0 %v11995_v58  ;;  %4596 = vperm.xlu1 %11384, %v16984_v14   ;;  %v11997_v58 = vld [vmem:[%s18356_s3 + $0xe8] ss:$16 sps:$4 sm:$0xff]   ;;  %v11998_v14 = vld [vmem:[%s18356_s3 + $0x10c] ss:$16 sps:$4 sm:$0xff]  }
 0x523   : > { %5542 = vmatmul.mubr.bf16.gmra.mrb[108].mxu1 %v11665_v37  ;;  %v12009_v37 = vld [vmem:[%s18356_s3 + $0x1a8] ss:$16 sps:$4 sm:$0xff]  }
 0x524   : > { %5551 = vmatprep.mubr.bf16.mxu1 %v11666_v46  ;;  %6214 = vperm.xlu0 %11386, %v16516_v44   ;;  %v11671_v46 = vld [vmem:[#allocation3 + $0x3a0] ss:$16 sps:$4 sm:$0xff]   ;;  %v12002_v44 = vld [vmem:[%s18356_s3 + $0x14c] ss:$16 sps:$4 sm:$0xff]  }
 0x525   : > { %11387 = vset.pattern.permute.xlu1 %v12220_v41  ;;  %v12000_v41 = vld [vmem:[%s18356_s3 + $0x12c] ss:$16 sps:$4 sm:$0xff]  }
 0x526   : > { %6206 = vperm.xlu1 %11387, %v16486_v30   ;;  %v11672_v30 = vld [vmem:[#allocation3 + $0x3c4] ss:$16 sps:$4 sm:$0xff]  }
 0x528   : > { %8096 = vmatmul.mubr.bf16.gmra.mrb[156].mxu0 %v11997_v58  ;;  %6222 = vperm.xlu0 %11386, %v16535_v54   ;;  %v11674_v54 = vld [vmem:[#allocation3 + $0x3c0] ss:$16 sps:$4 sm:$0xff]   ;;  %v12011_v58 = vld [vmem:[%s18356_s3 + $0x1c8] ss:$16 sps:$4 sm:$0xff]  }
 0x529   : > { %8105 = vmatprep.mubr.bf16.mxu0 %v11998_v14  ;;  %v11687_v14 = vld [vmem:[#allocation3 + $0x6c] ss:$16 sps:$4 sm:$0xff]  }
 0x52a   : > { %6210 = vperm.xlu1 %11387, %v16497_v7   ;;  %v12001_v7 = vld [vmem:[%s18356_s3 + $0x128] ss:$16 sps:$4 sm:$0xff]  }
 0x52b   : > { %5552 = vmatmul.mubr.bf16.gmra.mrb[112].mxu1 %v11668_v43 }
 0x52c   : > { %5561 = vmatprep.mubr.bf16.mxu1 %v11669_v5  ;;  %6230 = vperm.xlu0 %11386, %v16554_v29   ;;  %v11680_v29 = vld [vmem:[#allocation3 + $0xc] ss:$16 sps:$4 sm:$0xff]  }
 0x52d   : > { %v11684_v5 = vld [vmem:[#allocation3 + $0x4c] ss:$16 sps:$4 sm:$0xff]  }
 0x52e   : > { %6218 = vperm.xlu1 %11387, %v16504_v16   ;;  %v11675_v16 = vld [vmem:[#allocation3 + $0x3e4] ss:$16 sps:$4 sm:$0xff]  }
 0x530   : > { %8106 = vmatmul.mubr.bf16.gmra.mrb[160].mxu0 %v11999_v13  ;;  %6238 = vperm.xlu0 %11386, %v16573_v0   ;;  %v11677_v0 = vld [vmem:[#allocation3 + $0x3e0] ss:$16 sps:$4 sm:$0xff]  }
 0x531   : > { %8115 = vmatprep.mubr.bf16.mxu0 %v12000_v41  ;;  %v11693_v41 = vld [vmem:[#allocation3 + $0xac] ss:$16 sps:$4 sm:$0xff]  }
 0x532   : > { %6226 = vperm.xlu1 %11387, %v16524_v47   ;;  %v12003_v47 = vld [vmem:[%s18356_s3 + $0x148] ss:$16 sps:$4 sm:$0xff]  }
 0x533   : > { %5562 = vmatmul.mubr.bf16.gmra.mrb[116].mxu1 %v11671_v46  ;;  %v11690_v46 = vld [vmem:[#allocation3 + $0x8c] ss:$16 sps:$4 sm:$0xff]  }
 0x534   : > { %5571 = vmatprep.mubr.bf16.mxu1 %v11672_v30  ;;  %6246 = vperm.xlu0 %11386, %v16592_v33   ;;  %v11681_v33 = vld [vmem:[#allocation3 + $0x2c] ss:$16 sps:$4 sm:$0xff]   ;;  %v12013_v30 = vld [vmem:[%s18356_s3 + $0x1e8] ss:$16 sps:$4 sm:$0xff]  }
 0x536   : > { %6234 = vperm.xlu1 %11387, %v16542_v63   ;;  %v12004_v63 = vld [vmem:[%s18356_s3 + $0x16c] ss:$16 sps:$4 sm:$0xff]  }
 0x538   : > { %8116 = vmatmul.mubr.bf16.gmra.mrb[164].mxu0 %v12001_v7  ;;  %6254 = vperm.xlu0 %11386, %v16611_v59   ;;  %v11678_v59 = vld [vmem:[#allocation3 + $0x8] ss:$16 sps:$4 sm:$0xff]   ;;  %v11696_v7 = vld [vmem:[#allocation3 + $0xcc] ss:$16 sps:$4 sm:$0xff]  }
 0x539   : > { %8125 = vmatprep.mubr.bf16.mxu0 %v12002_v44  ;;  %v12017_v44 = vld [vmem:[%s18356_s3 + $0x228] ss:$16 sps:$4 sm:$0xff]  }
 0x53a   : > { %6242 = vperm.xlu1 %11387, %v16562_v51   ;;  %v12005_v51 = vld [vmem:[%s18356_s3 + $0x168] ss:$16 sps:$4 sm:$0xff]  }
 0x53b   : > { %5572 = vmatmul.mubr.bf16.gmra.mrb[120].mxu1 %v11674_v54  ;;  %v12015_v54 = vld [vmem:[%s18356_s3 + $0x208] ss:$16 sps:$4 sm:$0xff]  }
 0x53c   : > { %5581 = vmatprep.mubr.bf16.mxu1 %v11675_v16  ;;  %6262 = vperm.xlu0 %11386, %v16630_v36   ;;  %v17035_v36 = vpop.permute.xlu1 %4344 }
 0x53d   : > { %19629 = vst [vmem:[#allocation111_spill] sm:$0xff] %v17035_v36 }
 0x53e   : > { %6250 = vperm.xlu1 %11387, %v16580_v25   ;;  %v12006_v25 = vld [vmem:[%s18356_s3 + $0x18c] ss:$16 sps:$4 sm:$0xff]  }
 0x540   : > { %8126 = vmatmul.mubr.bf16.gmra.mrb[168].mxu0 %v12003_v47  ;;  %6270 = vperm.xlu0 %11386, %v16642_v22   ;;  %v12007_v22 = vld [vmem:[%s18356_s3 + $0x188] ss:$16 sps:$4 sm:$0xff]  }
 0x541   : > { %8135 = vmatprep.mubr.bf16.mxu0 %v12004_v63  ;;  %v11702_v63 = vld [vmem:[#allocation3 + $0x10c] ss:$16 sps:$4 sm:$0xff]  }
 0x542   : > { %6258 = vperm.xlu1 %11387, %v16600_v42   ;;  %v11683_v42 = vld [vmem:[#allocation3 + $0x28] ss:$16 sps:$4 sm:$0xff]  }
 0x543   : > { %5582 = vmatmul.mubr.bf16.gmra.mrb[124].mxu1 %v11677_v0  ;;  %v11699_v0 = vld [vmem:[#allocation3 + $0xec] ss:$16 sps:$4 sm:$0xff]  }
 0x544   : > { %5624 = vmatprep.mubr.bf16.mxu1 %v11680_v29  ;;  %6278 = vperm.xlu0 %11386, %v16660_v50   ;;  %v12008_v50 = vld [vmem:[%s18356_s3 + $0x1ac] ss:$16 sps:$4 sm:$0xff]   ;;  %v12019_v29 = vld [vmem:[%s18356_s3 + $0x248] ss:$16 sps:$4 sm:$0xff]  }
 0x546   : > { %6266 = vperm.xlu1 %11387, %v16618_v4   ;;  %v17040_v4 = vpop.permute.xlu1 %4352 }
 0x547   : > { %19630 = vst [vmem:[#allocation117_spill] sm:$0xff] %v17040_v4 }
 0x548   : > { %8136 = vmatmul.mubr.bf16.gmra.mrb[172].mxu0 %v12005_v51  ;;  %6286 = vperm.xlu0 %11386, %v16672_v55   ;;  %v11686_v55 = vld [vmem:[#allocation3 + $0x48] ss:$16 sps:$4 sm:$0xff]   ;;  %v11705_v51 = vld [vmem:[#allocation3 + $0x12c] ss:$16 sps:$4 sm:$0xff]  }
 0x549   : > { %8145 = vmatprep.mubr.bf16.mxu0 %v12006_v25  ;;  %v12023_v25 = vld [vmem:[%s18356_s3 + $0x288] ss:$16 sps:$4 sm:$0xff]  }
 0x54a   : > { %6274 = vperm.xlu1 %11387, %v16636_v8   ;;  %v17050_v8 = vpop.permute.xlu0 %4348 }
 0x54b   : > { %5625 = vmatmul.mubr.bf16.vlgmr.msra.gmra.mrb[0].mxu1 %v11678_v59  ;;  %v12021_v59 = vld [vmem:[%s18356_s3 + $0x268] ss:$16 sps:$4 sm:$0xff]  }
 0x54c   : > { %5634 = vmatprep.mubr.bf16.mxu1 %v11681_v33  ;;  %6294 = vperm.xlu0 %11386, %v16690_v12   ;;  %v12010_v12 = vld [vmem:[%s18356_s3 + $0x1cc] ss:$16 sps:$4 sm:$0xff]  }
 0x54e   : > { %6282 = vperm.xlu1 %11387, %v16648_v53   ;;  %v17053_v53 = vpop.permute.xlu1 %4356 }
 0x54f   : > { %19631 = vst [vmem:[#allocation82_spill] sm:$0xff] %v17053_v53 }
 0x550   : > { %8146 = vmatmul.mubr.bf16.gmra.mrb[176].mxu0 %v12007_v22  ;;  %6302 = vperm.xlu0 %11386, %v16702_v57  }
 0x551   : > { %8155 = vmatprep.mubr.bf16.mxu0 %v12008_v50  ;;  %v12025_v50 = vld [vmem:[%s18356_s3 + $0x2a8] ss:$16 sps:$4 sm:$0xff]  }
 0x552   : > { %6290 = vperm.xlu1 %11387, %v16666_v9   ;;  %v17063_v9 = vpop.permute.xlu0 %4360  ;;  %v17066_v57 = vpop.permute.xlu1 %4364 }
 0x553   : > { %5635 = vmatmul.mubr.bf16.gmra.mrb[4].mxu1 %v11683_v42  ;;  %19632 = vst [vmem:[#allocation115_spill] sm:$0xff] %v17063_v9  ;;  %19633 = vst [vmem:[#allocation37_spill] sm:$0xff] %v17066_v57  ;;  %v11708_v42 = vld [vmem:[#allocation3 + $0x14c] ss:$16 sps:$4 sm:$0xff]  }
 0x554   : > { %5644 = vmatprep.mubr.bf16.mxu1 %v11684_v5  ;;  %6310 = vperm.xlu0 %11386, %v16720_v10   ;;  %v12012_v10 = vld [vmem:[%s18356_s3 + $0x1ec] ss:$16 sps:$4 sm:$0xff]  }
 0x555   : > { %v19648_v5 = vld [vmem:[#allocation79_spill] sm:$0xff] }
 0x556   : > { %6298 = vperm.xlu1 %11387, %v16678_v38   ;;  %v11689_v38 = vld [vmem:[#allocation3 + $0x68] ss:$16 sps:$4 sm:$0xff]   ;;  %v17070_v43 = vpop.permute.xlu0 %4368 }
 0x558   : > { %8156 = vmatmul.mubr.bf16.gmra.mrb[180].mxu0 %v12009_v37  ;;  %6318 = vperm.xlu0 %11386, %v16732_v31   ;;  %v11692_v31 = vld [vmem:[#allocation3 + $0x88] ss:$16 sps:$4 sm:$0xff]   ;;  %v19650_v37 = vld [vmem:[#allocation122_spill] sm:$0xff] }
 0x559   : > { %8165 = vmatprep.mubr.bf16.mxu0 %v12010_v12  ;;  %v19652_v12 = vld [vmem:[#allocation108_spill] sm:$0xff] }
 0x55a   : > { %6306 = vperm.xlu1 %11387, %v16696_v18   ;;  %v17079_v18 = vpop.permute.xlu1 %4372 }
 0x55b   : > { %5645 = vmatmul.mubr.bf16.gmra.mrb[8].mxu1 %v11686_v55  ;;  %v11711_v55 = vld [vmem:[#allocation3 + $0x16c] ss:$16 sps:$4 sm:$0xff]  }
 0x55c   : > { %5654 = vmatprep.mubr.bf16.mxu1 %v11687_v14  ;;  %6326 = vperm.xlu0 %11386, %v16750_v11   ;;  %v12014_v11 = vld [vmem:[%s18356_s3 + $0x20c] ss:$16 sps:$4 sm:$0xff]  }
 0x55e   : > { %6314 = vperm.xlu1 %11387, %v16708_v60   ;;  %v17083_v60 = vpop.permute.xlu0 %4376  ;;  %v17086_v13 = vpop.permute.xlu1 %4380 }
 0x55f   : > { %19634 = vst [vmem:[#allocation114_spill] sm:$0xff] %v17086_v13 }
 0x560   : > { %8166 = vmatmul.mubr.bf16.gmra.mrb[184].mxu0 %v12011_v58  ;;  %6334 = vperm.xlu0 %11386, %v16762_v24   ;;  %v11695_v24 = vld [vmem:[#allocation3 + $0xa8] ss:$16 sps:$4 sm:$0xff]  }
 0x561   : > { %8175 = vmatprep.mubr.bf16.mxu0 %v12012_v10  ;;  %v19653_v58 = vld [vmem:[#allocation109_spill] sm:$0xff] }
 0x562   : > { %6322 = vperm.xlu1 %11387, %v16726_v27   ;;  %v17096_v27 = vpop.permute.xlu0 %4384  ;;  %v11714_v10 = vld [vmem:[#allocation3 + $0x18c] ss:$16 sps:$4 sm:$0xff]  }
 0x563   : > { %5655 = vmatmul.mubr.bf16.gmra.mrb[12].mxu1 %v11689_v38  ;;  %19635 = vst [vmem:[#allocation113_spill] sm:$0xff] %v17096_v27  ;;  %v11713_v38 = vld [vmem:[#allocation3 + $0x168] ss:$16 sps:$4 sm:$0xff]  }
 0x564   : > { %5664 = vmatprep.mubr.bf16.mxu1 %v11690_v46  ;;  %6342 = vperm.xlu0 %11386, %v16780_v45   ;;  %v12016_v45 = vld [vmem:[%s18356_s3 + $0x22c] ss:$16 sps:$4 sm:$0xff]   ;;  %v12027_v46 = vld [vmem:[%s18356_s3 + $0x2c8] ss:$16 sps:$4 sm:$0xff]  }
 0x566   : > { %6330 = vperm.xlu1 %11387, %v16738_v56   ;;  %v17099_v56 = vpop.permute.xlu1 %4388 }
 0x567   : > { %19636 = vst [vmem:[#allocation34_spill] sm:$0xff] %v17099_v56 }
 0x568   : > { %8176 = vmatmul.mubr.bf16.gmra.mrb[188].mxu0 %v12013_v30  ;;  %6350 = vperm.xlu0 %11386, %v16792_v15  }
 0x569   : > { %8185 = vmatprep.mubr.bf16.mxu0 %v12014_v11 }
 0x56a   : > { %6338 = vperm.xlu1 %11387, %v16756_v23   ;;  %v17109_v23 = vpop.permute.xlu0 %4392  ;;  %v17112_v15 = vpop.permute.xlu1 %4396 }
 0x56b   : > { %5665 = vmatmul.mubr.bf16.gmra.mrb[16].mxu1 %v11692_v31  ;;  %19637 = vst [vmem:[#allocation124_spill] sm:$0xff] %v17109_v23  ;;  %19638 = vst [vmem:[#allocation86_spill] sm:$0xff] %v17112_v15  ;;  %v12028_v31 = vld [vmem:[%s18356_s3 + $0x2ec] ss:$16 sps:$4 sm:$0xff]  }
 0x56c   : > { %5674 = vmatprep.mubr.bf16.mxu1 %v11693_v41  ;;  %6358 = vperm.xlu0 %11386, %v16810_v20   ;;  %v12018_v20 = vld [vmem:[%s18356_s3 + $0x24c] ss:$16 sps:$4 sm:$0xff]   ;;  %v19655_v41 = vld [vmem:[#allocation28_spill] sm:$0xff] }
 0x56e   : > { %6346 = vperm.xlu1 %11387, %v16768_v39   ;;  %v11698_v39 = vld [vmem:[#allocation3 + $0xc8] ss:$16 sps:$4 sm:$0xff]   ;;  %v17116_v16 = vpop.permute.xlu0 %4400 }
 0x570   : > { %8186 = vmatmul.mubr.bf16.gmra.mrb[192].mxu0 %v12015_v54  ;;  %6366 = vperm.xlu0 %11386, %v16822_v3   ;;  %v11701_v3 = vld [vmem:[#allocation3 + $0xe8] ss:$16 sps:$4 sm:$0xff]   ;;  %v19658_v54 = vmov 0  }
 0x571   : > { %8195 = vmatprep.mubr.bf16.mxu0 %v12016_v45  ;;  %v12029_v45 = vld [vmem:[%s18356_s3 + $0x2e8] ss:$16 sps:$4 sm:$0xff]  }
 0x572   : > { %6354 = vperm.xlu1 %11387, %v16786_v34   ;;  %v17125_v34 = vpop.permute.xlu1 %4404 }
 0x573   : > { %5675 = vmatmul.mubr.bf16.gmra.mrb[20].mxu1 %v11695_v24  ;;  %19639 = vst [vmem:[#allocation89_spill] sm:$0xff] %v17125_v34  ;;  %v19657_v24 = vld [vmem:[#allocation106_spill] sm:$0xff] }
 0x574   : > { %5684 = vmatprep.mubr.bf16.mxu1 %v11696_v7  ;;  %6374 = vperm.xlu0 %11386, %v16840_v61   ;;  %v12020_v61 = vld [vmem:[%s18356_s3 + $0x26c] ss:$16 sps:$4 sm:$0xff]  }
 0x575   : > { %v11716_v7 = vld [vmem:[#allocation3 + $0x188] ss:$16 sps:$4 sm:$0xff]  }
 0x576   : > { %6362 = vperm.xlu1 %11387, %v16798_v35   ;;  %v17129_v35 = vpop.permute.xlu0 %4408  ;;  %v17132_v47 = vpop.permute.xlu1 %4412 }
 0x577   : > { %19640 = vst [vmem:[#allocation91_spill] sm:$0xff] %v17129_v35  ;;  %19641 = vst [vmem:[#allocation93_spill] sm:$0xff] %v17132_v47 }
 0x578   : > { %8196 = vmatmul.mubr.bf16.gmra.mrb[196].mxu0 %v12017_v44  ;;  %6382 = vperm.xlu0 %11386, %v16852_v62   ;;  %v11704_v62 = vld [vmem:[#allocation3 + $0x108] ss:$16 sps:$4 sm:$0xff]  }
 0x579   : > { %8205 = vmatprep.mubr.bf16.mxu0 %v12018_v20  ;;  %v12030_v44 = vld [vmem:[%s18356_s3 + $0x30c] ss:$16 sps:$4 sm:$0xff]   ;;  %v12031_v20 = vld [vmem:[%s18356_s3 + $0x308] ss:$16 sps:$4 sm:$0xff]  }
 0x57a   : > { %6370 = vperm.xlu1 %11387, %v16816_v17   ;;  %v17142_v17 = vpop.permute.xlu0 %4416 }
 0x57b   : > { %5685 = vmatmul.mubr.bf16.gmra.mrb[24].mxu1 %v11698_v39  ;;  %v11717_v39 = vld [vmem:[#allocation3 + $0x1ac] ss:$16 sps:$4 sm:$0xff]  }
 0x57c   : > { %5694 = vmatprep.mubr.bf16.mxu1 %v11699_v0  ;;  %6390 = vperm.xlu0 %11386, %v16870_v28   ;;  %v12022_v28 = vld [vmem:[%s18356_s3 + $0x28c] ss:$16 sps:$4 sm:$0xff]  }
 0x57d   : > { %v11719_v0 = vld [vmem:[#allocation3 + $0x1a8] ss:$16 sps:$4 sm:$0xff]  }
 0x57e   : > { %6378 = vperm.xlu1 %11387, %v16828_v21   ;;  %v17145_v21 = vpop.permute.xlu1 %4420 }
 0x57f   : > { %19642 = vst [vmem:[#allocation96_spill] sm:$0xff] %v17145_v21 }
 0x580   : > { %8206 = vmatmul.mubr.bf16.gmra.mrb[200].mxu0 %v12019_v29  ;;  %6398 = vperm.xlu0 %11386, %v16882_v6   ;;  %v12032_v29 = vld [vmem:[%s18356_s3 + $0x32c] ss:$16 sps:$4 sm:$0xff]  }
 0x581   : > { %8215 = vmatprep.mubr.bf16.mxu0 %v12020_v61  ;;  %v12033_v61 = vld [vmem:[%s18356_s3 + $0x328] ss:$16 sps:$4 sm:$0xff]  }
 0x582   : > { %6386 = vperm.xlu1 %11387, %v16846_v2   ;;  %v17155_v2 = vpop.permute.xlu0 %4424  ;;  %v17158_v6 = vpop.permute.xlu1 %4428 }
 0x583   : > { %5695 = vmatmul.mubr.bf16.gmra.mrb[28].mxu1 %v11701_v3  ;;  %19643 = vst [vmem:[#allocation98_spill] sm:$0xff] %v17155_v2  ;;  %19644 = vst [vmem:[#allocation100_spill] sm:$0xff] %v17158_v6  ;;  %v11720_v3 = vld [vmem:[#allocation3 + $0x1cc] ss:$16 sps:$4 sm:$0xff]  }
 0x584   : > { %5704 = vmatprep.mubr.bf16.mxu1 %v11702_v63  ;;  %6406 = vperm.xlu0 %11386, %v16900_v52   ;;  %v12024_v52 = vld [vmem:[%s18356_s3 + $0x2ac] ss:$16 sps:$4 sm:$0xff]  }
 0x585   : > { %v11722_v63 = vld [vmem:[#allocation3 + $0x1c8] ss:$16 sps:$4 sm:$0xff]  }
 0x586   : > { %6394 = vperm.xlu1 %11387, %v16858_v1   ;;  %v11707_v1 = vld [vmem:[#allocation3 + $0x128] ss:$16 sps:$4 sm:$0xff]   ;;  %v17162_v33 = vpop.permute.xlu0 %4432 }
 0x588   : > { %8216 = vmatmul.mubr.bf16.gmra.mrb[204].mxu0 %v12021_v59  ;;  %6414 = vperm.xlu0 %11386, %v16912_v48   ;;  %v11710_v48 = vld [vmem:[#allocation3 + $0x148] ss:$16 sps:$4 sm:$0xff]  }
 0x589   : > { %8225 = vmatprep.mubr.bf16.mxu0 %v12022_v28  ;;  %v12034_v59 = vld [vmem:[%s18356_s3 + $0x34c] ss:$16 sps:$4 sm:$0xff]  }
 0x58a   : > { %6402 = vperm.xlu1 %11387, %v16876_v40   ;;  %v17171_v40 = vpop.permute.xlu1 %4436 }
 0x58b   : > { %5705 = vmatmul.mubr.bf16.gmra.mrb[32].mxu1 %v11704_v62  ;;  %19645 = vst [vmem:[#allocation103_spill] sm:$0xff] %v17171_v40  ;;  %v11723_v62 = vld [vmem:[#allocation3 + $0x1ec] ss:$16 sps:$4 sm:$0xff]  }
 0x58c   : > { %5714 = vmatprep.mubr.bf16.mxu1 %v11705_v51  ;;  %6422 = vperm.xlu0 %11386, %v16930_v32   ;;  %v12026_v32 = vld [vmem:[%s18356_s3 + $0x2cc] ss:$16 sps:$4 sm:$0xff]  }
 0x58e   : > { %6410 = vperm.xlu1 %11387, %v16888_v19   ;;  %v17175_v19 = vpop.permute.xlu0 %4440  ;;  %v17178_v22 = vpop.permute.xlu1 %4444 }
 0x58f   : > { %19646 = vst [vmem:[#allocation120_spill] sm:$0xff] %v17175_v19  ;;  %19647 = vst [vmem:[#allocation121_spill] sm:$0xff] %v17178_v22 }
 0x590   : > { %8226 = vmatmul.mubr.bf16.gmra.mrb[208].mxu0 %v12023_v25  ;;  %6430 = vperm.xlu0 %11386, %v16942_v26   ;;  %v12035_v25 = vld [vmem:[%s18356_s3 + $0x348] ss:$16 sps:$4 sm:$0xff]  }
 0x591   : > { %8235 = vmatprep.mubr.bf16.mxu0 %v12024_v52  ;;  %v12036_v52 = vld [vmem:[%s18356_s3 + $0x36c] ss:$16 sps:$4 sm:$0xff]  }
 0x592   : > { %6418 = vperm.xlu1 %11387, %v16906_v49   ;;  %v19649_v49 = vld [vmem:[#allocation35_spill] sm:$0xff]  ;;  %v17188_v26 = vpop.permute.xlu0 %4448  ;;  %v17191_v14 = vpop.permute.xlu1 %4452 }
 0x593   : > { %5715 = vmatmul.mubr.bf16.gmra.mrb[36].mxu1 %v11707_v1  ;;  %19651 = vst [vmem:[#allocation123_spill] sm:$0xff] %v17191_v14  ;;  %v11725_v1 = vld [vmem:[#allocation3 + $0x1e8] ss:$16 sps:$4 sm:$0xff]  }
 0x594   : > { %5724 = vmatprep.mubr.bf16.mxu1 %v11708_v42  ;;  %6438 = vperm.xlu0 %11386, %v19649_v49   ;;  %v11726_v42 = vld [vmem:[#allocation3 + $0x20c] ss:$16 sps:$4 sm:$0xff]  }
 0x596   : > { %6426 = vperm.xlu1 %11387, %v19648_v5   ;;  %v17201_v30 = vpop.permute.xlu0 %4456  ;;  %v17204_v11 = vpop.permute.xlu1 %4460 }
 0x597   : > { %19654 = vst [vmem:[#allocation105_spill] sm:$0xff] %v17201_v30  ;;  %19656 = vst [vmem:[#allocation107_spill] sm:$0xff] %v17204_v11 }
 0x598   : > { %8236 = vmatmul.mubr.bf16.gmra.mrb[212].mxu0 %v12025_v50  ;;  %6446 = vperm.xlu0 %11386, %v19652_v12  }
 0x599   : > { %8245 = vmatprep.mubr.bf16.mxu0 %v12026_v32 }
 0x59a   : > { %6434 = vperm.xlu1 %11387, %v19650_v37   ;;  %v17227_v51 = vpop.permute.xlu0 %4464  ;;  %v17229_v28 = vpop.permute.xlu1 %4468 }
 0x59b   : > { %5725 = vmatmul.mubr.bf16.gmra.mrb[40].mxu1 %v11710_v48  ;;  %19659 = vst [vmem:[#allocation119_spill] sm:$0xff] %v17227_v51  ;;  %19660 = vst [vmem:[#allocation125_spill] sm:$0xff] %v17229_v28 }
 0x59c   : > { %5734 = vmatprep.mubr.bf16.mxu1 %v11711_v55  ;;  %6454 = vperm.xlu0 %11386, %v19655_v41   ;;  %v19663_v55 = vld [vmem:[#allocation48_spill] sm:$0xff] }
 0x59e   : > { %6442 = vperm.xlu1 %11387, %v19653_v58   ;;  %v17237_v48 = vpop.permute.xlu0 %4472  ;;  %v17239_v50 = vpop.permute.xlu1 %4476  ;;  %v19664_v58 = vld [vmem:[#allocation181_spill] sm:$0xff] }
 0x59f   : > { %19661 = vst [vmem:[#allocation128_spill] sm:$0xff] %v17237_v48  ;;  %19662 = vst [vmem:[#allocation133_spill] sm:$0xff] %v17239_v50 }
 0x5a0   : > { %8246 = vmatmul.mubr.bf16.gmra.mrb[216].mxu0 %v12027_v46  ;;  %11389 = vset.pattern.permute.xlu0 %v19658_v54 }
 0x5a1   : > { %8255 = vmatprep.mubr.bf16.mxu0 %v12028_v31 }
 0x5a2   : > { %6450 = vperm.xlu1 %11387, %v19657_v24   ;;  %v11728_v24 = vld [vmem:[#allocation3 + $0x208] ss:$16 sps:$4 sm:$0xff]  }
 0x5a3   : > { %5735 = vmatmul.mubr.bf16.gmra.mrb[44].mxu1 %v11713_v38 }
 0x5a4   : > { %5744 = vmatprep.mubr.bf16.mxu1 %v11714_v10 }
 0x5a6   : > { %11388 = vset.pattern.permute.xlu1 %v19658_v54 }
 0x5a8   : > { %8256 = vmatmul.mubr.bf16.gmra.mrb[220].mxu0 %v12029_v45  ;;  %v11729_v45 = vld [vmem:[#allocation3 + $0x22c] ss:$16 sps:$4 sm:$0xff]  }
 0x5a9   : > { %8265 = vmatprep.mubr.bf16.mxu0 %v12030_v44 }
 0x5ab   : > { %5745 = vmatmul.mubr.bf16.gmra.mrb[48].mxu1 %v11716_v7  ;;  %v12037_v7 = vld [vmem:[%s18356_s3 + $0x368] ss:$16 sps:$4 sm:$0xff]  }
 0x5ac   : > { %5754 = vmatprep.mubr.bf16.mxu1 %v11717_v39  ;;  %v17248_v39 = vpop.permute.xlu0 %4480 }
 0x5ad   : > { %19665 = vst [vmem:[#allocation126_spill] sm:$0xff] %v17248_v39 }
 0x5b0   : > { %8266 = vmatmul.mubr.bf16.gmra.mrb[224].mxu0 %v12031_v20  ;;  %v17253_v20 = vpop.permute.xlu1 %4484 }
 0x5b1   : > { %8275 = vmatprep.mubr.bf16.mxu0 %v12032_v29  ;;  %19666 = vst [vmem:[#allocation129_spill] sm:$0xff] %v17253_v20  ;;  %v19718_v20 = vld [vmem:[#allocation65_spill] sm:$0xff] }
 0x5b3   : > { %5755 = vmatmul.mubr.bf16.gmra.mrb[52].mxu1 %v11719_v0  ;;  %v12038_v0 = vld [vmem:[%s18356_s3 + $0x38c] ss:$16 sps:$4 sm:$0xff]  }
 0x5b4   : > { %5764 = vmatprep.mubr.bf16.mxu1 %v11720_v3 }
 0x5b8   : > { %8276 = vmatmul.mubr.bf16.gmra.mrb[228].mxu0 %v12033_v61 }
 0x5b9   : > { %8285 = vmatprep.mubr.bf16.mxu0 %v12034_v59 }
 0x5bb   : > { %5765 = vmatmul.mubr.bf16.gmra.mrb[56].mxu1 %v11722_v63 }
 0x5bc   : > { %5774 = vmatprep.mubr.bf16.mxu1 %v11723_v62 }
 0x5c0   : > { %8286 = vmatmul.mubr.bf16.gmra.mrb[232].mxu0 %v12035_v25 }
 0x5c1   : > { %8295 = vmatprep.mubr.bf16.mxu0 %v12036_v52 }
 0x5c3   : > { %5775 = vmatmul.mubr.bf16.gmra.mrb[60].mxu1 %v11725_v1  ;;  %v8027_v5 = vpop.f32.mrb[128].mxu0  ;;  %v19667_v1 = vld [vmem:[#allocation47_spill] sm:$0xff] }
 0x5c4   : > { %v10520_v32 = vadd.f32 %v8027_v5, %v19663_v55  ;;  %v8029_v49 = vpop.f32.mrb[129].mxu0  ;;  %5784 = vmatprep.mubr.bf16.mxu1 %v11726_v42 }
 0x5c5   : > { %v10521_v37 = vadd.f32 %v8029_v49, %v19663_v55  ;;  %v8031_v12 = vpop.f32.mrb[130].mxu0 }
 0x5c6   : > { %v8346_v38 = vmul.f32 0.01, %v10520_v32  ;;  %v10522_v46 = vadd.f32 %v8031_v12, %v19664_v58  ;;  %v8033_v10 = vpop.f32.mrb[131].mxu0  ;;  %v19668_v12 = vld [vmem:[#allocation58_spill] sm:$0xff] }
 0x5c7   : > { %v8347_v31 = vmul.f32 0.01, %v10521_v37  ;;  %v10523_v41 = vadd.f32 %v8033_v10, %v19664_v58 }
 0x5c8   : > { %v8348_v54 = vmul.f32 0.01, %v10522_v46  ;;  %8296 = vmatmul.mubr.bf16.gmra.mrb[236].mxu0 %v12037_v7  ;;  %v8474_v3 = vmax.f32 %v10520_v32, %v8346_v38  ;;  %v17258_v7 = vpop.permute.xlu0 %4488  ;;  %v11731_v38 = vld [vmem:[#allocation3 + $0x228] ss:$16 sps:$4 sm:$0xff]  }
 0x5c9   : > { %v8349_v44 = vmul.f32 0.01, %v10523_v41  ;;  %8305 = vmatprep.mubr.bf16.mxu0 %v12038_v0  ;;  %v8475_v63 = vmax.f32 %v10521_v37, %v8347_v31  ;;  %19669 = vst [vmem:[#allocation110_spill] sm:$0xff] %v17258_v7 }
 0x5ca   : > { %v8476_v29 = vmax.f32 %v10522_v46, %v8348_v54  ;;  %v17261_v46 = vpop.permute.xlu1 %4492 }
 0x5cb   : > { %v8477_v61 = vmax.f32 %v10523_v41, %v8349_v44  ;;  %5785 = vmatmul.mubr.bf16.gmra.mrb[64].mxu1 %v11728_v24  ;;  %v8037_v62 = vpop.f32.mrb[132].mxu0  ;;  %19670 = vst [vmem:[#allocation131_spill] sm:$0xff] %v17261_v46  ;;  %v12039_v41 = vld [vmem:[%s18356_s3 + $0x388] ss:$16 sps:$4 sm:$0xff]   ;;  %v11732_v24 = vld [vmem:[#allocation3 + $0x24c] ss:$16 sps:$4 sm:$0xff]  }
 0x5cc   : > { %v8602_v59 = vpack.c.bf16 %v8476_v29, %v8474_v3  ;;  %v10524_v25 = vadd.f32 %v8037_v62, %v19667_v1  ;;  %v8039_v42 = vpop.f32.mrb[133].mxu0  ;;  %5794 = vmatprep.mubr.bf16.mxu1 %v11729_v45  ;;  %v12040_v45 = vld [vmem:[%s18356_s3 + $0x3ac] ss:$16 sps:$4 sm:$0xff]  }
 0x5cd   : > { %v10525_v52 = vadd.f32 %v8039_v42, %v19667_v1  ;;  %v8041_v5 = vpop.f32.mrb[134].mxu0  ;;  %v8603_v55 = vpack.c.bf16 %v8477_v61, %v8475_v63  ;;  %v19671_v62 = vld [vmem:[#allocation43_spill] sm:$0xff] }
 0x5ce   : > { %v8350_v49 = vmul.f32 0.01, %v10524_v25  ;;  %v10526_v58 = vadd.f32 %v8041_v5, %v19668_v12  ;;  %v8043_v10 = vpop.f32.mrb[135].mxu0  ;;  %v17270_v5 = vpop.permute.xlu0 %4496 }
 0x5cf   : > { %v8351_v32 = vmul.f32 0.01, %v10525_v52  ;;  %v10527_v37 = vadd.f32 %v8043_v10, %v19668_v12  ;;  %8666 = vmatprep.subr.bf16.mxu1 %v8603_v55  ;;  %19672 = vst [vmem:[#allocation127_spill] sm:$0xff] %v17270_v5  ;;  %v17273_v10 = vpop.permute.xlu1 %4500  ;;  %v19682_v5 = vld [vmem:[#allocation10_spill] sm:$0xff] }
 0x5d0   : > { %v8352_v31 = vmul.f32 0.01, %v10526_v58  ;;  %8306 = vmatmul.mubr.bf16.gmra.mrb[240].mxu0 %v12039_v41  ;;  %8667 = vmatpush1.bf16.msra.mxu1 %v8602_v59  ;;  %v8478_v44 = vmax.f32 %v10524_v25, %v8350_v49  ;;  %19673 = vst [vmem:[#allocation112_spill] sm:$0xff] %v17273_v10  ;;  %v19674_v25 = vld [vmem:[#allocation46_spill] sm:$0xff] }
 0x5d1   : > { %v8353_v54 = vmul.f32 0.01, %v10527_v37  ;;  %8315 = vmatprep.mubr.bf16.mxu0 %v12040_v45  ;;  %v8479_v3 = vmax.f32 %v10525_v52, %v8351_v32  ;;  %v12042_v45 = vld [vmem:[%s18356_s3 + $0x3cc] ss:$16 sps:$4 sm:$0xff]  }
 0x5d2   : > { %v8480_v0 = vmax.f32 %v10526_v58, %v8352_v31  ;;  %v12041_v31 = vld [vmem:[%s18356_s3 + $0x3a8] ss:$16 sps:$4 sm:$0xff]  }
 0x5d3   : > { %v8481_v29 = vmax.f32 %v10527_v37, %v8353_v54  ;;  %5795 = vmatmul.mubr.bf16.gmra.mrb[68].mxu1 %v11731_v38  ;;  %v8047_v63 = vpop.f32.mrb[136].mxu0  ;;  %v11734_v37 = vld [vmem:[#allocation3 + $0x248] ss:$16 sps:$4 sm:$0xff]  }
 0x5d4   : > { %v8604_v61 = vpack.c.bf16 %v8480_v0, %v8478_v44  ;;  %v10528_v1 = vadd.f32 %v8047_v63, %v19671_v62  ;;  %v8049_v42 = vpop.f32.mrb[137].mxu0  ;;  %5804 = vmatprep.mubr.bf16.mxu1 %v11732_v24  ;;  %v11735_v24 = vld [vmem:[#allocation3 + $0x26c] ss:$16 sps:$4 sm:$0xff]  }
 0x5d5   : > { %v10529_v59 = vadd.f32 %v8049_v42, %v19671_v62  ;;  %v8051_v55 = vpop.f32.mrb[138].mxu0  ;;  %v8605_v12 = vpack.c.bf16 %v8481_v29, %v8479_v3  ;;  %v17283_v3 = vpop.permute.xlu0 %4504 }
 0x5d6   : > { %v8354_v41 = vmul.f32 0.01, %v10528_v1  ;;  %v10530_v49 = vadd.f32 %v8051_v55, %v19674_v25  ;;  %v8053_v52 = vpop.f32.mrb[139].mxu0  ;;  %19675 = vst [vmem:[#allocation132_spill] sm:$0xff] %v17283_v3  ;;  %v17285_v42 = vpop.permute.xlu1 %4508 }
 0x5d7   : > { %v8355_v58 = vmul.f32 0.01, %v10529_v59  ;;  %v10531_v32 = vadd.f32 %v8053_v52, %v19674_v25  ;;  %8668 = vmatprep.subr.bf16.mxu1 %v8605_v12  ;;  %19676 = vst [vmem:[#allocation137_spill] sm:$0xff] %v17285_v42  ;;  %v19677_v12 = vld [vmem:[#allocation45_spill] sm:$0xff] }
 0x5d8   : > { %v8356_v38 = vmul.f32 0.01, %v10530_v49  ;;  %8316 = vmatmul.mubr.bf16.gmra.mrb[244].mxu0 %v12041_v31  ;;  %8669 = vmatpush1.bf16.msra.mxu1 %v8604_v61  ;;  %v8482_v44 = vmax.f32 %v10528_v1, %v8354_v41  ;;  %v19678_v1 = vld [vmem:[#allocation179_spill] sm:$0xff] }
 0x5d9   : > { %v8357_v54 = vmul.f32 0.01, %v10531_v32  ;;  %8325 = vmatprep.mubr.bf16.mxu0 %v12042_v45  ;;  %v8483_v29 = vmax.f32 %v10529_v59, %v8355_v58  ;;  %v11737_v58 = vld [vmem:[#allocation3 + $0x268] ss:$16 sps:$4 sm:$0xff]  }
 0x5da   : > { %v8484_v0 = vmax.f32 %v10530_v49, %v8356_v38 }
 0x5db   : > { %v8485_v63 = vmax.f32 %v10531_v32, %v8357_v54  ;;  %5805 = vmatmul.mubr.bf16.gmra.mrb[72].mxu1 %v11734_v37  ;;  %v8057_v62 = vpop.f32.mrb[140].mxu0  ;;  %v12043_v37 = vld [vmem:[%s18356_s3 + $0x3c8] ss:$16 sps:$4 sm:$0xff]   ;;  %v17294_v54 = vpop.permute.xlu0 %4512 }
 0x5dc   : > { %v8606_v55 = vpack.c.bf16 %v8484_v0, %v8482_v44  ;;  %v10532_v61 = vadd.f32 %v8057_v62, %v19677_v12  ;;  %v8059_v25 = vpop.f32.mrb[141].mxu0  ;;  %5814 = vmatprep.mubr.bf16.mxu1 %v11735_v24  ;;  %v11738_v24 = vld [vmem:[#allocation3 + $0x28c] ss:$16 sps:$4 sm:$0xff]   ;;  %19679 = vst [vmem:[#allocation130_spill] sm:$0xff] %v17294_v54 }
 0x5dd   : > { %v10533_v52 = vadd.f32 %v8059_v25, %v19677_v12  ;;  %v8061_v31 = vpop.f32.mrb[142].mxu0  ;;  %v8607_v10 = vpack.c.bf16 %v8485_v63, %v8483_v29  ;;  %v12044_v0 = vld [vmem:[%s18356_s3 + $0x3ec] ss:$16 sps:$4 sm:$0xff]   ;;  %v17299_v29 = vpop.permute.xlu1 %4516 }
 0x5de   : > { %v8358_v45 = vmul.f32 0.01, %v10532_v61  ;;  %v10534_v41 = vadd.f32 %v8061_v31, %v19678_v1  ;;  %v8063_v49 = vpop.f32.mrb[143].mxu0  ;;  %19680 = vst [vmem:[#allocation134_spill] sm:$0xff] %v17299_v29 }
 0x5df   : > { %v8359_v38 = vmul.f32 0.01, %v10533_v52  ;;  %v10535_v59 = vadd.f32 %v8063_v49, %v19678_v1  ;;  %8670 = vmatprep.subr.bf16.mxu1 %v8607_v10  ;;  %v19681_v1 = vld [vmem:[#allocation44_spill] sm:$0xff]  ;;  %v17304_v29 = vpop.permute.xlu0 %4520 }
 0x5e0   : > { %v8360_v32 = vmul.f32 0.01, %v10534_v41  ;;  %8326 = vmatmul.mubr.bf16.gmra.mrb[248].mxu0 %v12043_v37  ;;  %8671 = vmatpush1.bf16.msra.mxu1 %v8606_v55  ;;  %v8486_v10 = vmax.f32 %v10532_v61, %v8358_v45  ;;  %19683 = vst [vmem:[#allocation135_spill] sm:$0xff] %v17304_v29  ;;  %v11740_v45 = vld [vmem:[#allocation3 + $0x288] ss:$16 sps:$4 sm:$0xff]  }
 0x5e1   : > { %v8361_v44 = vmul.f32 0.01, %v10535_v59  ;;  %8335 = vmatprep.mubr.bf16.mxu0 %v12044_v0  ;;  %v8487_v62 = vmax.f32 %v10533_v52, %v8359_v38 }
 0x5e2   : > { %v8488_v63 = vmax.f32 %v10534_v41, %v8360_v32  ;;  %v17307_v41 = vpop.permute.xlu1 %4524 }
 0x5e3   : > { %v8489_v12 = vmax.f32 %v10535_v59, %v8361_v44  ;;  %5815 = vmatmul.mubr.bf16.gmra.mrb[76].mxu1 %v11737_v58  ;;  %v8067_v25 = vpop.f32.mrb[144].mxu0  ;;  %19684 = vst [vmem:[#allocation138_spill] sm:$0xff] %v17307_v41  ;;  %v12045_v59 = vld [vmem:[%s18356_s3 + $0x3e8] ss:$16 sps:$4 sm:$0xff]   ;;  %v11741_v58 = vld [vmem:[#allocation3 + $0x2ac] ss:$16 sps:$4 sm:$0xff]  }
 0x5e4   : > { %v8608_v31 = vpack.c.bf16 %v8488_v63, %v8486_v10  ;;  %v10536_v55 = vadd.f32 %v8067_v25, %v19681_v1  ;;  %v8069_v49 = vpop.f32.mrb[145].mxu0  ;;  %5824 = vmatprep.mubr.bf16.mxu1 %v11738_v24 }
 0x5e5   : > { %v10537_v37 = vadd.f32 %v8069_v49, %v19681_v1  ;;  %v8071_v54 = vpop.f32.mrb[146].mxu0  ;;  %v8609_v42 = vpack.c.bf16 %v8489_v12, %v8487_v62  ;;  %v17313_v12 = vpop.permute.xlu0 %4528 }
 0x5e6   : > { %v8362_v3 = vmul.f32 0.01, %v10536_v55  ;;  %v10538_v0 = vadd.f32 %v8071_v54, %v19682_v5  ;;  %v8073_v46 = vpop.f32.mrb[147].mxu0  ;;  %19686 = vst [vmem:[#allocation136_spill] sm:$0xff] %v17313_v12 }
 0x5e7   : > { %v8363_v61 = vmul.f32 0.01, %v10537_v37  ;;  %v10539_v52 = vadd.f32 %v8073_v46, %v19682_v5  ;;  %8672 = vmatprep.subr.bf16.mxu1 %v8609_v42  ;;  %v19685_v5 = vld [vmem:[#allocation52_spill] sm:$0xff] }
 0x5e8   : > { %v8364_v38 = vmul.f32 0.01, %v10538_v0  ;;  %8336 = vmatmul.mubr.bf16.gmra.mrb[252].mxu0 %v12045_v59  ;;  %8673 = vmatpush1.bf16.msra.mxu1 %v8608_v31  ;;  %v8490_v24 = vmax.f32 %v10536_v55, %v8362_v3  ;;  %v17316_v31 = vpop.permute.xlu1 %4532  ;;  %v19688_v3 = vld [vmem:[#allocation59_spill] sm:$0xff] }
 0x5e9   : > { %v8365_v32 = vmul.f32 0.01, %v10539_v52  ;;  %v8491_v44 = vmax.f32 %v10537_v37, %v8363_v61  ;;  %19687 = vst [vmem:[#allocation143_spill] sm:$0xff] %v17316_v31 }
 0x5ea   : > { %v8492_v54 = vmax.f32 %v10538_v0, %v8364_v38  ;;  %v11744_v38 = vld [vmem:[#allocation3 + $0x2cc] ss:$16 sps:$4 sm:$0xff]  }
 0x5eb   : > { %v8493_v10 = vmax.f32 %v10539_v52, %v8365_v32  ;;  %5825 = vmatmul.mubr.bf16.gmra.mrb[80].mxu1 %v11740_v45  ;;  %v8077_v63 = vpop.f32.mrb[148].mxu0  ;;  %v11743_v52 = vld [vmem:[#allocation3 + $0x2a8] ss:$16 sps:$4 sm:$0xff]  }
 0x5ec   : > { %v8610_v46 = vpack.c.bf16 %v8492_v54, %v8490_v24  ;;  %v10540_v42 = vadd.f32 %v8077_v63, %v19685_v5  ;;  %v8079_v62 = vpop.f32.mrb[149].mxu0  ;;  %5834 = vmatprep.mubr.bf16.mxu1 %v11741_v58  ;;  %v17320_v54 = vpop.permute.xlu0 %4536 }
 0x5ed   : > { %v10541_v25 = vadd.f32 %v8079_v62, %v19685_v5  ;;  %v8081_v1 = vpop.f32.mrb[150].mxu0  ;;  %v8611_v49 = vpack.c.bf16 %v8493_v10, %v8491_v44  ;;  %19689 = vst [vmem:[#allocation141_spill] sm:$0xff] %v17320_v54  ;;  %v17322_v5 = vpop.permute.xlu1 %4540 }
 0x5ee   : > { %v8366_v59 = vmul.f32 0.01, %v10540_v42  ;;  %v10542_v55 = vadd.f32 %v8081_v1, %v19688_v3  ;;  %v8083_v37 = vpop.f32.mrb[151].mxu0  ;;  %19690 = vst [vmem:[#allocation139_spill] sm:$0xff] %v17322_v5  ;;  %v19691_v1 = vld [vmem:[#allocation51_spill] sm:$0xff] }
 0x5ef   : > { %v8367_v0 = vmul.f32 0.01, %v10541_v25  ;;  %v10543_v61 = vadd.f32 %v8083_v37, %v19688_v3  ;;  %8674 = vmatprep.subr.bf16.mxu1 %v8611_v49 }
 0x5f0   : > { %v8368_v45 = vmul.f32 0.01, %v10542_v55  ;;  %8675 = vmatpush1.bf16.msra.mxu1 %v8610_v46  ;;  %v8494_v32 = vmax.f32 %v10540_v42, %v8366_v59  ;;  %v19692_v42 = vld [vmem:[#allocation63_spill] sm:$0xff] }
 0x5f1   : > { %v8369_v58 = vmul.f32 0.01, %v10543_v61  ;;  %v8495_v44 = vmax.f32 %v10541_v25, %v8367_v0  ;;  %v11746_v0 = vld [vmem:[#allocation3 + $0x2c8] ss:$16 sps:$4 sm:$0xff]  }
 0x5f2   : > { %v8496_v24 = vmax.f32 %v10542_v55, %v8368_v45 }
 0x5f3   : > { %v8497_v10 = vmax.f32 %v10543_v61, %v8369_v58  ;;  %5835 = vmatmul.mubr.bf16.gmra.mrb[84].mxu1 %v11743_v52  ;;  %v8087_v63 = vpop.f32.mrb[152].mxu0  ;;  %v11747_v52 = vld [vmem:[#allocation3 + $0x2ec] ss:$16 sps:$4 sm:$0xff]   ;;  %v17328_v58 = vpop.permute.xlu0 %4544 }
 0x5f4   : > { %v8612_v62 = vpack.c.bf16 %v8496_v24, %v8494_v32  ;;  %v10544_v31 = vadd.f32 %v8087_v63, %v19691_v1  ;;  %v8089_v3 = vpop.f32.mrb[153].mxu0  ;;  %5844 = vmatprep.mubr.bf16.mxu1 %v11744_v38  ;;  %19693 = vst [vmem:[#allocation140_spill] sm:$0xff] %v17328_v58  ;;  %v17330_v38 = vpop.permute.xlu1 %4548  ;;  %v19696_v58 = vld [vmem:[#allocation62_spill] sm:$0xff] }
 0x5f5   : > { %v10545_v49 = vadd.f32 %v8089_v3, %v19691_v1  ;;  %v8091_v46 = vpop.f32.mrb[154].mxu0  ;;  %v8613_v37 = vpack.c.bf16 %v8497_v10, %v8495_v44  ;;  %19694 = vst [vmem:[#allocation144_spill] sm:$0xff] %v17330_v38 }
 0x5f6   : > { %v8370_v12 = vmul.f32 0.01, %v10544_v31  ;;  %v10546_v59 = vadd.f32 %v8091_v46, %v19692_v42  ;;  %v8093_v55 = vpop.f32.mrb[155].mxu0  ;;  %v19695_v46 = vld [vmem:[#allocation61_spill] sm:$0xff] }
 0x5f7   : > { %v8371_v45 = vmul.f32 0.01, %v10545_v49  ;;  %v10547_v25 = vadd.f32 %v8093_v55, %v19692_v42  ;;  %8676 = vmatprep.subr.bf16.mxu1 %v8613_v37  ;;  %v17335_v38 = vpop.permute.xlu0 %4552 }
 0x5f8   : > { %v8372_v61 = vmul.f32 0.01, %v10546_v59  ;;  %8677 = vmatpush1.bf16.msra.mxu1 %v8612_v62  ;;  %v8498_v24 = vmax.f32 %v10544_v31, %v8370_v12  ;;  %19697 = vst [vmem:[#allocation148_spill] sm:$0xff] %v17335_v38 }
 0x5f9   : > { %v8373_v32 = vmul.f32 0.01, %v10547_v25  ;;  %v8499_v44 = vmax.f32 %v10545_v49, %v8371_v45  ;;  %v11749_v49 = vld [vmem:[#allocation3 + $0x2e8] ss:$16 sps:$4 sm:$0xff]  }
 0x5fa   : > { %v8500_v63 = vmax.f32 %v10546_v59, %v8372_v61  ;;  %v17338_v59 = vpop.permute.xlu1 %4556 }
 0x5fb   : > { %v8501_v10 = vmax.f32 %v10547_v25, %v8373_v32  ;;  %5845 = vmatmul.mubr.bf16.gmra.mrb[88].mxu1 %v11746_v0  ;;  %v8097_v1 = vpop.f32.mrb[156].mxu0  ;;  %19698 = vst [vmem:[#allocation142_spill] sm:$0xff] %v17338_v59  ;;  %v11750_v25 = vld [vmem:[#allocation3 + $0x30c] ss:$16 sps:$4 sm:$0xff]  }
 0x5fc   : > { %v8614_v3 = vpack.c.bf16 %v8500_v63, %v8498_v24  ;;  %v10548_v5 = vadd.f32 %v8097_v1, %v19695_v46  ;;  %v8099_v42 = vpop.f32.mrb[157].mxu0  ;;  %5854 = vmatprep.mubr.bf16.mxu1 %v11747_v52 }
 0x5fd   : > { %v10549_v37 = vadd.f32 %v8099_v42, %v19695_v46  ;;  %v8101_v62 = vpop.f32.mrb[158].mxu0  ;;  %v8615_v55 = vpack.c.bf16 %v8501_v10, %v8499_v44  ;;  %v19699_v10 = vld [vmem:[#allocation53_spill] sm:$0xff] }
 0x5fe   : > { %v8374_v54 = vmul.f32 0.01, %v10548_v5  ;;  %v10550_v41 = vadd.f32 %v8101_v62, %v19696_v58  ;;  %v8103_v29 = vpop.f32.mrb[159].mxu0 }
 0x5ff   : > { %v8375_v12 = vmul.f32 0.01, %v10549_v37  ;;  %v10551_v31 = vadd.f32 %v8103_v29, %v19696_v58  ;;  %8678 = vmatprep.subr.bf16.mxu1 %v8615_v55  ;;  %v17341_v29 = vpop.permute.xlu0 %4560 }
 0x600   : > { %v8376_v45 = vmul.f32 0.01, %v10550_v41  ;;  %8679 = vmatpush1.bf16.msra.mxu1 %v8614_v3  ;;  %v8502_v61 = vmax.f32 %v10548_v5, %v8374_v54  ;;  %19700 = vst [vmem:[#allocation146_spill] sm:$0xff] %v17341_v29  ;;  %v17344_v3 = vpop.permute.xlu1 %4564  ;;  %v19702_v54 = vld [vmem:[#allocation182_spill] sm:$0xff] }
 0x601   : > { %v8377_v0 = vmul.f32 0.01, %v10551_v31  ;;  %v8503_v32 = vmax.f32 %v10549_v37, %v8375_v12  ;;  %19701 = vst [vmem:[#allocation147_spill] sm:$0xff] %v17344_v3 }
 0x602   : > { %v8504_v52 = vmax.f32 %v10550_v41, %v8376_v45  ;;  %v11753_v45 = vld [vmem:[#allocation3 + $0x32c] ss:$16 sps:$4 sm:$0xff]  }
 0x603   : > { %v8505_v24 = vmax.f32 %v10551_v31, %v8377_v0  ;;  %5855 = vmatmul.mubr.bf16.gmra.mrb[92].mxu1 %v11749_v49  ;;  %v8107_v63 = vpop.f32.mrb[160].mxu0  ;;  %v11752_v31 = vld [vmem:[#allocation3 + $0x308] ss:$16 sps:$4 sm:$0xff]  }
 0x604   : > { %v8616_v44 = vpack.c.bf16 %v8504_v52, %v8502_v61  ;;  %v10552_v1 = vadd.f32 %v8107_v63, %v19699_v10  ;;  %v8109_v46 = vpop.f32.mrb[161].mxu0  ;;  %5864 = vmatprep.mubr.bf16.mxu1 %v11750_v25  ;;  %v17348_v52 = vpop.permute.xlu0 %4568 }
 0x605   : > { %v10553_v58 = vadd.f32 %v8109_v46, %v19699_v10  ;;  %v8111_v42 = vpop.f32.mrb[162].mxu0  ;;  %v8617_v62 = vpack.c.bf16 %v8505_v24, %v8503_v32  ;;  %19703 = vst [vmem:[#allocation149_spill] sm:$0xff] %v17348_v52  ;;  %v17350_v10 = vpop.permute.xlu1 %4572  ;;  %v19710_v52 = vld [vmem:[#allocation64_spill] sm:$0xff] }
 0x606   : > { %v8378_v55 = vmul.f32 0.01, %v10552_v1  ;;  %v10554_v41 = vadd.f32 %v8111_v42, %v19702_v54  ;;  %v8113_v5 = vpop.f32.mrb[163].mxu0  ;;  %19704 = vst [vmem:[#allocation145_spill] sm:$0xff] %v17350_v10  ;;  %v19705_v42 = vld [vmem:[#allocation12_spill] sm:$0xff] }
 0x607   : > { %v8379_v37 = vmul.f32 0.01, %v10553_v58  ;;  %v10555_v12 = vadd.f32 %v8113_v5, %v19702_v54  ;;  %8680 = vmatprep.subr.bf16.mxu1 %v8617_v62 }
 0x608   : > { %v8380_v49 = vmul.f32 0.01, %v10554_v41  ;;  %8681 = vmatpush1.bf16.msra.mxu1 %v8616_v44  ;;  %v8506_v0 = vmax.f32 %v10552_v1, %v8378_v55  ;;  %v19706_v1 = vld [vmem:[#allocation60_spill] sm:$0xff] }
 0x609   : > { %v8381_v25 = vmul.f32 0.01, %v10555_v12  ;;  %v8507_v32 = vmax.f32 %v10553_v58, %v8379_v37  ;;  %v11755_v37 = vld [vmem:[#allocation3 + $0x328] ss:$16 sps:$4 sm:$0xff]  }
 0x60a   : > { %v8508_v61 = vmax.f32 %v10554_v41, %v8380_v49 }
 0x60b   : > { %v8509_v24 = vmax.f32 %v10555_v12, %v8381_v25  ;;  %5865 = vmatmul.mubr.bf16.gmra.mrb[96].mxu1 %v11752_v31  ;;  %v8117_v63 = vpop.f32.mrb[164].mxu0  ;;  %v17356_v31 = vpop.permute.xlu0 %4576  ;;  %v11756_v25 = vld [vmem:[#allocation3 + $0x34c] ss:$16 sps:$4 sm:$0xff]  }
 0x60c   : > { %v8618_v46 = vpack.c.bf16 %v8508_v61, %v8506_v0  ;;  %v10556_v3 = vadd.f32 %v8117_v63, %v19705_v42  ;;  %v8119_v54 = vpop.f32.mrb[165].mxu0  ;;  %5874 = vmatprep.mubr.bf16.mxu1 %v11753_v45  ;;  %19707 = vst [vmem:[#allocation153_spill] sm:$0xff] %v17356_v31  ;;  %v17358_v45 = vpop.permute.xlu1 %4580 }
 0x60d   : > { %v10557_v62 = vadd.f32 %v8119_v54, %v19705_v42  ;;  %v8121_v44 = vpop.f32.mrb[166].mxu0  ;;  %v8619_v5 = vpack.c.bf16 %v8509_v24, %v8507_v32  ;;  %19708 = vst [vmem:[#allocation152_spill] sm:$0xff] %v17358_v45 }
 0x60e   : > { %v8382_v29 = vmul.f32 0.01, %v10556_v3  ;;  %v10558_v55 = vadd.f32 %v8121_v44, %v19706_v1  ;;  %v8123_v41 = vpop.f32.mrb[167].mxu0  ;;  %v19709_v44 = vld [vmem:[#allocation68_spill] sm:$0xff] }
 0x60f   : > { %v8383_v49 = vmul.f32 0.01, %v10557_v62  ;;  %v10559_v58 = vadd.f32 %v8123_v41, %v19706_v1  ;;  %8682 = vmatprep.subr.bf16.mxu1 %v8619_v5  ;;  %v17363_v45 = vpop.permute.xlu0 %4584 }
 0x610   : > { %v8384_v12 = vmul.f32 0.01, %v10558_v55  ;;  %8683 = vmatpush1.bf16.msra.mxu1 %v8618_v46  ;;  %v8510_v61 = vmax.f32 %v10556_v3, %v8382_v29  ;;  %19711 = vst [vmem:[#allocation151_spill] sm:$0xff] %v17363_v45 }
 0x611   : > { %v8385_v0 = vmul.f32 0.01, %v10559_v58  ;;  %v8511_v32 = vmax.f32 %v10557_v62, %v8383_v49  ;;  %v11758_v62 = vld [vmem:[#allocation3 + $0x348] ss:$16 sps:$4 sm:$0xff]  }
 0x612   : > { %v8512_v63 = vmax.f32 %v10558_v55, %v8384_v12  ;;  %v17366_v55 = vpop.permute.xlu1 %4588 }
 0x613   : > { %v8513_v24 = vmax.f32 %v10559_v58, %v8385_v0  ;;  %5875 = vmatmul.mubr.bf16.gmra.mrb[100].mxu1 %v11755_v37  ;;  %v8127_v42 = vpop.f32.mrb[168].mxu0  ;;  %19712 = vst [vmem:[#allocation150_spill] sm:$0xff] %v17366_v55  ;;  %v11759_v58 = vld [vmem:[#allocation3 + $0x36c] ss:$16 sps:$4 sm:$0xff]  }
 0x614   : > { %v8620_v54 = vpack.c.bf16 %v8512_v63, %v8510_v61  ;;  %v10560_v10 = vadd.f32 %v8127_v42, %v19709_v44  ;;  %v8129_v1 = vpop.f32.mrb[169].mxu0  ;;  %5884 = vmatprep.mubr.bf16.mxu1 %v11756_v25 }
 0x615   : > { %v10561_v5 = vadd.f32 %v8129_v1, %v19709_v44  ;;  %v8131_v46 = vpop.f32.mrb[170].mxu0  ;;  %v8621_v41 = vpack.c.bf16 %v8513_v24, %v8511_v32  ;;  %v19713_v24 = vld [vmem:[#allocation67_spill] sm:$0xff]  ;;  %v17369_v1 = vpop.permute.xlu0 %4592 }
 0x616   : > { %v8386_v31 = vmul.f32 0.01, %v10560_v10  ;;  %v10562_v59 = vadd.f32 %v8131_v46, %v19710_v52  ;;  %v8133_v38 = vpop.f32.mrb[171].mxu0  ;;  %19714 = vst [vmem:[#allocation157_spill] sm:$0xff] %v17369_v1 }
 0x617   : > { %v8387_v29 = vmul.f32 0.01, %v10561_v5  ;;  %v10563_v3 = vadd.f32 %v8133_v38, %v19710_v52  ;;  %8684 = vmatprep.subr.bf16.mxu1 %v8621_v41 }
 0x618   : > { %v8388_v49 = vmul.f32 0.01, %v10562_v59  ;;  %8685 = vmatpush1.bf16.msra.mxu1 %v8620_v54  ;;  %v8514_v12 = vmax.f32 %v10560_v10, %v8386_v31  ;;  %v17372_v54 = vpop.permute.xlu1 %4596  ;;  %v19716_v10 = vld [vmem:[#allocation66_spill] sm:$0xff] }
 0x619   : > { %v8389_v37 = vmul.f32 0.01, %v10563_v3  ;;  %v8515_v0 = vmax.f32 %v10561_v5, %v8387_v29  ;;  %19715 = vst [vmem:[#allocation154_spill] sm:$0xff] %v17372_v54 }
 0x61a   : > { %v8516_v25 = vmax.f32 %v10562_v59, %v8388_v49 }
 0x61b   : > { %v8517_v61 = vmax.f32 %v10563_v3, %v8389_v37  ;;  %5885 = vmatmul.mubr.bf16.gmra.mrb[104].mxu1 %v11758_v62  ;;  %v8137_v63 = vpop.f32.mrb[172].mxu0  ;;  %v11761_v37 = vld [vmem:[#allocation3 + $0x368] ss:$16 sps:$4 sm:$0xff]  }
 0x61c   : > { %v8622_v32 = vpack.c.bf16 %v8516_v25, %v8514_v12  ;;  %v10564_v42 = vadd.f32 %v8137_v63, %v19713_v24  ;;  %v8139_v44 = vpop.f32.mrb[173].mxu0  ;;  %5894 = vmatprep.mubr.bf16.mxu1 %v11759_v58  ;;  %v17383_v50 = vpop.permute.xlu1 %6206 }
 0x61d   : > { %v10565_v38 = vadd.f32 %v8139_v44, %v19713_v24  ;;  %v8141_v52 = vpop.f32.mrb[174].mxu0  ;;  %v8623_v46 = vpack.c.bf16 %v8517_v61, %v8515_v0  ;;  %v11762_v0 = vld [vmem:[#allocation3 + $0x38c] ss:$16 sps:$4 sm:$0xff]   ;;  %19719 = vst [vmem:[#allocation156_spill] sm:$0xff] %v17383_v50 }
 0x61e   : > { %v8390_v41 = vmul.f32 0.01, %v10564_v42  ;;  %v10566_v59 = vadd.f32 %v8141_v52, %v19716_v10  ;;  %v5626_v31 = vpop.f32.mrb[0].mxu1  ;;  %v8143_v5 = vpop.f32.mrb[175].mxu0 }
 0x61f   : > { %v8391_v29 = vmul.f32 0.01, %v10565_v38  ;;  %v10392_v3 = vadd.f32 %v5626_v31, %v17035_v36  ;;  %v10567_v62 = vadd.f32 %v8143_v5, %v19716_v10  ;;  %v5628_v49 = vpop.f32.mrb[1].mxu1  ;;  %8686 = vmatprep.subr.bf16.mxu1 %v8623_v46 }
 0x620   : > { %v8392_v58 = vmul.f32 0.01, %v10566_v59  ;;  %v10393_v12 = vadd.f32 %v5628_v49, %v17035_v36  ;;  %v5630_v25 = vpop.f32.mrb[2].mxu1  ;;  %8687 = vmatpush1.bf16.msra.mxu1 %v8622_v32  ;;  %v8518_v52 = vmax.f32 %v10564_v42, %v8390_v41  ;;  %v17380_v49 = vpop.permute.xlu0 %6202 }
 0x621   : > { %v5945_v61 = vmul.f32 0.01, %v10392_v3  ;;  %v8393_v63 = vmul.f32 0.01, %v10567_v62  ;;  %v10394_v24 = vadd.f32 %v5630_v25, %v17050_v8  ;;  %v5632_v44 = vpop.f32.mrb[3].mxu1  ;;  %v8519_v10 = vmax.f32 %v10565_v38, %v8391_v29  ;;  %19717 = vst [vmem:[#allocation158_spill] sm:$0xff] %v17380_v49 }
 0x622   : > { %v8520_v54 = vmax.f32 %v10566_v59, %v8392_v58  ;;  %v5946_v1 = vmul.f32 0.01, %v10393_v12  ;;  %v10395_v31 = vadd.f32 %v5632_v44, %v17050_v8 }
 0x623   : > { %v6073_v5 = vmax.f32 %v10392_v3, %v5945_v61  ;;  %v8521_v46 = vmax.f32 %v10567_v62, %v8393_v63  ;;  %v5947_v55 = vmul.f32 0.01, %v10394_v24  ;;  %5895 = vmatmul.mubr.bf16.gmra.mrb[108].mxu1 %v11761_v37  ;;  %v8147_v45 = vpop.f32.mrb[176].mxu0  ;;  %v19720_v37 = vld [vmem:[#allocation13_spill] sm:$0xff] }
 0x624   : > { %v8624_v32 = vpack.c.bf16 %v8520_v54, %v8518_v52  ;;  %v6074_v36 = vmax.f32 %v10393_v12, %v5946_v1  ;;  %v5948_v7 = vmul.f32 0.01, %v10395_v31  ;;  %v10568_v39 = vadd.f32 %v8147_v45, %v19718_v20  ;;  %v8149_v25 = vpop.f32.mrb[177].mxu0  ;;  %5904 = vmatprep.mubr.bf16.mxu1 %v11762_v0 }
 0x625   : > { %v6075_v42 = vmax.f32 %v10394_v24, %v5947_v55  ;;  %v10569_v41 = vadd.f32 %v8149_v25, %v19718_v20  ;;  %v8151_v38 = vpop.f32.mrb[178].mxu0  ;;  %v8625_v59 = vpack.c.bf16 %v8521_v46, %v8519_v10  ;;  %v6457_v62 = vmul.f32 %v17380_v49, %v6073_v5  ;;  %v11764_v20 = vld [vmem:[#allocation3 + $0x388] ss:$16 sps:$4 sm:$0xff]  }
 0x626   : > { %v6076_v29 = vmax.f32 %v10395_v31, %v5948_v7  ;;  %v8394_v3 = vmul.f32 0.01, %v10568_v39  ;;  %v10570_v58 = vadd.f32 %v8151_v38, %v19720_v37  ;;  %v5636_v54 = vpop.f32.mrb[4].mxu1  ;;  %v8153_v1 = vpop.f32.mrb[179].mxu0  ;;  %v6458_v63 = vmul.f32 %v17380_v49, %v6074_v36  ;;  %v11765_v31 = vld [vmem:[#allocation3 + $0x3ac] ss:$16 sps:$4 sm:$0xff]  }
 0x627   : > { %v8395_v12 = vmul.f32 0.01, %v10569_v41  ;;  %v10396_v45 = vadd.f32 %v5636_v54, %v17040_v4  ;;  %v10571_v61 = vadd.f32 %v8153_v1, %v19720_v37  ;;  %v6459_v0 = vmul.f32 %v17383_v50, %v6075_v42  ;;  %v5638_v55 = vpop.f32.mrb[5].mxu1  ;;  %8688 = vmatprep.subr.bf16.mxu1 %v8625_v59  ;;  %v17395_v1 = vpop.permute.xlu1 %6210 }
 0x628   : > { %v8396_v7 = vmul.f32 0.01, %v10570_v58  ;;  %v6460_v24 = vmul.f32 %v17383_v50, %v6076_v29  ;;  %v10397_v44 = vadd.f32 %v5638_v55, %v17040_v4  ;;  %v5640_v52 = vpop.f32.mrb[6].mxu1  ;;  %8689 = vmatpush1.bf16.msra.mxu1 %v8624_v32  ;;  %v8522_v10 = vmax.f32 %v10568_v39, %v8394_v3  ;;  %19721 = vst [vmem:[#allocation155_spill] sm:$0xff] %v17395_v1  ;;  %v19722_v50 = vld [vmem:[#allocation84_spill] sm:$0xff] }
 0x629   : > { %v5949_v5 = vmul.f32 0.01, %v10396_v45  ;;  %v8397_v46 = vmul.f32 0.01, %v10571_v61  ;;  %v6585_v25 = vadd.f32 %v6459_v0, %v6457_v62  ;;  %v5642_v38 = vpop.f32.mrb[7].mxu1  ;;  %v10398_v59 = vadd.f32 %v5640_v52, %v17053_v53 }
 0x62a   : > { %v8524_v37 = vmax.f32 %v10570_v58, %v8396_v7  ;;  %v6654_v42 = vadd.f32 %v6460_v24, %v6458_v63  ;;  %v5950_v54 = vmul.f32 0.01, %v10397_v44  ;;  %v8523_v36 = vmax.f32 %v10569_v41, %v8395_v12  ;;  %v17403_v12 = vpop.permute.xlu0 %6214 }
 0x62b   : > { %v6077_v49 = vmax.f32 %v10396_v45, %v5949_v5  ;;  %v8525_v29 = vmax.f32 %v10571_v61, %v8397_v46  ;;  %v10399_v55 = vadd.f32 %v5642_v38, %v17053_v53  ;;  %5905 = vmatmul.mubr.bf16.gmra.mrb[112].mxu1 %v11764_v20  ;;  %v8157_v32 = vpop.f32.mrb[180].mxu0  ;;  %v5951_v3 = vmul.f32 0.01, %v10398_v59  ;;  %19723 = vst [vmem:[#allocation162_spill] sm:$0xff] %v17403_v12 }
 0x62c   : > { %v8626_v4 = vpack.c.bf16 %v8524_v37, %v8522_v10  ;;  %v6078_v39 = vmax.f32 %v10397_v44, %v5950_v54  ;;  %v10572_v62 = vadd.f32 %v8157_v32, %v19722_v50  ;;  %v8159_v0 = vpop.f32.mrb[181].mxu0  ;;  %5914 = vmatprep.mubr.bf16.mxu1 %v11765_v31  ;;  %v19724_v44 = vld [vmem:[#allocation69_spill] sm:$0xff] }
 0x62d   : > { %v5952_v58 = vmul.f32 0.01, %v10399_v55  ;;  %v17400_v63 = vadd.f32 %v8159_v0, %v19722_v50  ;;  %v6461_v7 = vmul.f32 %v17395_v1, %v6077_v49  ;;  %v8161_v41 = vpop.f32.mrb[182].mxu0  ;;  %v8627_v45 = vpack.c.bf16 %v8525_v29, %v8523_v36  ;;  %v11767_v37 = vld [vmem:[#allocation3 + $0x3a8] ss:$16 sps:$4 sm:$0xff]  }
 0x62e   : > { %v6079_v61 = vmax.f32 %v10398_v59, %v5951_v3  ;;  %v8398_v20 = vmul.f32 0.01, %v10572_v62  ;;  %v6462_v24 = vmul.f32 %v17395_v1, %v6078_v39  ;;  %v10574_v52 = vadd.f32 %v8161_v41, %v19724_v44  ;;  %v5646_v10 = vpop.f32.mrb[8].mxu1  ;;  %v8163_v5 = vpop.f32.mrb[183].mxu0  ;;  %v11768_v39 = vld [vmem:[#allocation3 + $0x3cc] ss:$16 sps:$4 sm:$0xff]  }
 0x62f   : > { %v6080_v46 = vmax.f32 %v10399_v55, %v5952_v58  ;;  %v17408_v31 = vmul.f32 0.01, %v17400_v63  ;;  %v6586_v50 = vadd.f32 %v6585_v25, %v6461_v7  ;;  %v10400_v38 = vadd.f32 %v5646_v10, %v17063_v9  ;;  %v5648_v49 = vpop.f32.mrb[9].mxu1  ;;  %8690 = vmatprep.subr.bf16.mxu1 %v8627_v45  ;;  %v17418_v45 = vpop.permute.xlu1 %6218 }
 0x630   : > { %v8526_v54 = vmax.f32 %v10572_v62, %v8398_v20  ;;  %v6655_v36 = vadd.f32 %v6654_v42, %v6462_v24  ;;  %v8400_v59 = vmul.f32 0.01, %v10574_v52  ;;  %v6463_v29 = vmul.f32 %v17403_v12, %v6079_v61  ;;  %v5650_v32 = vpop.f32.mrb[10].mxu1  ;;  %8691 = vmatpush1.bf16.msra.mxu1 %v8626_v4  ;;  %19725 = vst [vmem:[#allocation159_spill] sm:$0xff] %v17418_v45 }
 0x631   : > { %v8527_v55 = vmax.f32 %v17400_v63, %v17408_v31  ;;  %v6464_v3 = vmul.f32 %v17403_v12, %v6080_v46  ;;  %v5953_v0 = vmul.f32 0.01, %v10400_v38  ;;  %v10575_v25 = vadd.f32 %v8163_v5, %v19724_v44  ;;  %v5652_v58 = vpop.f32.mrb[11].mxu1  ;;  %v19726_v44 = vld [vmem:[#allocation14_spill] sm:$0xff] }
 0x632   : > { %v8528_v7 = vmax.f32 %v10574_v52, %v8400_v59  ;;  %v6587_v41 = vadd.f32 %v6586_v50, %v6463_v29  ;;  %v10401_v62 = vadd.f32 %v5648_v49, %v17063_v9  ;;  %v10402_v42 = vadd.f32 %v5650_v32, %v17066_v57  ;;  %v17426_v29 = vpop.permute.xlu0 %6222 }
 0x633   : > { %v6656_v61 = vadd.f32 %v6655_v36, %v6464_v3  ;;  %v6081_v4 = vmax.f32 %v10400_v38, %v5953_v0  ;;  %v8401_v20 = vmul.f32 0.01, %v10575_v25  ;;  %v10403_v24 = vadd.f32 %v5652_v58, %v17066_v57  ;;  %5915 = vmatmul.mubr.bf16.gmra.mrb[116].mxu1 %v11767_v37  ;;  %v8167_v63 = vpop.f32.mrb[184].mxu0  ;;  %19727 = vst [vmem:[#allocation163_spill] sm:$0xff] %v17426_v29  ;;  %v17441_v53 = vpop.permute.xlu1 %6226 }
 0x634   : > { %v8628_v10 = vpack.c.bf16 %v8528_v7, %v8526_v54  ;;  %v5954_v46 = vmul.f32 0.01, %v10401_v62  ;;  %v5955_v31 = vmul.f32 0.01, %v10402_v42  ;;  %v10576_v5 = vadd.f32 %v8167_v63, %v19726_v44  ;;  %v8169_v52 = vpop.f32.mrb[185].mxu0  ;;  %5924 = vmatprep.mubr.bf16.mxu1 %v11768_v39  ;;  %v19728_v54 = vld [vmem:[#allocation72_spill] sm:$0xff] }
 0x635   : > { %v8529_v50 = vmax.f32 %v10575_v25, %v8401_v20  ;;  %v5956_v49 = vmul.f32 0.01, %v10403_v24  ;;  %v17423_v59 = vadd.f32 %v8169_v52, %v19726_v44  ;;  %v6465_v36 = vmul.f32 %v17418_v45, %v6081_v4  ;;  %v8171_v38 = vpop.f32.mrb[186].mxu0  ;;  %v11770_v52 = vld [vmem:[#allocation3 + $0x3c8] ss:$16 sps:$4 sm:$0xff]  }
 0x636   : > { %v6082_v32 = vmax.f32 %v10401_v62, %v5954_v46  ;;  %v6083_v37 = vmax.f32 %v10402_v42, %v5955_v31  ;;  %v8402_v3 = vmul.f32 0.01, %v10576_v5  ;;  %v10578_v0 = vadd.f32 %v8171_v38, %v19728_v54  ;;  %v5656_v58 = vpop.f32.mrb[12].mxu1  ;;  %v8173_v7 = vpop.f32.mrb[187].mxu0  ;;  %v11771_v46 = vld [vmem:[#allocation3 + $0x3ec] ss:$16 sps:$4 sm:$0xff]  }
 0x637   : > { %v6084_v63 = vmax.f32 %v10403_v24, %v5956_v49  ;;  %v17430_v39 = vmul.f32 0.01, %v17423_v59  ;;  %v6588_v25 = vadd.f32 %v6587_v41, %v6465_v36  ;;  %v10404_v20 = vadd.f32 %v5656_v58, %v17070_v43  ;;  %v5658_v44 = vpop.f32.mrb[13].mxu1 }
 0x638   : > { %v8530_v4 = vmax.f32 %v10576_v5, %v8402_v3  ;;  %v6466_v57 = vmul.f32 %v17418_v45, %v6082_v32  ;;  %v8404_v9 = vmul.f32 0.01, %v10578_v0  ;;  %v6467_v62 = vmul.f32 %v17426_v29, %v6083_v37  ;;  %v5660_v42 = vpop.f32.mrb[14].mxu1 }
 0x639   : > { %v8531_v31 = vmax.f32 %v17423_v59, %v17430_v39  ;;  %v6468_v24 = vmul.f32 %v17426_v29, %v6084_v63  ;;  %v5957_v49 = vmul.f32 0.01, %v10404_v20  ;;  %v10579_v41 = vadd.f32 %v8173_v7, %v19728_v54  ;;  %v5662_v36 = vpop.f32.mrb[15].mxu1  ;;  %v654_v59 = vld [vmem:[#allocation2] sm:$0x1] }
 0x63a   : > { %v6657_v38 = vadd.f32 %v6656_v61, %v6466_v57  ;;  %v8532_v58 = vmax.f32 %v10578_v0, %v8404_v9  ;;  %v6589_v12 = vadd.f32 %v6588_v25, %v6467_v62  ;;  %v10405_v5 = vadd.f32 %v5658_v44, %v17070_v43  ;;  %6725 = vperm.xlu1 %11388, %v654_v59   ;;  %v19729_v0 = vld [vmem:[#allocation73_spill] sm:$0xff]  ;;  %v17448_v25 = vpop.permute.xlu0 %6230 }
 0x63b   : > { %v6085_v32 = vmax.f32 %v10404_v20, %v5957_v49  ;;  %v8405_v3 = vmul.f32 0.01, %v10579_v41  ;;  %v8629_v45 = vpack.c.bf16 %v8529_v50, %v8527_v55  ;;  %v10406_v37 = vadd.f32 %v5660_v42, %v17079_v18  ;;  %5925 = vmatmul.mubr.bf16.gmra.mrb[120].mxu1 %v11770_v52  ;;  %v8177_v1 = vpop.f32.mrb[188].mxu0 }
 0x63c   : > { %v8630_v63 = vpack.c.bf16 %v8532_v58, %v8530_v4  ;;  %v6658_v39 = vadd.f32 %v6657_v38, %v6468_v24  ;;  %v5958_v29 = vmul.f32 0.01, %v10405_v5  ;;  %v10407_v54 = vadd.f32 %v5662_v36, %v17079_v18  ;;  %v8179_v57 = vpop.f32.mrb[189].mxu0  ;;  %5934 = vmatprep.mubr.bf16.mxu1 %v11771_v46  ;;  %v19730_v4 = vld [vmem:[#allocation15_spill] sm:$0xff] }
 0x63d   : > { %v8533_v9 = vmax.f32 %v10579_v41, %v8405_v3  ;;  %8692 = vmatprep.subr.bf16.mxu1 %v8629_v45  ;;  %v5959_v61 = vmul.f32 0.01, %v10406_v37  ;;  %v10580_v55 = vadd.f32 %v8177_v1, %v19729_v0  ;;  %v17446_v50 = vadd.f32 %v8179_v57, %v19729_v0  ;;  %v8181_v7 = vpop.f32.mrb[190].mxu0  ;;  %v11773_v24 = vld [vmem:[#allocation3 + $0x3e8] ss:$16 sps:$4 sm:$0xff]  }
 0x63e   : > { %v6086_v20 = vmax.f32 %v10405_v5, %v5958_v29  ;;  %8693 = vmatpush1.bf16.msra.mxu1 %v8628_v10  ;;  %v5960_v44 = vmul.f32 0.01, %v10407_v54  ;;  %v6469_v52 = vmul.f32 %v17441_v53, %v6085_v32  ;;  %v10582_v62 = vadd.f32 %v8181_v7, %v19730_v4  ;;  %v5666_v42 = vpop.f32.mrb[16].mxu1  ;;  %v8183_v46 = vpop.f32.mrb[191].mxu0 }
 0x63f   : > { %v6087_v45 = vmax.f32 %v10406_v37, %v5959_v61  ;;  %v8406_v49 = vmul.f32 0.01, %v10580_v55  ;;  %v17453_v1 = vmul.f32 0.01, %v17446_v50  ;;  %v10408_v41 = vadd.f32 %v5666_v42, %v17083_v60  ;;  %v5668_v36 = vpop.f32.mrb[17].mxu1 }
 0x640   : > { %v6088_v38 = vmax.f32 %v10407_v54, %v5960_v44  ;;  %v6470_v29 = vmul.f32 %v17441_v53, %v6086_v20  ;;  %v6590_v10 = vadd.f32 %v6589_v12, %v6469_v52  ;;  %v8408_v58 = vmul.f32 0.01, %v10582_v62  ;;  %v5670_v5 = vpop.f32.mrb[18].mxu1  ;;  %v17463_v52 = vpop.permute.xlu1 %6234 }
 0x641   : > { %v8534_v32 = vmax.f32 %v10580_v55, %v8406_v49  ;;  %v8535_v3 = vmax.f32 %v17446_v50, %v17453_v1  ;;  %v6471_v59 = vmul.f32 %v17448_v25, %v6087_v45  ;;  %v5961_v37 = vmul.f32 0.01, %v10408_v41  ;;  %v5672_v57 = vpop.f32.mrb[19].mxu1 }
 0x642   : > { %v6659_v61 = vadd.f32 %v6658_v39, %v6470_v29  ;;  %v8536_v0 = vmax.f32 %v10582_v62, %v8408_v58  ;;  %v6472_v7 = vmul.f32 %v17448_v25, %v6088_v38  ;;  %v10583_v42 = vadd.f32 %v8183_v46, %v19730_v4  ;;  %v12046_v62 = vld [vmem:[#allocation3 + $0x4] ss:$16 sps:$4 sm:$0xff]   ;;  %v19731_v46 = vld [vmem:[#allocation71_spill] sm:$0xff] }
 0x643   : > { %v6591_v54 = vadd.f32 %v6590_v10, %v6471_v59  ;;  %v6089_v44 = vmax.f32 %v10408_v41, %v5961_v37  ;;  %v10409_v12 = vadd.f32 %v5668_v36, %v17083_v60  ;;  %v8631_v20 = vpack.c.bf16 %v8533_v9, %v8531_v31  ;;  %5935 = vmatmul.mubr.bf16.gmra.mrb[124].mxu1 %v11773_v24  ;;  %v8187_v55 = vpop.f32.mrb[192].mxu0  ;;  %v19732_v10 = vld [vmem:[#allocation70_spill] sm:$0xff] }
 0x644   : > { %v8632_v50 = vpack.c.bf16 %v8536_v0, %v8534_v32  ;;  %v6660_v49 = vadd.f32 %v6659_v61, %v6472_v7  ;;  %v8409_v45 = vmul.f32 0.01, %v10583_v42  ;;  %v10410_v1 = vadd.f32 %v5670_v5, %v17086_v13  ;;  %v8189_v39 = vpop.f32.mrb[193].mxu0  ;;  %8698 = vmatprep.mubr.bf16.mxu1 %v12046_v62  ;;  %v17476_v0 = vpop.permute.xlu0 %6238 }
 0x645   : > { %v5962_v38 = vmul.f32 0.01, %v10409_v12  ;;  %8694 = vmatprep.subr.bf16.mxu1 %v8631_v20  ;;  %v10411_v4 = vadd.f32 %v5672_v57, %v17086_v13  ;;  %v10584_v41 = vadd.f32 %v8187_v55, %v19731_v46  ;;  %v17469_v31 = vadd.f32 %v8189_v39, %v19731_v46  ;;  %v8191_v9 = vpop.f32.mrb[194].mxu0  ;;  %19733 = vst [vmem:[#allocation161_spill] sm:$0xff] %v17476_v0 }
 0x646   : > { %v8537_v24 = vmax.f32 %v10583_v42, %v8409_v45  ;;  %v5963_v36 = vmul.f32 0.01, %v10410_v1  ;;  %8695 = vmatpush1.bf16.msra.mxu1 %v8630_v63  ;;  %v6473_v29 = vmul.f32 %v17463_v52, %v6089_v44  ;;  %v10586_v58 = vadd.f32 %v8191_v9, %v19732_v10  ;;  %v5676_v5 = vpop.f32.mrb[20].mxu1  ;;  %v8193_v32 = vpop.f32.mrb[195].mxu0 }
 0x647   : > { %v6090_v59 = vmax.f32 %v10409_v12, %v5962_v38  ;;  %v5964_v37 = vmul.f32 0.01, %v10411_v4  ;;  %v8410_v61 = vmul.f32 0.01, %v10584_v41  ;;  %v17474_v57 = vmul.f32 0.01, %v17469_v31 }
 0x648   : > { %v6091_v7 = vmax.f32 %v10410_v1, %v5963_v36  ;;  %v6592_v20 = vadd.f32 %v6591_v54, %v6473_v29  ;;  %v8412_v55 = vmul.f32 0.01, %v10586_v58  ;;  %v10412_v42 = vadd.f32 %v5676_v5, %v17096_v27  ;;  %v5678_v63 = vpop.f32.mrb[21].mxu1  ;;  %v17486_v5 = vpop.permute.xlu1 %6242 }
 0x649   : > { %v6092_v45 = vmax.f32 %v10411_v4, %v5964_v37  ;;  %v8538_v44 = vmax.f32 %v10584_v41, %v8410_v61  ;;  %v6474_v12 = vmul.f32 %v17463_v52, %v6090_v59  ;;  %v5680_v62 = vpop.f32.mrb[22].mxu1  ;;  %v10587_v13 = vadd.f32 %v8193_v32, %v19732_v10 }
 0x64a   : > { %v8540_v38 = vmax.f32 %v10586_v58, %v8412_v55  ;;  %v6475_v46 = vmul.f32 %v17476_v0, %v6091_v7  ;;  %v5965_v9 = vmul.f32 0.01, %v10412_v42  ;;  %v5682_v1 = vpop.f32.mrb[23].mxu1  ;;  %v10413_v29 = vadd.f32 %v5678_v63, %v17096_v27 }
 0x64b   : > { %v6661_v54 = vadd.f32 %v6660_v49, %v6474_v12  ;;  %v6476_v36 = vmul.f32 %v17476_v0, %v6092_v45  ;;  %v8633_v4 = vpack.c.bf16 %v8537_v24, %v8535_v3  ;;  %v8197_v41 = vpop.f32.mrb[196].mxu0  ;;  %v8413_v58 = vmul.f32 0.01, %v10587_v13  ;;  %v19734_v3 = vld [vmem:[#allocation18_spill] sm:$0xff] }
 0x64c   : > { %v17488_v37 = vpack.c.bf16 %v8540_v38, %v8538_v44  ;;  %v6593_v59 = vadd.f32 %v6592_v20, %v6475_v46  ;;  %v6093_v61 = vmax.f32 %v10412_v42, %v5965_v9  ;;  %v8199_v55 = vpop.f32.mrb[197].mxu0  ;;  %v5966_v39 = vmul.f32 0.01, %v10413_v29  ;;  %v19735_v9 = vld [vmem:[#allocation76_spill] sm:$0xff] }
 0x64d   : > { %v6662_v7 = vadd.f32 %v6661_v54, %v6476_v36  ;;  %8696 = vmatprep.subr.bf16.mxu1 %v8633_v4  ;;  %v10414_v10 = vadd.f32 %v5680_v62, %v17099_v56  ;;  %v10415_v49 = vadd.f32 %v5682_v1, %v17099_v56  ;;  %v8201_v32 = vpop.f32.mrb[198].mxu0  ;;  %v8541_v45 = vmax.f32 %v10587_v13, %v8413_v58 }
 0x64e   : > { %8697 = vmatpush1.bf16.msra.mxu1 %v8632_v50  ;;  %v10588_v24 = vadd.f32 %v8197_v41, %v19734_v3  ;;  %v17494_v63 = vadd.f32 %v8199_v55, %v19734_v3  ;;  %v6477_v20 = vmul.f32 %v17486_v5, %v6093_v61  ;;  %v5686_v42 = vpop.f32.mrb[24].mxu1  ;;  %v8203_v44 = vpop.f32.mrb[199].mxu0  ;;  %v6094_v12 = vmax.f32 %v10413_v29, %v5966_v39  ;;  %v12047_v55 = vld [vmem:[#allocation3] ss:$16 sps:$4 sm:$0xff]  }
 0x64f   : > { %v5967_v38 = vmul.f32 0.01, %v10414_v10  ;;  %v5968_v46 = vmul.f32 0.01, %v10415_v49  ;;  %v10590_v54 = vadd.f32 %v8201_v32, %v19735_v9  ;;  %v5688_v62 = vpop.f32.mrb[25].mxu1  ;;  %v17501_v50 = vpop.permute.xlu0 %6246  ;;  %v10416_v4 = vadd.f32 %v5686_v42, %v17109_v23 }
 0x650   : > { %v8414_v36 = vmul.f32 0.01, %v10588_v24  ;;  %v17499_v1 = vmul.f32 0.01, %v17494_v63  ;;  %v6594_v13 = vadd.f32 %v6593_v59, %v6477_v20  ;;  %19736 = vst [vmem:[#allocation160_spill] sm:$0xff] %v17501_v50  ;;  %v5690_v41 = vpop.f32.mrb[26].mxu1  ;;  %v6478_v39 = vmul.f32 %v17486_v5, %v6094_v12 }
 0x651   : > { %v6095_v58 = vmax.f32 %v10414_v10, %v5967_v38  ;;  %v6096_v61 = vmax.f32 %v10415_v49, %v5968_v46  ;;  %8699 = vmatmul.mubr.bf16.vlgmr.msra.gmra.mrb[128].mxu1 %v12047_v55  ;;  %v8416_v29 = vmul.f32 0.01, %v10590_v54  ;;  %v5692_v3 = vpop.f32.mrb[27].mxu1  ;;  %v5969_v27 = vmul.f32 0.01, %v10416_v4 }
 0x652   : > { %v8542_v32 = vmax.f32 %v10588_v24, %v8414_v36  ;;  %v17508_v59 = vadd.f32 %v8203_v44, %v19735_v9  ;;  %v12048_v20 = vld [vmem:[#allocation3 + $0x24] ss:$16 sps:$4 sm:$0xff]   ;;  %v6663_v42 = vadd.f32 %v6662_v7, %v6478_v39  ;;  %v10417_v24 = vadd.f32 %v5688_v62, %v17109_v23  ;;  %v17517_v9 = vpop.permute.xlu1 %6250  ;;  %v19738_v39 = vld [vmem:[#allocation81_spill] sm:$0xff] }
 0x653   : > { %8708 = vmatprep.mubr.bf16.mxu1 %v12048_v20  ;;  %v8544_v0 = vmax.f32 %v10590_v54, %v8416_v29  ;;  %v6479_v10 = vmul.f32 %v17501_v50, %v6095_v58  ;;  %v6480_v49 = vmul.f32 %v17501_v50, %v6096_v61  ;;  %v8207_v38 = vpop.f32.mrb[200].mxu0  ;;  %v6097_v12 = vmax.f32 %v10416_v4, %v5969_v27 }
 0x654   : > { %v8417_v46 = vmul.f32 0.01, %v17508_v59  ;;  %v19737_v36 = vmax.f32 %v17469_v31, %v17474_v57  ;;  %v8209_v44 = vpop.f32.mrb[201].mxu0  ;;  %v10418_v58 = vadd.f32 %v5690_v41, %v17112_v15  ;;  %v5970_v4 = vmul.f32 0.01, %v10417_v24  ;;  %v19739_v41 = vld [vmem:[#allocation20_spill] sm:$0xff] }
 0x655   : > { %v17519_v20 = vpack.c.bf16 %v8544_v0, %v8542_v32  ;;  %v6595_v7 = vadd.f32 %v6594_v13, %v6479_v10  ;;  %v6664_v54 = vadd.f32 %v6663_v42, %v6480_v49  ;;  %v8211_v61 = vpop.f32.mrb[202].mxu0  ;;  %v10419_v62 = vadd.f32 %v5692_v3, %v17112_v15  ;;  %v12050_v15 = vld [vmem:[#allocation3 + $0x44] ss:$16 sps:$4 sm:$0xff]  }
 0x656   : > { %v8635_v55 = vpack.c.bf16 %v8541_v45, %v19737_v36  ;;  %v8545_v27 = vmax.f32 %v17508_v59, %v8417_v46  ;;  %v10592_v29 = vadd.f32 %v8207_v38, %v19738_v39  ;;  %v5696_v31 = vpop.f32.mrb[28].mxu1  ;;  %v8213_v57 = vpop.f32.mrb[203].mxu0  ;;  %v5971_v45 = vmul.f32 0.01, %v10418_v58 }
 0x657   : > { %v17527_v0 = vadd.f32 %v8209_v44, %v19738_v39  ;;  %v6481_v13 = vmul.f32 %v17517_v9, %v6097_v12  ;;  %v10594_v32 = vadd.f32 %v8211_v61, %v19739_v41  ;;  %v5698_v42 = vpop.f32.mrb[29].mxu1  ;;  %v6098_v59 = vmax.f32 %v10417_v24, %v5970_v4  ;;  %v17531_v46 = vpop.permute.xlu0 %6254 }
 0x658   : > { %9019 = vmatprep.subr.bf16.mxu1 %v8635_v55  ;;  %v5972_v10 = vmul.f32 0.01, %v10419_v62  ;;  %v8418_v49 = vmul.f32 0.01, %v10592_v29  ;;  %v10420_v3 = vadd.f32 %v5696_v31, %v17116_v16  ;;  %v5700_v38 = vpop.f32.mrb[30].mxu1  ;;  %v6099_v36 = vmax.f32 %v10418_v58, %v5971_v45 }
 0x659   : > { %9020 = vmatpush1.bf16.msra.mxu1 %v17488_v37  ;;  %v12049_v55 = vld [vmem:[#allocation3 + $0x20] ss:$16 sps:$4 sm:$0xff]   ;;  %v17535_v37 = vmul.f32 0.01, %v17527_v0  ;;  %v6596_v44 = vadd.f32 %v6595_v7, %v6481_v13  ;;  %v8420_v39 = vmul.f32 0.01, %v10594_v32  ;;  %v6482_v24 = vmul.f32 %v17517_v9, %v6098_v59  ;;  %v17544_v59 = vpop.permute.xlu1 %6258 }
 0x65a   : > { %8709 = vmatmul.mubr.bf16.gmra.mrb[132].mxu1 %v12049_v55  ;;  %v5702_v12 = vpop.f32.mrb[31].mxu1  ;;  %v6100_v56 = vmax.f32 %v10419_v62, %v5972_v10  ;;  %v8546_v61 = vmax.f32 %v10592_v29, %v8418_v49  ;;  %v5973_v4 = vmul.f32 0.01, %v10420_v3  ;;  %v6483_v58 = vmul.f32 %v17531_v46, %v6099_v36  ;;  %19740 = vst [vmem:[#allocation167_spill] sm:$0xff] %v17544_v59 }
 0x65b   : > { %8718 = vmatprep.mubr.bf16.mxu1 %v12050_v15  ;;  %v8547_v31 = vmax.f32 %v17527_v0, %v17535_v37  ;;  %v8548_v23 = vmax.f32 %v10594_v32, %v8420_v39  ;;  %v10595_v45 = vadd.f32 %v8213_v57, %v19739_v41  ;;  %v8217_v55 = vpop.f32.mrb[204].mxu0  ;;  %v6665_v50 = vadd.f32 %v6664_v54, %v6482_v24  ;;  %v19742_v39 = vld [vmem:[#allocation74_spill] sm:$0xff] }
 0x65c   : > { %v6484_v7 = vmul.f32 %v17531_v46, %v6100_v56  ;;  %v6101_v13 = vmax.f32 %v10420_v3, %v5973_v4  ;;  %v10421_v62 = vadd.f32 %v5698_v42, %v17116_v16  ;;  %v8219_v29 = vpop.f32.mrb[205].mxu0  ;;  %v6597_v15 = vadd.f32 %v6596_v44, %v6483_v58  ;;  %v12051_v58 = vld [vmem:[#allocation3 + $0x40] ss:$16 sps:$4 sm:$0xff]  }
 0x65d   : > { %v17546_v10 = vpack.c.bf16 %v8548_v23, %v8546_v61  ;;  %v8421_v49 = vmul.f32 0.01, %v10595_v45  ;;  %v19741_v0 = vmax.f32 %v17494_v63, %v17499_v1  ;;  %v8221_v36 = vpop.f32.mrb[206].mxu0  ;;  %v10422_v54 = vadd.f32 %v5700_v38, %v17125_v34  ;;  %v19743_v38 = vld [vmem:[#allocation80_spill] sm:$0xff] }
 0x65e   : > { %v6666_v57 = vadd.f32 %v6665_v50, %v6484_v7  ;;  %v5974_v41 = vmul.f32 0.01, %v10421_v62  ;;  %v10423_v56 = vadd.f32 %v5702_v12, %v17125_v34  ;;  %v5706_v3 = vpop.f32.mrb[32].mxu1  ;;  %v8223_v42 = vpop.f32.mrb[207].mxu0  ;;  %v10596_v23 = vadd.f32 %v8217_v55, %v19742_v39 }
 0x65f   : > { %v8637_v32 = vpack.c.bf16 %v8545_v27, %v19741_v0  ;;  %v8549_v37 = vmax.f32 %v10595_v45, %v8421_v49  ;;  %v17555_v44 = vadd.f32 %v8219_v29, %v19742_v39  ;;  %v6485_v61 = vmul.f32 %v17544_v59, %v6101_v13  ;;  %v5708_v63 = vpop.f32.mrb[33].mxu1  ;;  %v17563_v7 = vpop.permute.xlu0 %6262 }
 0x660   : > { %v6102_v1 = vmax.f32 %v10421_v62, %v5974_v41  ;;  %v5975_v27 = vmul.f32 0.01, %v10422_v54  ;;  %v5976_v50 = vmul.f32 0.01, %v10423_v56  ;;  %v10598_v24 = vadd.f32 %v8221_v36, %v19743_v38  ;;  %v5710_v12 = vpop.f32.mrb[34].mxu1  ;;  %19744 = vst [vmem:[#allocation164_spill] sm:$0xff] %v17563_v7 }
 0x661   : > { %9021 = vmatprep.subr.bf16.mxu1 %v8637_v32  ;;  %v8422_v4 = vmul.f32 0.01, %v10596_v23  ;;  %v17561_v45 = vmul.f32 0.01, %v17555_v44  ;;  %v6598_v55 = vadd.f32 %v6597_v15, %v6485_v61  ;;  %v10424_v13 = vadd.f32 %v5706_v3, %v17129_v35  ;;  %v5712_v29 = vpop.f32.mrb[35].mxu1 }
 0x662   : > { %9022 = vmatpush1.bf16.msra.mxu1 %v17519_v20  ;;  %v6103_v62 = vmax.f32 %v10422_v54, %v5975_v27  ;;  %v6104_v49 = vmax.f32 %v10423_v56, %v5976_v50  ;;  %v6486_v20 = vmul.f32 %v17544_v59, %v6102_v1  ;;  %v8424_v0 = vmul.f32 0.01, %v10598_v24  ;;  %v12052_v32 = vld [vmem:[#allocation3 + $0x64] ss:$16 sps:$4 sm:$0xff]  }
 0x663   : > { %8719 = vmatmul.mubr.bf16.gmra.mrb[136].mxu1 %v12051_v58  ;;  %v8550_v36 = vmax.f32 %v10596_v23, %v8422_v4  ;;  %v5977_v39 = vmul.f32 0.01, %v10424_v13  ;;  %v17570_v58 = vadd.f32 %v8223_v42, %v19743_v38  ;;  %v8227_v15 = vpop.f32.mrb[208].mxu0  ;;  %v10425_v23 = vadd.f32 %v5708_v63, %v17129_v35  ;;  %v17576_v4 = vpop.permute.xlu1 %6266 }
 0x664   : > { %8728 = vmatprep.mubr.bf16.mxu1 %v12052_v32  ;;  %v6667_v61 = vadd.f32 %v6666_v57, %v6486_v20  ;;  %v8552_v34 = vmax.f32 %v10598_v24, %v8424_v0  ;;  %v6487_v3 = vmul.f32 %v17563_v7, %v6103_v62  ;;  %v6488_v54 = vmul.f32 %v17563_v7, %v6104_v49  ;;  %v8229_v56 = vpop.f32.mrb[209].mxu0  ;;  %v19745_v0 = vld [vmem:[#allocation78_spill] sm:$0xff] }
 0x665   : > { %v6105_v1 = vmax.f32 %v10424_v13, %v5977_v39  ;;  %v8425_v27 = vmul.f32 0.01, %v17570_v58  ;;  %v8639_v50 = vpack.c.bf16 %v8549_v37, %v8547_v31  ;;  %v8231_v32 = vpop.f32.mrb[210].mxu0  ;;  %v10426_v57 = vadd.f32 %v5710_v12, %v17132_v47  ;;  %v19746_v12 = vld [vmem:[#allocation19_spill] sm:$0xff] }
 0x666   : > { %v17578_v41 = vpack.c.bf16 %v8552_v34, %v8550_v36  ;;  %v6599_v42 = vadd.f32 %v6598_v55, %v6487_v3  ;;  %v6668_v38 = vadd.f32 %v6667_v61, %v6488_v54  ;;  %v5716_v24 = vpop.f32.mrb[36].mxu1  ;;  %v8233_v62 = vpop.f32.mrb[211].mxu0  ;;  %v5978_v20 = vmul.f32 0.01, %v10425_v23  ;;  %v12053_v54 = vld [vmem:[#allocation3 + $0x60] ss:$16 sps:$4 sm:$0xff]  }
 0x667   : > { %v8553_v49 = vmax.f32 %v17570_v58, %v8425_v27  ;;  %9023 = vmatprep.subr.bf16.mxu1 %v8639_v50  ;;  %v10427_v13 = vadd.f32 %v5712_v29, %v17132_v47  ;;  %v10600_v63 = vadd.f32 %v8227_v15, %v19745_v0  ;;  %v5718_v31 = vpop.f32.mrb[37].mxu1  ;;  %v5979_v37 = vmul.f32 0.01, %v10426_v57  ;;  %v17590_v29 = vpop.permute.xlu0 %6270 }
 0x668   : > { %9024 = vmatpush1.bf16.msra.mxu1 %v17546_v10  ;;  %v17586_v34 = vadd.f32 %v8229_v56, %v19745_v0  ;;  %v6489_v55 = vmul.f32 %v17576_v4, %v6105_v1  ;;  %v10602_v36 = vadd.f32 %v8231_v32, %v19746_v12  ;;  %v5720_v39 = vpop.f32.mrb[38].mxu1  ;;  %v6106_v61 = vmax.f32 %v10425_v23, %v5978_v20  ;;  %v12054_v1 = vld [vmem:[#allocation3 + $0x84] ss:$16 sps:$4 sm:$0xff]  }
 0x669   : > { %v5980_v58 = vmul.f32 0.01, %v10427_v13  ;;  %v8426_v3 = vmul.f32 0.01, %v10600_v63  ;;  %v10428_v15 = vadd.f32 %v5716_v24, %v17142_v17  ;;  %v5722_v27 = vpop.f32.mrb[39].mxu1  ;;  %v6107_v50 = vmax.f32 %v10426_v57, %v5979_v37 }
 0x66a   : > { %v17594_v10 = vmul.f32 0.01, %v17586_v34  ;;  %v6600_v56 = vadd.f32 %v6599_v42, %v6489_v55  ;;  %v8428_v0 = vmul.f32 0.01, %v10602_v36  ;;  %v6490_v23 = vmul.f32 %v17576_v4, %v6106_v61 }
 0x66b   : > { %8729 = vmatmul.mubr.bf16.gmra.mrb[140].mxu1 %v12053_v54  ;;  %v6108_v32 = vmax.f32 %v10427_v13, %v5980_v58  ;;  %v8554_v47 = vmax.f32 %v10600_v63, %v8426_v3  ;;  %v5981_v20 = vmul.f32 0.01, %v10428_v15  ;;  %v8237_v35 = vpop.f32.mrb[212].mxu0  ;;  %v6491_v24 = vmul.f32 %v17590_v29, %v6107_v50  ;;  %v17603_v63 = vpop.permute.xlu1 %6274 }
 0x66c   : > { %8738 = vmatprep.mubr.bf16.mxu1 %v12054_v1  ;;  %v8555_v54 = vmax.f32 %v17586_v34, %v17594_v10  ;;  %v8556_v7 = vmax.f32 %v10602_v36, %v8428_v0  ;;  %v10603_v57 = vadd.f32 %v8233_v62, %v19746_v12  ;;  %v8239_v37 = vpop.f32.mrb[213].mxu0  ;;  %v6669_v59 = vadd.f32 %v6668_v38, %v6490_v23  ;;  %v19749_v23 = vld [vmem:[#allocation88_spill] sm:$0xff] }
 0x66d   : > { %v6492_v42 = vmul.f32 %v17590_v29, %v6108_v32  ;;  %v6109_v55 = vmax.f32 %v10428_v15, %v5981_v20  ;;  %v10429_v13 = vadd.f32 %v5718_v31, %v17142_v17  ;;  %v8241_v61 = vpop.f32.mrb[214].mxu0  ;;  %v6601_v3 = vadd.f32 %v6600_v56, %v6491_v24  ;;  %v19748_v32 = vld [vmem:[#allocation83_spill] sm:$0xff]  ;;  %v12055_v24 = vld [vmem:[#allocation3 + $0x80] ss:$16 sps:$4 sm:$0xff]  }
 0x66e   : > { %v17605_v58 = vpack.c.bf16 %v8556_v7, %v8554_v47  ;;  %v8429_v1 = vmul.f32 0.01, %v10603_v57  ;;  %v19747_v34 = vmax.f32 %v17555_v44, %v17561_v45  ;;  %v5726_v50 = vpop.f32.mrb[40].mxu1  ;;  %v8243_v62 = vpop.f32.mrb[215].mxu0  ;;  %v10430_v10 = vadd.f32 %v5720_v39, %v17145_v21 }
 0x66f   : > { %v6670_v12 = vadd.f32 %v6669_v59, %v6492_v42  ;;  %v5982_v38 = vmul.f32 0.01, %v10429_v13  ;;  %v10431_v15 = vadd.f32 %v5722_v27, %v17145_v21  ;;  %v5728_v31 = vpop.f32.mrb[41].mxu1  ;;  %v10604_v47 = vadd.f32 %v8237_v35, %v19748_v32 }
 0x670   : > { %v8641_v36 = vpack.c.bf16 %v8553_v49, %v19747_v34  ;;  %v8557_v0 = vmax.f32 %v10603_v57, %v8429_v1  ;;  %v17614_v7 = vadd.f32 %v8239_v37, %v19748_v32  ;;  %v6493_v56 = vmul.f32 %v17603_v63, %v6109_v55  ;;  %v5730_v44 = vpop.f32.mrb[42].mxu1  ;;  %v17622_v37 = vpop.permute.xlu0 %6278  ;;  %v12056_v34 = vld [vmem:[#allocation3 + $0xa4] ss:$16 sps:$4 sm:$0xff]  }
 0x671   : > { %v6110_v45 = vmax.f32 %v10429_v13, %v5982_v38  ;;  %v5983_v49 = vmul.f32 0.01, %v10430_v10  ;;  %v5984_v59 = vmul.f32 0.01, %v10431_v15  ;;  %v10606_v39 = vadd.f32 %v8241_v61, %v19749_v23  ;;  %v5732_v20 = vpop.f32.mrb[43].mxu1  ;;  %19750 = vst [vmem:[#allocation168_spill] sm:$0xff] %v17622_v37 }
 0x672   : > { %9025 = vmatprep.subr.bf16.mxu1 %v8641_v36  ;;  %v8430_v27 = vmul.f32 0.01, %v10604_v47  ;;  %v17620_v57 = vmul.f32 0.01, %v17614_v7  ;;  %v6602_v35 = vadd.f32 %v6601_v3, %v6493_v56  ;;  %v10432_v42 = vadd.f32 %v5726_v50, %v17155_v2 }
 0x673   : > { %9026 = vmatpush1.bf16.msra.mxu1 %v17578_v41  ;;  %v6111_v55 = vmax.f32 %v10430_v10, %v5983_v49  ;;  %v6112_v13 = vmax.f32 %v10431_v15, %v5984_v59  ;;  %v6494_v1 = vmul.f32 %v17603_v63, %v6110_v45  ;;  %v8432_v41 = vmul.f32 0.01, %v10606_v39  ;;  %v8247_v61 = vpop.f32.mrb[216].mxu0  ;;  %v17633_v15 = vpop.permute.xlu1 %6282 }
 0x674   : > { %8739 = vmatmul.mubr.bf16.gmra.mrb[144].mxu1 %v12055_v24  ;;  %v8558_v36 = vmax.f32 %v10604_v47, %v8430_v27  ;;  %v5985_v32 = vmul.f32 0.01, %v10432_v42  ;;  %v17629_v24 = vadd.f32 %v8243_v62, %v19749_v23  ;;  %v8249_v3 = vpop.f32.mrb[217].mxu0  ;;  %19751 = vst [vmem:[#allocation166_spill] sm:$0xff] %v17633_v15  ;;  %v10433_v59 = vadd.f32 %v5728_v31, %v17155_v2 }
 0x675   : > { %8748 = vmatprep.mubr.bf16.mxu1 %v12056_v34  ;;  %v6671_v56 = vadd.f32 %v6670_v12, %v6494_v1  ;;  %v8560_v21 = vmax.f32 %v10606_v39, %v8432_v41  ;;  %v6495_v50 = vmul.f32 %v17622_v37, %v6111_v55  ;;  %v6496_v10 = vmul.f32 %v17622_v37, %v6112_v13  ;;  %v8251_v45 = vpop.f32.mrb[218].mxu0  ;;  %v19752_v41 = vld [vmem:[#allocation87_spill] sm:$0xff] }
 0x676   : > { %v6113_v49 = vmax.f32 %v10432_v42, %v5985_v32  ;;  %v8433_v47 = vmul.f32 0.01, %v17629_v24  ;;  %v8643_v27 = vpack.c.bf16 %v8557_v0, %v8555_v54  ;;  %v5736_v34 = vpop.f32.mrb[44].mxu1  ;;  %v8253_v38 = vpop.f32.mrb[219].mxu0  ;;  %v10434_v39 = vadd.f32 %v5730_v44, %v17158_v6  ;;  %v19753_v0 = vld [vmem:[#allocation25_spill] sm:$0xff] }
 0x677   : > { %v17637_v62 = vpack.c.bf16 %v8560_v21, %v8558_v36  ;;  %v6603_v23 = vadd.f32 %v6602_v35, %v6495_v50  ;;  %v6672_v12 = vadd.f32 %v6671_v56, %v6496_v10  ;;  %v5738_v55 = vpop.f32.mrb[45].mxu1  ;;  %v5986_v1 = vmul.f32 0.01, %v10433_v59  ;;  %v12057_v50 = vld [vmem:[#allocation3 + $0xa0] ss:$16 sps:$4 sm:$0xff]  }
 0x678   : > { %v8561_v13 = vmax.f32 %v17629_v24, %v8433_v47  ;;  %9027 = vmatprep.subr.bf16.mxu1 %v8643_v27  ;;  %v10435_v42 = vadd.f32 %v5732_v20, %v17158_v6  ;;  %v10608_v32 = vadd.f32 %v8247_v61, %v19752_v41  ;;  %v5740_v37 = vpop.f32.mrb[46].mxu1  ;;  %v5987_v31 = vmul.f32 0.01, %v10434_v39  ;;  %v17649_v20 = vpop.permute.xlu0 %6286  ;;  %v12058_v27 = vld [vmem:[#allocation3 + $0xc4] ss:$16 sps:$4 sm:$0xff]  }
 0x679   : > { %9028 = vmatpush1.bf16.msra.mxu1 %v17605_v58  ;;  %v17645_v21 = vadd.f32 %v8249_v3, %v19752_v41  ;;  %v6497_v54 = vmul.f32 %v17633_v15, %v6113_v49  ;;  %v10610_v44 = vadd.f32 %v8251_v45, %v19753_v0  ;;  %v5742_v35 = vpop.f32.mrb[47].mxu1  ;;  %v6114_v36 = vmax.f32 %v10433_v59, %v5986_v1 }
 0x67a   : > { %v5988_v24 = vmul.f32 0.01, %v10435_v42  ;;  %v8434_v56 = vmul.f32 0.01, %v10608_v32  ;;  %v10436_v61 = vadd.f32 %v5736_v34, %v17162_v33  ;;  %v6115_v10 = vmax.f32 %v10434_v39, %v5987_v31  ;;  %v17660_v31 = vpop.permute.xlu1 %6290 }
 0x67b   : > { %v17653_v58 = vmul.f32 0.01, %v17645_v21  ;;  %v6604_v3 = vadd.f32 %v6603_v23, %v6497_v54  ;;  %v8436_v47 = vmul.f32 0.01, %v10610_v44  ;;  %v8257_v49 = vpop.f32.mrb[220].mxu0  ;;  %v6498_v59 = vmul.f32 %v17633_v15, %v6114_v36  ;;  %19754 = vst [vmem:[#allocation165_spill] sm:$0xff] %v17660_v31 }
 0x67c   : > { %8749 = vmatmul.mubr.bf16.gmra.mrb[148].mxu1 %v12057_v50  ;;  %v6116_v45 = vmax.f32 %v10435_v42, %v5988_v24  ;;  %v8562_v41 = vmax.f32 %v10608_v32, %v8434_v56  ;;  %v5989_v1 = vmul.f32 0.01, %v10436_v61  ;;  %v8259_v6 = vpop.f32.mrb[221].mxu0  ;;  %v6499_v34 = vmul.f32 %v17649_v20, %v6115_v10 }
 0x67d   : > { %8758 = vmatprep.mubr.bf16.mxu1 %v12058_v27  ;;  %v8563_v50 = vmax.f32 %v17645_v21, %v17653_v58  ;;  %v8564_v2 = vmax.f32 %v10610_v44, %v8436_v47  ;;  %v10611_v39 = vadd.f32 %v8253_v38, %v19753_v0  ;;  %v8261_v23 = vpop.f32.mrb[222].mxu0  ;;  %v6673_v54 = vadd.f32 %v6672_v12, %v6498_v59 }
 0x67e   : > { %v6500_v27 = vmul.f32 %v17649_v20, %v6116_v45  ;;  %v6117_v42 = vmax.f32 %v10436_v61, %v5989_v1  ;;  %v10437_v32 = vadd.f32 %v5738_v55, %v17162_v33  ;;  %v5746_v36 = vpop.f32.mrb[48].mxu1  ;;  %v8263_v24 = vpop.f32.mrb[223].mxu0  ;;  %v6605_v15 = vadd.f32 %v6604_v3, %v6499_v34  ;;  %v19756_v55 = vld [vmem:[#allocation75_spill] sm:$0xff]  ;;  %v19757_v1 = vld [vmem:[#allocation22_spill] sm:$0xff] }
 0x67f   : > { %v17664_v56 = vpack.c.bf16 %v8564_v2, %v8562_v41  ;;  %v8437_v21 = vmul.f32 0.01, %v10611_v39  ;;  %v19755_v44 = vmax.f32 %v17614_v7, %v17620_v57  ;;  %v5748_v38 = vpop.f32.mrb[49].mxu1  ;;  %v10438_v12 = vadd.f32 %v5740_v37, %v17171_v40 }
 0x680   : > { %v6674_v0 = vadd.f32 %v6673_v54, %v6500_v27  ;;  %v5990_v58 = vmul.f32 0.01, %v10437_v32  ;;  %v10439_v47 = vadd.f32 %v5742_v35, %v17171_v40  ;;  %v5750_v61 = vpop.f32.mrb[50].mxu1  ;;  %v10612_v59 = vadd.f32 %v8257_v49, %v19756_v55  ;;  %v12059_v35 = vld [vmem:[#allocation3 + $0xc0] ss:$16 sps:$4 sm:$0xff]   ;;  %v17681_v54 = vpop.permute.xlu0 %6294 }
 0x681   : > { %v8645_v10 = vpack.c.bf16 %v8561_v13, %v19755_v44  ;;  %v8565_v45 = vmax.f32 %v10611_v39, %v8437_v21  ;;  %v17673_v2 = vadd.f32 %v8259_v6, %v19756_v55  ;;  %v6501_v3 = vmul.f32 %v17660_v31, %v6117_v42  ;;  %v5752_v41 = vpop.f32.mrb[51].mxu1  ;;  %19758 = vst [vmem:[#allocation172_spill] sm:$0xff] %v17681_v54  ;;  %v12060_v44 = vld [vmem:[#allocation3 + $0xe4] ss:$16 sps:$4 sm:$0xff]  }
 0x682   : > { %v6118_v7 = vmax.f32 %v10437_v32, %v5990_v58  ;;  %v5991_v57 = vmul.f32 0.01, %v10438_v12  ;;  %v5992_v13 = vmul.f32 0.01, %v10439_v47  ;;  %v10614_v37 = vadd.f32 %v8261_v23, %v19757_v1  ;;  %v17694_v58 = vpop.permute.xlu1 %6298 }
 0x683   : > { %9029 = vmatprep.subr.bf16.mxu1 %v8645_v10  ;;  %v8438_v34 = vmul.f32 0.01, %v10612_v59  ;;  %v17679_v39 = vmul.f32 0.01, %v17673_v2  ;;  %v6606_v49 = vadd.f32 %v6605_v15, %v6501_v3  ;;  %v10440_v6 = vadd.f32 %v5746_v36, %v17175_v19  ;;  %v8267_v27 = vpop.f32.mrb[224].mxu0 }
 0x684   : > { %9030 = vmatpush1.bf16.msra.mxu1 %v17637_v62  ;;  %v6119_v42 = vmax.f32 %v10438_v12, %v5991_v57  ;;  %v6120_v32 = vmax.f32 %v10439_v47, %v5992_v13  ;;  %v6502_v21 = vmul.f32 %v17660_v31, %v6118_v7  ;;  %v8440_v62 = vmul.f32 0.01, %v10614_v37  ;;  %v8269_v23 = vpop.f32.mrb[225].mxu0 }
 0x685   : > { %8759 = vmatmul.mubr.bf16.gmra.mrb[152].mxu1 %v12059_v35  ;;  %v8566_v10 = vmax.f32 %v10612_v59, %v8438_v34  ;;  %v5993_v55 = vmul.f32 0.01, %v10440_v6  ;;  %v17688_v15 = vadd.f32 %v8263_v24, %v19757_v1  ;;  %v8271_v3 = vpop.f32.mrb[226].mxu0  ;;  %v10441_v59 = vadd.f32 %v5748_v38, %v17175_v19 }
 0x686   : > { %8768 = vmatprep.mubr.bf16.mxu1 %v12060_v44  ;;  %v6675_v35 = vadd.f32 %v6674_v0, %v6502_v21  ;;  %v8568_v36 = vmax.f32 %v10614_v37, %v8440_v62  ;;  %v6503_v12 = vmul.f32 %v17681_v54, %v6119_v42  ;;  %v6504_v47 = vmul.f32 %v17681_v54, %v6120_v32  ;;  %v5756_v7 = vpop.f32.mrb[52].mxu1  ;;  %v8273_v57 = vpop.f32.mrb[227].mxu0  ;;  %v19759_v62 = vld [vmem:[#allocation85_spill] sm:$0xff] }
 0x687   : > { %v6121_v13 = vmax.f32 %v10440_v6, %v5993_v55  ;;  %v8441_v44 = vmul.f32 0.01, %v17688_v15  ;;  %v8647_v34 = vpack.c.bf16 %v8565_v45, %v8563_v50  ;;  %v5758_v31 = vpop.f32.mrb[53].mxu1  ;;  %v10442_v37 = vadd.f32 %v5750_v61, %v17178_v22 }
 0x688   : > { %v17696_v24 = vpack.c.bf16 %v8568_v36, %v8566_v10  ;;  %v6607_v1 = vadd.f32 %v6606_v49, %v6503_v12  ;;  %v6676_v0 = vadd.f32 %v6675_v35, %v6504_v47  ;;  %v5760_v42 = vpop.f32.mrb[54].mxu1  ;;  %v5994_v21 = vmul.f32 0.01, %v10441_v59  ;;  %v19760_v10 = vld [vmem:[#allocation90_spill] sm:$0xff]  ;;  %v17708_v47 = vpop.permute.xlu0 %6302 }
 0x689   : > { %v8569_v32 = vmax.f32 %v17688_v15, %v8441_v44  ;;  %9031 = vmatprep.subr.bf16.mxu1 %v8647_v34  ;;  %v10443_v6 = vadd.f32 %v5752_v41, %v17178_v22  ;;  %v10616_v55 = vadd.f32 %v8267_v27, %v19759_v62  ;;  %v5762_v38 = vpop.f32.mrb[55].mxu1  ;;  %v5995_v50 = vmul.f32 0.01, %v10442_v37  ;;  %v12061_v12 = vld [vmem:[#allocation3 + $0xe0] ss:$16 sps:$4 sm:$0xff]  }
 0x68a   : > { %9032 = vmatpush1.bf16.msra.mxu1 %v17664_v56  ;;  %v17704_v45 = vadd.f32 %v8269_v23, %v19759_v62  ;;  %v6505_v49 = vmul.f32 %v17694_v58, %v6121_v13  ;;  %v10618_v61 = vadd.f32 %v8271_v3, %v19760_v10  ;;  %v6122_v35 = vmax.f32 %v10441_v59, %v5994_v21  ;;  %v12062_v62 = vld [vmem:[#allocation3 + $0x104] ss:$16 sps:$4 sm:$0xff]  }
 0x68b   : > { %v5996_v36 = vmul.f32 0.01, %v10443_v6  ;;  %v8442_v15 = vmul.f32 0.01, %v10616_v55  ;;  %v10444_v41 = vadd.f32 %v5756_v7, %v17188_v26  ;;  %v8277_v27 = vpop.f32.mrb[228].mxu0  ;;  %v6123_v44 = vmax.f32 %v10442_v37, %v5995_v50 }
 0x68c   : > { %v17712_v56 = vmul.f32 0.01, %v17704_v45  ;;  %v6608_v23 = vadd.f32 %v6607_v1, %v6505_v49  ;;  %v8444_v34 = vmul.f32 0.01, %v10618_v61  ;;  %v8279_v13 = vpop.f32.mrb[229].mxu0  ;;  %v6506_v21 = vmul.f32 %v17694_v58, %v6122_v35 }
 0x68d   : > { %8769 = vmatmul.mubr.bf16.gmra.mrb[156].mxu1 %v12061_v12  ;;  %v6124_v3 = vmax.f32 %v10443_v6, %v5996_v36  ;;  %v8570_v59 = vmax.f32 %v10616_v55, %v8442_v15  ;;  %v5997_v22 = vmul.f32 0.01, %v10444_v41  ;;  %v8281_v12 = vpop.f32.mrb[230].mxu0  ;;  %v6507_v37 = vmul.f32 %v17708_v47, %v6123_v44  ;;  %v17721_v55 = vpop.permute.xlu1 %6306 }
 0x68e   : > { %8778 = vmatprep.mubr.bf16.mxu1 %v12062_v62  ;;  %v8571_v19 = vmax.f32 %v17704_v45, %v17712_v56  ;;  %v8572_v7 = vmax.f32 %v10618_v61, %v8444_v34  ;;  %v10619_v50 = vadd.f32 %v8273_v57, %v19760_v10  ;;  %v5766_v54 = vpop.f32.mrb[56].mxu1  ;;  %v8283_v1 = vpop.f32.mrb[231].mxu0  ;;  %v6677_v49 = vadd.f32 %v6676_v0, %v6506_v21  ;;  %v19763_v34 = vld [vmem:[#allocation77_spill] sm:$0xff] }
 0x68f   : > { %v6508_v62 = vmul.f32 %v17708_v47, %v6124_v3  ;;  %v6125_v40 = vmax.f32 %v10444_v41, %v5997_v22  ;;  %v10445_v6 = vadd.f32 %v5758_v31, %v17188_v26  ;;  %19761 = vst [vmem:[#allocation169_spill] sm:$0xff] %v17721_v55  ;;  %v5768_v35 = vpop.f32.mrb[57].mxu1  ;;  %v6609_v15 = vadd.f32 %v6608_v23, %v6507_v37 }
 0x690   : > { %v17723_v36 = vpack.c.bf16 %v8572_v7, %v8570_v59  ;;  %v8445_v45 = vmul.f32 0.01, %v10619_v50  ;;  %v19762_v61 = vmax.f32 %v17673_v2, %v17679_v39  ;;  %v5770_v57 = vpop.f32.mrb[58].mxu1  ;;  %v10446_v0 = vadd.f32 %v5760_v42, %v17191_v14 }
 0x691   : > { %v6678_v10 = vadd.f32 %v6677_v49, %v6508_v62  ;;  %v5998_v56 = vmul.f32 0.01, %v10445_v6  ;;  %v10447_v22 = vadd.f32 %v5762_v38, %v17191_v14  ;;  %v5772_v41 = vpop.f32.mrb[59].mxu1  ;;  %v10620_v3 = vadd.f32 %v8277_v27, %v19763_v34  ;;  %v12063_v38 = vld [vmem:[#allocation3 + $0x100] ss:$16 sps:$4 sm:$0xff]   ;;  %v17740_v49 = vpop.permute.xlu0 %6310 }
 0x692   : > { %v8649_v44 = vpack.c.bf16 %v8569_v32, %v19762_v61  ;;  %v8573_v31 = vmax.f32 %v10619_v50, %v8445_v45  ;;  %v17732_v59 = vadd.f32 %v8279_v13, %v19763_v34  ;;  %v6509_v23 = vmul.f32 %v17721_v55, %v6125_v40  ;;  %v19764_v32 = vld [vmem:[#allocation118_spill] sm:$0xff]  ;;  %19765 = vst [vmem:[#allocation173_spill] sm:$0xff] %v17740_v49 }
 0x693   : > { %v6126_v21 = vmax.f32 %v10445_v6, %v5998_v56  ;;  %v5999_v2 = vmul.f32 0.01, %v10446_v0  ;;  %v6000_v39 = vmul.f32 0.01, %v10447_v22  ;;  %v10622_v7 = vadd.f32 %v8281_v12, %v19764_v32  ;;  %v8287_v42 = vpop.f32.mrb[232].mxu0 }
 0x694   : > { %9033 = vmatprep.subr.bf16.mxu1 %v8649_v44  ;;  %v8446_v37 = vmul.f32 0.01, %v10620_v3  ;;  %v17738_v50 = vmul.f32 0.01, %v17732_v59  ;;  %v6610_v27 = vadd.f32 %v6609_v15, %v6509_v23  ;;  %v10448_v13 = vadd.f32 %v5766_v54, %v17201_v30  ;;  %v8289_v40 = vpop.f32.mrb[233].mxu0 }
 0x695   : > { %9034 = vmatpush1.bf16.msra.mxu1 %v17696_v24  ;;  %v6127_v62 = vmax.f32 %v10446_v0, %v5999_v2  ;;  %v6128_v6 = vmax.f32 %v10447_v22, %v6000_v39  ;;  %v6510_v24 = vmul.f32 %v17721_v55, %v6126_v21  ;;  %v8448_v45 = vmul.f32 0.01, %v10622_v7  ;;  %v12064_v61 = vld [vmem:[#allocation3 + $0x124] ss:$16 sps:$4 sm:$0xff]   ;;  %v8291_v12 = vpop.f32.mrb[234].mxu0 }
 0x696   : > { %8779 = vmatmul.mubr.bf16.gmra.mrb[160].mxu1 %v12063_v38  ;;  %v8574_v44 = vmax.f32 %v10620_v3, %v8446_v37  ;;  %v6001_v34 = vmul.f32 0.01, %v10448_v13  ;;  %v17747_v15 = vadd.f32 %v8283_v1, %v19764_v32  ;;  %v5776_v23 = vpop.f32.mrb[60].mxu1  ;;  %v8293_v38 = vpop.f32.mrb[235].mxu0  ;;  %v10449_v3 = vadd.f32 %v5768_v35, %v17201_v30 }
 0x697   : > { %8788 = vmatprep.mubr.bf16.mxu1 %v12064_v61  ;;  %v6679_v54 = vadd.f32 %v6678_v10, %v6510_v24  ;;  %v8576_v14 = vmax.f32 %v10622_v7, %v8448_v45  ;;  %v6511_v0 = vmul.f32 %v17740_v49, %v6127_v62  ;;  %v6512_v22 = vmul.f32 %v17740_v49, %v6128_v6  ;;  %v5778_v21 = vpop.f32.mrb[61].mxu1  ;;  %v17753_v61 = vpop.permute.xlu1 %6314  ;;  %v19767_v24 = vld [vmem:[#allocation26_spill] sm:$0xff] }
 0x698   : > { %v6129_v2 = vmax.f32 %v10448_v13, %v6001_v34  ;;  %v8449_v39 = vmul.f32 0.01, %v17747_v15  ;;  %v8651_v37 = vpack.c.bf16 %v8573_v31, %v8571_v19  ;;  %19766 = vst [vmem:[#allocation171_spill] sm:$0xff] %v17753_v61  ;;  %v5780_v56 = vpop.f32.mrb[62].mxu1  ;;  %v10450_v10 = vadd.f32 %v5770_v57, %v17204_v11  ;;  %v19768_v31 = vld [vmem:[#allocation24_spill] sm:$0xff] }
 0x699   : > { %v17755_v1 = vpack.c.bf16 %v8576_v14, %v8574_v44  ;;  %v6611_v32 = vadd.f32 %v6610_v27, %v6511_v0  ;;  %v6680_v55 = vadd.f32 %v6679_v54, %v6512_v22  ;;  %v5782_v7 = vpop.f32.mrb[63].mxu1  ;;  %v6002_v6 = vmul.f32 0.01, %v10449_v3  ;;  %v12065_v54 = vld [vmem:[#allocation3 + $0x120] ss:$16 sps:$4 sm:$0xff]   ;;  %v17767_v0 = vpop.permute.xlu0 %6318 }
 0x69a   : > { %v8577_v62 = vmax.f32 %v17747_v15, %v8449_v39  ;;  %9035 = vmatprep.subr.bf16.mxu1 %v8651_v37  ;;  %v10451_v13 = vadd.f32 %v5772_v41, %v17204_v11  ;;  %v10624_v45 = vadd.f32 %v8287_v42, %v19767_v24  ;;  %v6003_v35 = vmul.f32 0.01, %v10450_v10  ;;  %19769 = vst [vmem:[#allocation170_spill] sm:$0xff] %v17767_v0 }
 0x69b   : > { %9036 = vmatpush1.bf16.msra.mxu1 %v17723_v36  ;;  %v17763_v19 = vadd.f32 %v8289_v40, %v19767_v24  ;;  %v6513_v14 = vmul.f32 %v17753_v61, %v6129_v2  ;;  %v10626_v27 = vadd.f32 %v8291_v12, %v19768_v31  ;;  %v8297_v57 = vpop.f32.mrb[236].mxu0  ;;  %v6130_v44 = vmax.f32 %v10449_v3, %v6002_v6  ;;  %v12066_v2 = vld [vmem:[#allocation3 + $0x144] ss:$16 sps:$4 sm:$0xff]  }
 0x69c   : > { %v6004_v34 = vmul.f32 0.01, %v10451_v13  ;;  %v8450_v15 = vmul.f32 0.01, %v10624_v45  ;;  %v10452_v41 = vadd.f32 %v5776_v23, %v17227_v51  ;;  %v8299_v42 = vpop.f32.mrb[237].mxu0  ;;  %v6131_v22 = vmax.f32 %v10450_v10, %v6003_v35 }
 0x69d   : > { %v17771_v36 = vmul.f32 0.01, %v17763_v19  ;;  %v6612_v40 = vadd.f32 %v6611_v32, %v6513_v14  ;;  %v8452_v39 = vmul.f32 0.01, %v10626_v27  ;;  %v8301_v12 = vpop.f32.mrb[238].mxu0  ;;  %v6514_v6 = vmul.f32 %v17753_v61, %v6130_v44 }
 0x69e   : > { %8789 = vmatmul.mubr.bf16.gmra.mrb[164].mxu1 %v12065_v54  ;;  %v6132_v37 = vmax.f32 %v10451_v13, %v6004_v34  ;;  %v8578_v3 = vmax.f32 %v10624_v45, %v8450_v15  ;;  %v6005_v24 = vmul.f32 0.01, %v10452_v41  ;;  %v5786_v54 = vpop.f32.mrb[64].mxu1  ;;  %v8303_v11 = vpop.f32.mrb[239].mxu0  ;;  %v6515_v10 = vmul.f32 %v17767_v0, %v6131_v22 }
 0x69f   : > { %8798 = vmatprep.mubr.bf16.mxu1 %v12066_v2  ;;  %v8579_v23 = vmax.f32 %v17763_v19, %v17771_v36  ;;  %v8580_v30 = vmax.f32 %v10626_v27, %v8452_v39  ;;  %v10627_v35 = vadd.f32 %v8293_v38, %v19768_v31  ;;  %v5788_v32 = vpop.f32.mrb[65].mxu1  ;;  %v6681_v14 = vadd.f32 %v6680_v55, %v6514_v6  ;;  %v17780_v45 = vpop.permute.xlu1 %6322 }
 0x6a0   : > { %v6516_v2 = vmul.f32 %v17767_v0, %v6132_v37  ;;  %v6133_v49 = vmax.f32 %v10452_v41, %v6005_v24  ;;  %v10453_v13 = vadd.f32 %v5778_v21, %v17227_v51  ;;  %19770 = vst [vmem:[#allocation11_spill] sm:$0xff] %v17780_v45  ;;  %v5790_v44 = vpop.f32.mrb[66].mxu1  ;;  %v6613_v15 = vadd.f32 %v6612_v40, %v6515_v10  ;;  %v19772_v21 = vld [vmem:[#allocation92_spill] sm:$0xff] }
 0x6a1   : > { %v17782_v34 = vpack.c.bf16 %v8580_v30, %v8578_v3  ;;  %v8453_v61 = vmul.f32 0.01, %v10627_v35  ;;  %v19771_v19 = vmax.f32 %v17732_v59, %v17738_v50  ;;  %v5792_v22 = vpop.f32.mrb[67].mxu1  ;;  %v10454_v55 = vadd.f32 %v5780_v56, %v17229_v28 }
 0x6a2   : > { %v6682_v38 = vadd.f32 %v6681_v14, %v6516_v2  ;;  %v6006_v31 = vmul.f32 0.01, %v10453_v13  ;;  %v10455_v41 = vadd.f32 %v5782_v7, %v17229_v28  ;;  %v10628_v39 = vadd.f32 %v8297_v57, %v19772_v21  ;;  %v12067_v7 = vld [vmem:[#allocation3 + $0x140] ss:$16 sps:$4 sm:$0xff]  }
 0x6a3   : > { %v8653_v27 = vpack.c.bf16 %v8577_v62, %v19771_v19  ;;  %v8581_v36 = vmax.f32 %v10627_v35, %v8453_v61  ;;  %v17791_v30 = vadd.f32 %v8299_v42, %v19772_v21  ;;  %v6517_v40 = vmul.f32 %v17780_v45, %v6133_v49  ;;  %v8307_v37 = vpop.f32.mrb[240].mxu0  ;;  %v19773_v62 = vld [vmem:[#allocation95_spill] sm:$0xff]  ;;  %v17799_v42 = vpop.permute.xlu0 %6326 }
 0x6a4   : > { %v6134_v3 = vmax.f32 %v10453_v13, %v6006_v31  ;;  %v6007_v59 = vmul.f32 0.01, %v10454_v55  ;;  %v6008_v50 = vmul.f32 0.01, %v10455_v41  ;;  %v10630_v6 = vadd.f32 %v8301_v12, %v19773_v62  ;;  %v8309_v56 = vpop.f32.mrb[241].mxu0  ;;  %19774 = vst [vmem:[#allocation174_spill] sm:$0xff] %v17799_v42 }
 0x6a5   : > { %9037 = vmatprep.subr.bf16.mxu1 %v8653_v27  ;;  %v8454_v24 = vmul.f32 0.01, %v10628_v39  ;;  %v17797_v61 = vmul.f32 0.01, %v17791_v30  ;;  %v6614_v57 = vadd.f32 %v6613_v15, %v6517_v40  ;;  %v10456_v49 = vadd.f32 %v5786_v54, %v17237_v48  ;;  %v8311_v10 = vpop.f32.mrb[242].mxu0 }
 0x6a6   : > { %9038 = vmatpush1.bf16.msra.mxu1 %v17755_v1  ;;  %v6135_v35 = vmax.f32 %v10454_v55, %v6007_v59  ;;  %v6136_v14 = vmax.f32 %v10455_v41, %v6008_v50  ;;  %v6518_v1 = vmul.f32 %v17780_v45, %v6134_v3  ;;  %v8456_v2 = vmul.f32 0.01, %v10630_v6  ;;  %v12068_v13 = vld [vmem:[#allocation3 + $0x164] ss:$16 sps:$4 sm:$0xff]   ;;  %v5796_v12 = vpop.f32.mrb[68].mxu1  ;;  %v8313_v19 = vpop.f32.mrb[243].mxu0 }
 0x6a7   : > { %8799 = vmatmul.mubr.bf16.gmra.mrb[168].mxu1 %v12067_v7  ;;  %v8582_v27 = vmax.f32 %v10628_v39, %v8454_v24  ;;  %v6009_v21 = vmul.f32 0.01, %v10456_v49  ;;  %v17806_v15 = vadd.f32 %v8303_v11, %v19773_v62  ;;  %v5798_v40 = vpop.f32.mrb[69].mxu1  ;;  %v10457_v39 = vadd.f32 %v5788_v32, %v17237_v48 }
 0x6a8   : > { %8808 = vmatprep.mubr.bf16.mxu1 %v12068_v13  ;;  %v6683_v54 = vadd.f32 %v6682_v38, %v6518_v1  ;;  %v8584_v7 = vmax.f32 %v10630_v6, %v8456_v2  ;;  %v6519_v55 = vmul.f32 %v17799_v42, %v6135_v35  ;;  %v6520_v41 = vmul.f32 %v17799_v42, %v6136_v14  ;;  %v5800_v3 = vpop.f32.mrb[70].mxu1  ;;  %v17812_v13 = vpop.permute.xlu1 %6330  ;;  %v19776_v38 = vld [vmem:[#allocation133_spill] sm:$0xff] }
 0x6a9   : > { %v6137_v59 = vmax.f32 %v10456_v49, %v6009_v21  ;;  %v8457_v50 = vmul.f32 0.01, %v17806_v15  ;;  %v8655_v24 = vpack.c.bf16 %v8581_v36, %v8579_v23  ;;  %19775 = vst [vmem:[#allocation9_spill] sm:$0xff] %v17812_v13  ;;  %v5802_v31 = vpop.f32.mrb[71].mxu1  ;;  %v10458_v6 = vadd.f32 %v5790_v44, %v19776_v38  ;;  %v19777_v14 = vld [vmem:[#allocation97_spill] sm:$0xff] }
 0x6aa   : > { %v17814_v45 = vpack.c.bf16 %v8584_v7, %v8582_v27  ;;  %v6615_v11 = vadd.f32 %v6614_v57, %v6519_v55  ;;  %v6684_v62 = vadd.f32 %v6683_v54, %v6520_v41  ;;  %v6010_v1 = vmul.f32 0.01, %v10457_v39  ;;  %v19778_v57 = vld [vmem:[#allocation94_spill] sm:$0xff] }
 0x6ab   : > { %v8585_v35 = vmax.f32 %v17806_v15, %v8457_v50  ;;  %9039 = vmatprep.subr.bf16.mxu1 %v8655_v24  ;;  %v10459_v49 = vadd.f32 %v5792_v22, %v19776_v38  ;;  %v10632_v2 = vadd.f32 %v8307_v37, %v19777_v14  ;;  %v8317_v21 = vpop.f32.mrb[244].mxu0  ;;  %v6011_v32 = vmul.f32 0.01, %v10458_v6  ;;  %v12069_v55 = vld [vmem:[#allocation3 + $0x160] ss:$16 sps:$4 sm:$0xff]   ;;  %v17826_v22 = vpop.permute.xlu0 %6334 }
 0x6ac   : > { %9040 = vmatpush1.bf16.msra.mxu1 %v17782_v34  ;;  %v17822_v23 = vadd.f32 %v8309_v56, %v19777_v14  ;;  %v6521_v36 = vmul.f32 %v17812_v13, %v6137_v59  ;;  %v10634_v27 = vadd.f32 %v8311_v10, %v19778_v57  ;;  %v8319_v44 = vpop.f32.mrb[245].mxu0  ;;  %v6138_v54 = vmax.f32 %v10457_v39, %v6010_v1  ;;  %v19780_v37 = vld [vmem:[#allocation126_spill] sm:$0xff] }
 0x6ad   : > { %v6012_v15 = vmul.f32 0.01, %v10459_v49  ;;  %v8458_v7 = vmul.f32 0.01, %v10632_v2  ;;  %19779 = vst [vmem:[#allocation8_spill] sm:$0xff] %v17826_v22  ;;  %v10460_v41 = vadd.f32 %v5796_v12, %v19780_v37  ;;  %v8321_v50 = vpop.f32.mrb[246].mxu0  ;;  %v6139_v24 = vmax.f32 %v10458_v6, %v6011_v32 }
 0x6ae   : > { %v17830_v34 = vmul.f32 0.01, %v17822_v23  ;;  %v6616_v56 = vadd.f32 %v6615_v11, %v6521_v36  ;;  %v8460_v14 = vmul.f32 0.01, %v10634_v27  ;;  %v12070_v59 = vld [vmem:[#allocation3 + $0x184] ss:$16 sps:$4 sm:$0xff]   ;;  %v6522_v48 = vmul.f32 %v17812_v13, %v6138_v54 }
 0x6af   : > { %8809 = vmatmul.mubr.bf16.gmra.mrb[172].mxu1 %v12069_v55  ;;  %v5806_v10 = vpop.f32.mrb[72].mxu1  ;;  %v8323_v38 = vpop.f32.mrb[247].mxu0  ;;  %v6140_v39 = vmax.f32 %v10459_v49, %v6012_v15  ;;  %v8586_v1 = vmax.f32 %v10632_v2, %v8458_v7  ;;  %v6013_v55 = vmul.f32 0.01, %v10460_v41  ;;  %v6523_v6 = vmul.f32 %v17826_v22, %v6139_v24 }
 0x6b0   : > { %8818 = vmatprep.mubr.bf16.mxu1 %v12070_v59  ;;  %v5808_v42 = vpop.f32.mrb[73].mxu1  ;;  %v8587_v12 = vmax.f32 %v17822_v23, %v17830_v34  ;;  %v8588_v28 = vmax.f32 %v10634_v27, %v8460_v14  ;;  %v10635_v32 = vadd.f32 %v8313_v19, %v19778_v57  ;;  %v6685_v36 = vadd.f32 %v6684_v62, %v6522_v48  ;;  %v17839_v2 = vpop.permute.xlu1 %6338  ;;  %v19783_v57 = vld [vmem:[#allocation129_spill] sm:$0xff] }
 0x6b1   : > { %v5810_v11 = vpop.f32.mrb[74].mxu1  ;;  %v6524_v59 = vmul.f32 %v17826_v22, %v6140_v39  ;;  %v6141_v51 = vmax.f32 %v10460_v41, %v6013_v55  ;;  %v10461_v49 = vadd.f32 %v5798_v40, %v19780_v37  ;;  %19781 = vst [vmem:[#allocation175_spill] sm:$0xff] %v17839_v2  ;;  %v6617_v7 = vadd.f32 %v6616_v56, %v6523_v6  ;;  %v19784_v40 = vld [vmem:[#allocation32_spill] sm:$0xff]  ;;  %v17855_v55 = vpop.permute.xlu0 %6342 }
 0x6b2   : > { %v5812_v54 = vpop.f32.mrb[75].mxu1  ;;  %v17841_v15 = vpack.c.bf16 %v8588_v28, %v8586_v1  ;;  %v8461_v13 = vmul.f32 0.01, %v10635_v32  ;;  %v19782_v23 = vmax.f32 %v17791_v30, %v17797_v61  ;;  %v10462_v48 = vadd.f32 %v5800_v3, %v19783_v57  ;;  %19786 = vst [vmem:[#allocation16_spill] sm:$0xff] %v17855_v55  ;;  %v12071_v6 = vld [vmem:[#allocation3 + $0x180] ss:$16 sps:$4 sm:$0xff]  }
 0x6b3   : > { %v6686_v24 = vadd.f32 %v6685_v36, %v6524_v59  ;;  %v6014_v19 = vmul.f32 0.01, %v10461_v49  ;;  %v10463_v62 = vadd.f32 %v5802_v31, %v19783_v57  ;;  %v8327_v41 = vpop.f32.mrb[248].mxu0  ;;  %v10636_v14 = vadd.f32 %v8317_v21, %v19784_v40 }
 0x6b4   : > { %v8657_v27 = vpack.c.bf16 %v8585_v35, %v19782_v23  ;;  %v8589_v34 = vmax.f32 %v10635_v32, %v8461_v13  ;;  %v17850_v28 = vadd.f32 %v8319_v44, %v19784_v40  ;;  %v6525_v56 = vmul.f32 %v17839_v2, %v6141_v51  ;;  %v8329_v39 = vpop.f32.mrb[249].mxu0  ;;  %v19785_v35 = vld [vmem:[#allocation99_spill] sm:$0xff]  ;;  %v19787_v32 = vld [vmem:[#allocation110_spill] sm:$0xff] }
 0x6b5   : > { %v6142_v1 = vmax.f32 %v10461_v49, %v6014_v19  ;;  %v6015_v30 = vmul.f32 0.01, %v10462_v48  ;;  %v6016_v61 = vmul.f32 0.01, %v10463_v62  ;;  %v10638_v3 = vadd.f32 %v8321_v50, %v19785_v35  ;;  %v8331_v31 = vpop.f32.mrb[250].mxu0 }
 0x6b6   : > { %9041 = vmatprep.subr.bf16.mxu1 %v8657_v27  ;;  %v8462_v13 = vmul.f32 0.01, %v10636_v14  ;;  %v17858_v21 = vmul.f32 0.01, %v17850_v28  ;;  %v6618_v44 = vadd.f32 %v6617_v7, %v6525_v56  ;;  %v10464_v51 = vadd.f32 %v5806_v10, %v19787_v32  ;;  %v5816_v36 = vpop.f32.mrb[76].mxu1  ;;  %v17861_v59 = vpop.f32.mrb[251].mxu0 }
 0x6b7   : > { %9042 = vmatpush1.bf16.msra.mxu1 %v17814_v45  ;;  %v6143_v49 = vmax.f32 %v10462_v48, %v6015_v30  ;;  %v6144_v45 = vmax.f32 %v10463_v62, %v6016_v61  ;;  %v6526_v23 = vmul.f32 %v17839_v2, %v6142_v1  ;;  %v8464_v50 = vmul.f32 0.01, %v10638_v3  ;;  %v12072_v27 = vld [vmem:[#allocation3 + $0x1a4] ss:$16 sps:$4 sm:$0xff]   ;;  %v5818_v19 = vpop.f32.mrb[77].mxu1  ;;  %v19788_v2 = vld [vmem:[#allocation131_spill] sm:$0xff] }
 0x6b8   : > { %8819 = vmatmul.mubr.bf16.gmra.mrb[176].mxu1 %v12071_v6  ;;  %v8590_v40 = vmax.f32 %v10636_v14, %v8462_v13  ;;  %v6017_v57 = vmul.f32 0.01, %v10464_v51  ;;  %v17867_v7 = vadd.f32 %v8323_v38, %v19785_v35  ;;  %v17869_v10 = vpop.f32.mrb[78].mxu1  ;;  %v10465_v14 = vadd.f32 %v5808_v42, %v19787_v32 }
 0x6b9   : > { %8828 = vmatprep.mubr.bf16.mxu1 %v12072_v27  ;;  %v6687_v56 = vadd.f32 %v6686_v24, %v6526_v23  ;;  %v8592_v37 = vmax.f32 %v10638_v3, %v8464_v50  ;;  %v6527_v48 = vmul.f32 %v17855_v55, %v6143_v49  ;;  %v6528_v62 = vmul.f32 %v17855_v55, %v6144_v45  ;;  %v5822_v1 = vpop.f32.mrb[79].mxu1  ;;  %v17875_v27 = vpop.permute.xlu1 %6346 }
 0x6ba   : > { %v6145_v30 = vmax.f32 %v10464_v51, %v6017_v57  ;;  %v8465_v61 = vmul.f32 0.01, %v17867_v7  ;;  %v8659_v13 = vpack.c.bf16 %v8589_v34, %v8587_v12  ;;  %v10466_v22 = vadd.f32 %v5810_v11, %v19788_v2  ;;  %v19789_v57 = vld [vmem:[#allocation102_spill] sm:$0xff]  ;;  %v19790_v12 = vld [vmem:[#allocation29_spill] sm:$0xff]  ;;  %v17887_v34 = vpop.permute.xlu0 %6350 }
 0x6bb   : > { %v8660_v6 = vpack.c.bf16 %v8592_v37, %v8590_v40  ;;  %v6619_v38 = vadd.f32 %v6618_v44, %v6527_v48  ;;  %v6688_v35 = vadd.f32 %v6687_v56, %v6528_v62  ;;  %v8337_v24 = vpop.f32.mrb[252].mxu0  ;;  %v6018_v49 = vmul.f32 0.01, %v10465_v14 }
 0x6bc   : > { %v8593_v3 = vmax.f32 %v17867_v7, %v8465_v61  ;;  %9043 = vmatprep.subr.bf16.mxu1 %v8659_v13  ;;  %v10467_v45 = vadd.f32 %v5812_v54, %v19788_v2  ;;  %v10640_v51 = vadd.f32 %v8327_v41, %v19789_v57  ;;  %v8339_v23 = vpop.f32.mrb[253].mxu0  ;;  %v6019_v50 = vmul.f32 0.01, %v10466_v22  ;;  %v12073_v54 = vld [vmem:[#allocation3 + $0x1a0] ss:$16 sps:$4 sm:$0xff]   ;;  %v19791_v41 = vld [vmem:[#allocation127_spill] sm:$0xff] }
 0x6bd   : > { %9044 = vmatpush1.bf16.msra.mxu1 %v17841_v15  ;;  %v17883_v42 = vadd.f32 %v8329_v39, %v19789_v57  ;;  %v6529_v37 = vmul.f32 %v17875_v27, %v6145_v30  ;;  %v10642_v11 = vadd.f32 %v8331_v31, %v19790_v12  ;;  %v8341_v44 = vpop.f32.mrb[254].mxu0  ;;  %v6146_v40 = vmax.f32 %v10465_v14, %v6018_v49  ;;  %v12074_v57 = vld [vmem:[#allocation3 + $0x1c4] ss:$16 sps:$4 sm:$0xff]  }
 0x6be   : > { %v6020_v7 = vmul.f32 0.01, %v10467_v45  ;;  %v8466_v56 = vmul.f32 0.01, %v10640_v51  ;;  %v10468_v48 = vadd.f32 %v5816_v36, %v19791_v41  ;;  %v5826_v62 = vpop.f32.mrb[80].mxu1  ;;  %v8343_v61 = vpop.f32.mrb[255].mxu0  ;;  %v6147_v15 = vmax.f32 %v10466_v22, %v6019_v50 }
 0x6bf   : > { %v17891_v39 = vmul.f32 0.01, %v17883_v42  ;;  %v6620_v13 = vadd.f32 %v6619_v38, %v6529_v37  ;;  %v8468_v30 = vmul.f32 0.01, %v10642_v11  ;;  %v5828_v31 = vpop.f32.mrb[81].mxu1  ;;  %v6530_v14 = vmul.f32 %v17875_v27, %v6146_v40 }
 0x6c0   : > { %8829 = vmatmul.mubr.bf16.gmra.mrb[180].mxu1 %v12073_v54  ;;  %v6148_v2 = vmax.f32 %v10467_v45, %v6020_v7  ;;  %v8594_v32 = vmax.f32 %v10640_v51, %v8466_v56  ;;  %v6021_v49 = vmul.f32 0.01, %v10468_v48  ;;  %v5830_v55 = vpop.f32.mrb[82].mxu1  ;;  %v6531_v22 = vmul.f32 %v17887_v34, %v6147_v15  ;;  %v17901_v51 = vpop.permute.xlu1 %6354 }
 0x6c1   : > { %8838 = vmatprep.mubr.bf16.mxu1 %v12074_v57  ;;  %v8595_v36 = vmax.f32 %v17883_v42, %v17891_v39  ;;  %v8596_v54 = vmax.f32 %v10642_v11, %v8468_v30  ;;  %v10643_v50 = vadd.f32 %v17861_v59, %v19790_v12  ;;  %v5832_v38 = vpop.f32.mrb[83].mxu1  ;;  %v6689_v37 = vadd.f32 %v6688_v35, %v6530_v14  ;;  %v19793_v30 = vld [vmem:[#allocation112_spill] sm:$0xff] }
 0x6c2   : > { %v6532_v57 = vmul.f32 %v17887_v34, %v6148_v2  ;;  %v6149_v0 = vmax.f32 %v10468_v48, %v6021_v49  ;;  %v10469_v45 = vadd.f32 %v5818_v19, %v19791_v41  ;;  %v6621_v7 = vadd.f32 %v6620_v13, %v6531_v22  ;;  %v19794_v12 = vld [vmem:[#allocation104_spill] sm:$0xff] }
 0x6c3   : > { %v8662_v40 = vpack.c.bf16 %v8596_v54, %v8594_v32  ;;  %v8469_v56 = vmul.f32 0.01, %v10643_v50  ;;  %v19792_v42 = vmax.f32 %v17850_v28, %v17858_v21  ;;  %v10470_v59 = vadd.f32 %v17869_v10, %v19793_v30  ;;  %v19795_v21 = vld [vmem:[#allocation101_spill] sm:$0xff]  ;;  %v12075_v22 = vld [vmem:[#allocation3 + $0x1c0] ss:$16 sps:$4 sm:$0xff]  }
 0x6c4   : > { %v6690_v15 = vadd.f32 %v6689_v37, %v6532_v57  ;;  %v6022_v39 = vmul.f32 0.01, %v10469_v45  ;;  %v10471_v35 = vadd.f32 %v5822_v1, %v19793_v30  ;;  %v10644_v19 = vadd.f32 %v8337_v24, %v19794_v12  ;;  %v19796_v37 = vld [vmem:[#allocation132_spill] sm:$0xff] }
 0x6c5   : > { %v8661_v11 = vpack.c.bf16 %v8593_v3, %v19792_v42  ;;  %v8597_v2 = vmax.f32 %v10643_v50, %v8469_v56  ;;  %v10645_v48 = vadd.f32 %v8339_v23, %v19794_v12  ;;  %v6533_v32 = vmul.f32 %v17901_v51, %v6149_v0  ;;  %v17913_v50 = vpop.permute.xlu0 %6358 }
 0x6c6   : > { %v6150_v13 = vmax.f32 %v10469_v45, %v6022_v39  ;;  %v6023_v14 = vmul.f32 0.01, %v10470_v59  ;;  %v6024_v28 = vmul.f32 0.01, %v10471_v35  ;;  %v10646_v3 = vadd.f32 %v8341_v44, %v19795_v21  ;;  %v5836_v49 = vpop.f32.mrb[84].mxu1 }
 0x6c7   : > { %9045 = vmatprep.subr.bf16.mxu1 %v8661_v11  ;;  %v8470_v54 = vmul.f32 0.01, %v10644_v19  ;;  %v8471_v10 = vmul.f32 0.01, %v10645_v48  ;;  %v6622_v1 = vadd.f32 %v6621_v7, %v6533_v32  ;;  %v10472_v24 = vadd.f32 %v5826_v62, %v19796_v37  ;;  %v5838_v57 = vpop.f32.mrb[85].mxu1 }
 0x6c8   : > { %9046 = vmatpush1.bf16.msra.mxu1 %v8660_v6  ;;  %v6151_v23 = vmax.f32 %v10470_v59, %v6023_v14  ;;  %v6152_v56 = vmax.f32 %v10471_v35, %v6024_v28  ;;  %v6534_v0 = vmul.f32 %v17901_v51, %v6150_v13  ;;  %v8472_v45 = vmul.f32 0.01, %v10646_v3  ;;  %v12076_v6 = vld [vmem:[#allocation3 + $0x1e4] ss:$16 sps:$4 sm:$0xff]   ;;  %v5840_v42 = vpop.f32.mrb[86].mxu1  ;;  %v17920_v59 = vpop.permute.xlu1 %6362 }
 0x6c9   : > { %8839 = vmatmul.mubr.bf16.gmra.mrb[184].mxu1 %v12075_v22  ;;  %v8598_v44 = vmax.f32 %v10644_v19, %v8470_v54  ;;  %v8599_v11 = vmax.f32 %v10645_v48, %v8471_v10  ;;  %v6025_v39 = vmul.f32 0.01, %v10472_v24  ;;  %v10647_v12 = vadd.f32 %v8343_v61, %v19795_v21  ;;  %v5842_v22 = vpop.f32.mrb[87].mxu1  ;;  %v19797_v54 = vld [vmem:[#allocation137_spill] sm:$0xff] }
 0x6ca   : > { %8848 = vmatprep.mubr.bf16.mxu1 %v12076_v6  ;;  %v6691_v7 = vadd.f32 %v6690_v15, %v6534_v0  ;;  %v8600_v32 = vmax.f32 %v10646_v3, %v8472_v45  ;;  %v6535_v30 = vmul.f32 %v17913_v50, %v6151_v23  ;;  %v6536_v62 = vmul.f32 %v17913_v50, %v6152_v56  ;;  %v17926_v23 = vpop.permute.xlu0 %6366  ;;  %v12077_v45 = vld [vmem:[#allocation3 + $0x1e0] ss:$16 sps:$4 sm:$0xff]  }
 0x6cb   : > { %v6153_v35 = vmax.f32 %v10472_v24, %v6025_v39  ;;  %v8473_v13 = vmul.f32 0.01, %v10647_v12  ;;  %v10473_v14 = vadd.f32 %v5828_v31, %v19796_v37  ;;  %v8663_v28 = vpack.c.bf16 %v8597_v2, %v8595_v36  ;;  %v19798_v24 = vld [vmem:[#allocation130_spill] sm:$0xff] }
 0x6cc   : > { %v8664_v6 = vpack.c.bf16 %v8600_v32, %v8598_v44  ;;  %v6623_v19 = vadd.f32 %v6622_v1, %v6535_v30  ;;  %v6692_v48 = vadd.f32 %v6691_v7, %v6536_v62  ;;  %v10474_v10 = vadd.f32 %v5830_v55, %v19797_v54  ;;  %v19799_v36 = vld [vmem:[#allocation134_spill] sm:$0xff] }
 0x6cd   : > { %v8601_v61 = vmax.f32 %v10647_v12, %v8473_v13  ;;  %v6026_v21 = vmul.f32 0.01, %v10473_v14  ;;  %9047 = vmatprep.subr.bf16.mxu1 %v8663_v28  ;;  %v10475_v15 = vadd.f32 %v5832_v38, %v19797_v54  ;;  %v6537_v3 = vmul.f32 %v17920_v59, %v6153_v35  ;;  %v12078_v35 = vld [vmem:[#allocation3 + $0x204] ss:$16 sps:$4 sm:$0xff]  }
 0x6ce   : > { %v6027_v56 = vmul.f32 0.01, %v10474_v10  ;;  %9048 = vmatpush1.bf16.msra.mxu1 %v8662_v40  ;;  %v10476_v0 = vadd.f32 %v5836_v49, %v19798_v24  ;;  %v10477_v31 = vadd.f32 %v5838_v57, %v19798_v24  ;;  %v10478_v30 = vadd.f32 %v5840_v42, %v19799_v36  ;;  %v5846_v2 = vpop.f32.mrb[88].mxu1  ;;  %v17931_v40 = vpop.permute.xlu1 %6370 }
 0x6cf   : > { %v6154_v1 = vmax.f32 %v10473_v14, %v6026_v21  ;;  %v6028_v55 = vmul.f32 0.01, %v10475_v15  ;;  %v6624_v44 = vadd.f32 %v6623_v19, %v6537_v3  ;;  %v8665_v39 = vpack.c.bf16 %v8601_v61, %v8599_v11  ;;  %v5848_v38 = vpop.f32.mrb[89].mxu1  ;;  %v17935_v13 = vpop.permute.xlu0 %6374  ;;  %v19801_v14 = vld [vmem:[#allocation135_spill] sm:$0xff] }
 0x6d0   : > { %v6155_v12 = vmax.f32 %v10474_v10, %v6027_v56  ;;  %v6029_v7 = vmul.f32 0.01, %v10476_v0  ;;  %v6030_v32 = vmul.f32 0.01, %v10477_v31  ;;  %v6031_v62 = vmul.f32 0.01, %v10478_v30 }
 0x6d1   : > { %8849 = vmatmul.mubr.bf16.gmra.mrb[188].mxu1 %v12077_v45  ;;  %v6156_v49 = vmax.f32 %v10475_v15, %v6028_v55  ;;  %v6538_v57 = vmul.f32 %v17920_v59, %v6154_v1  ;;  %9049 = vmatprep.subr.bf16.mxu1 %v8665_v39  ;;  %v10479_v42 = vadd.f32 %v5842_v22, %v19799_v36  ;;  %v5850_v11 = vpop.f32.mrb[90].mxu1 }
 0x6d2   : > { %8858 = vmatprep.mubr.bf16.mxu1 %v12078_v35  ;;  %19800 = vst [vmem:[#allocation33_spill] sm:$0xff] %v17935_v13  ;;  %v10480_v28 = vadd.f32 %v5846_v2, %v19801_v14  ;;  %v6539_v19 = vmul.f32 %v17926_v23, %v6155_v12  ;;  %v6157_v10 = vmax.f32 %v10476_v0, %v6029_v7  ;;  %v5852_v3 = vpop.f32.mrb[91].mxu1  ;;  %v17943_v35 = vpop.permute.xlu1 %6378 }
 0x6d3   : > { %v6158_v61 = vmax.f32 %v10477_v31, %v6030_v32  ;;  %v6159_v21 = vmax.f32 %v10478_v30, %v6031_v62  ;;  %9050 = vmatpush1.bf16.msra.mxu1 %v8664_v6  ;;  %v6693_v56 = vadd.f32 %v6692_v48, %v6538_v57  ;;  %v6540_v15 = vmul.f32 %v17926_v23, %v6156_v49  ;;  %v19802_v48 = vld [vmem:[#allocation138_spill] sm:$0xff] }
 0x6d4   : > { %v6032_v55 = vmul.f32 0.01, %v10479_v42  ;;  %v6033_v1 = vmul.f32 0.01, %v10480_v28  ;;  %v6625_v45 = vadd.f32 %v6624_v44, %v6539_v19  ;;  %v6541_v22 = vmul.f32 %v17931_v40, %v6157_v10  ;;  %v12079_v44 = vld [vmem:[#allocation3 + $0x200] ss:$16 sps:$4 sm:$0xff]  }
 0x6d5   : > { %v6542_v39 = vmul.f32 %v17931_v40, %v6158_v61  ;;  %v6543_v2 = vmul.f32 %v17935_v13, %v6159_v21  ;;  %v6694_v12 = vadd.f32 %v6693_v56, %v6540_v15  ;;  %v10481_v6 = vadd.f32 %v5848_v38, %v19801_v14  ;;  %v12080_v56 = vld [vmem:[#allocation3 + $0x224] ss:$16 sps:$4 sm:$0xff]   ;;  %v17950_v38 = vpop.permute.xlu0 %6382 }
 0x6d6   : > { %v6160_v0 = vmax.f32 %v10479_v42, %v6032_v55  ;;  %v6161_v31 = vmax.f32 %v10480_v28, %v6033_v1  ;;  %v6626_v30 = vadd.f32 %v6625_v45, %v6541_v22  ;;  %v10482_v7 = vadd.f32 %v5850_v11, %v19802_v48  ;;  %v5856_v62 = vpop.f32.mrb[92].mxu1  ;;  %v19803_v11 = vld [vmem:[#allocation136_spill] sm:$0xff]  ;;  %v19804_v22 = vld [vmem:[#allocation143_spill] sm:$0xff] }
 0x6d7   : > { %v10483_v32 = vadd.f32 %v5852_v3, %v19802_v48  ;;  %v6695_v49 = vadd.f32 %v6694_v12, %v6542_v39  ;;  %v6034_v19 = vmul.f32 0.01, %v10481_v6  ;;  %v5858_v61 = vpop.f32.mrb[93].mxu1  ;;  %v10484_v15 = vadd.f32 %v5856_v62, %v19803_v11 }
 0x6d8   : > { %v6544_v57 = vmul.f32 %v17935_v13, %v6160_v0  ;;  %v6545_v10 = vmul.f32 %v17943_v35, %v6161_v31  ;;  %v6627_v21 = vadd.f32 %v6626_v30, %v6543_v2  ;;  %v6035_v42 = vmul.f32 0.01, %v10482_v7  ;;  %v5860_v3 = vpop.f32.mrb[94].mxu1  ;;  %v17957_v13 = vpop.permute.xlu1 %6386 }
 0x6d9   : > { %8859 = vmatmul.mubr.bf16.gmra.mrb[192].mxu1 %v12079_v44  ;;  %v6036_v28 = vmul.f32 0.01, %v10483_v32  ;;  %v6162_v1 = vmax.f32 %v10481_v6, %v6034_v19  ;;  %v10485_v45 = vadd.f32 %v5858_v61, %v19803_v11  ;;  %v10486_v39 = vadd.f32 %v5860_v3, %v19804_v22  ;;  %v5862_v12 = vpop.f32.mrb[95].mxu1 }
 0x6da   : > { %8868 = vmatprep.mubr.bf16.mxu1 %v12080_v56  ;;  %v6696_v55 = vadd.f32 %v6695_v49, %v6544_v57  ;;  %v6163_v0 = vmax.f32 %v10482_v7, %v6035_v42  ;;  %v6628_v44 = vadd.f32 %v6627_v21, %v6545_v10  ;;  %v6037_v2 = vmul.f32 0.01, %v10484_v15  ;;  %v17961_v57 = vpop.permute.xlu0 %6390 }
 0x6db   : > { %v6164_v31 = vmax.f32 %v10483_v32, %v6036_v28  ;;  %v6546_v30 = vmul.f32 %v17943_v35, %v6162_v1  ;;  %v6038_v48 = vmul.f32 0.01, %v10485_v45  ;;  %v6039_v56 = vmul.f32 0.01, %v10486_v39  ;;  %v12081_v28 = vld [vmem:[#allocation3 + $0x220] ss:$16 sps:$4 sm:$0xff]  }
 0x6dc   : > { %v10487_v14 = vadd.f32 %v5862_v12, %v19804_v22  ;;  %v6547_v62 = vmul.f32 %v17950_v38, %v6163_v0  ;;  %v6165_v49 = vmax.f32 %v10484_v15, %v6037_v2  ;;  %v12082_v15 = vld [vmem:[#allocation3 + $0x244] ss:$16 sps:$4 sm:$0xff]  }
 0x6dd   : > { %v6548_v6 = vmul.f32 %v17950_v38, %v6164_v31  ;;  %v6697_v19 = vadd.f32 %v6696_v55, %v6546_v30  ;;  %v6166_v7 = vmax.f32 %v10485_v45, %v6038_v48  ;;  %v6167_v32 = vmax.f32 %v10486_v39, %v6039_v56  ;;  %v19805_v55 = vld [vmem:[#allocation141_spill] sm:$0xff]  ;;  %v19806_v56 = vld [vmem:[#allocation139_spill] sm:$0xff] }
 0x6de   : > { %v6040_v10 = vmul.f32 0.01, %v10487_v14  ;;  %v6629_v61 = vadd.f32 %v6628_v44, %v6547_v62  ;;  %v6549_v21 = vmul.f32 %v17957_v13, %v6165_v49  ;;  %v5866_v42 = vpop.f32.mrb[96].mxu1 }
 0x6df   : > { %v6698_v3 = vadd.f32 %v6697_v19, %v6548_v6  ;;  %v6550_v12 = vmul.f32 %v17957_v13, %v6166_v7  ;;  %v6551_v0 = vmul.f32 %v17961_v57, %v6167_v32  ;;  %v5868_v31 = vpop.f32.mrb[97].mxu1  ;;  %v10488_v48 = vadd.f32 %v5866_v42, %v19805_v55 }
 0x6e0   : > { %v6168_v1 = vmax.f32 %v10487_v14, %v6040_v10  ;;  %v6630_v2 = vadd.f32 %v6629_v61, %v6549_v21  ;;  %v10489_v45 = vadd.f32 %v5868_v31, %v19805_v55  ;;  %v5870_v39 = vpop.f32.mrb[98].mxu1  ;;  %v17973_v31 = vpop.permute.xlu0 %6398 }
 0x6e1   : > { %8869 = vmatmul.mubr.bf16.gmra.mrb[196].mxu1 %v12081_v28  ;;  %v6699_v44 = vadd.f32 %v6698_v3, %v6550_v12  ;;  %v10490_v62 = vadd.f32 %v5870_v39, %v19806_v56  ;;  %v5872_v6 = vpop.f32.mrb[99].mxu1  ;;  %v6041_v49 = vmul.f32 0.01, %v10488_v48  ;;  %v17971_v28 = vpop.permute.xlu1 %6394 }
 0x6e2   : > { %8878 = vmatprep.mubr.bf16.mxu1 %v12082_v15  ;;  %v6552_v30 = vmul.f32 %v17961_v57, %v6168_v1  ;;  %v6631_v14 = vadd.f32 %v6630_v2, %v6551_v0  ;;  %v6042_v19 = vmul.f32 0.01, %v10489_v45  ;;  %v10491_v7 = vadd.f32 %v5872_v6, %v19806_v56  ;;  %19807 = vst [vmem:[#allocation31_spill] sm:$0xff] %v17971_v28  ;;  %v12083_v2 = vld [vmem:[#allocation3 + $0x240] ss:$16 sps:$4 sm:$0xff]  }
 0x6e3   : > { %v6043_v10 = vmul.f32 0.01, %v10490_v62  ;;  %v6169_v61 = vmax.f32 %v10488_v48, %v6041_v49  ;;  %v12084_v56 = vld [vmem:[#allocation3 + $0x264] ss:$16 sps:$4 sm:$0xff]  }
 0x6e4   : > { %v6700_v32 = vadd.f32 %v6699_v44, %v6552_v30  ;;  %v6170_v21 = vmax.f32 %v10489_v45, %v6042_v19  ;;  %v6044_v42 = vmul.f32 0.01, %v10491_v7  ;;  %v19808_v44 = vld [vmem:[#allocation140_spill] sm:$0xff] }
 0x6e5   : > { %v6171_v3 = vmax.f32 %v10490_v62, %v6043_v10  ;;  %v6553_v1 = vmul.f32 %v17971_v28, %v6169_v61  ;;  %v19809_v10 = vld [vmem:[#allocation144_spill] sm:$0xff] }
 0x6e6   : > { %v6172_v12 = vmax.f32 %v10491_v7, %v6044_v42  ;;  %v6554_v15 = vmul.f32 %v17971_v28, %v6170_v21  ;;  %v5876_v0 = vpop.f32.mrb[100].mxu1 }
 0x6e7   : > { %v6555_v39 = vmul.f32 %v17973_v31, %v6171_v3  ;;  %v10492_v30 = vadd.f32 %v5876_v0, %v19808_v44  ;;  %v5878_v6 = vpop.f32.mrb[101].mxu1  ;;  %v6632_v48 = vadd.f32 %v6631_v14, %v6553_v1  ;;  %v17983_v0 = vpop.permute.xlu1 %6402 }
 0x6e8   : > { %v6701_v45 = vadd.f32 %v6700_v32, %v6554_v15  ;;  %v6556_v49 = vmul.f32 %v17973_v31, %v6172_v12  ;;  %v10493_v62 = vadd.f32 %v5878_v6, %v19808_v44  ;;  %v5880_v19 = vpop.f32.mrb[102].mxu1  ;;  %19810 = vst [vmem:[#allocation21_spill] sm:$0xff] %v17983_v0  ;;  %v17985_v1 = vpop.permute.xlu0 %6406 }
 0x6e9   : > { %8879 = vmatmul.mubr.bf16.gmra.mrb[200].mxu1 %v12083_v2  ;;  %v6045_v7 = vmul.f32 0.01, %v10492_v30  ;;  %v10494_v61 = vadd.f32 %v5880_v19, %v19809_v10  ;;  %v5882_v21 = vpop.f32.mrb[103].mxu1  ;;  %v6633_v42 = vadd.f32 %v6632_v48, %v6555_v39  ;;  %19811 = vst [vmem:[#allocation27_spill] sm:$0xff] %v17985_v1  ;;  %v12085_v39 = vld [vmem:[#allocation3 + $0x260] ss:$16 sps:$4 sm:$0xff]  }
 0x6ea   : > { %8888 = vmatprep.mubr.bf16.mxu1 %v12084_v56  ;;  %v6702_v2 = vadd.f32 %v6701_v45, %v6556_v49  ;;  %v6046_v28 = vmul.f32 0.01, %v10493_v62  ;;  %v10495_v3 = vadd.f32 %v5882_v21, %v19809_v10  ;;  %v19812_v49 = vld [vmem:[#allocation148_spill] sm:$0xff] }
 0x6eb   : > { %v6173_v55 = vmax.f32 %v10492_v30, %v6045_v7  ;;  %v6047_v56 = vmul.f32 0.01, %v10494_v61  ;;  %v12086_v7 = vld [vmem:[#allocation3 + $0x284] ss:$16 sps:$4 sm:$0xff]  }
 0x6ec   : > { %v6174_v14 = vmax.f32 %v10493_v62, %v6046_v28  ;;  %v6048_v32 = vmul.f32 0.01, %v10495_v3 }
 0x6ed   : > { %v6175_v12 = vmax.f32 %v10494_v61, %v6047_v56  ;;  %v6557_v15 = vmul.f32 %v17983_v0, %v6173_v55 }
 0x6ee   : > { %v6176_v6 = vmax.f32 %v10495_v3, %v6048_v32  ;;  %v6558_v19 = vmul.f32 %v17983_v0, %v6174_v14  ;;  %v5886_v44 = vpop.f32.mrb[104].mxu1  ;;  %v19813_v14 = vld [vmem:[#allocation142_spill] sm:$0xff] }
 0x6ef   : > { %v6634_v48 = vadd.f32 %v6633_v42, %v6557_v15  ;;  %v6559_v45 = vmul.f32 %v17985_v1, %v6175_v12  ;;  %v10496_v21 = vadd.f32 %v5886_v44, %v19812_v49  ;;  %v5888_v30 = vpop.f32.mrb[105].mxu1  ;;  %v17995_v15 = vpop.permute.xlu1 %6410 }
 0x6f0   : > { %v6703_v28 = vadd.f32 %v6702_v2, %v6558_v19  ;;  %v6560_v62 = vmul.f32 %v17985_v1, %v6176_v6  ;;  %v10497_v61 = vadd.f32 %v5888_v30, %v19812_v49  ;;  %v5890_v55 = vpop.f32.mrb[106].mxu1  ;;  %19814 = vst [vmem:[#allocation7_spill] sm:$0xff] %v17995_v15  ;;  %v17997_v19 = vpop.permute.xlu0 %6414  ;;  %v12087_v49 = vld [vmem:[#allocation3 + $0x280] ss:$16 sps:$4 sm:$0xff]  }
 0x6f1   : > { %8889 = vmatmul.mubr.bf16.gmra.mrb[204].mxu1 %v12085_v39  ;;  %v6635_v3 = vadd.f32 %v6634_v48, %v6559_v45  ;;  %v6049_v56 = vmul.f32 0.01, %v10496_v21  ;;  %v10498_v32 = vadd.f32 %v5890_v55, %v19813_v14  ;;  %v5892_v0 = vpop.f32.mrb[107].mxu1  ;;  %19815 = vst [vmem:[#allocation176_spill] sm:$0xff] %v17997_v19 }
 0x6f2   : > { %8898 = vmatprep.mubr.bf16.mxu1 %v12086_v7  ;;  %v6704_v39 = vadd.f32 %v6703_v28, %v6560_v62  ;;  %v6050_v42 = vmul.f32 0.01, %v10497_v61  ;;  %v10499_v12 = vadd.f32 %v5892_v0, %v19813_v14  ;;  %v19816_v62 = vld [vmem:[#allocation146_spill] sm:$0xff] }
 0x6f3   : > { %v6177_v44 = vmax.f32 %v10496_v21, %v6049_v56  ;;  %v6051_v10 = vmul.f32 0.01, %v10498_v32  ;;  %v12088_v56 = vld [vmem:[#allocation3 + $0x2a4] ss:$16 sps:$4 sm:$0xff]  }
 0x6f4   : > { %v6178_v7 = vmax.f32 %v10497_v61, %v6050_v42  ;;  %v6052_v2 = vmul.f32 0.01, %v10499_v12 }
 0x6f5   : > { %v6179_v6 = vmax.f32 %v10498_v32, %v6051_v10  ;;  %v6561_v30 = vmul.f32 %v17995_v15, %v6177_v44 }
 0x6f6   : > { %v6180_v48 = vmax.f32 %v10499_v12, %v6052_v2  ;;  %v6562_v45 = vmul.f32 %v17995_v15, %v6178_v7  ;;  %v5896_v55 = vpop.f32.mrb[108].mxu1  ;;  %v19817_v7 = vld [vmem:[#allocation147_spill] sm:$0xff] }
 0x6f7   : > { %v6636_v28 = vadd.f32 %v6635_v3, %v6561_v30  ;;  %v6563_v0 = vmul.f32 %v17997_v19, %v6179_v6  ;;  %v10500_v14 = vadd.f32 %v5896_v55, %v19816_v62  ;;  %v5898_v21 = vpop.f32.mrb[109].mxu1  ;;  %v18007_v30 = vpop.permute.xlu1 %6418 }
 0x6f8   : > { %v6705_v61 = vadd.f32 %v6704_v39, %v6562_v45  ;;  %v6564_v42 = vmul.f32 %v17997_v19, %v6180_v48  ;;  %v10501_v10 = vadd.f32 %v5898_v21, %v19816_v62  ;;  %v5900_v32 = vpop.f32.mrb[110].mxu1  ;;  %19818 = vst [vmem:[#allocation178_spill] sm:$0xff] %v18007_v30  ;;  %v18009_v45 = vpop.permute.xlu0 %6422  ;;  %v12089_v62 = vld [vmem:[#allocation3 + $0x2a0] ss:$16 sps:$4 sm:$0xff]  }
 0x6f9   : > { %8899 = vmatmul.mubr.bf16.gmra.mrb[208].mxu1 %v12087_v49  ;;  %v6637_v12 = vadd.f32 %v6636_v28, %v6563_v0  ;;  %v6053_v44 = vmul.f32 0.01, %v10500_v14  ;;  %v10502_v2 = vadd.f32 %v5900_v32, %v19817_v7  ;;  %v5902_v15 = vpop.f32.mrb[111].mxu1  ;;  %19819 = vst [vmem:[#allocation180_spill] sm:$0xff] %v18009_v45 }
 0x6fa   : > { %8908 = vmatprep.mubr.bf16.mxu1 %v12088_v56  ;;  %v6706_v49 = vadd.f32 %v6705_v61, %v6564_v42  ;;  %v6054_v3 = vmul.f32 0.01, %v10501_v10  ;;  %v10503_v6 = vadd.f32 %v5902_v15, %v19817_v7  ;;  %v19820_v42 = vld [vmem:[#allocation149_spill] sm:$0xff] }
 0x6fb   : > { %v6181_v55 = vmax.f32 %v10500_v14, %v6053_v44  ;;  %v6055_v1 = vmul.f32 0.01, %v10502_v2  ;;  %v12090_v44 = vld [vmem:[#allocation3 + $0x2c4] ss:$16 sps:$4 sm:$0xff]  }
 0x6fc   : > { %v6182_v56 = vmax.f32 %v10501_v10, %v6054_v3  ;;  %v6056_v39 = vmul.f32 0.01, %v10503_v6 }
 0x6fd   : > { %v6183_v48 = vmax.f32 %v10502_v2, %v6055_v1  ;;  %v6565_v21 = vmul.f32 %v18007_v30, %v6181_v55 }
 0x6fe   : > { %v6184_v28 = vmax.f32 %v10503_v6, %v6056_v39  ;;  %v6566_v0 = vmul.f32 %v18007_v30, %v6182_v56  ;;  %v5906_v32 = vpop.f32.mrb[112].mxu1  ;;  %v19821_v56 = vld [vmem:[#allocation145_spill] sm:$0xff] }
 0x6ff   : > { %v6638_v61 = vadd.f32 %v6637_v12, %v6565_v21  ;;  %v6567_v15 = vmul.f32 %v18009_v45, %v6183_v48  ;;  %v10504_v7 = vadd.f32 %v5906_v32, %v19820_v42  ;;  %v5908_v14 = vpop.f32.mrb[113].mxu1  ;;  %v18019_v21 = vpop.permute.xlu1 %6426 }
 0x700   : > { %v6707_v10 = vadd.f32 %v6706_v49, %v6566_v0  ;;  %v6568_v3 = vmul.f32 %v18009_v45, %v6184_v28  ;;  %v10505_v1 = vadd.f32 %v5908_v14, %v19820_v42  ;;  %v5910_v2 = vpop.f32.mrb[114].mxu1  ;;  %19822 = vst [vmem:[#allocation42_spill] sm:$0xff] %v18019_v21  ;;  %v18021_v0 = vpop.permute.xlu0 %6430  ;;  %v12091_v42 = vld [vmem:[#allocation3 + $0x2c0] ss:$16 sps:$4 sm:$0xff]  }
 0x701   : > { %8909 = vmatmul.mubr.bf16.gmra.mrb[212].mxu1 %v12089_v62  ;;  %v6639_v6 = vadd.f32 %v6638_v61, %v6567_v15  ;;  %v6057_v55 = vmul.f32 0.01, %v10504_v7  ;;  %v10506_v39 = vadd.f32 %v5910_v2, %v19821_v56  ;;  %v5912_v30 = vpop.f32.mrb[115].mxu1  ;;  %19823 = vst [vmem:[#allocation177_spill] sm:$0xff] %v18021_v0 }
 0x702   : > { %8918 = vmatprep.mubr.bf16.mxu1 %v12090_v44  ;;  %v6708_v62 = vadd.f32 %v6707_v10, %v6568_v3  ;;  %v6058_v12 = vmul.f32 0.01, %v10505_v1  ;;  %v10507_v48 = vadd.f32 %v5912_v30, %v19821_v56  ;;  %v19824_v3 = vld [vmem:[#allocation153_spill] sm:$0xff] }
 0x703   : > { %v6185_v32 = vmax.f32 %v10504_v7, %v6057_v55  ;;  %v6059_v19 = vmul.f32 0.01, %v10506_v39  ;;  %v12092_v55 = vld [vmem:[#allocation3 + $0x2e4] ss:$16 sps:$4 sm:$0xff]  }
 0x704   : > { %v6186_v44 = vmax.f32 %v10505_v1, %v6058_v12  ;;  %v6060_v49 = vmul.f32 0.01, %v10507_v48 }
 0x705   : > { %v6187_v28 = vmax.f32 %v10506_v39, %v6059_v19  ;;  %v6569_v14 = vmul.f32 %v18019_v21, %v6185_v32 }
 0x706   : > { %v6188_v61 = vmax.f32 %v10507_v48, %v6060_v49  ;;  %v6570_v15 = vmul.f32 %v18019_v21, %v6186_v44  ;;  %v5916_v2 = vpop.f32.mrb[116].mxu1  ;;  %v19825_v44 = vld [vmem:[#allocation152_spill] sm:$0xff] }
 0x707   : > { %v6640_v10 = vadd.f32 %v6639_v6, %v6569_v14  ;;  %v6571_v30 = vmul.f32 %v18021_v0, %v6187_v28  ;;  %v10508_v56 = vadd.f32 %v5916_v2, %v19824_v3  ;;  %v5918_v7 = vpop.f32.mrb[117].mxu1  ;;  %v18031_v14 = vpop.permute.xlu1 %6434 }
 0x708   : > { %v6709_v1 = vadd.f32 %v6708_v62, %v6570_v15  ;;  %v6572_v12 = vmul.f32 %v18021_v0, %v6188_v61  ;;  %v10509_v19 = vadd.f32 %v5918_v7, %v19824_v3  ;;  %v5920_v39 = vpop.f32.mrb[118].mxu1  ;;  %19826 = vst [vmem:[#allocation40_spill] sm:$0xff] %v18031_v14  ;;  %v18033_v15 = vpop.permute.xlu0 %6438  ;;  %v12093_v3 = vld [vmem:[#allocation3 + $0x2e0] ss:$16 sps:$4 sm:$0xff]  }
 0x709   : > { %8919 = vmatmul.mubr.bf16.gmra.mrb[216].mxu1 %v12091_v42  ;;  %v6641_v48 = vadd.f32 %v6640_v10, %v6571_v30  ;;  %v6061_v32 = vmul.f32 0.01, %v10508_v56  ;;  %v10510_v49 = vadd.f32 %v5920_v39, %v19825_v44  ;;  %v5922_v21 = vpop.f32.mrb[119].mxu1  ;;  %19827 = vst [vmem:[#allocation41_spill] sm:$0xff] %v18033_v15 }
 0x70a   : > { %8928 = vmatprep.mubr.bf16.mxu1 %v12092_v55  ;;  %v6710_v42 = vadd.f32 %v6709_v1, %v6572_v12  ;;  %v6062_v6 = vmul.f32 0.01, %v10509_v19  ;;  %v10511_v28 = vadd.f32 %v5922_v21, %v19825_v44  ;;  %v19828_v12 = vld [vmem:[#allocation151_spill] sm:$0xff] }
 0x70b   : > { %v6189_v2 = vmax.f32 %v10508_v56, %v6061_v32  ;;  %v6063_v45 = vmul.f32 0.01, %v10510_v49  ;;  %v12094_v32 = vld [vmem:[#allocation3 + $0x304] ss:$16 sps:$4 sm:$0xff]  }
 0x70c   : > { %v6190_v55 = vmax.f32 %v10509_v19, %v6062_v6  ;;  %v6064_v62 = vmul.f32 0.01, %v10511_v28 }
 0x70d   : > { %v6191_v61 = vmax.f32 %v10510_v49, %v6063_v45  ;;  %v6573_v7 = vmul.f32 %v18031_v14, %v6189_v2 }
 0x70e   : > { %v6192_v10 = vmax.f32 %v10511_v28, %v6064_v62  ;;  %v6574_v30 = vmul.f32 %v18031_v14, %v6190_v55  ;;  %v5926_v39 = vpop.f32.mrb[120].mxu1  ;;  %v19829_v55 = vld [vmem:[#allocation150_spill] sm:$0xff] }
 0x70f   : > { %v6642_v1 = vadd.f32 %v6641_v48, %v6573_v7  ;;  %v6575_v21 = vmul.f32 %v18033_v15, %v6191_v61  ;;  %v10512_v44 = vadd.f32 %v5926_v39, %v19828_v12  ;;  %v5928_v56 = vpop.f32.mrb[121].mxu1  ;;  %v18043_v7 = vpop.permute.xlu1 %6442 }
 0x710   : > { %v6711_v19 = vadd.f32 %v6710_v42, %v6574_v30  ;;  %v6576_v6 = vmul.f32 %v18033_v15, %v6192_v10  ;;  %v10513_v45 = vadd.f32 %v5928_v56, %v19828_v12  ;;  %v5930_v49 = vpop.f32.mrb[122].mxu1  ;;  %19830 = vst [vmem:[#allocation38_spill] sm:$0xff] %v18043_v7  ;;  %v18045_v30 = vpop.permute.xlu0 %6446  ;;  %v12095_v12 = vld [vmem:[#allocation3 + $0x300] ss:$16 sps:$4 sm:$0xff]  }
 0x711   : > { %8929 = vmatmul.mubr.bf16.gmra.mrb[220].mxu1 %v12093_v3  ;;  %v6643_v28 = vadd.f32 %v6642_v1, %v6575_v21  ;;  %v6065_v2 = vmul.f32 0.01, %v10512_v44  ;;  %v10514_v62 = vadd.f32 %v5930_v49, %v19829_v55  ;;  %v5932_v14 = vpop.f32.mrb[123].mxu1  ;;  %19831 = vst [vmem:[#allocation50_spill] sm:$0xff] %v18045_v30 }
 0x712   : > { %8938 = vmatprep.mubr.bf16.mxu1 %v12094_v32  ;;  %v6712_v3 = vadd.f32 %v6711_v19, %v6576_v6  ;;  %v6066_v48 = vmul.f32 0.01, %v10513_v45  ;;  %v10515_v61 = vadd.f32 %v5932_v14, %v19829_v55  ;;  %v19832_v6 = vld [vmem:[#allocation157_spill] sm:$0xff] }
 0x713   : > { %v6193_v39 = vmax.f32 %v10512_v44, %v6065_v2  ;;  %v6067_v0 = vmul.f32 0.01, %v10514_v62  ;;  %v12096_v2 = vld [vmem:[#allocation3 + $0x324] ss:$16 sps:$4 sm:$0xff]  }
 0x714   : > { %v6194_v32 = vmax.f32 %v10513_v45, %v6066_v48  ;;  %v6068_v42 = vmul.f32 0.01, %v10515_v61 }
 0x715   : > { %v6195_v10 = vmax.f32 %v10514_v62, %v6067_v0  ;;  %v6577_v56 = vmul.f32 %v18043_v7, %v6193_v39 }
 0x716   : > { %v6196_v1 = vmax.f32 %v10515_v61, %v6068_v42  ;;  %v6578_v21 = vmul.f32 %v18043_v7, %v6194_v32  ;;  %v5936_v49 = vpop.f32.mrb[124].mxu1  ;;  %v19833_v32 = vld [vmem:[#allocation154_spill] sm:$0xff] }
 0x717   : > { %v6644_v19 = vadd.f32 %v6643_v28, %v6577_v56  ;;  %v6579_v14 = vmul.f32 %v18045_v30, %v6195_v10  ;;  %v10516_v55 = vadd.f32 %v5936_v49, %v19832_v6  ;;  %v5938_v44 = vpop.f32.mrb[125].mxu1  ;;  %v18055_v56 = vpop.permute.xlu1 %6450 }
 0x718   : > { %v6713_v45 = vadd.f32 %v6712_v3, %v6578_v21  ;;  %v6580_v48 = vmul.f32 %v18045_v30, %v6196_v1  ;;  %v10517_v0 = vadd.f32 %v5938_v44, %v19832_v6  ;;  %v5940_v62 = vpop.f32.mrb[126].mxu1  ;;  %19834 = vst [vmem:[#allocation54_spill] sm:$0xff] %v18055_v56  ;;  %v18057_v21 = vpop.permute.xlu0 %6454  ;;  %v19851_v30 = vld [vmem:[#allocation115_spill] sm:$0xff] }
 0x719   : > { %8939 = vmatmul.mubr.bf16.gmra.mrb[224].mxu1 %v12095_v12  ;;  %v6645_v61 = vadd.f32 %v6644_v19, %v6579_v14  ;;  %v6069_v39 = vmul.f32 0.01, %v10516_v55  ;;  %v10518_v42 = vadd.f32 %v5940_v62, %v19833_v32  ;;  %v5942_v7 = vpop.f32.mrb[127].mxu1  ;;  %19835 = vst [vmem:[#allocation39_spill] sm:$0xff] %v18057_v21  ;;  %v12097_v62 = vld [vmem:[#allocation3 + $0x320] ss:$16 sps:$4 sm:$0xff]  }
 0x71a   : > { %8948 = vmatprep.mubr.bf16.mxu1 %v12096_v2  ;;  %v6714_v12 = vadd.f32 %v6713_v45, %v6580_v48  ;;  %v6070_v28 = vmul.f32 0.01, %v10517_v0  ;;  %v10519_v10 = vadd.f32 %v5942_v7, %v19833_v32  ;;  %v12098_v7 = vld [vmem:[#allocation3 + $0x344] ss:$16 sps:$4 sm:$0xff]  }
 0x71b   : > { %v6197_v49 = vmax.f32 %v10516_v55, %v6069_v39  ;;  %v6071_v15 = vmul.f32 0.01, %v10518_v42 }
 0x71c   : > { %v6198_v2 = vmax.f32 %v10517_v0, %v6070_v28  ;;  %v6072_v3 = vmul.f32 0.01, %v10519_v10 }
 0x71d   : > { %v6199_v1 = vmax.f32 %v10518_v42, %v6071_v15  ;;  %v6581_v44 = vmul.f32 %v18055_v56, %v6197_v49  ;;  %v12099_v49 = vld [vmem:[#allocation3 + $0x340] ss:$16 sps:$4 sm:$0xff]  }
 0x71e   : > { %v6200_v19 = vmax.f32 %v10519_v10, %v6072_v3  ;;  %v6582_v14 = vmul.f32 %v18055_v56, %v6198_v2  ;;  %v12100_v3 = vld [vmem:[#allocation3 + $0x364] ss:$16 sps:$4 sm:$0xff]  }
 0x71f   : > { %v6583_v45 = vmul.f32 %v18057_v21, %v6199_v1  ;;  %v6646_v48 = vadd.f32 %v6645_v61, %v6581_v44 }
 0x720   : > { %v6584_v55 = vmul.f32 %v18057_v21, %v6200_v19  ;;  %v6715_v39 = vadd.f32 %v6714_v12, %v6582_v14 }
 0x721   : > { %8949 = vmatmul.mubr.bf16.gmra.mrb[228].mxu1 %v12097_v62  ;;  %v6647_v0 = vadd.f32 %v6646_v48, %v6583_v45  ;;  %v6726_v62 = vpop.permute.xlu1 %6725  ;;  %v12101_v45 = vld [vmem:[#allocation3 + $0x360] ss:$16 sps:$4 sm:$0xff]  }
 0x722   : > { %8958 = vmatprep.mubr.bf16.mxu1 %v12098_v7  ;;  %v6716_v28 = vadd.f32 %v6715_v39, %v6584_v55  ;;  %v19836_v7 = vld [vmem:[#allocation30_spill] sm:$0xff] }
 0x723   : > { %v6648_v32 = vrot.slane %v6647_v0, 4  ;;  %v18064_v56 = vrot.slane %v6726_v62, %v19836_v7  ;;  %v12221_v62 = vmov 1966171168   ;;  %v12108_v7 = vld [vmem:[#allocation3 + $0x3e4] ss:$16 sps:$4 sm:$0xff]  }
 0x724   : > { %v6717_v6 = vrot.slane %v6716_v28, 4 }
 0x725   : > { %v6649_v15 = vadd.f32 %v6648_v32, %v6647_v0  ;;  %19837 = vst [vmem:[#allocation55_spill] sm:$0xff] %v18064_v56  ;;  %v12102_v32 = vld [vmem:[#allocation3 + $0x384] ss:$16 sps:$4 sm:$0xff]   ;;  %v12103_v0 = vld [vmem:[#allocation3 + $0x380] ss:$16 sps:$4 sm:$0xff]  }
 0x726   : > { %v6718_v42 = vadd.f32 %v6717_v6, %v6716_v28  ;;  %v12104_v28 = vld [vmem:[#allocation3 + $0x3a4] ss:$16 sps:$4 sm:$0xff]  }
 0x727   : > { %v6650_v10 = vrot.slane %v6649_v15, 2 }
 0x728   : > { %v6719_v2 = vrot.slane %v6718_v42, 2 }
 0x729   : > { %8959 = vmatmul.mubr.bf16.gmra.mrb[232].mxu1 %v12099_v49  ;;  %v6651_v1 = vadd.f32 %v6650_v10, %v6649_v15 }
 0x72a   : > { %8968 = vmatprep.mubr.bf16.mxu1 %v12100_v3  ;;  %v6720_v61 = vadd.f32 %v6719_v2, %v6718_v42  ;;  %v12105_v2 = vld [vmem:[#allocation3 + $0x3a0] ss:$16 sps:$4 sm:$0xff]   ;;  %v12106_v3 = vld [vmem:[#allocation3 + $0x3c4] ss:$16 sps:$4 sm:$0xff]  }
 0x72b   : > { %v6652_v44 = vrot.slane %v6651_v1, 1 }
 0x72c   : > { %v6721_v12 = vrot.slane %v6720_v61, 1 }
 0x72d   : > { %v6653_v19 = vadd.f32 %v6652_v44, %v6651_v1  ;;  %v6750_v1 = vunpack.c.l.s4 %v12221_v62  ;;  %v12107_v44 = vld [vmem:[#allocation3 + $0x3c0] ss:$16 sps:$4 sm:$0xff]   ;;  %v12117_v62 = vld [vmem:[#allocation3 + $0x68] ss:$16 sps:$4 sm:$0xff]  }
 0x72e   : > { %v6722_v14 = vadd.f32 %v6721_v12, %v6720_v61 }
 0x72f   : > { %v6732_v6 = vadd.f32 %v18064_v56, %v6653_v19  ;;  %v6751_v61 = vunpack.c.0.s8 %v6750_v1  ;;  %v19838_v19 = vld [vmem:[#allocation6_spill] sm:$0xff]  ;;  %v12118_v1 = vld [vmem:[#allocation3 + $0x8c] ss:$16 sps:$4 sm:$0xff]  }
 0x730   : > { %v6733_v48 = vadd.f32 %v18064_v56, %v6722_v14 }
 0x731   : > { %8969 = vmatmul.mubr.bf16.gmra.mrb[236].mxu1 %v12101_v45  ;;  %v10256_v55 = vmul.f32 -1.442695, %v6732_v6  ;;  %v18069_v14 = vsub.s32 %v6751_v61, %v19838_v19  ;;  %v12119_v61 = vld [vmem:[#allocation3 + $0x88] ss:$16 sps:$4 sm:$0xff]  }
 0x732   : > { %8978 = vmatprep.mubr.bf16.mxu1 %v12102_v32  ;;  %v10257_v39 = vmul.f32 -1.442695, %v6733_v48  ;;  %v19840_v48 = vlaneseq  ;;  %v12123_v19 = vld [vmem:[#allocation3 + $0xc8] ss:$16 sps:$4 sm:$0xff]  }
 0x733   : > { %11774 = vpow2.f32 %v10256_v55  ;;  %19839 = vst [vmem:[#allocation23_spill] sm:$0xff] %v18069_v14  ;;  %v19841_v55 = vmov 0 }
 0x734   : > { %11776 = vpow2.f32 %v10257_v39  ;;  %vm18079_vm0 = vcmp.lt.s32.totalorder %v19840_v48, 256  ;;  %v12109_v39 = vld [vmem:[#allocation3 + $0x3e0] ss:$16 sps:$4 sm:$0xff]   ;;  %v12127_v48 = vld [vmem:[#allocation3 + $0x108] ss:$16 sps:$4 sm:$0xff]  }
 0x735   : > { %v19842_v55 = vsel %vm18079_vm0, 4294967295, %v19841_v55 }
 0x736   : > { %19843 = vst [vmem:[#allocation57_spill] sm:$0xff] %v19842_v55 }
 0x739   : > { %8979 = vmatmul.mubr.bf16.gmra.mrb[240].mxu1 %v12103_v0 }
 0x73a   : > { %8988 = vmatprep.mubr.bf16.mxu1 %v12104_v28  ;;  %v12110_v28 = vld [vmem:[#allocation3 + $0xc] ss:$16 sps:$4 sm:$0xff]  }
 0x73d   : > { %v11775_v15 = vpop.eup %11774 }
 0x73e   : > { %v11777_v42 = vpop.eup %11776  ;;  %v6740_v49 = vadd.f32 1.0, %v11775_v15  ;;  %v12111_v15 = vld [vmem:[#allocation3 + $0x8] ss:$16 sps:$4 sm:$0xff]  }
 0x73f   : > { %v6741_v10 = vadd.f32 1.0, %v11777_v42  ;;  %v12112_v42 = vld [vmem:[#allocation3 + $0x2c] ss:$16 sps:$4 sm:$0xff]  }
 0x740   : > { %11778 = vrcp.f32 %v6740_v49  ;;  %v12113_v49 = vld [vmem:[#allocation3 + $0x28] ss:$16 sps:$4 sm:$0xff]  }
 0x741   : > { %8989 = vmatmul.mubr.bf16.gmra.mrb[244].mxu1 %v12105_v2  ;;  %11780 = vrcp.f32 %v6741_v10  ;;  %v12114_v10 = vld [vmem:[#allocation3 + $0x4c] ss:$16 sps:$4 sm:$0xff]   ;;  %v12115_v2 = vld [vmem:[#allocation3 + $0x48] ss:$16 sps:$4 sm:$0xff]  }
 0x742   : > { %8998 = vmatprep.mubr.bf16.mxu1 %v12106_v3  ;;  %v12116_v3 = vld [vmem:[#allocation3 + $0x6c] ss:$16 sps:$4 sm:$0xff]  }
 0x749   : > { %8999 = vmatmul.mubr.bf16.gmra.mrb[248].mxu1 %v12107_v44  ;;  %v12120_v44 = vld [vmem:[#allocation3 + $0xac] ss:$16 sps:$4 sm:$0xff]  }
 0x74a   : > { %9008 = vmatprep.mubr.bf16.mxu1 %v12108_v7  ;;  %v11779_v12 = vpop.eup %11778  ;;  %v12121_v7 = vld [vmem:[#allocation3 + $0xa8] ss:$16 sps:$4 sm:$0xff]  }
 0x74b   : > { %v11781_v45 = vpop.eup %11780 }
 0x74c   : > { %v6748_v6 = vcombine.low %v11779_v12, %v11781_v45  ;;  %v12122_v12 = vld [vmem:[#allocation3 + $0xcc] ss:$16 sps:$4 sm:$0xff]  }
 0x74d   : > { %v12124_v45 = vld [vmem:[#allocation3 + $0xec] ss:$16 sps:$4 sm:$0xff]  }
 0x74e   : > { %v6755_v32 = vrot.slane %v6748_v6, %v18069_v14  ;;  %v12125_v6 = vld [vmem:[#allocation3 + $0xe8] ss:$16 sps:$4 sm:$0xff]  }
 0x750   : > { %v6762_v0 = vrot.slane %v6755_v32, %v18069_v14  ;;  %v12126_v32 = vld [vmem:[#allocation3 + $0x10c] ss:$16 sps:$4 sm:$0xff]  }
 0x751   : > { %9009 = vmatmul.mubr.bf16.gmra.mrb[252].mxu1 %v12109_v39  ;;  %v12128_v39 = vld [vmem:[#allocation3 + $0x12c] ss:$16 sps:$4 sm:$0xff]  }
 0x752   : > { %9051 = vmatprep.mubr.bf16.mxu1 %v12110_v28  ;;  %6768 = vst.msk [vmem:[%s18076_s29] sm:$0x3] %vm18079_vm0, %v6762_v0  ;;  %v12129_v0 = vld [vmem:[#allocation3 + $0x128] ss:$16 sps:$4 sm:$0xff]   ;;  %v12130_v28 = vld [vmem:[#allocation3 + $0x14c] ss:$16 sps:$4 sm:$0xff]  }
 0x759   : > { %9052 = vmatmul.mubr.bf16.vlgmr.msra.gmra.mrb[128].mxu1 %v12111_v15  ;;  %v12131_v15 = vld [vmem:[#allocation3 + $0x148] ss:$16 sps:$4 sm:$0xff]  }
 0x75a   : > { %9061 = vmatprep.mubr.bf16.mxu1 %v12112_v42  ;;  %v12132_v42 = vld [vmem:[#allocation3 + $0x16c] ss:$16 sps:$4 sm:$0xff]  }
 0x761   : > { %9062 = vmatmul.mubr.bf16.gmra.mrb[132].mxu1 %v12113_v49  ;;  %v12133_v49 = vld [vmem:[#allocation3 + $0x168] ss:$16 sps:$4 sm:$0xff]  }
 0x762   : > { %9071 = vmatprep.mubr.bf16.mxu1 %v12114_v10  ;;  %v12134_v10 = vld [vmem:[#allocation3 + $0x18c] ss:$16 sps:$4 sm:$0xff]  }
 0x769   : > { %9072 = vmatmul.mubr.bf16.gmra.mrb[136].mxu1 %v12115_v2  ;;  %v12135_v2 = vld [vmem:[#allocation3 + $0x188] ss:$16 sps:$4 sm:$0xff]  }
 0x76a   : > { %9081 = vmatprep.mubr.bf16.mxu1 %v12116_v3  ;;  %v12136_v3 = vld [vmem:[#allocation3 + $0x1ac] ss:$16 sps:$4 sm:$0xff]  }
 0x771   : > { %9082 = vmatmul.mubr.bf16.gmra.mrb[140].mxu1 %v12117_v62  ;;  %v12137_v62 = vld [vmem:[#allocation3 + $0x1a8] ss:$16 sps:$4 sm:$0xff]  }
 0x772   : > { %9091 = vmatprep.mubr.bf16.mxu1 %v12118_v1  ;;  %v12138_v1 = vld [vmem:[#allocation3 + $0x1cc] ss:$16 sps:$4 sm:$0xff]  }
 0x779   : > { %9092 = vmatmul.mubr.bf16.gmra.mrb[144].mxu1 %v12119_v61  ;;  %v12139_v61 = vld [vmem:[#allocation3 + $0x1c8] ss:$16 sps:$4 sm:$0xff]  }
 0x77a   : > { %9101 = vmatprep.mubr.bf16.mxu1 %v12120_v44  ;;  %v12140_v44 = vld [vmem:[#allocation3 + $0x1ec] ss:$16 sps:$4 sm:$0xff]  }
 0x781   : > { %9102 = vmatmul.mubr.bf16.gmra.mrb[148].mxu1 %v12121_v7  ;;  %v12141_v7 = vld [vmem:[#allocation3 + $0x1e8] ss:$16 sps:$4 sm:$0xff]  }
 0x782   : > { %9111 = vmatprep.mubr.bf16.mxu1 %v12122_v12  ;;  %v12142_v12 = vld [vmem:[#allocation3 + $0x20c] ss:$16 sps:$4 sm:$0xff]  }
 0x789   : > { %9112 = vmatmul.mubr.bf16.gmra.mrb[152].mxu1 %v12123_v19  ;;  %v12143_v19 = vld [vmem:[#allocation3 + $0x208] ss:$16 sps:$4 sm:$0xff]  }
 0x78a   : > { %9121 = vmatprep.mubr.bf16.mxu1 %v12124_v45  ;;  %v12144_v45 = vld [vmem:[#allocation3 + $0x22c] ss:$16 sps:$4 sm:$0xff]  }
 0x791   : > { %9122 = vmatmul.mubr.bf16.gmra.mrb[156].mxu1 %v12125_v6  ;;  %v12145_v6 = vld [vmem:[#allocation3 + $0x228] ss:$16 sps:$4 sm:$0xff]  }
 0x792   : > { %9131 = vmatprep.mubr.bf16.mxu1 %v12126_v32  ;;  %v12146_v32 = vld [vmem:[#allocation3 + $0x24c] ss:$16 sps:$4 sm:$0xff]  }
 0x799   : > { %9132 = vmatmul.mubr.bf16.gmra.mrb[160].mxu1 %v12127_v48  ;;  %v12147_v48 = vld [vmem:[#allocation3 + $0x248] ss:$16 sps:$4 sm:$0xff]  }
 0x79a   : > { %9141 = vmatprep.mubr.bf16.mxu1 %v12128_v39  ;;  %v12148_v39 = vld [vmem:[#allocation3 + $0x26c] ss:$16 sps:$4 sm:$0xff]  }
 0x7a1   : > { %9142 = vmatmul.mubr.bf16.gmra.mrb[164].mxu1 %v12129_v0  ;;  %v12149_v0 = vld [vmem:[#allocation3 + $0x268] ss:$16 sps:$4 sm:$0xff]  }
 0x7a2   : > { %9151 = vmatprep.mubr.bf16.mxu1 %v12130_v28  ;;  %v12150_v28 = vld [vmem:[#allocation3 + $0x28c] ss:$16 sps:$4 sm:$0xff]  }
 0x7a9   : > { %9152 = vmatmul.mubr.bf16.gmra.mrb[168].mxu1 %v12131_v15  ;;  %v12151_v15 = vld [vmem:[#allocation3 + $0x288] ss:$16 sps:$4 sm:$0xff]  }
 0x7aa   : > { %9161 = vmatprep.mubr.bf16.mxu1 %v12132_v42  ;;  %v12152_v42 = vld [vmem:[#allocation3 + $0x2ac] ss:$16 sps:$4 sm:$0xff]  }
 0x7b1   : > { %9162 = vmatmul.mubr.bf16.gmra.mrb[172].mxu1 %v12133_v49  ;;  %v12153_v49 = vld [vmem:[#allocation3 + $0x2a8] ss:$16 sps:$4 sm:$0xff]  }
 0x7b2   : > { %9171 = vmatprep.mubr.bf16.mxu1 %v12134_v10  ;;  %v12154_v10 = vld [vmem:[#allocation3 + $0x2cc] ss:$16 sps:$4 sm:$0xff]  }
 0x7b9   : > { %9172 = vmatmul.mubr.bf16.gmra.mrb[176].mxu1 %v12135_v2  ;;  %v12155_v2 = vld [vmem:[#allocation3 + $0x2c8] ss:$16 sps:$4 sm:$0xff]  }
 0x7ba   : > { %9181 = vmatprep.mubr.bf16.mxu1 %v12136_v3  ;;  %v12156_v3 = vld [vmem:[#allocation3 + $0x2ec] ss:$16 sps:$4 sm:$0xff]  }
 0x7c1   : > { %9182 = vmatmul.mubr.bf16.gmra.mrb[180].mxu1 %v12137_v62  ;;  %v12157_v62 = vld [vmem:[#allocation3 + $0x2e8] ss:$16 sps:$4 sm:$0xff]  }
 0x7c2   : > { %9191 = vmatprep.mubr.bf16.mxu1 %v12138_v1  ;;  %v12158_v1 = vld [vmem:[#allocation3 + $0x30c] ss:$16 sps:$4 sm:$0xff]  }
 0x7c9   : > { %9192 = vmatmul.mubr.bf16.gmra.mrb[184].mxu1 %v12139_v61  ;;  %v12159_v61 = vld [vmem:[#allocation3 + $0x308] ss:$16 sps:$4 sm:$0xff]  }
 0x7ca   : > { %9201 = vmatprep.mubr.bf16.mxu1 %v12140_v44  ;;  %v12160_v44 = vld [vmem:[#allocation3 + $0x32c] ss:$16 sps:$4 sm:$0xff]  }
 0x7d1   : > { %9202 = vmatmul.mubr.bf16.gmra.mrb[188].mxu1 %v12141_v7  ;;  %v12161_v7 = vld [vmem:[#allocation3 + $0x328] ss:$16 sps:$4 sm:$0xff]  }
 0x7d2   : > { %9211 = vmatprep.mubr.bf16.mxu1 %v12142_v12  ;;  %v12162_v12 = vld [vmem:[#allocation3 + $0x34c] ss:$16 sps:$4 sm:$0xff]  }
 0x7d9   : > { %9212 = vmatmul.mubr.bf16.gmra.mrb[192].mxu1 %v12143_v19  ;;  %v12163_v19 = vld [vmem:[#allocation3 + $0x348] ss:$16 sps:$4 sm:$0xff]  }
 0x7da   : > { %9221 = vmatprep.mubr.bf16.mxu1 %v12144_v45  ;;  %v12164_v45 = vld [vmem:[#allocation3 + $0x36c] ss:$16 sps:$4 sm:$0xff]  }
 0x7e1   : > { %9222 = vmatmul.mubr.bf16.gmra.mrb[196].mxu1 %v12145_v6 }
 0x7e2   : > { %9231 = vmatprep.mubr.bf16.mxu1 %v12146_v32  ;;  %v19844_v32 = vld [vmem:[#allocation111_spill] sm:$0xff] }
 0x7e9   : > { %9232 = vmatmul.mubr.bf16.gmra.mrb[200].mxu1 %v12147_v48 }
 0x7ea   : > { %9241 = vmatprep.mubr.bf16.mxu1 %v12148_v39 }
 0x7f1   : > { %9242 = vmatmul.mubr.bf16.gmra.mrb[204].mxu1 %v12149_v0 }
 0x7f2   : > { %9251 = vmatprep.mubr.bf16.mxu1 %v12150_v28 }
 0x7f9   : > { %9252 = vmatmul.mubr.bf16.gmra.mrb[208].mxu1 %v12151_v15 }
 0x7fa   : > { %9261 = vmatprep.mubr.bf16.mxu1 %v12152_v42 }
 0x801   : > { %9262 = vmatmul.mubr.bf16.gmra.mrb[212].mxu1 %v12153_v49 }
 0x802   : > { %9271 = vmatprep.mubr.bf16.mxu1 %v12154_v10 }
 0x809   : > { %9272 = vmatmul.mubr.bf16.gmra.mrb[216].mxu1 %v12155_v2 }
 0x80a   : > { %9281 = vmatprep.mubr.bf16.mxu1 %v12156_v3 }
 0x811   : > { %9282 = vmatmul.mubr.bf16.gmra.mrb[220].mxu1 %v12157_v62 }
 0x812   : > { %9291 = vmatprep.mubr.bf16.mxu1 %v12158_v1  ;;  %v12165_v1 = vld [vmem:[#allocation3 + $0x368] ss:$16 sps:$4 sm:$0xff]  }
 0x819   : > { %9292 = vmatmul.mubr.bf16.gmra.mrb[224].mxu1 %v12159_v61 }
 0x81a   : > { %9301 = vmatprep.mubr.bf16.mxu1 %v12160_v44 }
 0x821   : > { %9302 = vmatmul.mubr.bf16.gmra.mrb[228].mxu1 %v12161_v7  ;;  %v12166_v7 = vld [vmem:[#allocation3 + $0x38c] ss:$16 sps:$4 sm:$0xff]  }
 0x822   : > { %9311 = vmatprep.mubr.bf16.mxu1 %v12162_v12 }
 0x829   : > { %9312 = vmatmul.mubr.bf16.gmra.mrb[232].mxu1 %v12163_v19 }
 0x82a   : > { %9321 = vmatprep.mubr.bf16.mxu1 %v12164_v45 }
 0x82c   : > { %v9053_v6 = vpop.f32.mrb[128].mxu1 }
 0x82d   : > { %v10648_v48 = vadd.f32 %v9053_v6, %v19844_v32  ;;  %v9055_v39 = vpop.f32.mrb[129].mxu1  ;;  %v19845_v6 = vld [vmem:[#allocation158_spill] sm:$0xff] }
 0x82e   : > { %v10649_v0 = vadd.f32 %v9055_v39, %v19844_v32  ;;  %v9057_v28 = vpop.f32.mrb[130].mxu1  ;;  %v19846_v39 = vld [vmem:[#allocation156_spill] sm:$0xff] }
 0x82f   : > { %v9372_v15 = vmul.f32 0.01, %v10648_v48  ;;  %v10650_v42 = vadd.f32 %v9057_v28, %v17050_v8  ;;  %v9059_v49 = vpop.f32.mrb[131].mxu1  ;;  %v19847_v28 = vld [vmem:[#allocation117_spill] sm:$0xff] }
 0x830   : > { %v9373_v10 = vmul.f32 0.01, %v10649_v0  ;;  %v10651_v2 = vadd.f32 %v9059_v49, %v17050_v8 }
 0x831   : > { %v9500_v3 = vmax.f32 %v10648_v48, %v9372_v15  ;;  %v9374_v62 = vmul.f32 0.01, %v10650_v42  ;;  %9322 = vmatmul.mubr.bf16.gmra.mrb[236].mxu1 %v12165_v1  ;;  %v19848_v1 = vld [vmem:[#allocation82_spill] sm:$0xff] }
 0x832   : > { %v9501_v61 = vmax.f32 %v10649_v0, %v9373_v10  ;;  %v9375_v44 = vmul.f32 0.01, %v10651_v2  ;;  %9331 = vmatprep.mubr.bf16.mxu1 %v12166_v7 }
 0x833   : > { %v9502_v12 = vmax.f32 %v10650_v42, %v9374_v62  ;;  %v9628_v32 = vmul.f32 %v9500_v3, %v19845_v6 }
 0x834   : > { %v9503_v19 = vmax.f32 %v10651_v2, %v9375_v44  ;;  %v9063_v45 = vpop.f32.mrb[132].mxu1  ;;  %v9629_v8 = vmul.f32 %v9501_v61, %v19845_v6  ;;  %v12168_v6 = vld [vmem:[#allocation3 + $0x3ac] ss:$16 sps:$4 sm:$0xff]  }
 0x835   : > { %v9630_v55 = vmul.f32 %v9502_v12, %v19846_v39  ;;  %v10652_v14 = vadd.f32 %v9063_v45, %v19847_v28  ;;  %v9065_v56 = vpop.f32.mrb[133].mxu1  ;;  %v12167_v45 = vld [vmem:[#allocation3 + $0x388] ss:$16 sps:$4 sm:$0xff]  }
 0x836   : > { %v9631_v48 = vmul.f32 %v9503_v19, %v19846_v39  ;;  %v10653_v15 = vadd.f32 %v9065_v56, %v19847_v28  ;;  %v9067_v0 = vpop.f32.mrb[134].mxu1  ;;  %v19849_v19 = vld [vmem:[#allocation155_spill] sm:$0xff] }
 0x837   : > { %v9756_v49 = vadd.f32 %v9630_v55, %v9628_v32  ;;  %v9376_v10 = vmul.f32 0.01, %v10652_v14  ;;  %v10654_v42 = vadd.f32 %v9067_v0, %v19848_v1  ;;  %v9069_v2 = vpop.f32.mrb[135].mxu1 }
 0x838   : > { %v9825_v62 = vadd.f32 %v9631_v48, %v9629_v8  ;;  %v9377_v44 = vmul.f32 0.01, %v10653_v15  ;;  %v10655_v3 = vadd.f32 %v9069_v2, %v19848_v1  ;;  %v19850_v8 = vld [vmem:[#allocation162_spill] sm:$0xff] }
 0x839   : > { %v9504_v7 = vmax.f32 %v10652_v14, %v9376_v10  ;;  %v9378_v12 = vmul.f32 0.01, %v10654_v42  ;;  %9332 = vmatmul.mubr.bf16.gmra.mrb[240].mxu1 %v12167_v45 }
 0x83a   : > { %v9505_v21 = vmax.f32 %v10653_v15, %v9377_v44  ;;  %v9379_v61 = vmul.f32 0.01, %v10655_v3  ;;  %9341 = vmatprep.mubr.bf16.mxu1 %v12168_v6 }
 0x83b   : > { %v9632_v56 = vmul.f32 %v9504_v7, %v19849_v19  ;;  %v9506_v39 = vmax.f32 %v10654_v42, %v9378_v12  ;;  %v19852_v7 = vld [vmem:[#allocation37_spill] sm:$0xff] }
 0x83c   : > { %v9633_v55 = vmul.f32 %v9505_v21, %v19849_v19  ;;  %v9507_v32 = vmax.f32 %v10655_v3, %v9379_v61  ;;  %v9073_v28 = vpop.f32.mrb[136].mxu1 }
 0x83d   : > { %v9757_v0 = vadd.f32 %v9756_v49, %v9632_v56  ;;  %v9634_v48 = vmul.f32 %v9506_v39, %v19850_v8  ;;  %v10656_v1 = vadd.f32 %v9073_v28, %v19851_v30  ;;  %v9075_v14 = vpop.f32.mrb[137].mxu1  ;;  %v12169_v56 = vld [vmem:[#allocation3 + $0x3a8] ss:$16 sps:$4 sm:$0xff]  }
 0x83e   : > { %v9826_v10 = vadd.f32 %v9825_v62, %v9633_v55  ;;  %v9635_v2 = vmul.f32 %v9507_v32, %v19850_v8  ;;  %v10657_v15 = vadd.f32 %v9075_v14, %v19851_v30  ;;  %v9077_v44 = vpop.f32.mrb[138].mxu1  ;;  %v12170_v55 = vld [vmem:[#allocation3 + $0x3cc] ss:$16 sps:$4 sm:$0xff]  }
 0x83f   : > { %v9758_v45 = vadd.f32 %v9757_v0, %v9634_v48  ;;  %v9380_v6 = vmul.f32 0.01, %v10656_v1  ;;  %v10658_v42 = vadd.f32 %v9077_v44, %v19852_v7  ;;  %v9079_v12 = vpop.f32.mrb[139].mxu1  ;;  %v19853_v32 = vld [vmem:[#allocation159_spill] sm:$0xff] }
 0x840   : > { %v9827_v21 = vadd.f32 %v9826_v10, %v9635_v2  ;;  %v9381_v3 = vmul.f32 0.01, %v10657_v15  ;;  %v10659_v49 = vadd.f32 %v9079_v12, %v19852_v7  ;;  %v19854_v10 = vld [vmem:[#allocation163_spill] sm:$0xff] }
 0x841   : > { %v9508_v61 = vmax.f32 %v10656_v1, %v9380_v6  ;;  %v9382_v19 = vmul.f32 0.01, %v10658_v42  ;;  %9342 = vmatmul.mubr.bf16.gmra.mrb[244].mxu1 %v12169_v56 }
 0x842   : > { %v9509_v39 = vmax.f32 %v10657_v15, %v9381_v3  ;;  %v9383_v62 = vmul.f32 0.01, %v10659_v49  ;;  %9351 = vmatprep.mubr.bf16.mxu1 %v12170_v55  ;;  %v12171_v55 = vld [vmem:[#allocation3 + $0x3c8] ss:$16 sps:$4 sm:$0xff]  }
 0x843   : > { %v9636_v30 = vmul.f32 %v9508_v61, %v19853_v32  ;;  %v9510_v28 = vmax.f32 %v10658_v42, %v9382_v19 }
 0x844   : > { %v9637_v0 = vmul.f32 %v9509_v39, %v19853_v32  ;;  %v9511_v8 = vmax.f32 %v10659_v49, %v9383_v62  ;;  %v9083_v48 = vpop.f32.mrb[140].mxu1 }
 0x845   : > { %v9759_v14 = vadd.f32 %v9758_v45, %v9636_v30  ;;  %v9638_v2 = vmul.f32 %v9510_v28, %v19854_v10  ;;  %v10660_v44 = vadd.f32 %v9083_v48, %v17070_v43  ;;  %v9085_v1 = vpop.f32.mrb[141].mxu1  ;;  %v12172_v30 = vld [vmem:[#allocation3 + $0x3ec] ss:$16 sps:$4 sm:$0xff]  }
 0x846   : > { %v9828_v6 = vadd.f32 %v9827_v21, %v9637_v0  ;;  %v9639_v7 = vmul.f32 %v9511_v8, %v19854_v10  ;;  %v10661_v15 = vadd.f32 %v9085_v1, %v17070_v43  ;;  %v9087_v12 = vpop.f32.mrb[142].mxu1 }
 0x847   : > { %v9760_v3 = vadd.f32 %v9759_v14, %v9638_v2  ;;  %v9384_v56 = vmul.f32 0.01, %v10660_v44  ;;  %v10662_v42 = vadd.f32 %v9087_v12, %v17079_v18  ;;  %v9089_v61 = vpop.f32.mrb[143].mxu1 }
 0x848   : > { %v9829_v19 = vadd.f32 %v9828_v6, %v9639_v7  ;;  %v9385_v49 = vmul.f32 0.01, %v10661_v15  ;;  %v10663_v45 = vadd.f32 %v9089_v61, %v17079_v18 }
 0x849   : > { %v9512_v39 = vmax.f32 %v10660_v44, %v9384_v56  ;;  %v9386_v62 = vmul.f32 0.01, %v10662_v42  ;;  %9352 = vmatmul.mubr.bf16.gmra.mrb[248].mxu1 %v12171_v55  ;;  %v19855_v56 = vld [vmem:[#allocation114_spill] sm:$0xff] }
 0x84a   : > { %v9513_v32 = vmax.f32 %v10661_v15, %v9385_v49  ;;  %v9387_v21 = vmul.f32 0.01, %v10663_v45  ;;  %9361 = vmatprep.mubr.bf16.mxu1 %v12172_v30 }
 0x84b   : > { %v9640_v43 = vmul.f32 %v9512_v39, %v17441_v53  ;;  %v9514_v28 = vmax.f32 %v10662_v42, %v9386_v62  ;;  %v12173_v62 = vld [vmem:[#allocation3 + $0x3e8] ss:$16 sps:$4 sm:$0xff]  }
 0x84c   : > { %v9641_v0 = vmul.f32 %v9513_v32, %v17441_v53  ;;  %v9515_v8 = vmax.f32 %v10663_v45, %v9387_v21  ;;  %v9093_v48 = vpop.f32.mrb[144].mxu1 }
 0x84d   : > { %v9761_v14 = vadd.f32 %v9760_v3, %v9640_v43  ;;  %v9642_v10 = vmul.f32 %v9514_v28, %v17448_v25  ;;  %v10664_v18 = vadd.f32 %v9093_v48, %v17083_v60  ;;  %v9095_v2 = vpop.f32.mrb[145].mxu1  ;;  %v19856_v28 = vld [vmem:[#allocation161_spill] sm:$0xff] }
 0x84e   : > { %v9830_v44 = vadd.f32 %v9829_v19, %v9641_v0  ;;  %v9643_v1 = vmul.f32 %v9515_v8, %v17448_v25  ;;  %v10665_v6 = vadd.f32 %v9095_v2, %v17083_v60  ;;  %v9097_v7 = vpop.f32.mrb[146].mxu1  ;;  %v19857_v8 = vld [vmem:[#allocation113_spill] sm:$0xff] }
 0x84f   : > { %v9762_v15 = vadd.f32 %v9761_v14, %v9642_v10  ;;  %v9388_v12 = vmul.f32 0.01, %v10664_v18  ;;  %v10666_v42 = vadd.f32 %v9097_v7, %v19855_v56  ;;  %v9099_v61 = vpop.f32.mrb[147].mxu1  ;;  %v19858_v7 = vld [vmem:[#allocation34_spill] sm:$0xff] }
 0x850   : > { %v9831_v53 = vadd.f32 %v9830_v44, %v9643_v1  ;;  %v9389_v49 = vmul.f32 0.01, %v10665_v6  ;;  %v10667_v3 = vadd.f32 %v9099_v61, %v19855_v56 }
 0x851   : > { %v9516_v45 = vmax.f32 %v10664_v18, %v9388_v12  ;;  %v9390_v39 = vmul.f32 0.01, %v10666_v42  ;;  %9362 = vmatmul.mubr.bf16.gmra.mrb[252].mxu1 %v12173_v62 }
 0x852   : > { %v9517_v55 = vmax.f32 %v10665_v6, %v9389_v49  ;;  %v9391_v19 = vmul.f32 0.01, %v10667_v3 }
 0x853   : > { %v9644_v25 = vmul.f32 %v9516_v45, %v17463_v52  ;;  %v9518_v32 = vmax.f32 %v10666_v42, %v9390_v39 }
 0x854   : > { %v9645_v60 = vmul.f32 %v9517_v55, %v17463_v52  ;;  %v9519_v21 = vmax.f32 %v10667_v3, %v9391_v19  ;;  %v9103_v30 = vpop.f32.mrb[148].mxu1 }
 0x855   : > { %v9763_v43 = vadd.f32 %v9762_v15, %v9644_v25  ;;  %v9646_v0 = vmul.f32 %v9518_v32, %v19856_v28  ;;  %v10668_v48 = vadd.f32 %v9103_v30, %v19857_v8  ;;  %v9105_v14 = vpop.f32.mrb[149].mxu1  ;;  %v19859_v32 = vld [vmem:[#allocation160_spill] sm:$0xff] }
 0x856   : > { %v9832_v10 = vadd.f32 %v9831_v53, %v9645_v60  ;;  %v9647_v18 = vmul.f32 %v9519_v21, %v19856_v28  ;;  %v10669_v2 = vadd.f32 %v9105_v14, %v19857_v8  ;;  %v9107_v44 = vpop.f32.mrb[150].mxu1  ;;  %v19860_v21 = vld [vmem:[#allocation124_spill] sm:$0xff] }
 0x857   : > { %v9764_v1 = vadd.f32 %v9763_v43, %v9646_v0  ;;  %v9392_v6 = vmul.f32 0.01, %v10668_v48  ;;  %v10670_v12 = vadd.f32 %v9107_v44, %v19858_v7  ;;  %v9109_v56 = vpop.f32.mrb[151].mxu1 }
 0x858   : > { %v9833_v52 = vadd.f32 %v9832_v10, %v9647_v18  ;;  %v9393_v42 = vmul.f32 0.01, %v10669_v2  ;;  %v10671_v15 = vadd.f32 %v9109_v56, %v19858_v7  ;;  %v19861_v18 = vld [vmem:[#allocation86_spill] sm:$0xff] }
 0x859   : > { %v9520_v61 = vmax.f32 %v10668_v48, %v9392_v6  ;;  %v9394_v49 = vmul.f32 0.01, %v10670_v12 }
 0x85a   : > { %v9521_v3 = vmax.f32 %v10669_v2, %v9393_v42  ;;  %v9395_v45 = vmul.f32 0.01, %v10671_v15 }
 0x85b   : > { %v9648_v53 = vmul.f32 %v9520_v61, %v17486_v5  ;;  %v9522_v39 = vmax.f32 %v10670_v12, %v9394_v49 }
 0x85c   : > { %v9649_v62 = vmul.f32 %v9521_v3, %v17486_v5  ;;  %v9523_v55 = vmax.f32 %v10671_v15, %v9395_v45  ;;  %v9113_v19 = vpop.f32.mrb[152].mxu1 }
 0x85d   : > { %v9765_v25 = vadd.f32 %v9764_v1, %v9648_v53  ;;  %v9650_v60 = vmul.f32 %v9522_v39, %v19859_v32  ;;  %v10672_v30 = vadd.f32 %v9113_v19, %v19860_v21  ;;  %v9115_v43 = vpop.f32.mrb[153].mxu1 }
 0x85e   : > { %v9834_v28 = vadd.f32 %v9833_v52, %v9649_v62  ;;  %v9651_v0 = vmul.f32 %v9523_v55, %v19859_v32  ;;  %v10673_v8 = vadd.f32 %v9115_v43, %v19860_v21  ;;  %v9117_v48 = vpop.f32.mrb[154].mxu1 }
 0x85f   : > { %v9766_v14 = vadd.f32 %v9765_v25, %v9650_v60  ;;  %v9396_v10 = vmul.f32 0.01, %v10672_v30  ;;  %v10674_v2 = vadd.f32 %v9117_v48, %v19861_v18  ;;  %v9119_v44 = vpop.f32.mrb[155].mxu1 }
 0x860   : > { %v9835_v5 = vadd.f32 %v9834_v28, %v9651_v0  ;;  %v9397_v6 = vmul.f32 0.01, %v10673_v8  ;;  %v10675_v1 = vadd.f32 %v9119_v44, %v19861_v18 }
 0x861   : > { %v9524_v7 = vmax.f32 %v10672_v30, %v9396_v10  ;;  %v9398_v12 = vmul.f32 0.01, %v10674_v2  ;;  %v19862_v30 = vld [vmem:[#allocation89_spill] sm:$0xff] }
 0x862   : > { %v9525_v56 = vmax.f32 %v10673_v8, %v9397_v6  ;;  %v9399_v42 = vmul.f32 0.01, %v10675_v1 }
 0x863   : > { %v9652_v52 = vmul.f32 %v9524_v7, %v17517_v9  ;;  %v9526_v15 = vmax.f32 %v10674_v2, %v9398_v12  ;;  %v19863_v2 = vld [vmem:[#allocation167_spill] sm:$0xff]  ;;  %v19864_v7 = vld [vmem:[#allocation164_spill] sm:$0xff] }
 0x864   : > { %v9653_v61 = vmul.f32 %v9525_v56, %v17517_v9  ;;  %v9527_v49 = vmax.f32 %v10675_v1, %v9399_v42  ;;  %v9123_v3 = vpop.f32.mrb[156].mxu1  ;;  %v19865_v56 = vld [vmem:[#allocation91_spill] sm:$0xff] }
 0x865   : > { %v9767_v45 = vadd.f32 %v9766_v14, %v9652_v52  ;;  %v9654_v53 = vmul.f32 %v9526_v15, %v17531_v46  ;;  %v10676_v39 = vadd.f32 %v9123_v3, %v17116_v16  ;;  %v9125_v62 = vpop.f32.mrb[157].mxu1 }
 0x866   : > { %v9836_v55 = vadd.f32 %v9835_v5, %v9653_v61  ;;  %v9655_v19 = vmul.f32 %v9527_v49, %v17531_v46  ;;  %v10677_v25 = vadd.f32 %v9125_v62, %v17116_v16  ;;  %v9127_v32 = vpop.f32.mrb[158].mxu1 }
 0x867   : > { %v9768_v60 = vadd.f32 %v9767_v45, %v9654_v53  ;;  %v9400_v21 = vmul.f32 0.01, %v10676_v39  ;;  %v10678_v43 = vadd.f32 %v9127_v32, %v19862_v30  ;;  %v9129_v28 = vpop.f32.mrb[159].mxu1 }
 0x868   : > { %v9837_v9 = vadd.f32 %v9836_v55, %v9655_v19  ;;  %v9401_v0 = vmul.f32 0.01, %v10677_v25  ;;  %v10679_v8 = vadd.f32 %v9129_v28, %v19862_v30 }
 0x869   : > { %v9528_v48 = vmax.f32 %v10676_v39, %v9400_v21  ;;  %v9402_v14 = vmul.f32 0.01, %v10678_v43  ;;  %v19866_v39 = vld [vmem:[#allocation93_spill] sm:$0xff] }
 0x86a   : > { %v9529_v10 = vmax.f32 %v10677_v25, %v9401_v0  ;;  %v9403_v18 = vmul.f32 0.01, %v10679_v8 }
 0x86b   : > { %v9656_v44 = vmul.f32 %v9528_v48, %v19863_v2  ;;  %v9530_v5 = vmax.f32 %v10678_v43, %v9402_v14 }
 0x86c   : > { %v9657_v46 = vmul.f32 %v9529_v10, %v19863_v2  ;;  %v9531_v16 = vmax.f32 %v10679_v8, %v9403_v18  ;;  %v9133_v6 = vpop.f32.mrb[160].mxu1 }
 0x86d   : > { %v9769_v1 = vadd.f32 %v9768_v60, %v9656_v44  ;;  %v9658_v12 = vmul.f32 %v9530_v5, %v19864_v7  ;;  %v10680_v42 = vadd.f32 %v9133_v6, %v19865_v56  ;;  %v9135_v52 = vpop.f32.mrb[161].mxu1 }
 0x86e   : > { %v9838_v15 = vadd.f32 %v9837_v9, %v9657_v46  ;;  %v9659_v61 = vmul.f32 %v9531_v16, %v19864_v7  ;;  %v10681_v49 = vadd.f32 %v9135_v52, %v19865_v56  ;;  %v9137_v3 = vpop.f32.mrb[162].mxu1  ;;  %v19867_v7 = vld [vmem:[#allocation96_spill] sm:$0xff] }
 0x86f   : > { %v9770_v45 = vadd.f32 %v9769_v1, %v9658_v12  ;;  %v9404_v53 = vmul.f32 0.01, %v10680_v42  ;;  %v10682_v62 = vadd.f32 %v9137_v3, %v19866_v39  ;;  %v9139_v55 = vpop.f32.mrb[163].mxu1 }
 0x870   : > { %v9839_v19 = vadd.f32 %v9838_v15, %v9659_v61  ;;  %v9405_v25 = vmul.f32 0.01, %v10681_v49  ;;  %v10683_v32 = vadd.f32 %v9139_v55, %v19866_v39  ;;  %v19868_v55 = vld [vmem:[#allocation168_spill] sm:$0xff] }
 0x871   : > { %v9532_v60 = vmax.f32 %v10680_v42, %v9404_v53  ;;  %v9406_v21 = vmul.f32 0.01, %v10682_v62 }
 0x872   : > { %v9533_v30 = vmax.f32 %v10681_v49, %v9405_v25  ;;  %v9407_v43 = vmul.f32 0.01, %v10683_v32  ;;  %v19869_v25 = vld [vmem:[#allocation98_spill] sm:$0xff] }
 0x873   : > { %v9660_v28 = vmul.f32 %v9532_v60, %v17576_v4  ;;  %v9534_v9 = vmax.f32 %v10682_v62, %v9406_v21 }
 0x874   : > { %v9661_v0 = vmul.f32 %v9533_v30, %v17576_v4  ;;  %v9535_v8 = vmax.f32 %v10683_v32, %v9407_v43  ;;  %v9143_v48 = vpop.f32.mrb[164].mxu1 }
 0x875   : > { %v9771_v14 = vadd.f32 %v9770_v45, %v9660_v28  ;;  %v9662_v10 = vmul.f32 %v9534_v9, %v17590_v29  ;;  %v10684_v18 = vadd.f32 %v9143_v48, %v17142_v17  ;;  %v9145_v2 = vpop.f32.mrb[165].mxu1 }
 0x876   : > { %v9840_v44 = vadd.f32 %v9839_v19, %v9661_v0  ;;  %v9663_v5 = vmul.f32 %v9535_v8, %v17590_v29  ;;  %v10685_v46 = vadd.f32 %v9145_v2, %v17142_v17  ;;  %v9147_v16 = vpop.f32.mrb[166].mxu1  ;;  %v19870_v8 = vld [vmem:[#allocation100_spill] sm:$0xff] }
 0x877   : > { %v9772_v6 = vadd.f32 %v9771_v14, %v9662_v10  ;;  %v9408_v1 = vmul.f32 0.01, %v10684_v18  ;;  %v10686_v12 = vadd.f32 %v9147_v16, %v19867_v7  ;;  %v9149_v56 = vpop.f32.mrb[167].mxu1  ;;  %v19871_v16 = vld [vmem:[#allocation166_spill] sm:$0xff] }
 0x878   : > { %v9841_v4 = vadd.f32 %v9840_v44, %v9663_v5  ;;  %v9409_v42 = vmul.f32 0.01, %v10685_v46  ;;  %v10687_v52 = vadd.f32 %v9149_v56, %v19867_v7 }
 0x879   : > { %v9536_v15 = vmax.f32 %v10684_v18, %v9408_v1  ;;  %v9410_v61 = vmul.f32 0.01, %v10686_v12 }
 0x87a   : > { %v9537_v49 = vmax.f32 %v10685_v46, %v9409_v42  ;;  %v9411_v3 = vmul.f32 0.01, %v10687_v52 }
 0x87b   : > { %v9664_v45 = vmul.f32 %v9536_v15, %v17603_v63  ;;  %v9538_v53 = vmax.f32 %v10686_v12, %v9410_v61 }
 0x87c   : > { %v9665_v29 = vmul.f32 %v9537_v49, %v17603_v63  ;;  %v9539_v17 = vmax.f32 %v10687_v52, %v9411_v3  ;;  %v9153_v39 = vpop.f32.mrb[168].mxu1 }
 0x87d   : > { %v9773_v62 = vadd.f32 %v9772_v6, %v9664_v45  ;;  %v9666_v19 = vmul.f32 %v9538_v53, %v19868_v55  ;;  %v10688_v32 = vadd.f32 %v9153_v39, %v19869_v25  ;;  %v9155_v60 = vpop.f32.mrb[169].mxu1 }
 0x87e   : > { %v9842_v21 = vadd.f32 %v9841_v4, %v9665_v29  ;;  %v9667_v30 = vmul.f32 %v9539_v17, %v19868_v55  ;;  %v10689_v43 = vadd.f32 %v9155_v60, %v19869_v25  ;;  %v9157_v28 = vpop.f32.mrb[170].mxu1  ;;  %v19872_v17 = vld [vmem:[#allocation103_spill] sm:$0xff] }
 0x87f   : > { %v9774_v9 = vadd.f32 %v9773_v62, %v9666_v19  ;;  %v9412_v0 = vmul.f32 0.01, %v10688_v32  ;;  %v10690_v48 = vadd.f32 %v9157_v28, %v19870_v8  ;;  %v9159_v14 = vpop.f32.mrb[171].mxu1 }
 0x880   : > { %v9843_v63 = vadd.f32 %v9842_v21, %v9667_v30  ;;  %v9413_v10 = vmul.f32 0.01, %v10689_v43  ;;  %v10691_v18 = vadd.f32 %v9159_v14, %v19870_v8 }
 0x881   : > { %v9540_v2 = vmax.f32 %v10688_v32, %v9412_v0  ;;  %v9414_v44 = vmul.f32 0.01, %v10690_v48 }
 0x882   : > { %v9541_v5 = vmax.f32 %v10689_v43, %v9413_v10  ;;  %v9415_v46 = vmul.f32 0.01, %v10691_v18  ;;  %v19873_v43 = vld [vmem:[#allocation165_spill] sm:$0xff] }
 0x883   : > { %v9668_v6 = vmul.f32 %v9540_v2, %v19871_v16  ;;  %v9542_v1 = vmax.f32 %v10690_v48, %v9414_v44  ;;  %v19874_v48 = vld [vmem:[#allocation172_spill] sm:$0xff] }
 0x884   : > { %v9669_v7 = vmul.f32 %v9541_v5, %v19871_v16  ;;  %v9543_v12 = vmax.f32 %v10691_v18, %v9415_v46  ;;  %v9163_v56 = vpop.f32.mrb[172].mxu1 }
 0x885   : > { %v9775_v4 = vadd.f32 %v9774_v9, %v9668_v6  ;;  %v9670_v42 = vmul.f32 %v9542_v1, %v17649_v20  ;;  %v10692_v52 = vadd.f32 %v9163_v56, %v17162_v33  ;;  %v9165_v15 = vpop.f32.mrb[173].mxu1  ;;  %v19876_v1 = vld [vmem:[#allocation121_spill] sm:$0xff] }
 0x886   : > { %v9844_v61 = vadd.f32 %v9843_v63, %v9669_v7  ;;  %v9671_v49 = vmul.f32 %v9543_v12, %v17649_v20  ;;  %v10693_v3 = vadd.f32 %v9165_v15, %v17162_v33  ;;  %v9167_v45 = vpop.f32.mrb[174].mxu1  ;;  %v19875_v63 = vld [vmem:[#allocation120_spill] sm:$0xff] }
 0x887   : > { %v9776_v53 = vadd.f32 %v9775_v4, %v9670_v42  ;;  %v9416_v29 = vmul.f32 0.01, %v10692_v52  ;;  %v10694_v39 = vadd.f32 %v9167_v45, %v19872_v17  ;;  %v9169_v62 = vpop.f32.mrb[175].mxu1 }
 0x888   : > { %v9845_v55 = vadd.f32 %v9844_v61, %v9671_v49  ;;  %v9417_v19 = vmul.f32 0.01, %v10693_v3  ;;  %v10695_v25 = vadd.f32 %v9169_v62, %v19872_v17 }
 0x889   : > { %v9544_v32 = vmax.f32 %v10692_v52, %v9416_v29  ;;  %v9418_v60 = vmul.f32 0.01, %v10694_v39 }
 0x88a   : > { %v9545_v21 = vmax.f32 %v10693_v3, %v9417_v19  ;;  %v9419_v30 = vmul.f32 0.01, %v10695_v25 }
 0x88b   : > { %v9672_v28 = vmul.f32 %v9544_v32, %v19873_v43  ;;  %v9546_v9 = vmax.f32 %v10694_v39, %v9418_v60 }
 0x88c   : > { %v9673_v20 = vmul.f32 %v9545_v21, %v19873_v43  ;;  %v9547_v33 = vmax.f32 %v10695_v25, %v9419_v30  ;;  %v9173_v0 = vpop.f32.mrb[176].mxu1 }
 0x88d   : > { %v9777_v8 = vadd.f32 %v9776_v53, %v9672_v28  ;;  %v9674_v14 = vmul.f32 %v9546_v9, %v19874_v48  ;;  %v10696_v10 = vadd.f32 %v9173_v0, %v19875_v63  ;;  %v9175_v18 = vpop.f32.mrb[177].mxu1  ;;  %v19877_v28 = vld [vmem:[#allocation123_spill] sm:$0xff] }
 0x88e   : > { %v9846_v2 = vadd.f32 %v9845_v55, %v9673_v20  ;;  %v9675_v44 = vmul.f32 %v9547_v33, %v19874_v48  ;;  %v10697_v5 = vadd.f32 %v9175_v18, %v19875_v63  ;;  %v9177_v46 = vpop.f32.mrb[178].mxu1 }
 0x88f   : > { %v9778_v16 = vadd.f32 %v9777_v8, %v9674_v14  ;;  %v9420_v6 = vmul.f32 0.01, %v10696_v10  ;;  %v10698_v7 = vadd.f32 %v9177_v46, %v19876_v1  ;;  %v9179_v12 = vpop.f32.mrb[179].mxu1  ;;  %v19879_v46 = vld [vmem:[#allocation173_spill] sm:$0xff] }
 0x890   : > { %v9847_v56 = vadd.f32 %v9846_v2, %v9675_v44  ;;  %v9421_v4 = vmul.f32 0.01, %v10697_v5  ;;  %v10699_v42 = vadd.f32 %v9179_v12, %v19876_v1 }
 0x891   : > { %v9548_v52 = vmax.f32 %v10696_v10, %v9420_v6  ;;  %v9422_v15 = vmul.f32 0.01, %v10698_v7  ;;  %v19878_v10 = vld [vmem:[#allocation169_spill] sm:$0xff] }
 0x892   : > { %v9549_v61 = vmax.f32 %v10697_v5, %v9421_v4  ;;  %v9423_v49 = vmul.f32 0.01, %v10699_v42  ;;  %v19880_v6 = vld [vmem:[#allocation105_spill] sm:$0xff] }
 0x893   : > { %v9676_v3 = vmul.f32 %v9548_v52, %v17694_v58  ;;  %v9550_v45 = vmax.f32 %v10698_v7, %v9422_v15 }
 0x894   : > { %v9677_v53 = vmul.f32 %v9549_v61, %v17694_v58  ;;  %v9551_v29 = vmax.f32 %v10699_v42, %v9423_v49  ;;  %v9183_v17 = vpop.f32.mrb[180].mxu1  ;;  %v19881_v61 = vld [vmem:[#allocation107_spill] sm:$0xff] }
 0x895   : > { %v9779_v39 = vadd.f32 %v9778_v16, %v9676_v3  ;;  %v9678_v62 = vmul.f32 %v9550_v45, %v17708_v47  ;;  %v10700_v55 = vadd.f32 %v9183_v17, %v17188_v26  ;;  %v9185_v19 = vpop.f32.mrb[181].mxu1 }
 0x896   : > { %v9848_v25 = vadd.f32 %v9847_v56, %v9677_v53  ;;  %v9679_v32 = vmul.f32 %v9551_v29, %v17708_v47  ;;  %v10701_v60 = vadd.f32 %v9185_v19, %v17188_v26  ;;  %v9187_v21 = vpop.f32.mrb[182].mxu1  ;;  %v19882_v19 = vld [vmem:[#allocation171_spill] sm:$0xff] }
 0x897   : > { %v9780_v30 = vadd.f32 %v9779_v39, %v9678_v62  ;;  %v9424_v43 = vmul.f32 0.01, %v10700_v55  ;;  %v10702_v9 = vadd.f32 %v9187_v21, %v19877_v28  ;;  %v9189_v20 = vpop.f32.mrb[183].mxu1 }
 0x898   : > { %v9849_v58 = vadd.f32 %v9848_v25, %v9679_v32  ;;  %v9425_v33 = vmul.f32 0.01, %v10701_v60  ;;  %v10703_v0 = vadd.f32 %v9189_v20, %v19877_v28  ;;  %v19883_v28 = vld [vmem:[#allocation170_spill] sm:$0xff]  ;;  %v19884_v20 = vld [vmem:[#allocation119_spill] sm:$0xff] }
 0x899   : > { %v9552_v8 = vmax.f32 %v10700_v55, %v9424_v43  ;;  %v9426_v48 = vmul.f32 0.01, %v10702_v9 }
 0x89a   : > { %v9553_v14 = vmax.f32 %v10701_v60, %v9425_v33  ;;  %v9427_v63 = vmul.f32 0.01, %v10703_v0 }
 0x89b   : > { %v9680_v18 = vmul.f32 %v9552_v8, %v19878_v10  ;;  %v9554_v2 = vmax.f32 %v10702_v9, %v9426_v48 }
 0x89c   : > { %v9681_v47 = vmul.f32 %v9553_v14, %v19878_v10  ;;  %v9555_v26 = vmax.f32 %v10703_v0, %v9427_v63  ;;  %v9193_v44 = vpop.f32.mrb[184].mxu1 }
 0x89d   : > { %v9781_v5 = vadd.f32 %v9780_v30, %v9680_v18  ;;  %v9682_v16 = vmul.f32 %v9554_v2, %v19879_v46  ;;  %v10704_v1 = vadd.f32 %v9193_v44, %v19880_v6  ;;  %v9195_v7 = vpop.f32.mrb[185].mxu1  ;;  %v19885_v18 = vld [vmem:[#allocation125_spill] sm:$0xff] }
 0x89e   : > { %v9850_v12 = vadd.f32 %v9849_v58, %v9681_v47  ;;  %v9683_v56 = vmul.f32 %v9555_v26, %v19879_v46  ;;  %v10705_v4 = vadd.f32 %v9195_v7, %v19880_v6  ;;  %v9197_v42 = vpop.f32.mrb[186].mxu1  ;;  %v19886_v7 = vld [vmem:[#allocation11_spill] sm:$0xff] }
 0x89f   : > { %v9782_v52 = vadd.f32 %v9781_v5, %v9682_v16  ;;  %v9428_v15 = vmul.f32 0.01, %v10704_v1  ;;  %v10706_v49 = vadd.f32 %v9197_v42, %v19881_v61  ;;  %v9199_v3 = vpop.f32.mrb[187].mxu1 }
 0x8a0   : > { %v9851_v45 = vadd.f32 %v9850_v12, %v9683_v56  ;;  %v9429_v53 = vmul.f32 0.01, %v10705_v4  ;;  %v10707_v29 = vadd.f32 %v9199_v3, %v19881_v61  ;;  %v19887_v61 = vld [vmem:[#allocation174_spill] sm:$0xff]  ;;  %v19888_v3 = vld [vmem:[#allocation128_spill] sm:$0xff] }
 0x8a1   : > { %v9556_v17 = vmax.f32 %v10704_v1, %v9428_v15  ;;  %v9430_v39 = vmul.f32 0.01, %v10706_v49 }
 0x8a2   : > { %v9557_v62 = vmax.f32 %v10705_v4, %v9429_v53  ;;  %v9431_v55 = vmul.f32 0.01, %v10707_v29 }
 0x8a3   : > { %v9684_v25 = vmul.f32 %v9556_v17, %v19882_v19  ;;  %v9558_v32 = vmax.f32 %v10706_v49, %v9430_v39 }
 0x8a4   : > { %v9685_v60 = vmul.f32 %v9557_v62, %v19882_v19  ;;  %v9559_v21 = vmax.f32 %v10707_v29, %v9431_v55  ;;  %v9203_v30 = vpop.f32.mrb[188].mxu1 }
 0x8a5   : > { %v9783_v43 = vadd.f32 %v9782_v52, %v9684_v25  ;;  %v9686_v9 = vmul.f32 %v9558_v32, %v19883_v28  ;;  %v10708_v58 = vadd.f32 %v9203_v30, %v19884_v20  ;;  %v9205_v33 = vpop.f32.mrb[189].mxu1  ;;  %v19889_v25 = vld [vmem:[#allocation133_spill] sm:$0xff] }
 0x8a6   : > { %v9852_v0 = vadd.f32 %v9851_v45, %v9685_v60  ;;  %v9687_v8 = vmul.f32 %v9559_v21, %v19883_v28  ;;  %v10709_v48 = vadd.f32 %v9205_v33, %v19884_v20  ;;  %v9207_v14 = vpop.f32.mrb[190].mxu1  ;;  %v19890_v33 = vld [vmem:[#allocation9_spill] sm:$0xff] }
 0x8a7   : > { %v9784_v63 = vadd.f32 %v9783_v43, %v9686_v9  ;;  %v9432_v10 = vmul.f32 0.01, %v10708_v58  ;;  %v10710_v2 = vadd.f32 %v9207_v14, %v19885_v18  ;;  %v9209_v47 = vpop.f32.mrb[191].mxu1 }
 0x8a8   : > { %v9853_v26 = vadd.f32 %v9852_v0, %v9687_v8  ;;  %v9433_v44 = vmul.f32 0.01, %v10709_v48  ;;  %v10711_v5 = vadd.f32 %v9209_v47, %v19885_v18  ;;  %v19891_v18 = vld [vmem:[#allocation8_spill] sm:$0xff]  ;;  %v19892_v47 = vld [vmem:[#allocation126_spill] sm:$0xff] }
 0x8a9   : > { %v9560_v46 = vmax.f32 %v10708_v58, %v9432_v10  ;;  %v9434_v16 = vmul.f32 0.01, %v10710_v2 }
 0x8aa   : > { %v9561_v6 = vmax.f32 %v10709_v48, %v9433_v44  ;;  %v9435_v1 = vmul.f32 0.01, %v10711_v5 }
 0x8ab   : > { %v9688_v12 = vmul.f32 %v9560_v46, %v19886_v7  ;;  %v9562_v56 = vmax.f32 %v10710_v2, %v9434_v16 }
 0x8ac   : > { %v9689_v4 = vmul.f32 %v9561_v6, %v19886_v7  ;;  %v9563_v42 = vmax.f32 %v10711_v5, %v9435_v1  ;;  %v9213_v52 = vpop.f32.mrb[192].mxu1 }
 0x8ad   : > { %v9785_v15 = vadd.f32 %v9784_v63, %v9688_v12  ;;  %v9690_v49 = vmul.f32 %v9562_v56, %v19887_v61  ;;  %v10712_v45 = vadd.f32 %v9213_v52, %v19888_v3  ;;  %v9215_v53 = vpop.f32.mrb[193].mxu1  ;;  %v19893_v12 = vld [vmem:[#allocation129_spill] sm:$0xff] }
 0x8ae   : > { %v9854_v29 = vadd.f32 %v9853_v26, %v9689_v4  ;;  %v9691_v17 = vmul.f32 %v9563_v42, %v19887_v61  ;;  %v10713_v39 = vadd.f32 %v9215_v53, %v19888_v3  ;;  %v9217_v62 = vpop.f32.mrb[194].mxu1  ;;  %v19894_v53 = vld [vmem:[#allocation175_spill] sm:$0xff] }
 0x8af   : > { %v9786_v55 = vadd.f32 %v9785_v15, %v9690_v49  ;;  %v9436_v19 = vmul.f32 0.01, %v10712_v45  ;;  %v10714_v32 = vadd.f32 %v9217_v62, %v19889_v25  ;;  %v9219_v60 = vpop.f32.mrb[195].mxu1 }
 0x8b0   : > { %v9855_v21 = vadd.f32 %v9854_v29, %v9691_v17  ;;  %v9437_v30 = vmul.f32 0.01, %v10713_v39  ;;  %v10715_v43 = vadd.f32 %v9219_v60, %v19889_v25  ;;  %v19895_v25 = vld [vmem:[#allocation16_spill] sm:$0xff]  ;;  %v19896_v60 = vld [vmem:[#allocation110_spill] sm:$0xff] }
 0x8b1   : > { %v9564_v28 = vmax.f32 %v10712_v45, %v9436_v19  ;;  %v9438_v9 = vmul.f32 0.01, %v10714_v32 }
 0x8b2   : > { %v9565_v20 = vmax.f32 %v10713_v39, %v9437_v30  ;;  %v9439_v58 = vmul.f32 0.01, %v10715_v43 }
 0x8b3   : > { %v9692_v0 = vmul.f32 %v9564_v28, %v19890_v33  ;;  %v9566_v8 = vmax.f32 %v10714_v32, %v9438_v9 }
 0x8b4   : > { %v9693_v48 = vmul.f32 %v9565_v20, %v19890_v33  ;;  %v9567_v14 = vmax.f32 %v10715_v43, %v9439_v58  ;;  %v9223_v63 = vpop.f32.mrb[196].mxu1 }
 0x8b5   : > { %v9787_v10 = vadd.f32 %v9786_v55, %v9692_v0  ;;  %v9694_v2 = vmul.f32 %v9566_v8, %v19891_v18  ;;  %v10716_v26 = vadd.f32 %v9223_v63, %v19892_v47  ;;  %v9225_v44 = vpop.f32.mrb[197].mxu1  ;;  %v19897_v0 = vld [vmem:[#allocation131_spill] sm:$0xff] }
 0x8b6   : > { %v9856_v5 = vadd.f32 %v9855_v21, %v9693_v48  ;;  %v9695_v46 = vmul.f32 %v9567_v14, %v19891_v18  ;;  %v10717_v16 = vadd.f32 %v9225_v44, %v19892_v47  ;;  %v9227_v6 = vpop.f32.mrb[198].mxu1 }
 0x8b7   : > { %v9788_v1 = vadd.f32 %v9787_v10, %v9694_v2  ;;  %v9440_v7 = vmul.f32 0.01, %v10716_v26  ;;  %v10718_v56 = vadd.f32 %v9227_v6, %v19893_v12  ;;  %v9229_v4 = vpop.f32.mrb[199].mxu1 }
 0x8b8   : > { %v9857_v42 = vadd.f32 %v9856_v5, %v9695_v46  ;;  %v9441_v52 = vmul.f32 0.01, %v10717_v16  ;;  %v10719_v15 = vadd.f32 %v9229_v4, %v19893_v12 }
 0x8b9   : > { %v9568_v61 = vmax.f32 %v10716_v26, %v9440_v7  ;;  %v9442_v49 = vmul.f32 0.01, %v10718_v56 }
 0x8ba   : > { %v9569_v3 = vmax.f32 %v10717_v16, %v9441_v52  ;;  %v9443_v45 = vmul.f32 0.01, %v10719_v15 }
 0x8bb   : > { %v9696_v29 = vmul.f32 %v9568_v61, %v19894_v53  ;;  %v9570_v17 = vmax.f32 %v10718_v56, %v9442_v49 }
 0x8bc   : > { %v9697_v39 = vmul.f32 %v9569_v3, %v19894_v53  ;;  %v9571_v62 = vmax.f32 %v10719_v15, %v9443_v45  ;;  %v9233_v55 = vpop.f32.mrb[200].mxu1  ;;  %v19898_v3 = vld [vmem:[#allocation112_spill] sm:$0xff] }
 0x8bd   : > { %v9789_v19 = vadd.f32 %v9788_v1, %v9696_v29  ;;  %v9698_v32 = vmul.f32 %v9570_v17, %v19895_v25  ;;  %v10720_v21 = vadd.f32 %v9233_v55, %v19896_v60  ;;  %v9235_v30 = vpop.f32.mrb[201].mxu1 }
 0x8be   : > { %v9858_v43 = vadd.f32 %v9857_v42, %v9697_v39  ;;  %v9699_v28 = vmul.f32 %v9571_v62, %v19895_v25  ;;  %v10721_v9 = vadd.f32 %v9235_v30, %v19896_v60  ;;  %v9237_v20 = vpop.f32.mrb[202].mxu1 }
 0x8bf   : > { %v9790_v58 = vadd.f32 %v9789_v19, %v9698_v32  ;;  %v9444_v33 = vmul.f32 0.01, %v10720_v21  ;;  %v10722_v8 = vadd.f32 %v9237_v20, %v19897_v0  ;;  %v9239_v48 = vpop.f32.mrb[203].mxu1 }
 0x8c0   : > { %v9859_v14 = vadd.f32 %v9858_v43, %v9699_v28  ;;  %v9445_v63 = vmul.f32 0.01, %v10721_v9  ;;  %v10723_v10 = vadd.f32 %v9239_v48, %v19897_v0 }
 0x8c1   : > { %v9572_v18 = vmax.f32 %v10720_v21, %v9444_v33  ;;  %v9446_v2 = vmul.f32 0.01, %v10722_v8 }
 0x8c2   : > { %v9573_v47 = vmax.f32 %v10721_v9, %v9445_v63  ;;  %v9447_v26 = vmul.f32 0.01, %v10723_v10 }
 0x8c3   : > { %v9700_v44 = vmul.f32 %v9572_v18, %v17875_v27  ;;  %v9574_v5 = vmax.f32 %v10722_v8, %v9446_v2 }
 0x8c4   : > { %v9701_v46 = vmul.f32 %v9573_v47, %v17875_v27  ;;  %v9575_v16 = vmax.f32 %v10723_v10, %v9447_v26  ;;  %v9243_v6 = vpop.f32.mrb[204].mxu1 }
 0x8c5   : > { %v9791_v1 = vadd.f32 %v9790_v58, %v9700_v44  ;;  %v9702_v7 = vmul.f32 %v9574_v5, %v17887_v34  ;;  %v10724_v12 = vadd.f32 %v9243_v6, %v19791_v41  ;;  %v9245_v56 = vpop.f32.mrb[205].mxu1 }
 0x8c6   : > { %v9860_v4 = vadd.f32 %v9859_v14, %v9701_v46  ;;  %v9703_v42 = vmul.f32 %v9575_v16, %v17887_v34  ;;  %v10725_v52 = vadd.f32 %v9245_v56, %v19791_v41  ;;  %v9247_v15 = vpop.f32.mrb[206].mxu1 }
 0x8c7   : > { %v9792_v61 = vadd.f32 %v9791_v1, %v9702_v7  ;;  %v9448_v49 = vmul.f32 0.01, %v10724_v12  ;;  %v10726_v45 = vadd.f32 %v9247_v15, %v19898_v3  ;;  %v9249_v53 = vpop.f32.mrb[207].mxu1 }
 0x8c8   : > { %v9861_v27 = vadd.f32 %v9860_v4, %v9703_v42  ;;  %v9449_v29 = vmul.f32 0.01, %v10725_v52  ;;  %v10727_v17 = vadd.f32 %v9249_v53, %v19898_v3 }
 0x8c9   : > { %v9576_v39 = vmax.f32 %v10724_v12, %v9448_v49  ;;  %v9450_v62 = vmul.f32 0.01, %v10726_v45 }
 0x8ca   : > { %v9577_v55 = vmax.f32 %v10725_v52, %v9449_v29  ;;  %v9451_v19 = vmul.f32 0.01, %v10727_v17 }
 0x8cb   : > { %v9704_v25 = vmul.f32 %v9576_v39, %v17901_v51  ;;  %v9578_v32 = vmax.f32 %v10726_v45, %v9450_v62 }
 0x8cc   : > { %v9705_v34 = vmul.f32 %v9577_v55, %v17901_v51  ;;  %v9579_v41 = vmax.f32 %v10727_v17, %v9451_v19  ;;  %v9253_v60 = vpop.f32.mrb[208].mxu1  ;;  %v19899_v19 = vld [vmem:[#allocation33_spill] sm:$0xff] }
 0x8cd   : > { %v9793_v21 = vadd.f32 %v9792_v61, %v9704_v25  ;;  %v9706_v30 = vmul.f32 %v9578_v32, %v17913_v50  ;;  %v10728_v43 = vadd.f32 %v9253_v60, %v19796_v37  ;;  %v9255_v28 = vpop.f32.mrb[209].mxu1  ;;  %v19900_v32 = vld [vmem:[#allocation135_spill] sm:$0xff] }
 0x8ce   : > { %v9862_v9 = vadd.f32 %v9861_v27, %v9705_v34  ;;  %v9707_v20 = vmul.f32 %v9579_v41, %v17913_v50  ;;  %v10729_v58 = vadd.f32 %v9255_v28, %v19796_v37  ;;  %v9257_v33 = vpop.f32.mrb[210].mxu1 }
 0x8cf   : > { %v9794_v0 = vadd.f32 %v9793_v21, %v9706_v30  ;;  %v9452_v8 = vmul.f32 0.01, %v10728_v43  ;;  %v10730_v48 = vadd.f32 %v9257_v33, %v19797_v54  ;;  %v9259_v14 = vpop.f32.mrb[211].mxu1 }
 0x8d0   : > { %v9863_v51 = vadd.f32 %v9862_v9, %v9707_v20  ;;  %v9453_v63 = vmul.f32 0.01, %v10729_v58  ;;  %v10731_v10 = vadd.f32 %v9259_v14, %v19797_v54  ;;  %v19901_v9 = vld [vmem:[#allocation138_spill] sm:$0xff] }
 0x8d1   : > { %v9580_v18 = vmax.f32 %v10728_v43, %v9452_v8  ;;  %v9454_v2 = vmul.f32 0.01, %v10730_v48 }
 0x8d2   : > { %v9581_v47 = vmax.f32 %v10729_v58, %v9453_v63  ;;  %v9455_v26 = vmul.f32 0.01, %v10731_v10 }
 0x8d3   : > { %v9708_v44 = vmul.f32 %v9580_v18, %v17920_v59  ;;  %v9582_v5 = vmax.f32 %v10730_v48, %v9454_v2 }
 0x8d4   : > { %v9709_v50 = vmul.f32 %v9581_v47, %v17920_v59  ;;  %v9583_v37 = vmax.f32 %v10731_v10, %v9455_v26  ;;  %v9263_v46 = vpop.f32.mrb[212].mxu1 }
 0x8d5   : > { %v9795_v16 = vadd.f32 %v9794_v0, %v9708_v44  ;;  %v9710_v6 = vmul.f32 %v9582_v5, %v17926_v23  ;;  %v10732_v1 = vadd.f32 %v9263_v46, %v19798_v24  ;;  %v9265_v7 = vpop.f32.mrb[213].mxu1 }
 0x8d6   : > { %v9864_v12 = vadd.f32 %v9863_v51, %v9709_v50  ;;  %v9711_v54 = vmul.f32 %v9583_v37, %v17926_v23  ;;  %v10733_v56 = vadd.f32 %v9265_v7, %v19798_v24  ;;  %v9267_v4 = vpop.f32.mrb[214].mxu1 }
 0x8d7   : > { %v9796_v42 = vadd.f32 %v9795_v16, %v9710_v6  ;;  %v9456_v52 = vmul.f32 0.01, %v10732_v1  ;;  %v10734_v15 = vadd.f32 %v9267_v4, %v19799_v36  ;;  %v9269_v61 = vpop.f32.mrb[215].mxu1 }
 0x8d8   : > { %v9865_v59 = vadd.f32 %v9864_v12, %v9711_v54  ;;  %v9457_v49 = vmul.f32 0.01, %v10733_v56  ;;  %v10735_v3 = vadd.f32 %v9269_v61, %v19799_v36 }
 0x8d9   : > { %v9584_v45 = vmax.f32 %v10732_v1, %v9456_v52  ;;  %v9458_v53 = vmul.f32 0.01, %v10734_v15 }
 0x8da   : > { %v9585_v27 = vmax.f32 %v10733_v56, %v9457_v49  ;;  %v9459_v29 = vmul.f32 0.01, %v10735_v3 }
 0x8db   : > { %v9712_v17 = vmul.f32 %v9584_v45, %v17931_v40  ;;  %v9586_v39 = vmax.f32 %v10734_v15, %v9458_v53 }
 0x8dc   : > { %v9713_v23 = vmul.f32 %v9585_v27, %v17931_v40  ;;  %v9587_v24 = vmax.f32 %v10735_v3, %v9459_v29  ;;  %v9273_v62 = vpop.f32.mrb[216].mxu1  ;;  %v19902_v27 = vld [vmem:[#allocation141_spill] sm:$0xff] }
 0x8dd   : > { %v9797_v55 = vadd.f32 %v9796_v42, %v9712_v17  ;;  %v9714_v25 = vmul.f32 %v9586_v39, %v19899_v19  ;;  %v10736_v34 = vadd.f32 %v9273_v62, %v19900_v32  ;;  %v9275_v41 = vpop.f32.mrb[217].mxu1 }
 0x8de   : > { %v9866_v60 = vadd.f32 %v9865_v59, %v9713_v23  ;;  %v9715_v36 = vmul.f32 %v9587_v24, %v19899_v19  ;;  %v10737_v21 = vadd.f32 %v9275_v41, %v19900_v32  ;;  %v9277_v30 = vpop.f32.mrb[218].mxu1  ;;  %v19903_v19 = vld [vmem:[#allocation139_spill] sm:$0xff] }
 0x8df   : > { %v9798_v43 = vadd.f32 %v9797_v55, %v9714_v25  ;;  %v9460_v28 = vmul.f32 0.01, %v10736_v34  ;;  %v10738_v20 = vadd.f32 %v9277_v30, %v19901_v9  ;;  %v9279_v58 = vpop.f32.mrb[219].mxu1 }
 0x8e0   : > { %v9867_v40 = vadd.f32 %v9866_v60, %v9715_v36  ;;  %v9461_v33 = vmul.f32 0.01, %v10737_v21  ;;  %v10739_v0 = vadd.f32 %v9279_v58, %v19901_v9 }
 0x8e1   : > { %v9588_v8 = vmax.f32 %v10736_v34, %v9460_v28  ;;  %v9462_v48 = vmul.f32 0.01, %v10738_v20 }
 0x8e2   : > { %v9589_v14 = vmax.f32 %v10737_v21, %v9461_v33  ;;  %v9463_v51 = vmul.f32 0.01, %v10739_v0 }
 0x8e3   : > { %v9716_v63 = vmul.f32 %v9588_v8, %v17943_v35  ;;  %v9590_v10 = vmax.f32 %v10738_v20, %v9462_v48 }
 0x8e4   : > { %v9717_v18 = vmul.f32 %v9589_v14, %v17943_v35  ;;  %v9591_v2 = vmax.f32 %v10739_v0, %v9463_v51  ;;  %v9283_v47 = vpop.f32.mrb[220].mxu1  ;;  %v19905_v0 = vld [vmem:[#allocation140_spill] sm:$0xff] }
 0x8e5   : > { %v9799_v26 = vadd.f32 %v9798_v43, %v9716_v63  ;;  %v9718_v44 = vmul.f32 %v9590_v10, %v17950_v38  ;;  %v10740_v5 = vadd.f32 %v9283_v47, %v19803_v11  ;;  %v9285_v50 = vpop.f32.mrb[221].mxu1  ;;  %v19904_v43 = vld [vmem:[#allocation31_spill] sm:$0xff]  ;;  %v19906_v47 = vld [vmem:[#allocation144_spill] sm:$0xff] }
 0x8e6   : > { %v9868_v37 = vadd.f32 %v9867_v40, %v9717_v18  ;;  %v9719_v46 = vmul.f32 %v9591_v2, %v17950_v38  ;;  %v10741_v16 = vadd.f32 %v9285_v50, %v19803_v11  ;;  %v9287_v6 = vpop.f32.mrb[222].mxu1 }
 0x8e7   : > { %v9800_v1 = vadd.f32 %v9799_v26, %v9718_v44  ;;  %v9464_v7 = vmul.f32 0.01, %v10740_v5  ;;  %v10742_v12 = vadd.f32 %v9287_v6, %v19804_v22  ;;  %v9289_v54 = vpop.f32.mrb[223].mxu1 }
 0x8e8   : > { %v9869_v35 = vadd.f32 %v9868_v37, %v9719_v46  ;;  %v9465_v56 = vmul.f32 0.01, %v10741_v16  ;;  %v10743_v4 = vadd.f32 %v9289_v54, %v19804_v22 }
 0x8e9   : > { %v9592_v42 = vmax.f32 %v10740_v5, %v9464_v7  ;;  %v9466_v52 = vmul.f32 0.01, %v10742_v12  ;;  %v19907_v7 = vld [vmem:[#allocation21_spill] sm:$0xff] }
 0x8ea   : > { %v9593_v15 = vmax.f32 %v10741_v16, %v9465_v56  ;;  %v9467_v61 = vmul.f32 0.01, %v10743_v4 }
 0x8eb   : > { %v9720_v59 = vmul.f32 %v9592_v42, %v17957_v13  ;;  %v9594_v49 = vmax.f32 %v10742_v12, %v9466_v52  ;;  %v19908_v42 = vld [vmem:[#allocation27_spill] sm:$0xff] }
 0x8ec   : > { %v9721_v38 = vmul.f32 %v9593_v15, %v17957_v13  ;;  %v9595_v11 = vmax.f32 %v10743_v4, %v9467_v61  ;;  %v9293_v3 = vpop.f32.mrb[224].mxu1  ;;  %v19909_v15 = vld [vmem:[#allocation148_spill] sm:$0xff] }
 0x8ed   : > { %v9801_v45 = vadd.f32 %v9800_v1, %v9720_v59  ;;  %v9722_v53 = vmul.f32 %v9594_v49, %v17961_v57  ;;  %v10744_v29 = vadd.f32 %v9293_v3, %v19902_v27  ;;  %v9295_v17 = vpop.f32.mrb[225].mxu1 }
 0x8ee   : > { %v9870_v39 = vadd.f32 %v9869_v35, %v9721_v38  ;;  %v9723_v22 = vmul.f32 %v9595_v11, %v17961_v57  ;;  %v10745_v23 = vadd.f32 %v9295_v17, %v19902_v27  ;;  %v9297_v24 = vpop.f32.mrb[226].mxu1  ;;  %v19910_v27 = vld [vmem:[#allocation142_spill] sm:$0xff] }
 0x8ef   : > { %v9802_v62 = vadd.f32 %v9801_v45, %v9722_v53  ;;  %v9468_v55 = vmul.f32 0.01, %v10744_v29  ;;  %v10746_v25 = vadd.f32 %v9297_v24, %v19903_v19  ;;  %v9299_v32 = vpop.f32.mrb[227].mxu1 }
 0x8f0   : > { %v9871_v13 = vadd.f32 %v9870_v39, %v9723_v22  ;;  %v9469_v34 = vmul.f32 0.01, %v10745_v23  ;;  %v10747_v41 = vadd.f32 %v9299_v32, %v19903_v19 }
 0x8f1   : > { %v9596_v60 = vmax.f32 %v10744_v29, %v9468_v55  ;;  %v9470_v36 = vmul.f32 0.01, %v10746_v25 }
 0x8f2   : > { %v9597_v21 = vmax.f32 %v10745_v23, %v9469_v34  ;;  %v9471_v30 = vmul.f32 0.01, %v10747_v41 }
 0x8f3   : > { %v9724_v28 = vmul.f32 %v9596_v60, %v19904_v43  ;;  %v9598_v9 = vmax.f32 %v10746_v25, %v9470_v36  ;;  %v19911_v25 = vld [vmem:[#allocation7_spill] sm:$0xff] }
 0x8f4   : > { %v9725_v57 = vmul.f32 %v9597_v21, %v19904_v43  ;;  %v9599_v20 = vmax.f32 %v10747_v41, %v9471_v30  ;;  %v9303_v58 = vpop.f32.mrb[228].mxu1  ;;  %v19912_v21 = vld [vmem:[#allocation176_spill] sm:$0xff]  ;;  %v19913_v43 = vld [vmem:[#allocation146_spill] sm:$0xff] }
 0x8f5   : > { %v9803_v40 = vadd.f32 %v9802_v62, %v9724_v28  ;;  %v9726_v33 = vmul.f32 %v9598_v9, %v17973_v31  ;;  %v10748_v8 = vadd.f32 %v9303_v58, %v19905_v0  ;;  %v9305_v48 = vpop.f32.mrb[229].mxu1 }
 0x8f6   : > { %v9872_v14 = vadd.f32 %v9871_v13, %v9725_v57  ;;  %v9727_v51 = vmul.f32 %v9599_v20, %v17973_v31  ;;  %v10749_v63 = vadd.f32 %v9305_v48, %v19905_v0  ;;  %v9307_v10 = vpop.f32.mrb[230].mxu1 }
 0x8f7   : > { %v9804_v18 = vadd.f32 %v9803_v40, %v9726_v33  ;;  %v9472_v2 = vmul.f32 0.01, %v10748_v8  ;;  %v10750_v26 = vadd.f32 %v9307_v10, %v19906_v47  ;;  %v9309_v44 = vpop.f32.mrb[231].mxu1 }
 0x8f8   : > { %v9873_v5 = vadd.f32 %v9872_v14, %v9727_v51  ;;  %v9473_v50 = vmul.f32 0.01, %v10749_v63  ;;  %v10751_v37 = vadd.f32 %v9309_v44, %v19906_v47  ;;  %v19915_v44 = vld [vmem:[#allocation178_spill] sm:$0xff] }
 0x8f9   : > { %v9600_v46 = vmax.f32 %v10748_v8, %v9472_v2  ;;  %v9474_v16 = vmul.f32 0.01, %v10750_v26  ;;  %v19914_v8 = vld [vmem:[#allocation147_spill] sm:$0xff] }
 0x8fa   : > { %v9601_v6 = vmax.f32 %v10749_v63, %v9473_v50  ;;  %v9475_v1 = vmul.f32 0.01, %v10751_v37 }
 0x8fb   : > { %v9728_v12 = vmul.f32 %v9600_v46, %v19907_v7  ;;  %v9602_v54 = vmax.f32 %v10750_v26, %v9474_v16 }
 0x8fc   : > { %v9729_v31 = vmul.f32 %v9601_v6, %v19907_v7  ;;  %v9603_v35 = vmax.f32 %v10751_v37, %v9475_v1  ;;  %v9313_v56 = vpop.f32.mrb[232].mxu1  ;;  %v19916_v1 = vld [vmem:[#allocation180_spill] sm:$0xff] }
 0x8fd   : > { %v9805_v4 = vadd.f32 %v9804_v18, %v9728_v12  ;;  %v9730_v52 = vmul.f32 %v9602_v54, %v19908_v42  ;;  %v10752_v61 = vadd.f32 %v9313_v56, %v19909_v15  ;;  %v9315_v59 = vpop.f32.mrb[233].mxu1  ;;  %v19917_v12 = vld [vmem:[#allocation149_spill] sm:$0xff] }
 0x8fe   : > { %v9874_v49 = vadd.f32 %v9873_v5, %v9729_v31  ;;  %v9731_v38 = vmul.f32 %v9603_v35, %v19908_v42  ;;  %v10753_v11 = vadd.f32 %v9315_v59, %v19909_v15  ;;  %v9317_v3 = vpop.f32.mrb[234].mxu1 }
 0x8ff   : > { %v9806_v45 = vadd.f32 %v9805_v4, %v9730_v52  ;;  %v9476_v53 = vmul.f32 0.01, %v10752_v61  ;;  %v10754_v29 = vadd.f32 %v9317_v3, %v19910_v27  ;;  %v9319_v17 = vpop.f32.mrb[235].mxu1 }
 0x900   : > { %v9875_v39 = vadd.f32 %v9874_v49, %v9731_v38  ;;  %v9477_v22 = vmul.f32 0.01, %v10753_v11  ;;  %v10755_v23 = vadd.f32 %v9319_v17, %v19910_v27  ;;  %v19919_v17 = vld [vmem:[#allocation42_spill] sm:$0xff] }
 0x901   : > { %v9604_v24 = vmax.f32 %v10752_v61, %v9476_v53  ;;  %v9478_v62 = vmul.f32 0.01, %v10754_v29  ;;  %v19918_v61 = vld [vmem:[#allocation145_spill] sm:$0xff] }
 0x902   : > { %v9605_v55 = vmax.f32 %v10753_v11, %v9477_v22  ;;  %v9479_v19 = vmul.f32 0.01, %v10755_v23 }
 0x903   : > { %v9732_v32 = vmul.f32 %v9604_v24, %v19911_v25  ;;  %v9606_v13 = vmax.f32 %v10754_v29, %v9478_v62 }
 0x904   : > { %v9733_v34 = vmul.f32 %v9605_v55, %v19911_v25  ;;  %v9607_v41 = vmax.f32 %v10755_v23, %v9479_v19  ;;  %v9323_v60 = vpop.f32.mrb[236].mxu1  ;;  %v19920_v19 = vld [vmem:[#allocation177_spill] sm:$0xff] }
 0x905   : > { %v9807_v36 = vadd.f32 %v9806_v45, %v9732_v32  ;;  %v9734_v30 = vmul.f32 %v9606_v13, %v19912_v21  ;;  %v10756_v28 = vadd.f32 %v9323_v60, %v19913_v43  ;;  %v9325_v9 = vpop.f32.mrb[237].mxu1  ;;  %v19921_v32 = vld [vmem:[#allocation153_spill] sm:$0xff] }
 0x906   : > { %v9876_v57 = vadd.f32 %v9875_v39, %v9733_v34  ;;  %v9735_v20 = vmul.f32 %v9607_v41, %v19912_v21  ;;  %v10757_v58 = vadd.f32 %v9325_v9, %v19913_v43  ;;  %v9327_v40 = vpop.f32.mrb[238].mxu1 }
 0x907   : > { %v9808_v33 = vadd.f32 %v9807_v36, %v9734_v30  ;;  %v9480_v0 = vmul.f32 0.01, %v10756_v28  ;;  %v10758_v48 = vadd.f32 %v9327_v40, %v19914_v8  ;;  %v9329_v14 = vpop.f32.mrb[239].mxu1 }
 0x908   : > { %v9877_v51 = vadd.f32 %v9876_v57, %v9735_v20  ;;  %v9481_v63 = vmul.f32 0.01, %v10757_v58  ;;  %v10759_v10 = vadd.f32 %v9329_v14, %v19914_v8  ;;  %v19923_v14 = vld [vmem:[#allocation40_spill] sm:$0xff] }
 0x909   : > { %v9608_v18 = vmax.f32 %v10756_v28, %v9480_v0  ;;  %v9482_v2 = vmul.f32 0.01, %v10758_v48  ;;  %v19922_v28 = vld [vmem:[#allocation152_spill] sm:$0xff] }
 0x90a   : > { %v9609_v47 = vmax.f32 %v10757_v58, %v9481_v63  ;;  %v9483_v26 = vmul.f32 0.01, %v10759_v10 }
 0x90b   : > { %v9736_v5 = vmul.f32 %v9608_v18, %v19915_v44  ;;  %v9610_v50 = vmax.f32 %v10758_v48, %v9482_v2 }
 0x90c   : > { %v9737_v37 = vmul.f32 %v9609_v47, %v19915_v44  ;;  %v9611_v46 = vmax.f32 %v10759_v10, %v9483_v26  ;;  %v9333_v16 = vpop.f32.mrb[240].mxu1  ;;  %v19924_v26 = vld [vmem:[#allocation41_spill] sm:$0xff] }
 0x90d   : > { %v9809_v6 = vadd.f32 %v9808_v33, %v9736_v5  ;;  %v9738_v7 = vmul.f32 %v9610_v50, %v19916_v1  ;;  %v10760_v54 = vadd.f32 %v9333_v16, %v19917_v12  ;;  %v9335_v31 = vpop.f32.mrb[241].mxu1  ;;  %v19925_v5 = vld [vmem:[#allocation151_spill] sm:$0xff] }
 0x90e   : > { %v9878_v35 = vadd.f32 %v9877_v51, %v9737_v37  ;;  %v9739_v56 = vmul.f32 %v9611_v46, %v19916_v1  ;;  %v10761_v4 = vadd.f32 %v9335_v31, %v19917_v12  ;;  %v9337_v42 = vpop.f32.mrb[242].mxu1 }
 0x90f   : > { %v9810_v52 = vadd.f32 %v9809_v6, %v9738_v7  ;;  %v9484_v15 = vmul.f32 0.01, %v10760_v54  ;;  %v10762_v59 = vadd.f32 %v9337_v42, %v19918_v61  ;;  %v9339_v49 = vpop.f32.mrb[243].mxu1 }
 0x910   : > { %v9879_v38 = vadd.f32 %v9878_v35, %v9739_v56  ;;  %v9485_v11 = vmul.f32 0.01, %v10761_v4  ;;  %v10763_v3 = vadd.f32 %v9339_v49, %v19918_v61  ;;  %v19927_v49 = vld [vmem:[#allocation38_spill] sm:$0xff] }
 0x911   : > { %v9612_v45 = vmax.f32 %v10760_v54, %v9484_v15  ;;  %v9486_v53 = vmul.f32 0.01, %v10762_v59  ;;  %v19926_v54 = vld [vmem:[#allocation150_spill] sm:$0xff] }
 0x912   : > { %v9613_v27 = vmax.f32 %v10761_v4, %v9485_v11  ;;  %v9487_v29 = vmul.f32 0.01, %v10763_v3 }
 0x913   : > { %v9740_v39 = vmul.f32 %v9612_v45, %v19919_v17  ;;  %v9614_v22 = vmax.f32 %v10762_v59, %v9486_v53 }
 0x914   : > { %v9741_v23 = vmul.f32 %v9613_v27, %v19919_v17  ;;  %v9615_v24 = vmax.f32 %v10763_v3, %v9487_v29  ;;  %v9343_v62 = vpop.f32.mrb[244].mxu1  ;;  %v19928_v29 = vld [vmem:[#allocation50_spill] sm:$0xff] }
 0x915   : > { %v9811_v55 = vadd.f32 %v9810_v52, %v9740_v39  ;;  %v9742_v25 = vmul.f32 %v9614_v22, %v19920_v19  ;;  %v10764_v13 = vadd.f32 %v9343_v62, %v19921_v32  ;;  %v9345_v34 = vpop.f32.mrb[245].mxu1  ;;  %v19929_v39 = vld [vmem:[#allocation157_spill] sm:$0xff] }
 0x916   : > { %v9880_v41 = vadd.f32 %v9879_v38, %v9741_v23  ;;  %v9743_v60 = vmul.f32 %v9615_v24, %v19920_v19  ;;  %v10765_v36 = vadd.f32 %v9345_v34, %v19921_v32  ;;  %v9347_v21 = vpop.f32.mrb[246].mxu1 }
 0x917   : > { %v9812_v30 = vadd.f32 %v9811_v55, %v9742_v25  ;;  %v9488_v43 = vmul.f32 0.01, %v10764_v13  ;;  %v10766_v9 = vadd.f32 %v9347_v21, %v19922_v28  ;;  %v9349_v57 = vpop.f32.mrb[247].mxu1 }
 0x918   : > { %v9881_v20 = vadd.f32 %v9880_v41, %v9743_v60  ;;  %v9489_v58 = vmul.f32 0.01, %v10765_v36  ;;  %v10767_v40 = vadd.f32 %v9349_v57, %v19922_v28  ;;  %v19931_v57 = vld [vmem:[#allocation54_spill] sm:$0xff] }
 0x919   : > { %v9616_v33 = vmax.f32 %v10764_v13, %v9488_v43  ;;  %v9490_v0 = vmul.f32 0.01, %v10766_v9  ;;  %v19930_v13 = vld [vmem:[#allocation154_spill] sm:$0xff] }
 0x91a   : > { %v9617_v8 = vmax.f32 %v10765_v36, %v9489_v58  ;;  %v9491_v48 = vmul.f32 0.01, %v10767_v40 }
 0x91b   : > { %v9744_v51 = vmul.f32 %v9616_v33, %v19923_v14  ;;  %v9618_v63 = vmax.f32 %v10766_v9, %v9490_v0 }
 0x91c   : > { %v9745_v10 = vmul.f32 %v9617_v8, %v19923_v14  ;;  %v9619_v18 = vmax.f32 %v10767_v40, %v9491_v48  ;;  %v9353_v2 = vpop.f32.mrb[248].mxu1  ;;  %v19932_v8 = vld [vmem:[#allocation39_spill] sm:$0xff] }
 0x91d   : > { %v9813_v47 = vadd.f32 %v9812_v30, %v9744_v51  ;;  %v9746_v44 = vmul.f32 %v9618_v63, %v19924_v26  ;;  %v10768_v50 = vadd.f32 %v9353_v2, %v19925_v5  ;;  %v9355_v37 = vpop.f32.mrb[249].mxu1 }
 0x91e   : > { %v9882_v46 = vadd.f32 %v9881_v20, %v9745_v10  ;;  %v9747_v16 = vmul.f32 %v9619_v18, %v19924_v26  ;;  %v10769_v6 = vadd.f32 %v9355_v37, %v19925_v5  ;;  %v9357_v1 = vpop.f32.mrb[250].mxu1 }
 0x91f   : > { %v9814_v7 = vadd.f32 %v9813_v47, %v9746_v44  ;;  %v9492_v12 = vmul.f32 0.01, %v10768_v50  ;;  %v10770_v31 = vadd.f32 %v9357_v1, %v19926_v54  ;;  %v9359_v35 = vpop.f32.mrb[251].mxu1 }
 0x920   : > { %v9883_v56 = vadd.f32 %v9882_v46, %v9747_v16  ;;  %v9493_v4 = vmul.f32 0.01, %v10769_v6  ;;  %v10771_v42 = vadd.f32 %v9359_v35, %v19926_v54 }
 0x921   : > { %v9620_v52 = vmax.f32 %v10768_v50, %v9492_v12  ;;  %v9494_v15 = vmul.f32 0.01, %v10770_v31 }
 0x922   : > { %v9621_v61 = vmax.f32 %v10769_v6, %v9493_v4  ;;  %v9495_v59 = vmul.f32 0.01, %v10771_v42 }
 0x923   : > { %v9748_v38 = vmul.f32 %v9620_v52, %v19927_v49  ;;  %v9622_v11 = vmax.f32 %v10770_v31, %v9494_v15 }
 0x924   : > { %v9749_v3 = vmul.f32 %v9621_v61, %v19927_v49  ;;  %v9623_v45 = vmax.f32 %v10771_v42, %v9495_v59  ;;  %v9363_v53 = vpop.f32.mrb[252].mxu1  ;;  %v19934_v49 = vld [vmem:[#allocation23_spill] sm:$0xff] }
 0x925   : > { %v9815_v27 = vadd.f32 %v9814_v7, %v9748_v38  ;;  %v9750_v17 = vmul.f32 %v9622_v11, %v19928_v29  ;;  %v10772_v22 = vadd.f32 %v9363_v53, %v19929_v39  ;;  %v9365_v23 = vpop.f32.mrb[253].mxu1  ;;  %v19933_v7 = vld [vmem:[#allocation55_spill] sm:$0xff] }
 0x926   : > { %v9884_v24 = vadd.f32 %v9883_v56, %v9749_v3  ;;  %v9751_v62 = vmul.f32 %v9623_v45, %v19928_v29  ;;  %v10773_v55 = vadd.f32 %v9365_v23, %v19929_v39  ;;  %v9367_v19 = vpop.f32.mrb[254].mxu1 }
 0x927   : > { %v9816_v25 = vadd.f32 %v9815_v27, %v9750_v17  ;;  %v9496_v32 = vmul.f32 0.01, %v10772_v22  ;;  %v10774_v34 = vadd.f32 %v9367_v19, %v19930_v13  ;;  %v9369_v41 = vpop.f32.mrb[255].mxu1 }
 0x928   : > { %v9885_v60 = vadd.f32 %v9884_v24, %v9751_v62  ;;  %v9497_v36 = vmul.f32 0.01, %v10773_v55  ;;  %v10775_v21 = vadd.f32 %v9369_v41, %v19930_v13 }
 0x929   : > { %v9624_v30 = vmax.f32 %v10772_v22, %v9496_v32  ;;  %v9498_v43 = vmul.f32 0.01, %v10774_v34 }
 0x92a   : > { %v9625_v28 = vmax.f32 %v10773_v55, %v9497_v36  ;;  %v9499_v9 = vmul.f32 0.01, %v10775_v21 }
 0x92b   : > { %v9752_v20 = vmul.f32 %v9624_v30, %v19931_v57  ;;  %v9626_v58 = vmax.f32 %v10774_v34, %v9498_v43 }
 0x92c   : > { %v9753_v40 = vmul.f32 %v9625_v28, %v19931_v57  ;;  %v9627_v33 = vmax.f32 %v10775_v21, %v9499_v9 }
 0x92d   : > { %v9817_v0 = vadd.f32 %v9816_v25, %v9752_v20  ;;  %v9754_v48 = vmul.f32 %v9626_v58, %v19932_v8 }
 0x92e   : > { %v9886_v14 = vadd.f32 %v9885_v60, %v9753_v40  ;;  %v9755_v51 = vmul.f32 %v9627_v33, %v19932_v8 }
 0x92f   : > { %v9818_v63 = vadd.f32 %v9817_v0, %v9754_v48 }
 0x930   : > { %v9887_v10 = vadd.f32 %v9886_v14, %v9755_v51 }
 0x931   : > { %v9819_v18 = vrot.slane %v9818_v63, 4 }
 0x932   : > { %v9888_v2 = vrot.slane %v9887_v10, 4 }
 0x933   : > { %v9820_v47 = vadd.f32 %v9819_v18, %v9818_v63 }
 0x934   : > { %v9889_v26 = vadd.f32 %v9888_v2, %v9887_v10 }
 0x935   : > { %v9821_v44 = vrot.slane %v9820_v47, 2 }
 0x936   : > { %v9890_v5 = vrot.slane %v9889_v26, 2 }
 0x937   : > { %v9822_v50 = vadd.f32 %v9821_v44, %v9820_v47 }
 0x938   : > { %v9891_v37 = vadd.f32 %v9890_v5, %v9889_v26 }
 0x939   : > { %v9823_v46 = vrot.slane %v9822_v50, 1 }
 0x93a   : > { %v9892_v16 = vrot.slane %v9891_v37, 1 }
 0x93b   : > { %v9824_v6 = vadd.f32 %v9823_v46, %v9822_v50 }
 0x93c   : > { %v9893_v1 = vadd.f32 %v9892_v16, %v9891_v37 }
 0x93d   : > { %v9894_v12 = vadd.f32 %v9824_v6, %v19933_v7 }
 0x93e   : > { %v9895_v54 = vadd.f32 %v9893_v1, %v19933_v7 }
 0x93f   : > { %v10259_v31 = vmul.f32 -1.442695, %v9894_v12 }
 0x940   : > { %v10260_v35 = vmul.f32 -1.442695, %v9895_v54 }
 0x941   : > { %11782 = vpow2.f32 %v10259_v31 }
 0x942   : > { %11784 = vpow2.f32 %v10260_v35 }
 0x94b   : > { %v11783_v56 = vpop.eup %11782 }
 0x94c   : > { %v11785_v4 = vpop.eup %11784  ;;  %v9902_v42 = vadd.f32 1.0, %v11783_v56 }
 0x94d   : > { %v9903_v52 = vadd.f32 1.0, %v11785_v4 }
 0x94e   : > { %11786 = vrcp.f32 %v9902_v42 }
 0x94f   : > { %11788 = vrcp.f32 %v9903_v52 }
 0x958   : > { %v11787_v15 = vpop.eup %11786 }
 0x959   : > { %v11789_v61 = vpop.eup %11788 }
 0x95a   : > { %v9910_v59 = vcombine.low %v11787_v15, %v11789_v61 }
 0x95c   : > { %v9917_v38 = vrot.slane %v9910_v59, %v19934_v49 }
 0x95e   : > { %v9924_v11 = vrot.slane %v9917_v38, %v19934_v49 }
 0x960   : > { %10261 = vst.msk [vmem:[%s18076_s29 + $0x2] sm:$0x3] %vm18079_vm0, %v9924_v11 }
 0x961 PF: > { %s19_s23 = sadd.s32 1, %s12212_s23  }
 0x962   : > { %p16_p3 = scmp.ge.s32.totalorder %s19_s23, 4  }
 0x964   :  { %18 = sbr.rel (!%p16_p3) target bundleno = 4 (0x4), region = 81 }
 0x96b   :  { %9948 = vsyncpa [#allocation4], 1 }
 0x96c   :  { %9950 = vsyncpa [#allocation4 + $0x1], 1 }

</bundles_post_ra>
